<compile_context>
chip_gen: v5e
topology: v5e:2x2
jax: 0.10.0
libtpu: 0.0.40
codegen_flags: <defaults>
</compile_context>

<pallas_src>
import numpy as np
import jax
import jax.numpy as jnp
from jax.experimental import pallas as pl
from jax.experimental.pallas import tpu as pltpu

LANES = 128                                  # channel dims padded to lane width
K = 5                                        # LeNet conv kernel size
N_TAPS = K * K                               # 25
H1 = 14                                      # pooled conv1 spatial side (28/2)
P1_ROWS = 200                                # 196 valid rows + 4 pad (8-aligned blocks)
M2 = H1 * H1 - ((K - 1) * H1 + (K - 1))      # 136 shifted-matmul rows for conv2
H2 = 5                                       # pooled conv2 spatial side (10/2)


# ---------------------------------------------------------------------------
# Kernel
# ---------------------------------------------------------------------------
def _conv_taps(a_ref, w_ref, b_ref, m0, width):
    """5x5 'valid' conv over a (rows=h*w, lanes=channels) VMEM ref, as tap-PAIR
    matmuls (K=256 contraction for the 256-deep MXU on v6e/v7x).  The f32
    accumulator stays register-resident.  Returns relu(conv + bias)."""
    offs = [kh * width + kw for kh in range(K) for kw in range(K)]
    acc = None
    for p in range(N_TAPS // 2):                                  # 12 pairs
        a = jnp.concatenate(
            [a_ref[pl.ds(offs[2 * p], m0), :],
             a_ref[pl.ds(offs[2 * p + 1], m0), :]], axis=-1)      # (m0, 256)
        d = jnp.dot(a, w_ref[p], preferred_element_type=jnp.float32)
        acc = d if acc is None else acc + d
    # Odd tail: tap 24 against the first half of the last (zero-padded) pair.
    acc = acc + jnp.dot(a_ref[pl.ds(offs[-1], m0), :],
                        w_ref[N_TAPS // 2][:LANES, :],
                        preferred_element_type=jnp.float32)
    return jnp.maximum(acc + b_ref[...], 0.0)


def _lenet_kernel(p_ref, w1_ref, b1_ref, w2_ref, b2_ref, s2_ref,
                  w3_ref, b3_ref, wf1_ref, bf1_ref, wf2_ref, bf2_ref,
                  out_ref, a1_s, a2_s):
    """One grid step == one image; every intermediate lives in VMEM/vregs."""
    # conv1 + bias + ReLU + 2x2 avg-pool.  Patch rows arrive pre-grouped into
    # the four pool blocks (dp,dq), 200 rows each -> pool = mean of the blocks.
    w1 = w1_ref[...]
    b1 = b1_ref[...]
    pooled = None
    for t in range(4):
        y = jnp.dot(p_ref[pl.ds(t * P1_ROWS, P1_ROWS), :], w1,
                    preferred_element_type=jnp.float32)
        y = jnp.maximum(y + b1, 0.0)
        pooled = y if pooled is None else pooled + y
    a1_s[...] = (0.25 * pooled).astype(jnp.bfloat16)              # (200,128) bf16

    # conv2 + bias + ReLU (shifted-matmul over the 14x14 pooled grid), then
    # select the 10x10 valid rows and 2x2 avg-pool via a tiny (25,136) matmul.
    y2 = _conv_taps(a1_s, w2_ref, b2_ref, M2, H1)                 # (136,128) f32
    a2_s[...] = jnp.dot(s2_ref[...], y2.astype(jnp.bfloat16),
                        preferred_element_type=jnp.float32).astype(jnp.bfloat16)

    # conv3 + bias + ReLU: 1x1 spatial output -> single shifted-matmul row.
    y3 = _conv_taps(a2_s, w3_ref, b3_ref, 1, H2)                  # (1,128) f32

    # fc1 + ReLU, fc2.
    h = jnp.maximum(
        jnp.dot(y3.astype(jnp.bfloat16), wf1_ref[...],
                preferred_element_type=jnp.float32) + bf1_ref[...], 0.0)
    o = jnp.dot(h.astype(jnp.bfloat16), wf2_ref[...],
                preferred_element_type=jnp.float32) + bf2_ref[...]
    out_ref[...] = jnp.broadcast_to(o.reshape(1, 1, LANES), out_ref.shape)


# ---------------------------------------------------------------------------
# Host-side (trace-time) parameter / constant preparation
# ---------------------------------------------------------------------------
def _pad_bias(v):
    return jnp.pad(v, (0, LANES - v.shape[0])).reshape(1, LANES).astype(jnp.float32)


def _prep_conv1_w(w):
    # (O, C, 5, 5) -> im2col weight (25*C -> pad 128, O -> pad 128), bf16.
    o, c, kh, kw = w.shape
    wm = jnp.transpose(w, (2, 3, 1, 0)).reshape(kh * kw * c, o)
    return jnp.pad(wm, ((0, LANES - kh * kw * c), (0, LANES - o))).astype(jnp.bfloat16)


def _prep_paired_conv_w(w):
    # (O, C, 5, 5) -> tap-major (25, C_pad128, O_pad128), taps paired along the
    # contraction dim -> (13, 256, 128) bf16 (last pair's 2nd half is zero).
    o, c, kh, kw = w.shape
    wt = jnp.transpose(w, (2, 3, 1, 0)).reshape(kh * kw, c, o)
    wt = jnp.pad(wt, ((0, 1), (0, LANES - c), (0, LANES - o)))
    return wt.reshape((kh * kw + 1) // 2, 2 * LANES, LANES).astype(jnp.bfloat16)


def _prep_fc_w(w):
    # PyTorch Linear weight (out, in) -> (in_pad128, out_pad128), bf16.
    o, i = w.shape
    return jnp.pad(w.T, ((0, LANES - i), (0, LANES - o))).astype(jnp.bfloat16)


def _conv1_patches(x):
    """im2col for conv1 with rows pre-grouped into the four 2x2-pool blocks.
    x: (B, C, 32, 32) -> (B*800, 128) bf16.  Row b*800 + t*200 + (i*14+j) holds
    the 5x5 patch for conv1 output position (2i+dp, 2j+dq), t = dp*2 + dq."""
    bsz, c = x.shape[0], x.shape[1]
    f = c * N_TAPS
    xt = jnp.transpose(x, (0, 2, 3, 1))                            # (B,32,32,C)
    slabs = [xt[:, kh:kh + 28, kw:kw + 28, :] for kh in range(K) for kw in range(K)]
    p = jnp.stack(slabs, axis=3).reshape(bsz, 28, 28, f)           # tap-major feats
    p = p.reshape(bsz, 14, 2, 14, 2, f)                            # (b,i,dp,j,dq,f)
    p = jnp.transpose(p, (0, 2, 4, 1, 3, 5)).reshape(bsz, 4, 196, f)
    p = jnp.pad(p, ((0, 0), (0, 0), (0, P1_ROWS - 196), (0, LANES - f)))
    return p.reshape(bsz * 4 * P1_ROWS, LANES).astype(jnp.bfloat16)


def _pool_select_conv2():
    """(25, 136) constant mapping conv2 shifted-matmul rows (on the 14-wide
    grid) to 5x5 2x2-average-pooled outputs.  Per-image, O(1) in batch."""
    s = np.zeros((H2 * H2, M2), np.float32)
    for i in range(H2):
        for j in range(H2):
            for dp in (0, 1):
                for dq in (0, 1):
                    s[i * H2 + j, (2 * i + dp) * H1 + (2 * j + dq)] = 0.25
    return jnp.asarray(s, jnp.bfloat16)


# ---------------------------------------------------------------------------
# Forward pass
# ---------------------------------------------------------------------------
def lenet_forward(params, x):
    """x: (B, in_channels, 32, 32) NCHW float32 -> (B, num_classes) float32."""
    bsz, cin, h0, w0 = x.shape
    num_classes = params["fc2_w"].shape[0]
    assert (h0, w0) == (32, 32), "LeNet needs 32x32 inputs"
    assert cin * N_TAPS <= LANES and num_classes <= LANES

    operands = (
        _conv1_patches(x),
        _prep_conv1_w(params["conv1_w"]), _pad_bias(params["conv1_b"]),
        _prep_paired_conv_w(params["conv2_w"]), _pad_bias(params["conv2_b"]),
        _pool_select_conv2(),
        _prep_paired_conv_w(params["conv3_w"]), _pad_bias(params["conv3_b"]),
        _prep_fc_w(params["fc1_w"]), _pad_bias(params["fc1_b"]),
        _prep_fc_w(params["fc2_w"]), _pad_bias(params["fc2_b"]),
    )

    def resident(shape):                     # full-array block, constant index
        return pl.BlockSpec(shape, lambda b: (0,) * len(shape))

    in_specs = [pl.BlockSpec((4 * P1_ROWS, LANES), lambda b: (b, 0))]
    in_specs += [resident(op.shape) for op in operands[1:]]

    out = pl.pallas_call(
        _lenet_kernel,
        out_shape=jax.ShapeDtypeStruct((bsz, 8, LANES), jnp.float32),
        grid=(bsz,),
        in_specs=in_specs,
        out_specs=pl.BlockSpec((1, 8, LANES), lambda b: (b, 0, 0)),
        scratch_shapes=[
            pltpu.VMEM((P1_ROWS, LANES), jnp.bfloat16),    # pooled conv1 act
            pltpu.VMEM((H2 * H2, LANES), jnp.bfloat16),    # pooled conv2 act
        ],
        compiler_params=pltpu.CompilerParams(
            dimension_semantics=("parallel",),
            vmem_limit_bytes=32 * 1024 * 1024,
        ),
    )(*operands)
    return out[:, 0, :num_classes]


# ---------------------------------------------------------------------------
# Parameters (deterministic synthetic init) and pure-JAX reference
# ---------------------------------------------------------------------------
def init_lenet_params(key, in_channels=1, num_classes=10):
    keys = jax.random.split(key, 10)

    def w_init(k, shape, fan_in):
        return (jax.random.normal(k, shape, jnp.float32) / jnp.sqrt(fan_in)).astype(jnp.float32)

    return {
        "conv1_w": w_init(keys[0], (6, in_channels, 5, 5), in_channels * 25),
        "conv1_b": w_init(keys[1], (6,), in_channels * 25),
        "conv2_w": w_init(keys[2], (16, 6, 5, 5), 6 * 25),
        "conv2_b": w_init(keys[3], (16,), 6 * 25),
        "conv3_w": w_init(keys[4], (120, 16, 5, 5), 16 * 25),
        "conv3_b": w_init(keys[5], (120,), 16 * 25),
        "fc1_w": w_init(keys[6], (84, 120), 120),   # PyTorch Linear: (out, in)
        "fc1_b": w_init(keys[7], (84,), 120),
        "fc2_w": w_init(keys[8], (num_classes, 84), 84),
        "fc2_b": w_init(keys[9], (num_classes,), 84),
    }


def lenet_reference(params, x):
    """Pure-JAX f32 reference with exact PyTorch LeNet semantics (validation)."""
    def conv(x, w, b):
        y = jax.lax.conv_general_dilated(
            x, w, window_strides=(1, 1), padding="VALID",
            dimension_numbers=("NCHW", "OIHW", "NCHW"))
        return y + b.reshape(1, -1, 1, 1)

    def pool(x):
        n, c, h, w = x.shape
        return x.reshape(n, c, h // 2, 2, w // 2, 2).mean(axis=(3, 5))

    relu = lambda t: jnp.maximum(t, 0.0)
    x = pool(relu(conv(x, params["conv1_w"], params["conv1_b"])))
    x = pool(relu(conv(x, params["conv2_w"], params["conv2_b"])))
    x = relu(conv(x, params["conv3_w"], params["conv3_b"])).reshape(x.shape[0], -1)
    x = relu(x @ params["fc1_w"].T + params["fc1_b"])
    return x @ params["fc2_w"].T + params["fc2_b"]


if __name__ == "__main__":
    key = jax.random.PRNGKey(0)
    k_param, k_x = jax.random.split(key)

    B, C_IN, H, W = 2, 1, 32, 32   # LeNet requires 32x32 input (conv3 -> 1x1)
    params = init_lenet_params(k_param, in_channels=C_IN, num_classes=10)
    x = jax.random.normal(k_x, (B, C_IN, H, W), jnp.float32)

    out = jax.jit(lenet_forward)(params, x)
    out = jax.block_until_ready(out)
    assert out.shape == (B, 10), out.shape

    ref = lenet_reference(params, x)
    np.testing.assert_allclose(np.asarray(out), np.asarray(ref), atol=1e-1, rtol=1e-1)
    print("KERNEL_OK")
</pallas_src>

<mosaic_0001>
module attributes {stable_mosaic.version = 11 : i64} {
  func.func @_lenet_kernel(%arg0: i32, %arg1: memref<800x128xbf16, #tpu.memory_space<vmem>>, %arg2: memref<128x128xbf16, #tpu.memory_space<vmem>>, %arg3: memref<1x128xf32, #tpu.memory_space<vmem>>, %arg4: memref<13x256x128xbf16, #tpu.memory_space<vmem>>, %arg5: memref<1x128xf32, #tpu.memory_space<vmem>>, %arg6: memref<25x136xbf16, #tpu.memory_space<vmem>>, %arg7: memref<13x256x128xbf16, #tpu.memory_space<vmem>>, %arg8: memref<1x128xf32, #tpu.memory_space<vmem>>, %arg9: memref<128x128xbf16, #tpu.memory_space<vmem>>, %arg10: memref<1x128xf32, #tpu.memory_space<vmem>>, %arg11: memref<128x128xbf16, #tpu.memory_space<vmem>>, %arg12: memref<1x128xf32, #tpu.memory_space<vmem>>, %arg13: memref<1x8x128xf32, #tpu.memory_space<vmem>>, %arg14: memref<200x128xbf16, #tpu.memory_space<vmem>>, %arg15: memref<25x128xbf16, #tpu.memory_space<vmem>>) attributes {dimension_semantics = [#tpu.dimension_semantics<parallel>], iteration_bounds = array<i64: 2>, scalar_prefetch = 0 : i64, scratch_operands = 2 : i64, tpu.core_type = #tpu.core_type<tc>, window_params = [{transform_indices = @transform_0, window_bounds = array<i64: 800, 128>}, {pipeline_mode = #tpu.pipeline_mode<synchronous>, transform_indices = @transform_1, window_bounds = array<i64: 128, 128>}, {pipeline_mode = #tpu.pipeline_mode<synchronous>, transform_indices = @transform_2, window_bounds = array<i64: 1, 128>}, {pipeline_mode = #tpu.pipeline_mode<synchronous>, transform_indices = @transform_3, window_bounds = array<i64: 13, 256, 128>}, {pipeline_mode = #tpu.pipeline_mode<synchronous>, transform_indices = @transform_4, window_bounds = array<i64: 1, 128>}, {pipeline_mode = #tpu.pipeline_mode<synchronous>, transform_indices = @transform_5, window_bounds = array<i64: 25, 136>}, {pipeline_mode = #tpu.pipeline_mode<synchronous>, transform_indices = @transform_6, window_bounds = array<i64: 13, 256, 128>}, {pipeline_mode = #tpu.pipeline_mode<synchronous>, transform_indices = @transform_7, window_bounds = array<i64: 1, 128>}, {pipeline_mode = #tpu.pipeline_mode<synchronous>, transform_indices = @transform_8, window_bounds = array<i64: 128, 128>}, {pipeline_mode = #tpu.pipeline_mode<synchronous>, transform_indices = @transform_9, window_bounds = array<i64: 1, 128>}, {pipeline_mode = #tpu.pipeline_mode<synchronous>, transform_indices = @transform_10, window_bounds = array<i64: 128, 128>}, {pipeline_mode = #tpu.pipeline_mode<synchronous>, transform_indices = @transform_11, window_bounds = array<i64: 1, 128>}, {transform_indices = @transform_12, window_bounds = array<i64: 1, 8, 128>}]} {
    %c0 = arith.constant 0 : index
    %c0_0 = arith.constant 0 : index
    %0 = vector.load %arg2[%c0, %c0_0] : memref<128x128xbf16, #tpu.memory_space<vmem>>, vector<128x128xbf16>
    %c0_1 = arith.constant 0 : index
    %c0_2 = arith.constant 0 : index
    %1 = vector.load %arg3[%c0_1, %c0_2] : memref<1x128xf32, #tpu.memory_space<vmem>>, vector<1x128xf32>
    %c0_3 = arith.constant 0 : index
    %c0_4 = arith.constant 0 : index
    %2 = vector.load %arg1[%c0_3, %c0_4] : memref<800x128xbf16, #tpu.memory_space<vmem>>, vector<200x128xbf16>
    %cst = arith.constant dense<0.000000e+00> : vector<200x128xf32>
    %3 = tpu.matmul %2, %0, %cst {dimension_numbers = #tpu.dot_dimension_numbers<[1], [0], [0], [1], [0, 0, 1, 1], [], []>} : vector<200x128xbf16>, vector<128x128xbf16>, vector<200x128xf32> -> vector<200x128xf32>
    %4 = vector.broadcast %1 : vector<1x128xf32> to vector<200x128xf32>
    %5 = arith.addf %3, %4 : vector<200x128xf32>
    %cst_5 = arith.constant 0.000000e+00 : f32
    %6 = vector.broadcast %cst_5 : f32 to vector<200x128xf32>
    %7 = arith.maximumf %5, %6 : vector<200x128xf32>
    %c200 = arith.constant 200 : index
    %c0_6 = arith.constant 0 : index
    %8 = vector.load %arg1[%c200, %c0_6] : memref<800x128xbf16, #tpu.memory_space<vmem>>, vector<200x128xbf16>
    %cst_7 = arith.constant dense<0.000000e+00> : vector<200x128xf32>
    %9 = tpu.matmul %8, %0, %cst_7 {dimension_numbers = #tpu.dot_dimension_numbers<[1], [0], [0], [1], [0, 0, 1, 1], [], []>} : vector<200x128xbf16>, vector<128x128xbf16>, vector<200x128xf32> -> vector<200x128xf32>
    %10 = vector.broadcast %1 : vector<1x128xf32> to vector<200x128xf32>
    %11 = arith.addf %9, %10 : vector<200x128xf32>
    %cst_8 = arith.constant 0.000000e+00 : f32
    %12 = vector.broadcast %cst_8 : f32 to vector<200x128xf32>
    %13 = arith.maximumf %11, %12 : vector<200x128xf32>
    %14 = arith.addf %7, %13 : vector<200x128xf32>
    %c400 = arith.constant 400 : index
    %c0_9 = arith.constant 0 : index
    %15 = vector.load %arg1[%c400, %c0_9] : memref<800x128xbf16, #tpu.memory_space<vmem>>, vector<200x128xbf16>
    %cst_10 = arith.constant dense<0.000000e+00> : vector<200x128xf32>
    %16 = tpu.matmul %15, %0, %cst_10 {dimension_numbers = #tpu.dot_dimension_numbers<[1], [0], [0], [1], [0, 0, 1, 1], [], []>} : vector<200x128xbf16>, vector<128x128xbf16>, vector<200x128xf32> -> vector<200x128xf32>
    %17 = vector.broadcast %1 : vector<1x128xf32> to vector<200x128xf32>
    %18 = arith.addf %16, %17 : vector<200x128xf32>
    %cst_11 = arith.constant 0.000000e+00 : f32
    %19 = vector.broadcast %cst_11 : f32 to vector<200x128xf32>
    %20 = arith.maximumf %18, %19 : vector<200x128xf32>
    %21 = arith.addf %14, %20 : vector<200x128xf32>
    %c600 = arith.constant 600 : index
    %c0_12 = arith.constant 0 : index
    %22 = vector.load %arg1[%c600, %c0_12] : memref<800x128xbf16, #tpu.memory_space<vmem>>, vector<200x128xbf16>
    %cst_13 = arith.constant dense<0.000000e+00> : vector<200x128xf32>
    %23 = tpu.matmul %22, %0, %cst_13 {dimension_numbers = #tpu.dot_dimension_numbers<[1], [0], [0], [1], [0, 0, 1, 1], [], []>} : vector<200x128xbf16>, vector<128x128xbf16>, vector<200x128xf32> -> vector<200x128xf32>
    %24 = vector.broadcast %1 : vector<1x128xf32> to vector<200x128xf32>
    %25 = arith.addf %23, %24 : vector<200x128xf32>
    %cst_14 = arith.constant 0.000000e+00 : f32
    %26 = vector.broadcast %cst_14 : f32 to vector<200x128xf32>
    %27 = arith.maximumf %25, %26 : vector<200x128xf32>
    %28 = arith.addf %21, %27 : vector<200x128xf32>
    %cst_15 = arith.constant 2.500000e-01 : f32
    %29 = vector.broadcast %cst_15 : f32 to vector<200x128xf32>
    %30 = arith.mulf %29, %28 : vector<200x128xf32>
    %31 = arith.truncf %30 : vector<200x128xf32> to vector<200x128xbf16>
    %c0_16 = arith.constant 0 : index
    %c0_17 = arith.constant 0 : index
    %32 = vector.load %arg14[%c0_16, %c0_17] : memref<200x128xbf16, #tpu.memory_space<vmem>>, vector<200x128xbf16>
    tpu.vector_store %arg14[%c0_16, %c0_17], %31 {strides = array<i32>} : memref<200x128xbf16, #tpu.memory_space<vmem>>, vector<200x128xbf16>,
    %c0_18 = arith.constant 0 : index
    %c0_19 = arith.constant 0 : index
    %33 = vector.load %arg14[%c0_18, %c0_19] : memref<200x128xbf16, #tpu.memory_space<vmem>>, vector<136x128xbf16>
    %c1 = arith.constant 1 : index
    %c0_20 = arith.constant 0 : index
    %34 = vector.load %arg14[%c1, %c0_20] : memref<200x128xbf16, #tpu.memory_space<vmem>>, vector<136x128xbf16>
    %35 = tpu.concatenate %33, %34 in 1 : vector<136x128xbf16>, vector<136x128xbf16> -> vector<136x256xbf16>
    %c0_21 = arith.constant 0 : index
    %c0_22 = arith.constant 0 : index
    %c0_23 = arith.constant 0 : index
    %36 = vector.load %arg4[%c0_21, %c0_22, %c0_23] : memref<13x256x128xbf16, #tpu.memory_space<vmem>>, vector<1x256x128xbf16>
    %37 = vector.shape_cast %36 : vector<1x256x128xbf16> to vector<256x128xbf16>
    %cst_24 = arith.constant dense<0.000000e+00> : vector<136x128xf32>
    %38 = tpu.matmul %35, %37, %cst_24 {dimension_numbers = #tpu.dot_dimension_numbers<[1], [0], [0], [1], [0, 0, 1, 1], [], []>} : vector<136x256xbf16>, vector<256x128xbf16>, vector<136x128xf32> -> vector<136x128xf32>
    %c2 = arith.constant 2 : index
    %c0_25 = arith.constant 0 : index
    %39 = vector.load %arg14[%c2, %c0_25] : memref<200x128xbf16, #tpu.memory_space<vmem>>, vector<136x128xbf16>
    %c3 = arith.constant 3 : index
    %c0_26 = arith.constant 0 : index
    %40 = vector.load %arg14[%c3, %c0_26] : memref<200x128xbf16, #tpu.memory_space<vmem>>, vector<136x128xbf16>
    %41 = tpu.concatenate %39, %40 in 1 : vector<136x128xbf16>, vector<136x128xbf16> -> vector<136x256xbf16>
    %c1_27 = arith.constant 1 : index
    %c0_28 = arith.constant 0 : index
    %c0_29 = arith.constant 0 : index
    %42 = vector.load %arg4[%c1_27, %c0_28, %c0_29] : memref<13x256x128xbf16, #tpu.memory_space<vmem>>, vector<1x256x128xbf16>
    %43 = vector.shape_cast %42 : vector<1x256x128xbf16> to vector<256x128xbf16>
    %cst_30 = arith.constant dense<0.000000e+00> : vector<136x128xf32>
    %44 = tpu.matmul %41, %43, %cst_30 {dimension_numbers = #tpu.dot_dimension_numbers<[1], [0], [0], [1], [0, 0, 1, 1], [], []>} : vector<136x256xbf16>, vector<256x128xbf16>, vector<136x128xf32> -> vector<136x128xf32>
    %45 = arith.addf %38, %44 : vector<136x128xf32>
    %c4 = arith.constant 4 : index
    %c0_31 = arith.constant 0 : index
    %46 = vector.load %arg14[%c4, %c0_31] : memref<200x128xbf16, #tpu.memory_space<vmem>>, vector<136x128xbf16>
    %c14 = arith.constant 14 : index
    %c0_32 = arith.constant 0 : index
    %47 = vector.load %arg14[%c14, %c0_32] : memref<200x128xbf16, #tpu.memory_space<vmem>>, vector<136x128xbf16>
    %48 = tpu.concatenate %46, %47 in 1 : vector<136x128xbf16>, vector<136x128xbf16> -> vector<136x256xbf16>
    %c2_33 = arith.constant 2 : index
    %c0_34 = arith.constant 0 : index
    %c0_35 = arith.constant 0 : index
    %49 = vector.load %arg4[%c2_33, %c0_34, %c0_35] : memref<13x256x128xbf16, #tpu.memory_space<vmem>>, vector<1x256x128xbf16>
    %50 = vector.shape_cast %49 : vector<1x256x128xbf16> to vector<256x128xbf16>
    %cst_36 = arith.constant dense<0.000000e+00> : vector<136x128xf32>
    %51 = tpu.matmul %48, %50, %cst_36 {dimension_numbers = #tpu.dot_dimension_numbers<[1], [0], [0], [1], [0, 0, 1, 1], [], []>} : vector<136x256xbf16>, vector<256x128xbf16>, vector<136x128xf32> -> vector<136x128xf32>
    %52 = arith.addf %45, %51 : vector<136x128xf32>
    %c15 = arith.constant 15 : index
    %c0_37 = arith.constant 0 : index
    %53 = vector.load %arg14[%c15, %c0_37] : memref<200x128xbf16, #tpu.memory_space<vmem>>, vector<136x128xbf16>
    %c16 = arith.constant 16 : index
    %c0_38 = arith.constant 0 : index
    %54 = vector.load %arg14[%c16, %c0_38] : memref<200x128xbf16, #tpu.memory_space<vmem>>, vector<136x128xbf16>
    %55 = tpu.concatenate %53, %54 in 1 : vector<136x128xbf16>, vector<136x128xbf16> -> vector<136x256xbf16>
    %c3_39 = arith.constant 3 : index
    %c0_40 = arith.constant 0 : index
    %c0_41 = arith.constant 0 : index
    %56 = vector.load %arg4[%c3_39, %c0_40, %c0_41] : memref<13x256x128xbf16, #tpu.memory_space<vmem>>, vector<1x256x128xbf16>
    %57 = vector.shape_cast %56 : vector<1x256x128xbf16> to vector<256x128xbf16>
    %cst_42 = arith.constant dense<0.000000e+00> : vector<136x128xf32>
    %58 = tpu.matmul %55, %57, %cst_42 {dimension_numbers = #tpu.dot_dimension_numbers<[1], [0], [0], [1], [0, 0, 1, 1], [], []>} : vector<136x256xbf16>, vector<256x128xbf16>, vector<136x128xf32> -> vector<136x128xf32>
    %59 = arith.addf %52, %58 : vector<136x128xf32>
    %c17 = arith.constant 17 : index
    %c0_43 = arith.constant 0 : index
    %60 = vector.load %arg14[%c17, %c0_43] : memref<200x128xbf16, #tpu.memory_space<vmem>>, vector<136x128xbf16>
    %c18 = arith.constant 18 : index
    %c0_44 = arith.constant 0 : index
    %61 = vector.load %arg14[%c18, %c0_44] : memref<200x128xbf16, #tpu.memory_space<vmem>>, vector<136x128xbf16>
    %62 = tpu.concatenate %60, %61 in 1 : vector<136x128xbf16>, vector<136x128xbf16> -> vector<136x256xbf16>
    %c4_45 = arith.constant 4 : index
    %c0_46 = arith.constant 0 : index
    %c0_47 = arith.constant 0 : index
    %63 = vector.load %arg4[%c4_45, %c0_46, %c0_47] : memref<13x256x128xbf16, #tpu.memory_space<vmem>>, vector<1x256x128xbf16>
    %64 = vector.shape_cast %63 : vector<1x256x128xbf16> to vector<256x128xbf16>
    %cst_48 = arith.constant dense<0.000000e+00> : vector<136x128xf32>
    %65 = tpu.matmul %62, %64, %cst_48 {dimension_numbers = #tpu.dot_dimension_numbers<[1], [0], [0], [1], [0, 0, 1, 1], [], []>} : vector<136x256xbf16>, vector<256x128xbf16>, vector<136x128xf32> -> vector<136x128xf32>
    %66 = arith.addf %59, %65 : vector<136x128xf32>
    %c28 = arith.constant 28 : index
    %c0_49 = arith.constant 0 : index
    %67 = vector.load %arg14[%c28, %c0_49] : memref<200x128xbf16, #tpu.memory_space<vmem>>, vector<136x128xbf16>
    %c29 = arith.constant 29 : index
    %c0_50 = arith.constant 0 : index
    %68 = vector.load %arg14[%c29, %c0_50] : memref<200x128xbf16, #tpu.memory_space<vmem>>, vector<136x128xbf16>
    %69 = tpu.concatenate %67, %68 in 1 : vector<136x128xbf16>, vector<136x128xbf16> -> vector<136x256xbf16>
    %c5 = arith.constant 5 : index
    %c0_51 = arith.constant 0 : index
    %c0_52 = arith.constant 0 : index
    %70 = vector.load %arg4[%c5, %c0_51, %c0_52] : memref<13x256x128xbf16, #tpu.memory_space<vmem>>, vector<1x256x128xbf16>
    %71 = vector.shape_cast %70 : vector<1x256x128xbf16> to vector<256x128xbf16>
    %cst_53 = arith.constant dense<0.000000e+00> : vector<136x128xf32>
    %72 = tpu.matmul %69, %71, %cst_53 {dimension_numbers = #tpu.dot_dimension_numbers<[1], [0], [0], [1], [0, 0, 1, 1], [], []>} : vector<136x256xbf16>, vector<256x128xbf16>, vector<136x128xf32> -> vector<136x128xf32>
    %73 = arith.addf %66, %72 : vector<136x128xf32>
    %c30 = arith.constant 30 : index
    %c0_54 = arith.constant 0 : index
    %74 = vector.load %arg14[%c30, %c0_54] : memref<200x128xbf16, #tpu.memory_space<vmem>>, vector<136x128xbf16>
    %c31 = arith.constant 31 : index
    %c0_55 = arith.constant 0 : index
    %75 = vector.load %arg14[%c31, %c0_55] : memref<200x128xbf16, #tpu.memory_space<vmem>>, vector<136x128xbf16>
    %76 = tpu.concatenate %74, %75 in 1 : vector<136x128xbf16>, vector<136x128xbf16> -> vector<136x256xbf16>
    %c6 = arith.constant 6 : index
    %c0_56 = arith.constant 0 : index
    %c0_57 = arith.constant 0 : index
    %77 = vector.load %arg4[%c6, %c0_56, %c0_57] : memref<13x256x128xbf16, #tpu.memory_space<vmem>>, vector<1x256x128xbf16>
    %78 = vector.shape_cast %77 : vector<1x256x128xbf16> to vector<256x128xbf16>
    %cst_58 = arith.constant dense<0.000000e+00> : vector<136x128xf32>
    %79 = tpu.matmul %76, %78, %cst_58 {dimension_numbers = #tpu.dot_dimension_numbers<[1], [0], [0], [1], [0, 0, 1, 1], [], []>} : vector<136x256xbf16>, vector<256x128xbf16>, vector<136x128xf32> -> vector<136x128xf32>
    %80 = arith.addf %73, %79 : vector<136x128xf32>
    %c32 = arith.constant 32 : index
    %c0_59 = arith.constant 0 : index
    %81 = vector.load %arg14[%c32, %c0_59] : memref<200x128xbf16, #tpu.memory_space<vmem>>, vector<136x128xbf16>
    %c42 = arith.constant 42 : index
    %c0_60 = arith.constant 0 : index
    %82 = vector.load %arg14[%c42, %c0_60] : memref<200x128xbf16, #tpu.memory_space<vmem>>, vector<136x128xbf16>
    %83 = tpu.concatenate %81, %82 in 1 : vector<136x128xbf16>, vector<136x128xbf16> -> vector<136x256xbf16>
    %c7 = arith.constant 7 : index
    %c0_61 = arith.constant 0 : index
    %c0_62 = arith.constant 0 : index
    %84 = vector.load %arg4[%c7, %c0_61, %c0_62] : memref<13x256x128xbf16, #tpu.memory_space<vmem>>, vector<1x256x128xbf16>
    %85 = vector.shape_cast %84 : vector<1x256x128xbf16> to vector<256x128xbf16>
    %cst_63 = arith.constant dense<0.000000e+00> : vector<136x128xf32>
    %86 = tpu.matmul %83, %85, %cst_63 {dimension_numbers = #tpu.dot_dimension_numbers<[1], [0], [0], [1], [0, 0, 1, 1], [], []>} : vector<136x256xbf16>, vector<256x128xbf16>, vector<136x128xf32> -> vector<136x128xf32>
    %87 = arith.addf %80, %86 : vector<136x128xf32>
    %c43 = arith.constant 43 : index
    %c0_64 = arith.constant 0 : index
    %88 = vector.load %arg14[%c43, %c0_64] : memref<200x128xbf16, #tpu.memory_space<vmem>>, vector<136x128xbf16>
    %c44 = arith.constant 44 : index
    %c0_65 = arith.constant 0 : index
    %89 = vector.load %arg14[%c44, %c0_65] : memref<200x128xbf16, #tpu.memory_space<vmem>>, vector<136x128xbf16>
    %90 = tpu.concatenate %88, %89 in 1 : vector<136x128xbf16>, vector<136x128xbf16> -> vector<136x256xbf16>
    %c8 = arith.constant 8 : index
    %c0_66 = arith.constant 0 : index
    %c0_67 = arith.constant 0 : index
    %91 = vector.load %arg4[%c8, %c0_66, %c0_67] : memref<13x256x128xbf16, #tpu.memory_space<vmem>>, vector<1x256x128xbf16>
    %92 = vector.shape_cast %91 : vector<1x256x128xbf16> to vector<256x128xbf16>
    %cst_68 = arith.constant dense<0.000000e+00> : vector<136x128xf32>
    %93 = tpu.matmul %90, %92, %cst_68 {dimension_numbers = #tpu.dot_dimension_numbers<[1], [0], [0], [1], [0, 0, 1, 1], [], []>} : vector<136x256xbf16>, vector<256x128xbf16>, vector<136x128xf32> -> vector<136x128xf32>
    %94 = arith.addf %87, %93 : vector<136x128xf32>
    %c45 = arith.constant 45 : index
    %c0_69 = arith.constant 0 : index
    %95 = vector.load %arg14[%c45, %c0_69] : memref<200x128xbf16, #tpu.memory_space<vmem>>, vector<136x128xbf16>
    %c46 = arith.constant 46 : index
    %c0_70 = arith.constant 0 : index
    %96 = vector.load %arg14[%c46, %c0_70] : memref<200x128xbf16, #tpu.memory_space<vmem>>, vector<136x128xbf16>
    %97 = tpu.concatenate %95, %96 in 1 : vector<136x128xbf16>, vector<136x128xbf16> -> vector<136x256xbf16>
    %c9 = arith.constant 9 : index
    %c0_71 = arith.constant 0 : index
    %c0_72 = arith.constant 0 : index
    %98 = vector.load %arg4[%c9, %c0_71, %c0_72] : memref<13x256x128xbf16, #tpu.memory_space<vmem>>, vector<1x256x128xbf16>
    %99 = vector.shape_cast %98 : vector<1x256x128xbf16> to vector<256x128xbf16>
    %cst_73 = arith.constant dense<0.000000e+00> : vector<136x128xf32>
    %100 = tpu.matmul %97, %99, %cst_73 {dimension_numbers = #tpu.dot_dimension_numbers<[1], [0], [0], [1], [0, 0, 1, 1], [], []>} : vector<136x256xbf16>, vector<256x128xbf16>, vector<136x128xf32> -> vector<136x128xf32>
    %101 = arith.addf %94, %100 : vector<136x128xf32>
    %c56 = arith.constant 56 : index
    %c0_74 = arith.constant 0 : index
    %102 = vector.load %arg14[%c56, %c0_74] : memref<200x128xbf16, #tpu.memory_space<vmem>>, vector<136x128xbf16>
    %c57 = arith.constant 57 : index
    %c0_75 = arith.constant 0 : index
    %103 = vector.load %arg14[%c57, %c0_75] : memref<200x128xbf16, #tpu.memory_space<vmem>>, vector<136x128xbf16>
    %104 = tpu.concatenate %102, %103 in 1 : vector<136x128xbf16>, vector<136x128xbf16> -> vector<136x256xbf16>
    %c10 = arith.constant 10 : index
    %c0_76 = arith.constant 0 : index
    %c0_77 = arith.constant 0 : index
    %105 = vector.load %arg4[%c10, %c0_76, %c0_77] : memref<13x256x128xbf16, #tpu.memory_space<vmem>>, vector<1x256x128xbf16>
    %106 = vector.shape_cast %105 : vector<1x256x128xbf16> to vector<256x128xbf16>
    %cst_78 = arith.constant dense<0.000000e+00> : vector<136x128xf32>
    %107 = tpu.matmul %104, %106, %cst_78 {dimension_numbers = #tpu.dot_dimension_numbers<[1], [0], [0], [1], [0, 0, 1, 1], [], []>} : vector<136x256xbf16>, vector<256x128xbf16>, vector<136x128xf32> -> vector<136x128xf32>
    %108 = arith.addf %101, %107 : vector<136x128xf32>
    %c58 = arith.constant 58 : index
    %c0_79 = arith.constant 0 : index
    %109 = vector.load %arg14[%c58, %c0_79] : memref<200x128xbf16, #tpu.memory_space<vmem>>, vector<136x128xbf16>
    %c59 = arith.constant 59 : index
    %c0_80 = arith.constant 0 : index
    %110 = vector.load %arg14[%c59, %c0_80] : memref<200x128xbf16, #tpu.memory_space<vmem>>, vector<136x128xbf16>
    %111 = tpu.concatenate %109, %110 in 1 : vector<136x128xbf16>, vector<136x128xbf16> -> vector<136x256xbf16>
    %c11 = arith.constant 11 : index
    %c0_81 = arith.constant 0 : index
    %c0_82 = arith.constant 0 : index
    %112 = vector.load %arg4[%c11, %c0_81, %c0_82] : memref<13x256x128xbf16, #tpu.memory_space<vmem>>, vector<1x256x128xbf16>
    %113 = vector.shape_cast %112 : vector<1x256x128xbf16> to vector<256x128xbf16>
    %cst_83 = arith.constant dense<0.000000e+00> : vector<136x128xf32>
    %114 = tpu.matmul %111, %113, %cst_83 {dimension_numbers = #tpu.dot_dimension_numbers<[1], [0], [0], [1], [0, 0, 1, 1], [], []>} : vector<136x256xbf16>, vector<256x128xbf16>, vector<136x128xf32> -> vector<136x128xf32>
    %115 = arith.addf %108, %114 : vector<136x128xf32>
    %c60 = arith.constant 60 : index
    %c0_84 = arith.constant 0 : index
    %116 = vector.load %arg14[%c60, %c0_84] : memref<200x128xbf16, #tpu.memory_space<vmem>>, vector<136x128xbf16>
    %c12 = arith.constant 12 : index
    %c0_85 = arith.constant 0 : index
    %c0_86 = arith.constant 0 : index
    %117 = vector.load %arg4[%c12, %c0_85, %c0_86] : memref<13x256x128xbf16, #tpu.memory_space<vmem>>, vector<1x256x128xbf16>
    %118 = vector.shape_cast %117 : vector<1x256x128xbf16> to vector<256x128xbf16>
    %119 = vector.extract_strided_slice %118 {offsets = [0, 0], sizes = [128, 128], strides = [1, 1]} : vector<256x128xbf16> to vector<128x128xbf16>
    %cst_87 = arith.constant dense<0.000000e+00> : vector<136x128xf32>
    %120 = tpu.matmul %116, %119, %cst_87 {dimension_numbers = #tpu.dot_dimension_numbers<[1], [0], [0], [1], [0, 0, 1, 1], [], []>} : vector<136x128xbf16>, vector<128x128xbf16>, vector<136x128xf32> -> vector<136x128xf32>
    %121 = arith.addf %115, %120 : vector<136x128xf32>
    %c0_88 = arith.constant 0 : index
    %c0_89 = arith.constant 0 : index
    %122 = vector.load %arg5[%c0_88, %c0_89] : memref<1x128xf32, #tpu.memory_space<vmem>>, vector<1x128xf32>
    %123 = vector.broadcast %122 : vector<1x128xf32> to vector<136x128xf32>
    %124 = arith.addf %121, %123 : vector<136x128xf32>
    %cst_90 = arith.constant 0.000000e+00 : f32
    %125 = vector.broadcast %cst_90 : f32 to vector<136x128xf32>
    %126 = arith.maximumf %124, %125 : vector<136x128xf32>
    %c0_91 = arith.constant 0 : index
    %c0_92 = arith.constant 0 : index
    %127 = vector.load %arg6[%c0_91, %c0_92] : memref<25x136xbf16, #tpu.memory_space<vmem>>, vector<25x136xbf16>
    %128 = arith.truncf %126 : vector<136x128xf32> to vector<136x128xbf16>
    %cst_93 = arith.constant dense<0.000000e+00> : vector<25x128xf32>
    %129 = tpu.matmul %127, %128, %cst_93 {dimension_numbers = #tpu.dot_dimension_numbers<[1], [0], [0], [1], [0, 0, 1, 1], [], []>} : vector<25x136xbf16>, vector<136x128xbf16>, vector<25x128xf32> -> vector<25x128xf32>
    %130 = arith.truncf %129 : vector<25x128xf32> to vector<25x128xbf16>
    %c0_94 = arith.constant 0 : index
    %c0_95 = arith.constant 0 : index
    %131 = vector.load %arg15[%c0_94, %c0_95] : memref<25x128xbf16, #tpu.memory_space<vmem>>, vector<25x128xbf16>
    tpu.vector_store %arg15[%c0_94, %c0_95], %130 {strides = array<i32>} : memref<25x128xbf16, #tpu.memory_space<vmem>>, vector<25x128xbf16>,
    %c0_96 = arith.constant 0 : index
    %c0_97 = arith.constant 0 : index
    %132 = vector.load %arg15[%c0_96, %c0_97] : memref<25x128xbf16, #tpu.memory_space<vmem>>, vector<1x128xbf16>
    %c1_98 = arith.constant 1 : index
    %c0_99 = arith.constant 0 : index
    %133 = vector.load %arg15[%c1_98, %c0_99] : memref<25x128xbf16, #tpu.memory_space<vmem>>, vector<1x128xbf16>
    %134 = tpu.concatenate %132, %133 in 1 : vector<1x128xbf16>, vector<1x128xbf16> -> vector<1x256xbf16>
    %c0_100 = arith.constant 0 : index
    %c0_101 = arith.constant 0 : index
    %c0_102 = arith.constant 0 : index
    %135 = vector.load %arg7[%c0_100, %c0_101, %c0_102] : memref<13x256x128xbf16, #tpu.memory_space<vmem>>, vector<1x256x128xbf16>
    %136 = vector.shape_cast %135 : vector<1x256x128xbf16> to vector<256x128xbf16>
    %cst_103 = arith.constant dense<0.000000e+00> : vector<1x128xf32>
    %137 = tpu.matmul %134, %136, %cst_103 {dimension_numbers = #tpu.dot_dimension_numbers<[1], [0], [0], [1], [0, 0, 1, 1], [], []>} : vector<1x256xbf16>, vector<256x128xbf16>, vector<1x128xf32> -> vector<1x128xf32>
    %c2_104 = arith.constant 2 : index
    %c0_105 = arith.constant 0 : index
    %138 = vector.load %arg15[%c2_104, %c0_105] : memref<25x128xbf16, #tpu.memory_space<vmem>>, vector<1x128xbf16>
    %c3_106 = arith.constant 3 : index
    %c0_107 = arith.constant 0 : index
    %139 = vector.load %arg15[%c3_106, %c0_107] : memref<25x128xbf16, #tpu.memory_space<vmem>>, vector<1x128xbf16>
    %140 = tpu.concatenate %138, %139 in 1 : vector<1x128xbf16>, vector<1x128xbf16> -> vector<1x256xbf16>
    %c1_108 = arith.constant 1 : index
    %c0_109 = arith.constant 0 : index
    %c0_110 = arith.constant 0 : index
    %141 = vector.load %arg7[%c1_108, %c0_109, %c0_110] : memref<13x256x128xbf16, #tpu.memory_space<vmem>>, vector<1x256x128xbf16>
    %142 = vector.shape_cast %141 : vector<1x256x128xbf16> to vector<256x128xbf16>
    %cst_111 = arith.constant dense<0.000000e+00> : vector<1x128xf32>
    %143 = tpu.matmul %140, %142, %cst_111 {dimension_numbers = #tpu.dot_dimension_numbers<[1], [0], [0], [1], [0, 0, 1, 1], [], []>} : vector<1x256xbf16>, vector<256x128xbf16>, vector<1x128xf32> -> vector<1x128xf32>
    %144 = arith.addf %137, %143 : vector<1x128xf32>
    %c4_112 = arith.constant 4 : index
    %c0_113 = arith.constant 0 : index
    %145 = vector.load %arg15[%c4_112, %c0_113] : memref<25x128xbf16, #tpu.memory_space<vmem>>, vector<1x128xbf16>
    %c5_114 = arith.constant 5 : index
    %c0_115 = arith.constant 0 : index
    %146 = vector.load %arg15[%c5_114, %c0_115] : memref<25x128xbf16, #tpu.memory_space<vmem>>, vector<1x128xbf16>
    %147 = tpu.concatenate %145, %146 in 1 : vector<1x128xbf16>, vector<1x128xbf16> -> vector<1x256xbf16>
    %c2_116 = arith.constant 2 : index
    %c0_117 = arith.constant 0 : index
    %c0_118 = arith.constant 0 : index
    %148 = vector.load %arg7[%c2_116, %c0_117, %c0_118] : memref<13x256x128xbf16, #tpu.memory_space<vmem>>, vector<1x256x128xbf16>
    %149 = vector.shape_cast %148 : vector<1x256x128xbf16> to vector<256x128xbf16>
    %cst_119 = arith.constant dense<0.000000e+00> : vector<1x128xf32>
    %150 = tpu.matmul %147, %149, %cst_119 {dimension_numbers = #tpu.dot_dimension_numbers<[1], [0], [0], [1], [0, 0, 1, 1], [], []>} : vector<1x256xbf16>, vector<256x128xbf16>, vector<1x128xf32> -> vector<1x128xf32>
    %151 = arith.addf %144, %150 : vector<1x128xf32>
    %c6_120 = arith.constant 6 : index
    %c0_121 = arith.constant 0 : index
    %152 = vector.load %arg15[%c6_120, %c0_121] : memref<25x128xbf16, #tpu.memory_space<vmem>>, vector<1x128xbf16>
    %c7_122 = arith.constant 7 : index
    %c0_123 = arith.constant 0 : index
    %153 = vector.load %arg15[%c7_122, %c0_123] : memref<25x128xbf16, #tpu.memory_space<vmem>>, vector<1x128xbf16>
    %154 = tpu.concatenate %152, %153 in 1 : vector<1x128xbf16>, vector<1x128xbf16> -> vector<1x256xbf16>
    %c3_124 = arith.constant 3 : index
    %c0_125 = arith.constant 0 : index
    %c0_126 = arith.constant 0 : index
    %155 = vector.load %arg7[%c3_124, %c0_125, %c0_126] : memref<13x256x128xbf16, #tpu.memory_space<vmem>>, vector<1x256x128xbf16>
    %156 = vector.shape_cast %155 : vector<1x256x128xbf16> to vector<256x128xbf16>
    %cst_127 = arith.constant dense<0.000000e+00> : vector<1x128xf32>
    %157 = tpu.matmul %154, %156, %cst_127 {dimension_numbers = #tpu.dot_dimension_numbers<[1], [0], [0], [1], [0, 0, 1, 1], [], []>} : vector<1x256xbf16>, vector<256x128xbf16>, vector<1x128xf32> -> vector<1x128xf32>
    %158 = arith.addf %151, %157 : vector<1x128xf32>
    %c8_128 = arith.constant 8 : index
    %c0_129 = arith.constant 0 : index
    %159 = vector.load %arg15[%c8_128, %c0_129] : memref<25x128xbf16, #tpu.memory_space<vmem>>, vector<1x128xbf16>
    %c9_130 = arith.constant 9 : index
    %c0_131 = arith.constant 0 : index
    %160 = vector.load %arg15[%c9_130, %c0_131] : memref<25x128xbf16, #tpu.memory_space<vmem>>, vector<1x128xbf16>
    %161 = tpu.concatenate %159, %160 in 1 : vector<1x128xbf16>, vector<1x128xbf16> -> vector<1x256xbf16>
    %c4_132 = arith.constant 4 : index
    %c0_133 = arith.constant 0 : index
    %c0_134 = arith.constant 0 : index
    %162 = vector.load %arg7[%c4_132, %c0_133, %c0_134] : memref<13x256x128xbf16, #tpu.memory_space<vmem>>, vector<1x256x128xbf16>
    %163 = vector.shape_cast %162 : vector<1x256x128xbf16> to vector<256x128xbf16>
    %cst_135 = arith.constant dense<0.000000e+00> : vector<1x128xf32>
    %164 = tpu.matmul %161, %163, %cst_135 {dimension_numbers = #tpu.dot_dimension_numbers<[1], [0], [0], [1], [0, 0, 1, 1], [], []>} : vector<1x256xbf16>, vector<256x128xbf16>, vector<1x128xf32> -> vector<1x128xf32>
    %165 = arith.addf %158, %164 : vector<1x128xf32>
    %c10_136 = arith.constant 10 : index
    %c0_137 = arith.constant 0 : index
    %166 = vector.load %arg15[%c10_136, %c0_137] : memref<25x128xbf16, #tpu.memory_space<vmem>>, vector<1x128xbf16>
    %c11_138 = arith.constant 11 : index
    %c0_139 = arith.constant 0 : index
    %167 = vector.load %arg15[%c11_138, %c0_139] : memref<25x128xbf16, #tpu.memory_space<vmem>>, vector<1x128xbf16>
    %168 = tpu.concatenate %166, %167 in 1 : vector<1x128xbf16>, vector<1x128xbf16> -> vector<1x256xbf16>
    %c5_140 = arith.constant 5 : index
    %c0_141 = arith.constant 0 : index
    %c0_142 = arith.constant 0 : index
    %169 = vector.load %arg7[%c5_140, %c0_141, %c0_142] : memref<13x256x128xbf16, #tpu.memory_space<vmem>>, vector<1x256x128xbf16>
    %170 = vector.shape_cast %169 : vector<1x256x128xbf16> to vector<256x128xbf16>
    %cst_143 = arith.constant dense<0.000000e+00> : vector<1x128xf32>
    %171 = tpu.matmul %168, %170, %cst_143 {dimension_numbers = #tpu.dot_dimension_numbers<[1], [0], [0], [1], [0, 0, 1, 1], [], []>} : vector<1x256xbf16>, vector<256x128xbf16>, vector<1x128xf32> -> vector<1x128xf32>
    %172 = arith.addf %165, %171 : vector<1x128xf32>
    %c12_144 = arith.constant 12 : index
    %c0_145 = arith.constant 0 : index
    %173 = vector.load %arg15[%c12_144, %c0_145] : memref<25x128xbf16, #tpu.memory_space<vmem>>, vector<1x128xbf16>
    %c13 = arith.constant 13 : index
    %c0_146 = arith.constant 0 : index
    %174 = vector.load %arg15[%c13, %c0_146] : memref<25x128xbf16, #tpu.memory_space<vmem>>, vector<1x128xbf16>
    %175 = tpu.concatenate %173, %174 in 1 : vector<1x128xbf16>, vector<1x128xbf16> -> vector<1x256xbf16>
    %c6_147 = arith.constant 6 : index
    %c0_148 = arith.constant 0 : index
    %c0_149 = arith.constant 0 : index
    %176 = vector.load %arg7[%c6_147, %c0_148, %c0_149] : memref<13x256x128xbf16, #tpu.memory_space<vmem>>, vector<1x256x128xbf16>
    %177 = vector.shape_cast %176 : vector<1x256x128xbf16> to vector<256x128xbf16>
    %cst_150 = arith.constant dense<0.000000e+00> : vector<1x128xf32>
    %178 = tpu.matmul %175, %177, %cst_150 {dimension_numbers = #tpu.dot_dimension_numbers<[1], [0], [0], [1], [0, 0, 1, 1], [], []>} : vector<1x256xbf16>, vector<256x128xbf16>, vector<1x128xf32> -> vector<1x128xf32>
    %179 = arith.addf %172, %178 : vector<1x128xf32>
    %c14_151 = arith.constant 14 : index
    %c0_152 = arith.constant 0 : index
    %180 = vector.load %arg15[%c14_151, %c0_152] : memref<25x128xbf16, #tpu.memory_space<vmem>>, vector<1x128xbf16>
    %c15_153 = arith.constant 15 : index
    %c0_154 = arith.constant 0 : index
    %181 = vector.load %arg15[%c15_153, %c0_154] : memref<25x128xbf16, #tpu.memory_space<vmem>>, vector<1x128xbf16>
    %182 = tpu.concatenate %180, %181 in 1 : vector<1x128xbf16>, vector<1x128xbf16> -> vector<1x256xbf16>
    %c7_155 = arith.constant 7 : index
    %c0_156 = arith.constant 0 : index
    %c0_157 = arith.constant 0 : index
    %183 = vector.load %arg7[%c7_155, %c0_156, %c0_157] : memref<13x256x128xbf16, #tpu.memory_space<vmem>>, vector<1x256x128xbf16>
    %184 = vector.shape_cast %183 : vector<1x256x128xbf16> to vector<256x128xbf16>
    %cst_158 = arith.constant dense<0.000000e+00> : vector<1x128xf32>
    %185 = tpu.matmul %182, %184, %cst_158 {dimension_numbers = #tpu.dot_dimension_numbers<[1], [0], [0], [1], [0, 0, 1, 1], [], []>} : vector<1x256xbf16>, vector<256x128xbf16>, vector<1x128xf32> -> vector<1x128xf32>
    %186 = arith.addf %179, %185 : vector<1x128xf32>
    %c16_159 = arith.constant 16 : index
    %c0_160 = arith.constant 0 : index
    %187 = vector.load %arg15[%c16_159, %c0_160] : memref<25x128xbf16, #tpu.memory_space<vmem>>, vector<1x128xbf16>
    %c17_161 = arith.constant 17 : index
    %c0_162 = arith.constant 0 : index
    %188 = vector.load %arg15[%c17_161, %c0_162] : memref<25x128xbf16, #tpu.memory_space<vmem>>, vector<1x128xbf16>
    %189 = tpu.concatenate %187, %188 in 1 : vector<1x128xbf16>, vector<1x128xbf16> -> vector<1x256xbf16>
    %c8_163 = arith.constant 8 : index
    %c0_164 = arith.constant 0 : index
    %c0_165 = arith.constant 0 : index
    %190 = vector.load %arg7[%c8_163, %c0_164, %c0_165] : memref<13x256x128xbf16, #tpu.memory_space<vmem>>, vector<1x256x128xbf16>
    %191 = vector.shape_cast %190 : vector<1x256x128xbf16> to vector<256x128xbf16>
    %cst_166 = arith.constant dense<0.000000e+00> : vector<1x128xf32>
    %192 = tpu.matmul %189, %191, %cst_166 {dimension_numbers = #tpu.dot_dimension_numbers<[1], [0], [0], [1], [0, 0, 1, 1], [], []>} : vector<1x256xbf16>, vector<256x128xbf16>, vector<1x128xf32> -> vector<1x128xf32>
    %193 = arith.addf %186, %192 : vector<1x128xf32>
    %c18_167 = arith.constant 18 : index
    %c0_168 = arith.constant 0 : index
    %194 = vector.load %arg15[%c18_167, %c0_168] : memref<25x128xbf16, #tpu.memory_space<vmem>>, vector<1x128xbf16>
    %c19 = arith.constant 19 : index
    %c0_169 = arith.constant 0 : index
    %195 = vector.load %arg15[%c19, %c0_169] : memref<25x128xbf16, #tpu.memory_space<vmem>>, vector<1x128xbf16>
    %196 = tpu.concatenate %194, %195 in 1 : vector<1x128xbf16>, vector<1x128xbf16> -> vector<1x256xbf16>
    %c9_170 = arith.constant 9 : index
    %c0_171 = arith.constant 0 : index
    %c0_172 = arith.constant 0 : index
    %197 = vector.load %arg7[%c9_170, %c0_171, %c0_172] : memref<13x256x128xbf16, #tpu.memory_space<vmem>>, vector<1x256x128xbf16>
    %198 = vector.shape_cast %197 : vector<1x256x128xbf16> to vector<256x128xbf16>
    %cst_173 = arith.constant dense<0.000000e+00> : vector<1x128xf32>
    %199 = tpu.matmul %196, %198, %cst_173 {dimension_numbers = #tpu.dot_dimension_numbers<[1], [0], [0], [1], [0, 0, 1, 1], [], []>} : vector<1x256xbf16>, vector<256x128xbf16>, vector<1x128xf32> -> vector<1x128xf32>
    %200 = arith.addf %193, %199 : vector<1x128xf32>
    %c20 = arith.constant 20 : index
    %c0_174 = arith.constant 0 : index
    %201 = vector.load %arg15[%c20, %c0_174] : memref<25x128xbf16, #tpu.memory_space<vmem>>, vector<1x128xbf16>
    %c21 = arith.constant 21 : index
    %c0_175 = arith.constant 0 : index
    %202 = vector.load %arg15[%c21, %c0_175] : memref<25x128xbf16, #tpu.memory_space<vmem>>, vector<1x128xbf16>
    %203 = tpu.concatenate %201, %202 in 1 : vector<1x128xbf16>, vector<1x128xbf16> -> vector<1x256xbf16>
    %c10_176 = arith.constant 10 : index
    %c0_177 = arith.constant 0 : index
    %c0_178 = arith.constant 0 : index
    %204 = vector.load %arg7[%c10_176, %c0_177, %c0_178] : memref<13x256x128xbf16, #tpu.memory_space<vmem>>, vector<1x256x128xbf16>
    %205 = vector.shape_cast %204 : vector<1x256x128xbf16> to vector<256x128xbf16>
    %cst_179 = arith.constant dense<0.000000e+00> : vector<1x128xf32>
    %206 = tpu.matmul %203, %205, %cst_179 {dimension_numbers = #tpu.dot_dimension_numbers<[1], [0], [0], [1], [0, 0, 1, 1], [], []>} : vector<1x256xbf16>, vector<256x128xbf16>, vector<1x128xf32> -> vector<1x128xf32>
    %207 = arith.addf %200, %206 : vector<1x128xf32>
    %c22 = arith.constant 22 : index
    %c0_180 = arith.constant 0 : index
    %208 = vector.load %arg15[%c22, %c0_180] : memref<25x128xbf16, #tpu.memory_space<vmem>>, vector<1x128xbf16>
    %c23 = arith.constant 23 : index
    %c0_181 = arith.constant 0 : index
    %209 = vector.load %arg15[%c23, %c0_181] : memref<25x128xbf16, #tpu.memory_space<vmem>>, vector<1x128xbf16>
    %210 = tpu.concatenate %208, %209 in 1 : vector<1x128xbf16>, vector<1x128xbf16> -> vector<1x256xbf16>
    %c11_182 = arith.constant 11 : index
    %c0_183 = arith.constant 0 : index
    %c0_184 = arith.constant 0 : index
    %211 = vector.load %arg7[%c11_182, %c0_183, %c0_184] : memref<13x256x128xbf16, #tpu.memory_space<vmem>>, vector<1x256x128xbf16>
    %212 = vector.shape_cast %211 : vector<1x256x128xbf16> to vector<256x128xbf16>
    %cst_185 = arith.constant dense<0.000000e+00> : vector<1x128xf32>
    %213 = tpu.matmul %210, %212, %cst_185 {dimension_numbers = #tpu.dot_dimension_numbers<[1], [0], [0], [1], [0, 0, 1, 1], [], []>} : vector<1x256xbf16>, vector<256x128xbf16>, vector<1x128xf32> -> vector<1x128xf32>
    %214 = arith.addf %207, %213 : vector<1x128xf32>
    %c24 = arith.constant 24 : index
    %c0_186 = arith.constant 0 : index
    %215 = vector.load %arg15[%c24, %c0_186] : memref<25x128xbf16, #tpu.memory_space<vmem>>, vector<1x128xbf16>
    %c12_187 = arith.constant 12 : index
    %c0_188 = arith.constant 0 : index
    %c0_189 = arith.constant 0 : index
    %216 = vector.load %arg7[%c12_187, %c0_188, %c0_189] : memref<13x256x128xbf16, #tpu.memory_space<vmem>>, vector<1x256x128xbf16>
    %217 = vector.shape_cast %216 : vector<1x256x128xbf16> to vector<256x128xbf16>
    %218 = vector.extract_strided_slice %217 {offsets = [0, 0], sizes = [128, 128], strides = [1, 1]} : vector<256x128xbf16> to vector<128x128xbf16>
    %cst_190 = arith.constant dense<0.000000e+00> : vector<1x128xf32>
    %219 = tpu.matmul %215, %218, %cst_190 {dimension_numbers = #tpu.dot_dimension_numbers<[1], [0], [0], [1], [0, 0, 1, 1], [], []>} : vector<1x128xbf16>, vector<128x128xbf16>, vector<1x128xf32> -> vector<1x128xf32>
    %220 = arith.addf %214, %219 : vector<1x128xf32>
    %c0_191 = arith.constant 0 : index
    %c0_192 = arith.constant 0 : index
    %221 = vector.load %arg8[%c0_191, %c0_192] : memref<1x128xf32, #tpu.memory_space<vmem>>, vector<1x128xf32>
    %222 = arith.addf %220, %221 : vector<1x128xf32>
    %cst_193 = arith.constant 0.000000e+00 : f32
    %223 = vector.broadcast %cst_193 : f32 to vector<1x128xf32>
    %224 = arith.maximumf %222, %223 : vector<1x128xf32>
    %225 = arith.truncf %224 : vector<1x128xf32> to vector<1x128xbf16>
    %c0_194 = arith.constant 0 : index
    %c0_195 = arith.constant 0 : index
    %226 = vector.load %arg9[%c0_194, %c0_195] : memref<128x128xbf16, #tpu.memory_space<vmem>>, vector<128x128xbf16>
    %cst_196 = arith.constant dense<0.000000e+00> : vector<1x128xf32>
    %227 = tpu.matmul %225, %226, %cst_196 {dimension_numbers = #tpu.dot_dimension_numbers<[1], [0], [0], [1], [0, 0, 1, 1], [], []>} : vector<1x128xbf16>, vector<128x128xbf16>, vector<1x128xf32> -> vector<1x128xf32>
    %c0_197 = arith.constant 0 : index
    %c0_198 = arith.constant 0 : index
    %228 = vector.load %arg10[%c0_197, %c0_198] : memref<1x128xf32, #tpu.memory_space<vmem>>, vector<1x128xf32>
    %229 = arith.addf %227, %228 : vector<1x128xf32>
    %cst_199 = arith.constant 0.000000e+00 : f32
    %230 = vector.broadcast %cst_199 : f32 to vector<1x128xf32>
    %231 = arith.maximumf %229, %230 : vector<1x128xf32>
    %232 = arith.truncf %231 : vector<1x128xf32> to vector<1x128xbf16>
    %c0_200 = arith.constant 0 : index
    %c0_201 = arith.constant 0 : index
    %233 = vector.load %arg11[%c0_200, %c0_201] : memref<128x128xbf16, #tpu.memory_space<vmem>>, vector<128x128xbf16>
    %cst_202 = arith.constant dense<0.000000e+00> : vector<1x128xf32>
    %234 = tpu.matmul %232, %233, %cst_202 {dimension_numbers = #tpu.dot_dimension_numbers<[1], [0], [0], [1], [0, 0, 1, 1], [], []>} : vector<1x128xbf16>, vector<128x128xbf16>, vector<1x128xf32> -> vector<1x128xf32>
    %c0_203 = arith.constant 0 : index
    %c0_204 = arith.constant 0 : index
    %235 = vector.load %arg12[%c0_203, %c0_204] : memref<1x128xf32, #tpu.memory_space<vmem>>, vector<1x128xf32>
    %236 = arith.addf %234, %235 : vector<1x128xf32>
    %237 = vector.shape_cast %236 : vector<1x128xf32> to vector<1x1x128xf32>
    %238 = vector.shape_cast %237 : vector<1x1x128xf32> to vector<1x1x128xf32>
    %239 = vector.broadcast %238 : vector<1x1x128xf32> to vector<1x8x128xf32>
    %c0_205 = arith.constant 0 : index
    %c0_206 = arith.constant 0 : index
    %c0_207 = arith.constant 0 : index
    %240 = vector.load %arg13[%c0_205, %c0_206, %c0_207] : memref<1x8x128xf32, #tpu.memory_space<vmem>>, vector<1x8x128xf32>
    tpu.vector_store %arg13[%c0_205, %c0_206, %c0_207], %239 {strides = array<i32>} : memref<1x8x128xf32, #tpu.memory_space<vmem>>, vector<1x8x128xf32>,
    return
  }
  func.func @transform_0(%arg0: i32) -> (i32, i32) {
    %c0_i32 = arith.constant 0 : i32
    %c0_i32_0 = arith.constant 0 : i32
    return %arg0, %c0_i32 : i32, i32
  }
  func.func @transform_1(%arg0: i32) -> (i32, i32) {
    %c0_i32 = arith.constant 0 : i32
    %c0_i32_0 = arith.constant 0 : i32
    %c0_i32_1 = arith.constant 0 : i32
    return %c0_i32, %c0_i32_0 : i32, i32
  }
  func.func @transform_2(%arg0: i32) -> (i32, i32) {
    %c0_i32 = arith.constant 0 : i32
    %c0_i32_0 = arith.constant 0 : i32
    %c0_i32_1 = arith.constant 0 : i32
    return %c0_i32, %c0_i32_0 : i32, i32
  }
  func.func @transform_3(%arg0: i32) -> (i32, i32, i32) {
    %c0_i32 = arith.constant 0 : i32
    %c0_i32_0 = arith.constant 0 : i32
    %c0_i32_1 = arith.constant 0 : i32
    %c0_i32_2 = arith.constant 0 : i32
    return %c0_i32, %c0_i32_0, %c0_i32_1 : i32, i32, i32
  }
  func.func @transform_4(%arg0: i32) -> (i32, i32) {
    %c0_i32 = arith.constant 0 : i32
    %c0_i32_0 = arith.constant 0 : i32
    %c0_i32_1 = arith.constant 0 : i32
    return %c0_i32, %c0_i32_0 : i32, i32
  }
  func.func @transform_5(%arg0: i32) -> (i32, i32) {
    %c0_i32 = arith.constant 0 : i32
    %c0_i32_0 = arith.constant 0 : i32
    %c0_i32_1 = arith.constant 0 : i32
    return %c0_i32, %c0_i32_0 : i32, i32
  }
  func.func @transform_6(%arg0: i32) -> (i32, i32, i32) {
    %c0_i32 = arith.constant 0 : i32
    %c0_i32_0 = arith.constant 0 : i32
    %c0_i32_1 = arith.constant 0 : i32
    %c0_i32_2 = arith.constant 0 : i32
    return %c0_i32, %c0_i32_0, %c0_i32_1 : i32, i32, i32
  }
  func.func @transform_7(%arg0: i32) -> (i32, i32) {
    %c0_i32 = arith.constant 0 : i32
    %c0_i32_0 = arith.constant 0 : i32
    %c0_i32_1 = arith.constant 0 : i32
    return %c0_i32, %c0_i32_0 : i32, i32
  }
  func.func @transform_8(%arg0: i32) -> (i32, i32) {
    %c0_i32 = arith.constant 0 : i32
    %c0_i32_0 = arith.constant 0 : i32
    %c0_i32_1 = arith.constant 0 : i32
    return %c0_i32, %c0_i32_0 : i32, i32
  }
  func.func @transform_9(%arg0: i32) -> (i32, i32) {
    %c0_i32 = arith.constant 0 : i32
    %c0_i32_0 = arith.constant 0 : i32
    %c0_i32_1 = arith.constant 0 : i32
    return %c0_i32, %c0_i32_0 : i32, i32
  }
  func.func @transform_10(%arg0: i32) -> (i32, i32) {
    %c0_i32 = arith.constant 0 : i32
    %c0_i32_0 = arith.constant 0 : i32
    %c0_i32_1 = arith.constant 0 : i32
    return %c0_i32, %c0_i32_0 : i32, i32
  }
  func.func @transform_11(%arg0: i32) -> (i32, i32) {
    %c0_i32 = arith.constant 0 : i32
    %c0_i32_0 = arith.constant 0 : i32
    %c0_i32_1 = arith.constant 0 : i32
    return %c0_i32, %c0_i32_0 : i32, i32
  }
  func.func @transform_12(%arg0: i32) -> (i32, i32, i32) {
    %c0_i32 = arith.constant 0 : i32
    %c0_i32_0 = arith.constant 0 : i32
    %c0_i32_1 = arith.constant 0 : i32
    return %arg0, %c0_i32, %c0_i32_0 : i32, i32, i32
  }
}

</mosaic_0001>

<bundles_post_ra>
// kernel: lenet_forward.1
= control target key start
LH: loop header
LB: loop body
LE: loop exit
PB: predicated region body
PF: predicated region fallthrough
CT: control target
= control target key end

     0   :  { %s12577_s21 = smov 0   ;;  %s15970_s0 = inlined_call_operand.vmem [shape: bf16[1600,128], index: 0, kind: input, shape index: {}]   ;;  %s15971_s1 = inlined_call_operand.vmem [shape: bf16[128,128], index: 1, kind: input, shape index: {}]   ;;  %s15972_s2 = inlined_call_operand.vmem [shape: f32[1,128], index: 2, kind: input, shape index: {}]   ;;  %s15973_s3 = inlined_call_operand.vmem [shape: bf16[13,256,128], index: 3, kind: input, shape index: {}]   ;;  %s15974_s4 = inlined_call_operand.vmem [shape: f32[1,128], index: 4, kind: input, shape index: {}]   ;;  %s15975_s5 = inlined_call_operand.vmem [shape: bf16[25,136], index: 5, kind: input, shape index: {}]   ;;  %s15976_s6 = inlined_call_operand.vmem [shape: bf16[13,256,128], index: 6, kind: input, shape index: {}]   ;;  %s15977_s7 = inlined_call_operand.vmem [shape: f32[1,128], index: 7, kind: input, shape index: {}]   ;;  %s15978_s8 = inlined_call_operand.vmem [shape: bf16[128,128], index: 8, kind: input, shape index: {}]   ;;  %s15979_s9 = inlined_call_operand.vmem [shape: f32[1,128], index: 9, kind: input, shape index: {}]   ;;  %s15980_s10 = inlined_call_operand.vmem [shape: bf16[128,128], index: 10, kind: input, shape index: {}]   ;;  %s15981_s11 = inlined_call_operand.vmem [shape: f32[1,128], index: 11, kind: input, shape index: {}]   ;;  %s15982_s12 = inlined_call_operand.vmem [shape: f32[2,8,128], index: 12, kind: output, shape index: {}]  }
   0x1 LB: > { %s12583_s22 = sadd.s32 4294967295, %s12510_s21   ;;  %p8891_p0 = scmp.ge.s32.totalorder %s12510_s21, 1  ;;  %s12510_s21 = sphi %s12577_s21, %s22_s21  }
   0x2   : > { %p363_p1 = scmp.lt.s32.totalorder %s12510_s21, 3 }
   0x4   : > { %p364_p2 = pnand %p8891_p0, %p363_p1 }
   0x6   : > { %367 = sbr.rel (%p364_p2) target bundleno = 2147 (0x863), region = 68 }
   0xb   : > { %v11693_v0 = vld [vmem:[%s15971_s1 + $0x38] sm:$0xff]  ;;  %v11692_v1 = vld [vmem:[%s15971_s1 + $0x30] sm:$0xff]  ;;  %v11691_v2 = vld [vmem:[%s15971_s1 + $0x28] sm:$0xff]  ;;  %s404_s13 = smul.u32 100, %s12583_s22  ;;  %vm2246_vm0 = vcmask 1045504   ;;  %vm1672_vm2 = vcmask 1046528  }
   0xc   : > { %584 = vmatpush.bf16.msra.mxu0 %v11693_v0  ;;  %783 = vmatpush.bf16.msra.mxu1 %v11693_v0  ;;  %v11690_v3 = vld [vmem:[%s15971_s1 + $0x20] sm:$0xff]  ;;  %v11689_v4 = vld [vmem:[%s15971_s1 + $0x18] sm:$0xff]  ;;  %v11688_v5 = vld [vmem:[%s15971_s1 + $0x10] sm:$0xff]  ;;  %vm1502_vm1 = vsmask.f32 7424  ;;  %vm4029_vm6 = vcmask 1044480  }
   0xd   : > { %1007 = vmatpush.bf16.msra.mxu2 %v11693_v0  ;;  %1231 = vmatpush.bf16.msra.mxu3 %v11693_v0  ;;  %p405_p3 = scmp.lt.s32.totalorder %s404_s13, 199  ;;  %v11687_v6 = vld [vmem:[%s15971_s1 + $0x8] sm:$0xff]  ;;  %v11686_v7 = vld [vmem:[%s15971_s1] sm:$0xff]  ;;  %v11772_v36 = vld [vmem:[%s15973_s3 + $0xb8] sm:$0xff]  ;;  %vm2531_vm3 = vsmask.f32 3328 }
   0xe   : > { %v11771_v47 = vld [vmem:[%s15973_s3 + $0xb0] sm:$0xff]  ;;  %v12662_v48 = vld [vmem:[%s15972_s2] ss:$0 sm:$0xff]  ;;  %vm2645_vm4 = vsmask.f32 4352  ;;  %vm6543_vm8 = vcmask 1043456  }
   0xf   : > { %s16203_s13 = smov (!%p405_p3, %s404_s13), 199  ;;  %vm4772_vm5 = vsmask.f32 6400  ;;  %vm5187_vm7 = vsmask.f32 5376  ;;  %vm6536_vm9 = vcmask 64512  }
  0x10   : > { %585 = vmatpush.bf16.msra.mxu0 %v11692_v1  ;;  %784 = vmatpush.bf16.msra.mxu1 %v11692_v1  ;;  %s8892_s20 = sshll.u32 %s16203_s13, 2  ;;  %vm6592_vm10 = vcmask 1040384   ;;  %vm6593_vm11 = vsmask.f32 256  ;;  %p410_p4 = scmp.lt.s32.totalorder %s12583_s22, 1 }
  0x11   : > { %1008 = vmatpush.bf16.msra.mxu2 %v11692_v1  ;;  %1232 = vmatpush.bf16.msra.mxu3 %v11692_v1  ;;  %s12615_s27 = scalar_lea.vmem %s15970_s0, %s8892_s20  ;;  %vm6594_vm12 = vmand %vm6592_vm10, %vm6593_vm11 }
  0x12   : > { %v11694_v8 = vld [vmem:[%s12615_s27] sm:$0xff]  ;;  %v11718_v10 = vld [vmem:[%s12615_s27 + $0xc8] sm:$0xff]  ;;  %v11719_v14 = vld [vmem:[%s12615_s27 + $0xd0] sm:$0xff]  ;;  %s16205_s22 = smov (!%p410_p4, %s12583_s22), 1 }
  0x13   : > { %v11706_v9 = vld [vmem:[%s12615_s27 + $0x64] sm:$0xff]  ;;  %v11730_v11 = vld [vmem:[%s12615_s27 + $0x12c] sm:$0xff]  ;;  %v11731_v15 = vld [vmem:[%s12615_s27 + $0x134] sm:$0xff]  ;;  %s8893_s28 = sshll.u32 %s16205_s22, 3 }
  0x14   : > { %586 = vmatpush.bf16.msra.mxu0 %v11691_v2  ;;  %785 = vmatpush.bf16.msra.mxu1 %v11691_v2  ;;  %v11695_v12 = vld [vmem:[%s12615_s27 + $0x8] sm:$0xff]  ;;  %v11696_v16 = vld [vmem:[%s12615_s27 + $0x10] sm:$0xff]  ;;  %v11720_v18 = vld [vmem:[%s12615_s27 + $0xd8] sm:$0xff]  ;;  %s413_s13 = scalar_lea.vmem %s15982_s12, %s8893_s28 }
  0x15   : > { %1009 = vmatpush.bf16.msra.mxu2 %v11691_v2  ;;  %1233 = vmatpush.bf16.msra.mxu3 %v11691_v2  ;;  %v11707_v13 = vld [vmem:[%s12615_s27 + $0x6c] sm:$0xff]  ;;  %v11708_v17 = vld [vmem:[%s12615_s27 + $0x74] sm:$0xff]  ;;  %v11732_v19 = vld [vmem:[%s12615_s27 + $0x13c] sm:$0xff] }
  0x16   : > { %v11697_v20 = vld [vmem:[%s12615_s27 + $0x18] sm:$0xff]  ;;  %v11721_v22 = vld [vmem:[%s12615_s27 + $0xe0] sm:$0xff]  ;;  %v11722_v26 = vld [vmem:[%s12615_s27 + $0xe8] sm:$0xff] }
  0x17   : > { %v11709_v21 = vld [vmem:[%s12615_s27 + $0x7c] sm:$0xff]  ;;  %v11733_v23 = vld [vmem:[%s12615_s27 + $0x144] sm:$0xff]  ;;  %v11734_v27 = vld [vmem:[%s12615_s27 + $0x14c] sm:$0xff] }
  0x18   : > { %587 = vmatpush.bf16.msra.mxu0 %v11690_v3  ;;  %786 = vmatpush.bf16.msra.mxu1 %v11690_v3  ;;  %v11698_v24 = vld [vmem:[%s12615_s27 + $0x20] sm:$0xff]  ;;  %v11699_v28 = vld [vmem:[%s12615_s27 + $0x28] sm:$0xff]  ;;  %v11723_v30 = vld [vmem:[%s12615_s27 + $0xf0] sm:$0xff] }
  0x19   : > { %1010 = vmatpush.bf16.msra.mxu2 %v11690_v3  ;;  %1234 = vmatpush.bf16.msra.mxu3 %v11690_v3  ;;  %v11710_v25 = vld [vmem:[%s12615_s27 + $0x84] sm:$0xff]  ;;  %v11711_v29 = vld [vmem:[%s12615_s27 + $0x8c] sm:$0xff]  ;;  %v11735_v31 = vld [vmem:[%s12615_s27 + $0x154] sm:$0xff] }
  0x1a   : > { %v11700_v32 = vld [vmem:[%s12615_s27 + $0x30] sm:$0xff]  ;;  %v11724_v34 = vld [vmem:[%s12615_s27 + $0xf8] sm:$0xff]  ;;  %v11725_v39 = vld [vmem:[%s12615_s27 + $0x100] sm:$0xff] }
  0x1b   : > { %v11712_v33 = vld [vmem:[%s12615_s27 + $0x94] sm:$0xff]  ;;  %v11736_v35 = vld [vmem:[%s12615_s27 + $0x15c] sm:$0xff]  ;;  %v11737_v40 = vld [vmem:[%s12615_s27 + $0x164] sm:$0xff] }
  0x1c   : > { %588 = vmatpush.bf16.msra.mxu0 %v11689_v4  ;;  %787 = vmatpush.bf16.msra.mxu1 %v11689_v4  ;;  %v11701_v37 = vld [vmem:[%s12615_s27 + $0x38] sm:$0xff]  ;;  %v11702_v41 = vld [vmem:[%s12615_s27 + $0x40] sm:$0xff]  ;;  %v11726_v45 = vld [vmem:[%s12615_s27 + $0x108] sm:$0xff] }
  0x1d   : > { %1011 = vmatpush.bf16.msra.mxu2 %v11689_v4  ;;  %1235 = vmatpush.bf16.msra.mxu3 %v11689_v4  ;;  %v11713_v38 = vld [vmem:[%s12615_s27 + $0x9c] sm:$0xff]  ;;  %v11714_v42 = vld [vmem:[%s12615_s27 + $0xa4] sm:$0xff]  ;;  %v11738_v46 = vld [vmem:[%s12615_s27 + $0x16c] sm:$0xff] }
  0x1e   : > { %v11703_v3 = vld [vmem:[%s12615_s27 + $0x48] sm:$0xff] }
  0x1f   : > { %v11715_v4 = vld [vmem:[%s12615_s27 + $0xac] sm:$0xff] }
  0x20   : > { %589 = vmatpush.bf16.msra.mxu0 %v11688_v5  ;;  %788 = vmatpush.bf16.msra.mxu1 %v11688_v5 }
  0x21   : > { %1012 = vmatpush.bf16.msra.mxu2 %v11688_v5  ;;  %1236 = vmatpush.bf16.msra.mxu3 %v11688_v5 }
  0x24   : > { %590 = vmatpush.bf16.msra.mxu0 %v11687_v6  ;;  %789 = vmatpush.bf16.msra.mxu1 %v11687_v6 }
  0x25   : > { %1013 = vmatpush.bf16.msra.mxu2 %v11687_v6  ;;  %1237 = vmatpush.bf16.msra.mxu3 %v11687_v6 }
  0x28   : > { %591 = vmatpush.bf16.msra.mxu0 %v11686_v7  ;;  %790 = vmatpush.bf16.msra.mxu1 %v11686_v7 }
  0x29   : > { %1014 = vmatpush.bf16.msra.mxu2 %v11686_v7  ;;  %1238 = vmatpush.bf16.msra.mxu3 %v11686_v7 }
  0x2b   : > { %592 = vmatmul.bf16.vlgmr.msra.gmra.mxu0 %v11694_v8  ;;  %791 = vmatmul.bf16.vlgmr.msra.gmra.mxu1 %v11706_v9 }
  0x2c   : > { %1015 = vmatmul.bf16.vlgmr.msra.gmra.mxu2 %v11718_v10  ;;  %1239 = vmatmul.bf16.vlgmr.msra.gmra.mxu3 %v11730_v11  ;;  %v11727_v11 = vld [vmem:[%s12615_s27 + $0x110] sm:$0xff] }
  0x2d   : > { %1821 = vmatpush.bf16.msrb.mxu0 %v11772_v36 }
  0x31   : > { %1822 = vmatpush.bf16.msrb.mxu0 %v11771_v47 }
  0x3b   : > { %597 = vmatmul.bf16.gmra.mxu0 %v11695_v12  ;;  %796 = vmatmul.bf16.gmra.mxu1 %v11707_v13  ;;  %v11739_v12 = vld [vmem:[%s12615_s27 + $0x174] sm:$0xff] }
  0x3c   : > { %1020 = vmatmul.bf16.gmra.mxu2 %v11719_v14  ;;  %1244 = vmatmul.bf16.gmra.mxu3 %v11731_v15 }
  0x4b   : > { %602 = vmatmul.bf16.gmra.mxu0 %v11696_v16  ;;  %801 = vmatmul.bf16.gmra.mxu1 %v11708_v17  ;;  %v11780_v16 = vld [vmem:[%s15973_s3 + $0xf8] sm:$0xff] }
  0x4c   : > { %1025 = vmatmul.bf16.gmra.mxu2 %v11720_v18  ;;  %1249 = vmatmul.bf16.gmra.mxu3 %v11732_v19  ;;  %v11756_v17 = vld [vmem:[%s15973_s3 + $0x38] sm:$0xff] }
  0x4d   : > { %1874 = vmatpush.bf16.msrb.mxu1 %v11780_v16  ;;  %2023 = vmatpush.bf16.msrb.mxu2 %v11756_v17  ;;  %v11775_v16 = vld [vmem:[%s15973_s3 + $0xd0] sm:$0xff] }
  0x4e   : > { %v11751_v17 = vld [vmem:[%s15973_s3 + $0x10] sm:$0xff] }
  0x5b   : > { %607 = vmatmul.bf16.gmra.mxu0 %v11697_v20  ;;  %806 = vmatmul.bf16.gmra.mxu1 %v11709_v21  ;;  %v11764_v20 = vld [vmem:[%s15973_s3 + $0x78] sm:$0xff] }
  0x5c   : > { %1030 = vmatmul.bf16.gmra.mxu2 %v11721_v22  ;;  %1254 = vmatmul.bf16.gmra.mxu3 %v11733_v23 }
  0x5d   : > { %2076 = vmatpush.bf16.msrb.mxu3 %v11764_v20 }
  0x6b   : > { %612 = vmatmul.bf16.gmra.mxu0 %v11698_v24  ;;  %811 = vmatmul.bf16.gmra.mxu1 %v11710_v25 }
  0x6c   : > { %1035 = vmatmul.bf16.gmra.mxu2 %v11722_v26  ;;  %1259 = vmatmul.bf16.gmra.mxu3 %v11734_v27  ;;  %v11779_v26 = vld [vmem:[%s15973_s3 + $0xf0] sm:$0xff] }
  0x6d   : > { %v11755_v27 = vld [vmem:[%s15973_s3 + $0x30] sm:$0xff]  ;;  %1875 = vmatpush.bf16.msrb.mxu1 %v11779_v26 }
  0x6e   : > { %2024 = vmatpush.bf16.msrb.mxu2 %v11755_v27 }
  0x7b   : > { %617 = vmatmul.bf16.gmra.mxu0 %v11699_v28  ;;  %816 = vmatmul.bf16.gmra.mxu1 %v11711_v29  ;;  %v11763_v28 = vld [vmem:[%s15973_s3 + $0x70] sm:$0xff] }
  0x7c   : > { %1040 = vmatmul.bf16.gmra.mxu2 %v11723_v30  ;;  %1264 = vmatmul.bf16.gmra.mxu3 %v11735_v31 }
  0x7d   : > { %2077 = vmatpush.bf16.msrb.mxu3 %v11763_v28 }
  0x8b   : > { %622 = vmatmul.bf16.gmra.mxu0 %v11700_v32  ;;  %821 = vmatmul.bf16.gmra.mxu1 %v11712_v33 }
  0x8c   : > { %1045 = vmatmul.bf16.gmra.mxu2 %v11724_v34  ;;  %1269 = vmatmul.bf16.gmra.mxu3 %v11736_v35 }
  0x9b   : > { %627 = vmatmul.bf16.gmra.mxu0 %v11701_v37  ;;  %826 = vmatmul.bf16.gmra.mxu1 %v11713_v38 }
  0x9c   : > { %1050 = vmatmul.bf16.gmra.mxu2 %v11725_v39  ;;  %1274 = vmatmul.bf16.gmra.mxu3 %v11737_v40  ;;  %v11770_v39 = vld [vmem:[%s15973_s3 + $0xa8] sm:$0xff] }
  0x9d   : > { %v11778_v40 = vld [vmem:[%s15973_s3 + $0xe8] sm:$0xff]  ;;  %1823 = vmatpush.bf16.msrb.mxu0 %v11770_v39 }
  0x9e   : > { %1876 = vmatpush.bf16.msrb.mxu1 %v11778_v40  ;;  %v11705_v40 = vld [vmem:[%s12615_s27 + $0x58] sm:$0xff] }
  0xa8   : > { %v593_v43 = vpop.f32.mrf.mxu0  ;;  %v792_v44 = vpop.f32.mrf.mxu1 }
  0xa9   : > { %v594_v49 = vadd.f32 %v12662_v48, %v593_v43  ;;  %v793_v50 = vadd.f32 %v12662_v48, %v792_v44  ;;  %v11762_v44 = vld [vmem:[%s15973_s3 + $0x68] sm:$0xff] }
  0xaa   : > { %2078 = vmatpush.bf16.msrb.mxu3 %v11762_v44 }
  0xab   : > { %632 = vmatmul.bf16.gmra.mxu0 %v11702_v41  ;;  %831 = vmatmul.bf16.gmra.mxu1 %v11714_v42  ;;  %v657_v56 = vmax.f32 %v594_v49, 0.0  ;;  %v856_v57 = vmax.f32 %v793_v50, 0.0  ;;  %v11754_v41 = vld [vmem:[%s15973_s3 + $0x28] sm:$0xff]  ;;  %v11704_v49 = vld [vmem:[%s12615_s27 + $0x50] sm:$0xff] }
  0xac   : > { %1055 = vmatmul.bf16.gmra.mxu2 %v11726_v45  ;;  %1279 = vmatmul.bf16.gmra.mxu3 %v11738_v46  ;;  %v11716_v50 = vld [vmem:[%s12615_s27 + $0xb4] sm:$0xff] }
  0xad   : > { %v881_v62 = vadd.f32 %v856_v57, %v657_v56  ;;  %2025 = vmatpush.bf16.msrb.mxu2 %v11754_v41  ;;  %v11717_v41 = vld [vmem:[%s12615_s27 + $0xbc] sm:$0xff] }
  0xaf   : > { %v1016_v51 = vpop.f32.mrf.mxu2  ;;  %v1240_v52 = vpop.f32.mrf.mxu3 }
  0xb0   : > { %v1017_v53 = vadd.f32 %v12662_v48, %v1016_v51  ;;  %v595_v54 = vpop.f32.mrf.mxu0  ;;  %v794_v55 = vpop.f32.mrf.mxu1  ;;  %v1241_v61 = vadd.f32 %v12662_v48, %v1240_v52 }
  0xb1   : > { %v596_v58 = vadd.f32 %v12662_v48, %v595_v54  ;;  %v795_v59 = vadd.f32 %v12662_v48, %v794_v55  ;;  %v11777_v54 = vld [vmem:[%s15973_s3 + $0xe0] sm:$0xff] }
  0xb2   : > { %v1080_v60 = vmax.f32 %v1017_v53, 0.0  ;;  %v1304_v6 = vmax.f32 %v1241_v61, 0.0  ;;  %v11769_v53 = vld [vmem:[%s15973_s3 + $0xa0] sm:$0xff]  ;;  %1877 = vmatpush.bf16.msrb.mxu1 %v11777_v54 }
  0xb3   : > { %v658_v63 = vmax.f32 %v596_v58, 0.0  ;;  %v857_v0 = vmax.f32 %v795_v59, 0.0  ;;  %v11753_v55 = vld [vmem:[%s15973_s3 + $0x20] sm:$0xff]  ;;  %1824 = vmatpush.bf16.msrb.mxu0 %v11769_v53 }
  0xb4   : > { %v1105_v5 = vadd.f32 %v1080_v60, %v881_v62  ;;  %v11728_v62 = vld [vmem:[%s12615_s27 + $0x118] sm:$0xff]  ;;  %2026 = vmatpush.bf16.msrb.mxu2 %v11753_v55  ;;  %v11729_v55 = vld [vmem:[%s12615_s27 + $0x120] sm:$0xff] }
  0xb5   : > { %v882_v13 = vadd.f32 %v857_v0, %v658_v63  ;;  %v11740_v63 = vld [vmem:[%s12615_s27 + $0x17c] sm:$0xff] }
  0xb6   : > { %v1329_v18 = vadd.f32 %v1304_v6, %v1105_v5  ;;  %v11761_v0 = vld [vmem:[%s15973_s3 + $0x60] sm:$0xff]  ;;  %v11776_v5 = vld [vmem:[%s15973_s3 + $0xd8] sm:$0xff] }
  0xb7   : > { %v1018_v1 = vpop.f32.mrf.mxu2  ;;  %v1242_v2 = vpop.f32.mrf.mxu3  ;;  %2079 = vmatpush.bf16.msrb.mxu3 %v11761_v0  ;;  %v11752_v6 = vld [vmem:[%s15973_s3 + $0x18] sm:$0xff]  ;;  %1878 = vmatpush.bf16.msrb.mxu1 %v11776_v5 }
  0xb8   : > { %v1019_v7 = vadd.f32 %v12662_v48, %v1018_v1  ;;  %v1243_v8 = vadd.f32 %v12662_v48, %v1242_v2  ;;  %v598_v9 = vpop.f32.mrf.mxu0  ;;  %v797_v10 = vpop.f32.mrf.mxu1  ;;  %v1354_v29 = vmul.f32 0.25, %v1329_v18  ;;  %2027 = vmatpush.bf16.msrb.mxu2 %v11752_v6 }
  0xb9   : > { %v599_v21 = vadd.f32 %v12662_v48, %v598_v9  ;;  %v798_v23 = vadd.f32 %v12662_v48, %v797_v10  ;;  %v11760_v9 = vld [vmem:[%s15973_s3 + $0x58] sm:$0xff] }
  0xba   : > { %v1081_v14 = vmax.f32 %v1019_v7, 0.0  ;;  %v1305_v15 = vmax.f32 %v1243_v8, 0.0 }
  0xbb   : > { %637 = vmatmul.bf16.gmra.mxu0 %v11703_v3  ;;  %836 = vmatmul.bf16.gmra.mxu1 %v11715_v4  ;;  %v659_v34 = vmax.f32 %v599_v21, 0.0  ;;  %v858_v36 = vmax.f32 %v798_v23, 0.0  ;;  %v11768_v4 = vld [vmem:[%s15973_s3 + $0x98] sm:$0xff]  ;;  %v11759_v23 = vld [vmem:[%s15973_s3 + $0x50] sm:$0xff] }
  0xbc   : > { %v1106_v19 = vadd.f32 %v1081_v14, %v882_v13  ;;  %1060 = vmatmul.bf16.gmra.mxu2 %v11727_v11  ;;  %1284 = vmatmul.bf16.gmra.mxu3 %v11739_v12 }
  0xbd   : > { %v883_v45 = vadd.f32 %v858_v36, %v659_v34  ;;  %1825 = vmatpush.bf16.msrb.mxu0 %v11768_v4  ;;  %2080 = vmatpush.bf16.msrb.mxu3 %v11760_v9  ;;  %v11750_v34 = vld [vmem:[%s15973_s3 + $0x8] sm:$0xff] }
  0xbe   : > { %v1330_v22 = vadd.f32 %v1305_v15, %v1106_v19  ;;  %v11767_v15 = vld [vmem:[%s15973_s3 + $0x90] sm:$0xff]  ;;  %1879 = vmatpush.bf16.msrb.mxu1 %v11775_v16  ;;  %2028 = vmatpush.bf16.msrb.mxu2 %v11751_v17  ;;  %v11758_v36 = vld [vmem:[%s15973_s3 + $0x48] sm:$0xff] }
  0xbf   : > { %v1021_v24 = vpop.f32.mrf.mxu2  ;;  %v1245_v25 = vpop.f32.mrf.mxu3 }
  0xc0   : > { %v1355_v30 = vmul.f32 0.25, %v1330_v22  ;;  %v1022_v31 = vadd.f32 %v12662_v48, %v1021_v24  ;;  %v600_v32 = vpop.f32.mrf.mxu0  ;;  %v799_v33 = vpop.f32.mrf.mxu1  ;;  %v1246_v43 = vadd.f32 %v12662_v48, %v1245_v25 }
  0xc1   : > { %v601_v37 = vadd.f32 %v12662_v48, %v600_v32  ;;  %v800_v38 = vadd.f32 %v12662_v48, %v799_v33  ;;  %1826 = vmatpush.bf16.msrb.mxu0 %v11767_v15  ;;  %2081 = vmatpush.bf16.msrb.mxu3 %v11759_v23  ;;  %v11766_v32 = vld [vmem:[%s15973_s3 + $0x88] sm:$0xff] }
  0xc2   : > { %v12697_v35 = vpack.c.bf16 %v1355_v30, %v1354_v29  ;;  %v1082_v42 = vmax.f32 %v1022_v31, 0.0  ;;  %v1306_v57 = vmax.f32 %v1246_v43, 0.0  ;;  %v11774_v33 = vld [vmem:[%s15973_s3 + $0xc8] sm:$0xff]  ;;  %2029 = vmatpush.bf16.msrb.mxu2 %v11750_v34 }
  0xc3   : > { %v660_v46 = vmax.f32 %v601_v37, 0.0  ;;  %v859_v47 = vmax.f32 %v800_v38, 0.0  ;;  %1880 = vmatpush.bf16.msrb.mxu1 %v11774_v33 }
  0xc4   : > { %12203 = vst [vmem:[#allocation2] sm:$0xff] %v12697_v35   ;;  %v1107_v56 = vadd.f32 %v1082_v42, %v883_v45 }
  0xc5   : > { %v884_v1 = vadd.f32 %v859_v47, %v660_v46  ;;  %1827 = vmatpush.bf16.msrb.mxu0 %v11766_v32  ;;  %2082 = vmatpush.bf16.msrb.mxu3 %v11758_v36  ;;  %v11765_v47 = vld [vmem:[%s15973_s3 + $0x80] sm:$0xff] }
  0xc6   : > { %v1331_v7 = vadd.f32 %v1306_v57, %v1107_v56  ;;  %v11741_v56 = vld [vmem:[%s12615_s27 + $0x184] sm:$0xff] }
  0xc7   : > { %v1023_v51 = vpop.f32.mrf.mxu2  ;;  %v1247_v52 = vpop.f32.mrf.mxu3  ;;  %v11757_v57 = vld [vmem:[%s15973_s3 + $0x40] sm:$0xff] }
  0xc8   : > { %v1024_v58 = vadd.f32 %v12662_v48, %v1023_v51  ;;  %v1248_v59 = vadd.f32 %v12662_v48, %v1247_v52  ;;  %v603_v60 = vpop.f32.mrf.mxu0  ;;  %v802_v61 = vpop.f32.mrf.mxu1  ;;  %v1356_v18 = vmul.f32 0.25, %v1331_v7 }
  0xc9   : > { %v604_v10 = vadd.f32 %v12662_v48, %v603_v60  ;;  %v803_v11 = vadd.f32 %v12662_v48, %v802_v61  ;;  %1828 = vmatpush.bf16.msrb.mxu0 %v11765_v47  ;;  %2083 = vmatpush.bf16.msrb.mxu3 %v11757_v57 }
  0xca   : > { %v1083_v2 = vmax.f32 %v1024_v58, 0.0  ;;  %v1307_v3 = vmax.f32 %v1248_v59, 0.0  ;;  %v12262_v58 = vunpack.c.h.b16 %v12697_v35 }
  0xcb   : > { %642 = vmatmul.bf16.gmra.mxu0 %v11704_v49  ;;  %841 = vmatmul.bf16.gmra.mxu1 %v11716_v50  ;;  %v661_v24 = vmax.f32 %v604_v10, 0.0  ;;  %v860_v25 = vmax.f32 %v803_v11, 0.0  ;;  %v2129_v29 = vld [vmem:[#allocation2] sm:$0xc] }
  0xcc   : > { %v1108_v8 = vadd.f32 %v1083_v2, %v884_v1  ;;  %1065 = vmatmul.bf16.gmra.mxu2 %v11728_v62  ;;  %1289 = vmatmul.bf16.gmra.mxu3 %v11740_v63  ;;  %v2149_v42 = vunpack.c.l.b16 %v2129_v29  ;;  %v11773_v49 = vld [vmem:[%s15973_s3 + $0xc0] sm:$0xff] }
  0xcd   : > { %v885_v37 = vadd.f32 %v860_v25, %v661_v24  ;;  %v11749_v50 = vld [vmem:[%s15973_s3] sm:$0xff]  ;;  %1881 = vmatpush.bf16.msrb.mxu1 %v11773_v49 }
  0xce   : > { %v1332_v12 = vadd.f32 %v1307_v3, %v1108_v8  ;;  %2030 = vmatpush.bf16.msrb.mxu2 %v11749_v50  ;;  %v2150_v62 = vpack.c.b16 %v12262_v58, %v2149_v42  ;;  %v1615_v6 = vld [vmem:[#allocation2] sm:$0xe] }
  0xcf   : > { %v1026_v13 = vpop.f32.mrf.mxu2  ;;  %v1250_v14 = vpop.f32.mrf.mxu3  ;;  %v1618_v23 = vunpack.c.l.b16 %v1615_v6 }
  0xd0   : > { %v1357_v19 = vmul.f32 0.25, %v1332_v12  ;;  %v1027_v20 = vadd.f32 %v12662_v48, %v1026_v13  ;;  %v605_v21 = vpop.f32.mrf.mxu0  ;;  %v804_v22 = vpop.f32.mrf.mxu1  ;;  %v1251_v31 = vadd.f32 %v12662_v48, %v1250_v14  ;;  %v2247_v7 = vrot.slane %v2150_v62, 2  ;;  %v456_v12 = vld [vmem:[%s12615_s27 + $0x60] sm:$0xf]  ;;  %v706_v13 = vld [vmem:[%s12615_s27 + $0xc4] sm:$0xf] }
  0xd1   : > { %v606_v27 = vadd.f32 %v12662_v48, %v605_v21  ;;  %v805_v28 = vadd.f32 %v12662_v48, %v804_v22  ;;  %v756_v29 = vunpack.c.l.b16 %v706_v13 }
  0xd2   : > { %v12207_v26 = vpack.c.bf16 %v1357_v19, %v1356_v18  ;;  %v1084_v30 = vmax.f32 %v1027_v20, 0.0  ;;  %v1308_v44 = vmax.f32 %v1251_v31, 0.0  ;;  %v930_v18 = vld [vmem:[%s12615_s27 + $0x128] sm:$0xf]  ;;  %v1154_v19 = vld [vmem:[%s12615_s27 + $0x18c] sm:$0xf] }
  0xd3   : > { %v662_v38 = vmax.f32 %v606_v27, 0.0  ;;  %v861_v39 = vmax.f32 %v805_v28, 0.0  ;;  %v509_v28 = vunpack.c.l.b16 %v456_v12  ;;  %v1204_v31 = vunpack.c.l.b16 %v1154_v19 }
  0xd4   : > { %12336 = vst [vmem:[#allocation2 + $0x8] sm:$0xff] %v12207_v26   ;;  %v1109_v43 = vadd.f32 %v1084_v30, %v885_v37  ;;  %v980_v30 = vunpack.c.l.b16 %v930_v18  ;;  %v12818_v37 = vpack.c.b16 %v12262_v58, %v1618_v23  ;;  %v1506_v23 = vshll.u32 %v12697_v35, 16 }
  0xd5   : > { %v886_v59 = vadd.f32 %v861_v39, %v662_v38  ;;  %v1217_v47 = vpack.c.b16 %v1204_v31, %v1204_v31 }
  0xd6   : > { %v1333_v63 = vadd.f32 %v1308_v44, %v1109_v43  ;;  %v522_v44 = vpack.c.b16 %v509_v28, %v509_v28  ;;  %v1624_v12 = vshrl.u32 %v12818_v37, 16 }
  0xd7   : > { %v1028_v45 = vpop.f32.mrf.mxu2  ;;  %v1252_v46 = vpop.f32.mrf.mxu3 }
  0xd8   : > { %v1029_v51 = vadd.f32 %v12662_v48, %v1028_v45  ;;  %v1253_v52 = vadd.f32 %v12662_v48, %v1252_v46  ;;  %v608_v53 = vpop.f32.mrf.mxu0  ;;  %v807_v54 = vpop.f32.mrf.mxu1  ;;  %v1358_v9 = vmul.f32 0.25, %v1333_v63  ;;  %v769_v45 = vpack.c.b16 %v756_v29, %v756_v29 }
  0xd9   : > { %v609_v2 = vadd.f32 %v12662_v48, %v608_v53  ;;  %v808_v5 = vadd.f32 %v12662_v48, %v807_v54  ;;  %v993_v46 = vpack.c.b16 %v980_v30, %v980_v30 }
  0xda   : > { %v1085_v60 = vmax.f32 %v1029_v51, 0.0  ;;  %v1309_v61 = vmax.f32 %v1253_v52, 0.0 }
  0xdb   : > { %647 = vmatmul.bf16.gmra.mxu0 %v11705_v40  ;;  %846 = vmatmul.bf16.gmra.mxu1 %v11717_v41  ;;  %v12794_v0 = vld [vmem:[#allocation2 + $0x8] sm:$0xff]  ;;  %v663_v22 = vmax.f32 %v609_v2, 0.0  ;;  %v862_v25 = vmax.f32 %v808_v5, 0.0 }
  0xdc   : > { %v1110_v1 = vadd.f32 %v1085_v60, %v886_v59  ;;  %1070 = vmatmul.bf16.gmra.mxu2 %v11729_v55  ;;  %1294 = vmatmul.bf16.gmra.mxu3 %v11741_v56  ;;  %v12797_v3 = vld [vmem:[#allocation2 + $0x8] sm:$0xff]   ;;  %v2248_v8 = vrot.slane %v12794_v0, 2  ;;  %v1511_v55 = vshll.u32 %v12794_v0, 16  ;;  %v1626_v56 = vshll.u32 %v12818_v37, 16 }
  0xdd   : > { %v2536_v21 = vshll.u32 %v12797_v3, 16  ;;  %v2533_v34 = vshrl.u32 %v12797_v3, 16  ;;  %v887_v38 = vadd.f32 %v862_v25, %v663_v22 }
  0xde   : > { %v1334_v4 = vadd.f32 %v1309_v61, %v1110_v1  ;;  %v12809_v20 = vsel %vm2246_vm0, %v2247_v7, %v2248_v8  ;;  %v1513_v1 = vrot.slane %v1511_v55, 1 }
  0xdf   : > { %v1031_v10 = vpop.f32.mrf.mxu2  ;;  %v1255_v11 = vpop.f32.mrf.mxu3  ;;  %v3219_v36 = vrot.slane %v2536_v21, 1 }
  0xe0   : > { %v1359_v14 = vmul.f32 0.25, %v1334_v4  ;;  %v1032_v15 = vadd.f32 %v12662_v48, %v1031_v10  ;;  %v610_v16 = vpop.f32.mrf.mxu0  ;;  %v809_v17 = vpop.f32.mrf.mxu1  ;;  %v1256_v33 = vadd.f32 %v12662_v48, %v1255_v11  ;;  %v1628_v4 = vrot.slane %v1626_v56, 1 }
  0xe1   : > { %v611_v26 = vadd.f32 %v12662_v48, %v610_v16  ;;  %v810_v27 = vadd.f32 %v12662_v48, %v809_v17  ;;  %v12822_v41 = vor.u32 %v3219_v36, %v2533_v34  ;;  %v1515_v10 = vshrl.u32 %v12794_v0, 16 }
  0xe2   : > { %v12212_v24 = vpack.c.bf16 %v1359_v14, %v1358_v9  ;;  %v1086_v32 = vmax.f32 %v1032_v15, 0.0  ;;  %v1310_v50 = vmax.f32 %v1256_v33, 0.0  ;;  %v1629_v22 = vor.u32 %v1628_v4, %v1624_v12 }
  0xe3   : > { %v664_v39 = vmax.f32 %v611_v26, 0.0  ;;  %v863_v40 = vmax.f32 %v810_v27, 0.0  ;;  %v1517_v19 = vor.u32 %v1515_v10, %v1513_v1  ;;  %v1508_v33 = vrot.slane %v1506_v23, 1 }
  0xe4   : > { %12337 = vst [vmem:[#allocation2 + $0x10] sm:$0xff] %v12212_v24   ;;  %v1111_v49 = vadd.f32 %v1086_v32, %v887_v38  ;;  %v1630_v31 = vsel %vm1502_vm1, %v1629_v22, %v1513_v1  ;;  %v1674_v32 = vrot.slane %v12794_v0, 1 }
  0xe5   : > { %v888_v57 = vadd.f32 %v863_v40, %v664_v39 }
  0xe6   : > { %v1335_v61 = vadd.f32 %v1310_v50, %v1111_v49 }
  0xe7   : > { %v1033_v42 = vpop.f32.mrf.mxu2  ;;  %v1257_v43 = vpop.f32.mrf.mxu3 }
  0xe8   : > { %v1034_v51 = vadd.f32 %v12662_v48, %v1033_v42  ;;  %v1258_v52 = vadd.f32 %v12662_v48, %v1257_v43  ;;  %v613_v53 = vpop.f32.mrf.mxu0  ;;  %v812_v54 = vpop.f32.mrf.mxu1  ;;  %v1360_v13 = vmul.f32 0.25, %v1335_v61 }
  0xe9   : > { %v614_v63 = vadd.f32 %v12662_v48, %v613_v53  ;;  %v813_v6 = vadd.f32 %v12662_v48, %v812_v54 }
  0xea   : > { %v1087_v58 = vmax.f32 %v1034_v51, 0.0  ;;  %v1311_v59 = vmax.f32 %v1258_v52, 0.0 }
  0xeb   : > { %652 = vmatmul.bf16.gmra.mxu0 %v522_v44  ;;  %851 = vmatmul.bf16.gmra.mxu1 %v769_v45  ;;  %v12828_v60 = vld [vmem:[#allocation2 + $0x10] sm:$0xff]  ;;  %v665_v18 = vmax.f32 %v614_v63, 0.0  ;;  %v864_v25 = vmax.f32 %v813_v6, 0.0  ;;  %v1673_v45 = vrot.slane %v12818_v37, 1 }
  0xec   : > { %v1112_v62 = vadd.f32 %v1087_v58, %v888_v57  ;;  %1075 = vmatmul.bf16.gmra.mxu2 %v993_v46  ;;  %1299 = vmatmul.bf16.gmra.mxu3 %v1217_v47  ;;  %v1519_v2 = vshll.u32 %v12828_v60, 16  ;;  %v2253_v36 = vrot.slane %v12828_v60, 2  ;;  %v1676_v46 = vrot.slane %v1630_v31, 1 }
  0xed   : > { %v889_v38 = vadd.f32 %v864_v25, %v665_v18  ;;  %v1504_v47 = vshrl.u32 %v12697_v35, 16  ;;  %v1675_v37 = vsel %vm1672_vm2, %v1673_v45, %v1674_v32  ;;  %v1523_v12 = vshrl.u32 %v12828_v60, 16 }
  0xee   : > { %v1336_v5 = vadd.f32 %v1311_v59, %v1112_v62  ;;  %v12834_v11 = vrot.slane %v1519_v2, 1  ;;  %v12857_v49 = vsel %vm2246_vm0, %v2248_v8, %v2253_v36 }
  0xef   : > { %v1036_v7 = vpop.f32.mrf.mxu2  ;;  %v1260_v9 = vpop.f32.mrf.mxu3  ;;  %v1509_v56 = vor.u32 %v1508_v33, %v1504_v47 }
  0xf0   : > { %v1361_v14 = vmul.f32 0.25, %v1336_v5  ;;  %v1037_v15 = vadd.f32 %v12662_v48, %v1036_v7  ;;  %v615_v16 = vpop.f32.mrf.mxu0  ;;  %v814_v17 = vpop.f32.mrf.mxu1  ;;  %v12843_v28 = vsel %vm1502_vm1, %v1517_v19, %v12834_v11  ;;  %v1261_v30 = vadd.f32 %v12662_v48, %v1260_v9 }
  0xf1   : > { %v616_v26 = vadd.f32 %v12662_v48, %v615_v16  ;;  %v815_v27 = vadd.f32 %v12662_v48, %v814_v17  ;;  %v1677_v42 = vrot.slane %v12843_v28, 1  ;;  %v1514_v61 = vsel %vm1502_vm1, %v1509_v56, %v1513_v1 }
  0xf2   : > { %v12217_v24 = vpack.c.bf16 %v1361_v14, %v1360_v13  ;;  %v1088_v29 = vmax.f32 %v1037_v15, 0.0  ;;  %v1312_v51 = vmax.f32 %v1261_v30, 0.0  ;;  %v1525_v18 = vor.u32 %v1523_v12, %v12834_v11 }
  0xf3   : > { %v666_v39 = vmax.f32 %v616_v26, 0.0  ;;  %v865_v40 = vmax.f32 %v815_v27, 0.0  ;;  %v1678_v8 = vsel %vm1672_vm2, %v1676_v46, %v1677_v42 }
  0xf4   : > { %12338 = vst [vmem:[#allocation2 + $0x18] sm:$0xff] %v12217_v24   ;;  %v1113_v50 = vadd.f32 %v1088_v29, %v889_v38  ;;  %v1679_v29 = vrot.slane %v12828_v60, 1 }
  0xf5   : > { %v890_v57 = vadd.f32 %v865_v40, %v666_v39 }
  0xf6   : > { %v1337_v63 = vadd.f32 %v1312_v51, %v1113_v50 }
  0xf7   : > { %v1038_v43 = vpop.f32.mrf.mxu2  ;;  %v1262_v44 = vpop.f32.mrf.mxu3 }
  0xf8   : > { %v1039_v52 = vadd.f32 %v12662_v48, %v1038_v43  ;;  %v1263_v53 = vadd.f32 %v12662_v48, %v1262_v44  ;;  %v618_v54 = vpop.f32.mrf.mxu0  ;;  %v817_v55 = vpop.f32.mrf.mxu1  ;;  %v1362_v1 = vmul.f32 0.25, %v1337_v63 }
  0xf9   : > { %v619_v4 = vadd.f32 %v12662_v48, %v618_v54  ;;  %v818_v7 = vadd.f32 %v12662_v48, %v817_v55 }
  0xfa   : > { %v1089_v58 = vmax.f32 %v1039_v52, 0.0  ;;  %v1313_v59 = vmax.f32 %v1263_v53, 0.0  ;;  %v1680_v52 = vsel %vm1672_vm2, %v1674_v32, %v1679_v29 }
  0xfb   : > { %1829 = vmatmul.bf16.vlgmr.msrb.gmra.mxu0 %v1675_v37  ;;  %1882 = vmatmul.bf16.vlgmr.msrb.gmra.mxu1 %v1678_v8  ;;  %v12868_v62 = vld [vmem:[#allocation2 + $0x18] sm:$0xff]  ;;  %v866_v22 = vmax.f32 %v818_v7, 0.0 }
  0xfc   : > { %v1114_v2 = vadd.f32 %v1089_v58, %v890_v57  ;;  %2031 = vmatmul.bf16.vlgmr.msrb.gmra.mxu2 %v12697_v35  ;;  %2084 = vmatmul.bf16.vlgmr.msrb.gmra.mxu3 %v1514_v61  ;;  %v1527_v5 = vshll.u32 %v12868_v62, 16  ;;  %v667_v35 = vmax.f32 %v619_v4, 0.0  ;;  %v2257_v30 = vrot.slane %v12868_v62, 2 }
  0xfe   : > { %v1338_v6 = vadd.f32 %v1313_v59, %v1114_v2  ;;  %v1529_v13 = vrot.slane %v1527_v5, 1  ;;  %v891_v31 = vadd.f32 %v866_v22, %v667_v35  ;;  %v12889_v43 = vsel %vm2246_vm0, %v2253_v36, %v2257_v30 }
  0xff   : > { %v1041_v9 = vpop.f32.mrf.mxu2  ;;  %v1265_v10 = vpop.f32.mrf.mxu3  ;;  %v1683_v35 = vrot.slane %v12868_v62, 1 }
 0x100   : > { %v1363_v14 = vmul.f32 0.25, %v1338_v6  ;;  %v1042_v15 = vadd.f32 %v12662_v48, %v1041_v9  ;;  %v620_v16 = vpop.f32.mrf.mxu0  ;;  %v819_v17 = vpop.f32.mrf.mxu1  ;;  %v12880_v25 = vsel %vm1502_vm1, %v1525_v18, %v1529_v13  ;;  %v1266_v27 = vadd.f32 %v12662_v48, %v1265_v10 }
 0x101   : > { %v621_v23 = vadd.f32 %v12662_v48, %v620_v16  ;;  %v820_v24 = vadd.f32 %v12662_v48, %v819_v17  ;;  %v1681_v38 = vrot.slane %v12880_v25, 1 }
 0x102   : > { %v12222_v19 = vpack.c.bf16 %v1363_v14, %v1362_v1  ;;  %v1090_v26 = vmax.f32 %v1042_v15, 0.0  ;;  %v1314_v45 = vmax.f32 %v1266_v27, 0.0 }
 0x103   : > { %v668_v33 = vmax.f32 %v621_v23, 0.0  ;;  %v867_v11 = vmax.f32 %v820_v24, 0.0  ;;  %v1682_v36 = vsel %vm1672_vm2, %v1677_v42, %v1681_v38  ;;  %v1531_v42 = vshrl.u32 %v12868_v62, 16 }
 0x104   : > { %12339 = vst [vmem:[#allocation2 + $0x20] sm:$0xff] %v12222_v19   ;;  %v1115_v44 = vadd.f32 %v1090_v26, %v891_v31 }
 0x105   : > { %v892_v53 = vadd.f32 %v867_v11, %v668_v33 }
 0x106   : > { %v1339_v56 = vadd.f32 %v1314_v45, %v1115_v44  ;;  %v1684_v45 = vsel %vm1672_vm2, %v1679_v29, %v1683_v35 }
 0x107   : > { %v1043_v39 = vpop.f32.mrf.mxu2  ;;  %v1267_v40 = vpop.f32.mrf.mxu3 }
 0x108   : > { %v1044_v46 = vadd.f32 %v12662_v48, %v1043_v39  ;;  %v1268_v47 = vadd.f32 %v12662_v48, %v1267_v40  ;;  %v623_v50 = vpop.f32.mrf.mxu0  ;;  %v822_v51 = vpop.f32.mrf.mxu1  ;;  %v1364_v4 = vmul.f32 0.25, %v1339_v56 }
 0x109   : > { %v624_v32 = vadd.f32 %v12662_v48, %v623_v50  ;;  %v823_v8 = vadd.f32 %v12662_v48, %v822_v51 }
 0x10a   : > { %v1091_v54 = vmax.f32 %v1044_v46, 0.0  ;;  %v1315_v55 = vmax.f32 %v1268_v47, 0.0 }
 0x10b   : > { %1834 = vmatmul.bf16.gmra.mxu0 %v1680_v52  ;;  %1887 = vmatmul.bf16.gmra.mxu1 %v1682_v36  ;;  %v12903_v37 = vld [vmem:[#allocation2 + $0x20] sm:$0xff]  ;;  %v669_v9 = vmax.f32 %v624_v32, 0.0  ;;  %v868_v12 = vmax.f32 %v823_v8, 0.0 }
 0x10c   : > { %v1116_v57 = vadd.f32 %v1091_v54, %v892_v53  ;;  %2036 = vmatmul.bf16.gmra.mxu2 %v12794_v0  ;;  %2089 = vmatmul.bf16.gmra.mxu3 %v12843_v28  ;;  %v1535_v58 = vshll.u32 %v12903_v37, 16  ;;  %v1533_v28 = vor.u32 %v1531_v42, %v1529_v13  ;;  %v2261_v18 = vrot.slane %v12903_v37, 2 }
 0x10d   : > { %v893_v19 = vadd.f32 %v868_v12, %v669_v9 }
 0x10e   : > { %v1340_v59 = vadd.f32 %v1315_v55, %v1116_v57  ;;  %v1537_v2 = vrot.slane %v1535_v58, 1  ;;  %v12924_v27 = vsel %vm2246_vm0, %v2257_v30, %v2261_v18 }
 0x10f   : > { %v1046_v61 = vpop.f32.mrf.mxu2  ;;  %v1270_v63 = vpop.f32.mrf.mxu3 }
 0x110   : > { %v1365_v5 = vmul.f32 0.25, %v1340_v59  ;;  %v1047_v6 = vadd.f32 %v12662_v48, %v1046_v61  ;;  %v625_v7 = vpop.f32.mrf.mxu0  ;;  %v824_v0 = vpop.f32.mrf.mxu1  ;;  %v12915_v15 = vsel %vm1502_vm1, %v1533_v28, %v1537_v2  ;;  %v1271_v17 = vadd.f32 %v12662_v48, %v1270_v63 }
 0x111   : > { %v626_v1 = vadd.f32 %v12662_v48, %v625_v7  ;;  %v825_v14 = vadd.f32 %v12662_v48, %v824_v0  ;;  %v1685_v23 = vrot.slane %v12915_v15, 1 }
 0x112   : > { %v12227_v10 = vpack.c.bf16 %v1365_v5, %v1364_v4  ;;  %v1092_v16 = vmax.f32 %v1047_v6, 0.0  ;;  %v1316_v33 = vmax.f32 %v1271_v17, 0.0 }
 0x113   : > { %v670_v22 = vmax.f32 %v626_v1, 0.0  ;;  %v869_v13 = vmax.f32 %v825_v14, 0.0  ;;  %v1686_v30 = vsel %vm1672_vm2, %v1681_v38, %v1685_v23  ;;  %v1539_v38 = vshrl.u32 %v12903_v37, 16 }
 0x114   : > { %12340 = vst [vmem:[#allocation2 + $0x28] sm:$0xff] %v12227_v10   ;;  %v1117_v31 = vadd.f32 %v1092_v16, %v893_v19  ;;  %v1687_v10 = vrot.slane %v12903_v37, 1 }
 0x115   : > { %v894_v46 = vadd.f32 %v869_v13, %v670_v22  ;;  %v1541_v42 = vor.u32 %v1539_v38, %v1537_v2 }
 0x116   : > { %v1341_v52 = vadd.f32 %v1316_v33, %v1117_v31  ;;  %v1688_v33 = vsel %vm1672_vm2, %v1683_v35, %v1687_v10 }
 0x117   : > { %v1048_v24 = vpop.f32.mrf.mxu2  ;;  %v1272_v26 = vpop.f32.mrf.mxu3 }
 0x118   : > { %v1049_v11 = vadd.f32 %v12662_v48, %v1048_v24  ;;  %v1273_v39 = vadd.f32 %v12662_v48, %v1272_v26  ;;  %v628_v40 = vpop.f32.mrf.mxu0  ;;  %v827_v44 = vpop.f32.mrf.mxu1  ;;  %v1366_v58 = vmul.f32 0.25, %v1341_v52 }
 0x119   : > { %v629_v29 = vadd.f32 %v12662_v48, %v628_v40  ;;  %v828_v54 = vadd.f32 %v12662_v48, %v827_v44 }
 0x11a   : > { %v1093_v47 = vmax.f32 %v1049_v11, 0.0  ;;  %v1317_v50 = vmax.f32 %v1273_v39, 0.0 }
 0x11b   : > { %1839 = vmatmul.bf16.gmra.mxu0 %v1684_v45  ;;  %1892 = vmatmul.bf16.gmra.mxu1 %v1686_v30  ;;  %v12938_v51 = vld [vmem:[#allocation2 + $0x28] sm:$0xff]  ;;  %v671_v63 = vmax.f32 %v629_v29, 0.0 }
 0x11c   : > { %v1118_v53 = vadd.f32 %v1093_v47, %v894_v46  ;;  %2041 = vmatmul.bf16.gmra.mxu2 %v12828_v60  ;;  %2094 = vmatmul.bf16.gmra.mxu3 %v12880_v25  ;;  %v1543_v55 = vshll.u32 %v12938_v51, 16  ;;  %v870_v25 = vmax.f32 %v828_v54, 0.0  ;;  %v2265_v2 = vrot.slane %v12938_v51, 2 }
 0x11e   : > { %v1342_v36 = vadd.f32 %v1317_v50, %v1118_v53  ;;  %v1545_v32 = vrot.slane %v1543_v55, 1  ;;  %v895_v28 = vadd.f32 %v870_v25, %v671_v63  ;;  %v12968_v11 = vsel %vm2246_vm0, %v2261_v18, %v2265_v2 }
 0x11f   : > { %v1051_v56 = vpop.f32.mrf.mxu2  ;;  %v1275_v57 = vpop.f32.mrf.mxu3  ;;  %v1547_v53 = vshrl.u32 %v12938_v51, 16 }
 0x120   : > { %v1367_v59 = vmul.f32 0.25, %v1342_v36  ;;  %v1052_v8 = vadd.f32 %v12662_v48, %v1051_v56  ;;  %v630_v61 = vpop.f32.mrf.mxu0  ;;  %v829_v60 = vpop.f32.mrf.mxu1  ;;  %v12950_v7 = vsel %vm1502_vm1, %v1541_v42, %v1545_v32  ;;  %v1276_v9 = vadd.f32 %v12662_v48, %v1275_v57 }
 0x121   : > { %v631_v5 = vadd.f32 %v12662_v48, %v630_v61  ;;  %v830_v6 = vadd.f32 %v12662_v48, %v829_v60  ;;  %v1689_v14 = vrot.slane %v12950_v7, 1  ;;  %v1549_v38 = vor.u32 %v1547_v53, %v1545_v32 }
 0x122   : > { %v12232_v4 = vpack.c.bf16 %v1367_v59, %v1366_v58  ;;  %v1094_v0 = vmax.f32 %v1052_v8, 0.0  ;;  %v1318_v22 = vmax.f32 %v1276_v9, 0.0  ;;  %v1691_v42 = vrot.slane %v12938_v51, 1 }
 0x123   : > { %v672_v12 = vmax.f32 %v631_v5, 0.0  ;;  %v871_v1 = vmax.f32 %v830_v6, 0.0  ;;  %v1690_v45 = vsel %vm1672_vm2, %v1685_v23, %v1689_v14 }
 0x124   : > { %12341 = vst [vmem:[#allocation2 + $0x30] sm:$0xff] %v12232_v4   ;;  %v1119_v19 = vadd.f32 %v1094_v0, %v895_v28 }
 0x125   : > { %v896_v39 = vadd.f32 %v871_v1, %v672_v12 }
 0x126   : > { %v1343_v47 = vadd.f32 %v1318_v22, %v1119_v19 }
 0x127   : > { %v1053_v16 = vpop.f32.mrf.mxu2  ;;  %v1277_v17 = vpop.f32.mrf.mxu3 }
 0x128   : > { %v1054_v13 = vadd.f32 %v12662_v48, %v1053_v16  ;;  %v1278_v24 = vadd.f32 %v12662_v48, %v1277_v17  ;;  %v633_v26 = vpop.f32.mrf.mxu0  ;;  %v832_v31 = vpop.f32.mrf.mxu1  ;;  %v1368_v55 = vmul.f32 0.25, %v1343_v47 }
 0x129   : > { %v634_v18 = vadd.f32 %v12662_v48, %v633_v26  ;;  %v833_v50 = vadd.f32 %v12662_v48, %v832_v31 }
 0x12a   : > { %v1095_v40 = vmax.f32 %v1054_v13, 0.0  ;;  %v1319_v44 = vmax.f32 %v1278_v24, 0.0  ;;  %v1692_v13 = vsel %vm1672_vm2, %v1687_v10, %v1691_v42  ;;  %v13013_v10 = vld [vmem:[%s15972_s2] ss:$0 sm:$0xff] }
 0x12b   : > { %1844 = vmatmul.bf16.gmra.mxu0 %v1688_v33  ;;  %1897 = vmatmul.bf16.gmra.mxu1 %v1690_v45  ;;  %v12973_v46 = vld [vmem:[#allocation2 + $0x30] sm:$0xff]  ;;  %v872_v58 = vmax.f32 %v833_v50, 0.0 }
 0x12c   : > { %v1120_v35 = vadd.f32 %v1095_v40, %v896_v39  ;;  %2046 = vmatmul.bf16.gmra.mxu2 %v12868_v62  ;;  %2099 = vmatmul.bf16.gmra.mxu3 %v12915_v15  ;;  %v1551_v30 = vshll.u32 %v12973_v46, 16  ;;  %v673_v15 = vmax.f32 %v634_v18, 0.0  ;;  %v2269_v0 = vrot.slane %v12973_v46, 2 }
 0x12d   : > { %v1555_v50 = vshrl.u32 %v12973_v46, 16 }
 0x12e   : > { %v1344_v52 = vadd.f32 %v1319_v44, %v1120_v35  ;;  %v1553_v54 = vrot.slane %v1551_v30, 1  ;;  %v897_v5 = vadd.f32 %v872_v58, %v673_v15  ;;  %v13004_v39 = vsel %vm2246_vm0, %v2265_v2, %v2269_v0 }
 0x12f   : > { %v1056_v23 = vpop.f32.mrf.mxu2  ;;  %v1280_v29 = vpop.f32.mrf.mxu3 }
 0x130   : > { %v1369_v36 = vmul.f32 0.25, %v1344_v52  ;;  %v1057_v56 = vadd.f32 %v12662_v48, %v1056_v23  ;;  %v635_v57 = vpop.f32.mrf.mxu0  ;;  %v834_v62 = vpop.f32.mrf.mxu1  ;;  %v12985_v60 = vsel %vm1502_vm1, %v1549_v38, %v1553_v54  ;;  %v1281_v25 = vadd.f32 %v12662_v48, %v1280_v29 }
 0x131   : > { %v636_v8 = vadd.f32 %v12662_v48, %v635_v57  ;;  %v835_v61 = vadd.f32 %v12662_v48, %v834_v62  ;;  %v1693_v4 = vrot.slane %v12985_v60, 1 }
 0x132   : > { %v12237_v59 = vpack.c.bf16 %v1369_v36, %v1368_v55  ;;  %v1096_v63 = vmax.f32 %v1057_v56, 0.0  ;;  %v1320_v1 = vmax.f32 %v1281_v25, 0.0  ;;  %v1557_v36 = vor.u32 %v1555_v50, %v1553_v54 }
 0x133   : > { %v674_v32 = vmax.f32 %v636_v8, 0.0  ;;  %v873_v6 = vmax.f32 %v835_v61, 0.0  ;;  %v1694_v24 = vsel %vm1672_vm2, %v1689_v14, %v1693_v4  ;;  %v1695_v8 = vrot.slane %v12973_v46, 1 }
 0x134   : > { %12342 = vst [vmem:[#allocation2 + $0x38] sm:$0xff] %v12237_v59   ;;  %v1121_v12 = vadd.f32 %v1096_v63, %v897_v5 }
 0x135   : > { %v898_v26 = vadd.f32 %v873_v6, %v674_v32 }
 0x136   : > { %v1345_v40 = vadd.f32 %v1320_v1, %v1121_v12 }
 0x137   : > { %v1058_v9 = vpop.f32.mrf.mxu2  ;;  %v1282_v28 = vpop.f32.mrf.mxu3 }
 0x138   : > { %v1059_v16 = vadd.f32 %v12662_v48, %v1058_v9  ;;  %v1283_v17 = vadd.f32 %v12662_v48, %v1282_v28  ;;  %v638_v19 = vpop.f32.mrf.mxu0  ;;  %v837_v22 = vpop.f32.mrf.mxu1 }
 0x139   : > { %v639_v14 = vadd.f32 %v13013_v10, %v638_v19  ;;  %v838_v2 = vadd.f32 %v13013_v10, %v837_v22 }
 0x13a   : > { %v1097_v31 = vmax.f32 %v1059_v16, 0.0  ;;  %v1321_v33 = vmax.f32 %v1283_v17, 0.0  ;;  %v1696_v17 = vsel %vm1672_vm2, %v1691_v42, %v1695_v8 }
 0x13b   : > { %1849 = vmatmul.bf16.gmra.mxu0 %v1692_v13  ;;  %1902 = vmatmul.bf16.gmra.mxu1 %v1694_v24  ;;  %v13006_v48 = vld [vmem:[#allocation2 + $0x38] sm:$0xff]  ;;  %v675_v29 = vmax.f32 %v639_v14, 0.0  ;;  %v874_v55 = vmax.f32 %v838_v2, 0.0 }
 0x13c   : > { %v1122_v44 = vadd.f32 %v1097_v31, %v898_v26  ;;  %2051 = vmatmul.bf16.gmra.mxu2 %v12903_v37  ;;  %2104 = vmatmul.bf16.gmra.mxu3 %v12950_v7  ;;  %v1559_v45 = vshll.u32 %v13006_v48, 16  ;;  %v1370_v37 = vmul.f32 0.25, %v1345_v40  ;;  %v2273_v25 = vrot.slane %v13006_v48, 2 }
 0x13d   : > { %v899_v59 = vadd.f32 %v874_v55, %v675_v29  ;;  %v1563_v50 = vshrl.u32 %v13006_v48, 16 }
 0x13e   : > { %v1346_v47 = vadd.f32 %v1321_v33, %v1122_v44  ;;  %v13019_v30 = vrot.slane %v1559_v45, 1  ;;  %v13042_v19 = vsel %vm2246_vm0, %v2269_v0, %v2273_v25 }
 0x13f   : > { %v1061_v35 = vpop.f32.mrf.mxu2  ;;  %v1285_v18 = vpop.f32.mrf.mxu3 }
 0x140   : > { %v1371_v7 = vmul.f32 0.25, %v1346_v47  ;;  %v1062_v52 = vadd.f32 %v13013_v10, %v1061_v35  ;;  %v640_v53 = vpop.f32.mrf.mxu0  ;;  %v839_v23 = vpop.f32.mrf.mxu1  ;;  %v13026_v38 = vsel %vm1502_vm1, %v1557_v36, %v13019_v30  ;;  %v1286_v58 = vadd.f32 %v13013_v10, %v1285_v18  ;;  %v11788_v47 = vld [vmem:[%s15973_s3 + $0x138] sm:$0xff] }
 0x141   : > { %v641_v57 = vadd.f32 %v13013_v10, %v640_v53  ;;  %v840_v62 = vadd.f32 %v13013_v10, %v839_v23  ;;  %v1697_v54 = vrot.slane %v13026_v38, 1  ;;  %2395 = vmatpush.bf16.msra.mxu0 %v11788_v47 }
 0x142   : > { %v12242_v56 = vpack.c.bf16 %v1371_v7, %v1370_v37  ;;  %v1098_v15 = vmax.f32 %v1062_v52, 0.0  ;;  %v1322_v9 = vmax.f32 %v1286_v58, 0.0  ;;  %v11812_v37 = vld [vmem:[%s15973_s3 + $0x1f8] sm:$0xff] }
 0x143   : > { %v676_v61 = vmax.f32 %v641_v57, 0.0  ;;  %v875_v63 = vmax.f32 %v840_v62, 0.0  ;;  %v1698_v26 = vsel %vm1672_vm2, %v1693_v4, %v1697_v54  ;;  %v13074_v57 = vor.u32 %v1563_v50, %v13019_v30  ;;  %2973 = vmatpush.bf16.msra.mxu3 %v11812_v37  ;;  %v11803_v30 = vld [vmem:[%s15973_s3 + $0x1b0] sm:$0xff]  ;;  %v11785_v37 = vld [vmem:[%s15973_s3 + $0x120] sm:$0xff] }
 0x144   : > { %12343 = vst [vmem:[#allocation2 + $0x40] sm:$0xff] %v12242_v56   ;;  %v1123_v6 = vadd.f32 %v1098_v15, %v899_v59 }
 0x145   : > { %v900_v22 = vadd.f32 %v875_v63, %v676_v61  ;;  %v11787_v61 = vld [vmem:[%s15973_s3 + $0x130] sm:$0xff] }
 0x146   : > { %v1347_v40 = vadd.f32 %v1322_v9, %v1123_v6  ;;  %v11795_v63 = vld [vmem:[%s15973_s3 + $0x170] sm:$0xff]  ;;  %2396 = vmatpush.bf16.msra.mxu0 %v11787_v61 }
 0x147   : > { %v1063_v5 = vpop.f32.mrf.mxu2  ;;  %v1287_v32 = vpop.f32.mrf.mxu3 }
 0x148   : > { %v1064_v28 = vadd.f32 %v13013_v10, %v1063_v5  ;;  %v1288_v12 = vadd.f32 %v13013_v10, %v1287_v32  ;;  %v643_v1 = vpop.f32.mrf.mxu0  ;;  %v842_v16 = vpop.f32.mrf.mxu1  ;;  %v1372_v7 = vmul.f32 0.25, %v1347_v40  ;;  %v11811_v5 = vld [vmem:[%s15973_s3 + $0x1f0] sm:$0xff] }
 0x149   : > { %v644_v14 = vadd.f32 %v13013_v10, %v643_v1  ;;  %v843_v2 = vadd.f32 %v13013_v10, %v842_v16  ;;  %2974 = vmatpush.bf16.msra.mxu3 %v11811_v5 }
 0x14a   : > { %v1099_v13 = vmax.f32 %v1064_v28, 0.0  ;;  %v1323_v24 = vmax.f32 %v1288_v12, 0.0  ;;  %v1699_v28 = vrot.slane %v13006_v48, 1 }
 0x14b   : > { %1854 = vmatmul.bf16.gmra.mxu0 %v1696_v17  ;;  %1907 = vmatmul.bf16.gmra.mxu1 %v1698_v26  ;;  %v1445_v31 = vld [vmem:[#allocation2 + $0x40] sm:$0xf]  ;;  %v1616_v33 = vld [vmem:[#allocation2 + $0x44] sm:$0x3]  ;;  %v677_v36 = vmax.f32 %v644_v14, 0.0  ;;  %v876_v56 = vmax.f32 %v843_v2, 0.0 }
 0x14c   : > { %v1124_v42 = vadd.f32 %v1099_v13, %v900_v22  ;;  %2056 = vmatmul.bf16.gmra.mxu2 %v12938_v51  ;;  %2109 = vmatmul.bf16.gmra.mxu3 %v12985_v60  ;;  %v13051_v0 = vunpack.c.l.b16 %v1445_v31  ;;  %v1621_v44 = vunpack.c.l.b16 %v1616_v33  ;;  %v11796_v51 = vld [vmem:[%s15973_s3 + $0x178] sm:$0xff]  ;;  %v11786_v22 = vld [vmem:[%s15973_s3 + $0x128] sm:$0xff]  ;;  %v1446_v47 = vld [vmem:[#allocation2 + $0x44] sm:$0x1] }
 0x14d   : > { %v11804_v60 = vld [vmem:[%s15973_s3 + $0x1b8] sm:$0xff]  ;;  %2448 = vmatpush.bf16.msra.mxu1 %v11796_v51  ;;  %v901_v12 = vadd.f32 %v876_v56, %v677_v36  ;;  %v11794_v13 = vld [vmem:[%s15973_s3 + $0x168] sm:$0xff]  ;;  %2397 = vmatpush.bf16.msra.mxu0 %v11786_v22  ;;  %v1700_v51 = vsel %vm1672_vm2, %v1695_v8, %v1699_v28  ;;  %v11801_v8 = vld [vmem:[%s15973_s3 + $0x1a0] sm:$0xff] }
 0x14e   : > { %v1348_v45 = vadd.f32 %v1323_v24, %v1124_v42  ;;  %v13056_v4 = vpack.c.b16 %v1621_v44, %v13051_v0  ;;  %2920 = vmatpush.bf16.msra.mxu2 %v11804_v60  ;;  %v11802_v24 = vld [vmem:[%s15973_s3 + $0x1a8] sm:$0xff] }
 0x14f   : > { %v1066_v35 = vpop.f32.mrf.mxu2  ;;  %v1290_v18 = vpop.f32.mrf.mxu3  ;;  %v11810_v33 = vld [vmem:[%s15973_s3 + $0x1e8] sm:$0xff] }
 0x150   : > { %v1373_v52 = vmul.f32 0.25, %v1348_v45  ;;  %v1067_v53 = vadd.f32 %v13013_v10, %v1066_v35  ;;  %v645_v23 = vpop.f32.mrf.mxu0  ;;  %v844_v29 = vpop.f32.mrf.mxu1  ;;  %v1632_v55 = vshll.u32 %v13056_v4, 16  ;;  %v1291_v6 = vadd.f32 %v13013_v10, %v1290_v18  ;;  %2975 = vmatpush.bf16.msra.mxu3 %v11810_v33 }
 0x151   : > { %v646_v15 = vadd.f32 %v13013_v10, %v645_v23  ;;  %v845_v58 = vadd.f32 %v13013_v10, %v844_v29  ;;  %2449 = vmatpush.bf16.msra.mxu1 %v11795_v63  ;;  %2398 = vmatpush.bf16.msra.mxu0 %v11785_v37  ;;  %v11784_v29 = vld [vmem:[%s15973_s3 + $0x118] sm:$0xff]  ;;  %v15983_v36 = vrot.slane %v13056_v4, 2 }
 0x152   : > { %v12247_v62 = vpack.c.bf16 %v1373_v52, %v1372_v7  ;;  %v13078_v59 = vrot.slane %v1632_v55, 1  ;;  %v1100_v32 = vmax.f32 %v1067_v53, 0.0  ;;  %2921 = vmatpush.bf16.msra.mxu2 %v11803_v30  ;;  %v1324_v42 = vmax.f32 %v1291_v6, 0.0  ;;  %v11793_v7 = vld [vmem:[%s15973_s3 + $0x160] sm:$0xff]  ;;  %v11792_v55 = vld [vmem:[%s15973_s3 + $0x158] sm:$0xff] }
 0x153   : > { %v678_v1 = vmax.f32 %v646_v15, 0.0  ;;  %v877_v16 = vmax.f32 %v845_v58, 0.0  ;;  %v1500_v52 = vunpack.c.l.b16 %v1446_v47  ;;  %v11809_v53 = vld [vmem:[%s15973_s3 + $0x1e0] sm:$0xff]  ;;  %v1636_v30 = vshrl.u32 %v13056_v4, 16 }
 0x154   : > { %12344 = vst [vmem:[#allocation2 + $0x48] sm:$0xff] %v12247_v62   ;;  %v13096_v9 = vsel %vm1502_vm1, %v13074_v57, %v13078_v59  ;;  %v1125_v40 = vadd.f32 %v1100_v32, %v901_v12  ;;  %2976 = vmatpush.bf16.msra.mxu3 %v11809_v53  ;;  %v13162_v5 = vsel %vm2246_vm0, %v2273_v25, %v15983_v36  ;;  %v11783_v25 = vld [vmem:[%s15973_s3 + $0x110] sm:$0xff] }
 0x155   : > { %v1701_v17 = vrot.slane %v13096_v9, 1  ;;  %2450 = vmatpush.bf16.msra.mxu1 %v11794_v13  ;;  %v902_v60 = vadd.f32 %v877_v16, %v678_v1  ;;  %v13154_v63 = vpack.c.b16 %v1500_v52, %v13051_v0  ;;  %2399 = vmatpush.bf16.msra.mxu0 %v11784_v29  ;;  %v11789_v9 = vld [vmem:[%s15973_s3 + $0x140] sm:$0xff] }
 0x156   : > { %2922 = vmatpush.bf16.msra.mxu2 %v11802_v24  ;;  %v13168_v24 = vor.u32 %v1636_v30, %v13078_v59  ;;  %v11799_v59 = vld [vmem:[%s15973_s3 + $0x190] sm:$0xff] }
 0x157   : > { %v1068_v26 = vpop.f32.mrf.mxu2  ;;  %v1292_v31 = vpop.f32.mrf.mxu3  ;;  %v1702_v50 = vsel %vm1672_vm2, %v1697_v54, %v1701_v17  ;;  %v1349_v54 = vadd.f32 %v1324_v42, %v1125_v40  ;;  %v11791_v40 = vld [vmem:[%s15973_s3 + $0x150] sm:$0xff]  ;;  %v1567_v42 = vshll.u32 %v13154_v63, 16 }
 0x158   : > { %v1069_v44 = vadd.f32 %v13013_v10, %v1068_v26  ;;  %v1293_v14 = vadd.f32 %v13013_v10, %v1292_v31  ;;  %v648_v2 = vpop.f32.mrf.mxu0  ;;  %v847_v45 = vpop.f32.mrf.mxu1 }
 0x159   : > { %2451 = vmatpush.bf16.msra.mxu1 %v11793_v7  ;;  %v649_v62 = vadd.f32 %v13013_v10, %v648_v2  ;;  %v848_v15 = vadd.f32 %v13013_v10, %v847_v45  ;;  %v1374_v32 = vmul.f32 0.25, %v1349_v54  ;;  %v12348_v45 = vld [vmem:[#allocation2 + $0x10] sm:$0xff]   ;;  %2400 = vmatpush.bf16.msra.mxu0 %v11783_v25  ;;  %v11798_v7 = vld [vmem:[%s15973_s3 + $0x188] sm:$0xff]  ;;  %v13198_v54 = vrot.slane %v1567_v42, 1 }
 0x15a   : > { %v1101_v35 = vmax.f32 %v1069_v44, 0.0  ;;  %v1325_v18 = vmax.f32 %v1293_v14, 0.0  ;;  %2923 = vmatpush.bf16.msra.mxu2 %v11801_v8  ;;  %v11807_v44 = vld [vmem:[%s15973_s3 + $0x1d0] sm:$0xff]  ;;  %v11806_v8 = vld [vmem:[%s15973_s3 + $0x1c8] sm:$0xff]  ;;  %v2544_v30 = vshll.u32 %v12348_v45, 16 }
 0x15b   : > { %1859 = vmatmul.bf16.gmra.mxu0 %v1700_v51  ;;  %1912 = vmatmul.bf16.gmra.mxu1 %v1702_v50  ;;  %v679_v31 = vmax.f32 %v649_v62, 0.0  ;;  %v878_v33 = vmax.f32 %v848_v15, 0.0  ;;  %v11790_v50 = vld [vmem:[%s15973_s3 + $0x148] sm:$0xff] }
 0x15c   : > { %v1126_v23 = vadd.f32 %v1101_v35, %v902_v60  ;;  %2061 = vmatmul.bf16.gmra.mxu2 %v12973_v46  ;;  %2114 = vmatmul.bf16.gmra.mxu3 %v13026_v38  ;;  %v11800_v46 = vld [vmem:[%s15973_s3 + $0x198] sm:$0xff]  ;;  %v1703_v60 = vrot.slane %v13154_v63, 1  ;;  %v1705_v35 = vrot.slane %v13168_v24, 1  ;;  %v2546_v25 = vrot.slane %v2544_v30, 5 }
 0x15d   : > { %v11808_v38 = vld [vmem:[%s15973_s3 + $0x1d8] sm:$0xff]  ;;  %2452 = vmatpush.bf16.msra.mxu1 %v11792_v55  ;;  %v903_v37 = vadd.f32 %v878_v33, %v679_v31 }
 0x15e   : > { %v1350_v56 = vadd.f32 %v1325_v18, %v1126_v23  ;;  %2924 = vmatpush.bf16.msra.mxu2 %v11800_v46  ;;  %2977 = vmatpush.bf16.msra.mxu3 %v11808_v38  ;;  %v11782_v18 = vld [vmem:[%s15973_s3 + $0x108] sm:$0xff]  ;;  %v2541_v23 = vshrl.u32 %v12348_v45, 16  ;;  %v12349_v31 = vld [vmem:[#allocation2 + $0x18] sm:$0xff]  }
 0x15f   : > { %v1071_v58 = vpop.f32.mrf.mxu2  ;;  %v1295_v61 = vpop.f32.mrf.mxu3  ;;  %2401 = vmatpush.bf16.msra.mxu0 %v11782_v18  ;;  %v2550_v45 = vshrl.u32 %v12349_v31, 16 }
 0x160   : > { %v1375_v6 = vmul.f32 0.25, %v1350_v56  ;;  %v1072_v12 = vadd.f32 %v13013_v10, %v1071_v58  ;;  %v650_v1 = vpop.f32.mrf.mxu0  ;;  %v849_v16 = vpop.f32.mrf.mxu1  ;;  %v1296_v2 = vadd.f32 %v13013_v10, %v1295_v61  ;;  %v1704_v58 = vsel %vm1672_vm2, %v1699_v28, %v1703_v60  ;;  %v11781_v28 = vld [vmem:[%s15973_s3 + $0x100] sm:$0xff] }
 0x161   : > { %v651_v22 = vadd.f32 %v13013_v10, %v650_v1  ;;  %v850_v13 = vadd.f32 %v13013_v10, %v849_v16  ;;  %2453 = vmatpush.bf16.msra.mxu1 %v11791_v40  ;;  %v1706_v61 = vsel %vm1672_vm2, %v1701_v17, %v1705_v35  ;;  %v11797_v17 = vld [vmem:[%s15973_s3 + $0x180] sm:$0xff]  ;;  %v1570_v16 = vsel %vm1502_vm1, %v13074_v57, %v13198_v54  ;;  %v12442_v57 = vld [vmem:[#allocation2 + $0x4] sm:$0xf0]  }
 0x162   : > { %v12252_v26 = vpack.c.bf16 %v1375_v6, %v1374_v32  ;;  %v1102_v14 = vmax.f32 %v1072_v12, 0.0  ;;  %2925 = vmatpush.bf16.msra.mxu2 %v11799_v59  ;;  %2978 = vmatpush.bf16.msra.mxu3 %v11807_v44  ;;  %v1326_v55 = vmax.f32 %v1296_v2, 0.0  ;;  %v2543_v33 = vrot.slane %v2541_v23, 4 }
 0x163   : > { %v680_v47 = vmax.f32 %v651_v22, 0.0  ;;  %v879_v51 = vmax.f32 %v850_v13, 0.0  ;;  %v11805_v22 = vld [vmem:[%s15973_s3 + $0x1c0] sm:$0xff]  ;;  %2402 = vmatpush.bf16.msra.mxu0 %v11781_v28  ;;  %v2535_v2 = vrot.slane %v2533_v34, 4 }
 0x164   : > { %12345 = vst [vmem:[#allocation2 + $0x50] sm:$0xff] %v12252_v26   ;;  %v1127_v29 = vadd.f32 %v1102_v14, %v903_v37  ;;  %v2547_v23 = vor.u32 %v2546_v25, %v2543_v33 }
 0x165   : > { %v904_v38 = vadd.f32 %v879_v51, %v680_v47  ;;  %2454 = vmatpush.bf16.msra.mxu1 %v11790_v50  ;;  %v2553_v47 = vshll.u32 %v12349_v31, 16 }
 0x166   : > { %2926 = vmatpush.bf16.msra.mxu2 %v11798_v7  ;;  %2979 = vmatpush.bf16.msra.mxu3 %v11806_v8  ;;  %v1351_v13 = vadd.f32 %v1326_v55, %v1127_v29 }
 0x167   : > { %v1073_v52 = vpop.f32.mrf.mxu2  ;;  %v1297_v53 = vpop.f32.mrf.mxu3 }
 0x168   : > { %v1074_v56 = vadd.f32 %v13013_v10, %v1073_v52  ;;  %v1298_v62 = vadd.f32 %v13013_v10, %v1297_v53  ;;  %v653_v15 = vpop.f32.mrf.mxu0  ;;  %v852_v46 = vpop.f32.mrf.mxu1  ;;  %v1376_v51 = vmul.f32 0.25, %v1351_v13  ;;  %v12369_v52 = vld [vmem:[#allocation2 + $0x4] sm:$0x8]  ;;  %v1571_v13 = vshrl.u32 %v13154_v63, 16 }
 0x169   : > { %v654_v12 = vadd.f32 %v13013_v10, %v653_v15  ;;  %v853_v1 = vadd.f32 %v13013_v10, %v852_v46  ;;  %2455 = vmatpush.bf16.msra.mxu1 %v11789_v9  ;;  %v13236_v53 = vor.u32 %v12442_v57, %v12369_v52  ;;  %v2552_v15 = vrot.slane %v2550_v45, 4 }
 0x16a   : > { %v1103_v32 = vmax.f32 %v1074_v56, 0.0  ;;  %v1327_v6 = vmax.f32 %v1298_v62, 0.0  ;;  %2927 = vmatpush.bf16.msra.mxu2 %v11797_v17  ;;  %2980 = vmatpush.bf16.msra.mxu3 %v11805_v22  ;;  %v2555_v46 = vrot.slane %v2553_v47, 5 }
 0x16b   : > { %1864 = vmatmul.bf16.gmra.mxu0 %v1704_v58  ;;  %1917 = vmatmul.bf16.gmra.mxu1 %v1706_v61  ;;  %v681_v59 = vmax.f32 %v654_v12, 0.0  ;;  %v880_v42 = vmax.f32 %v853_v1, 0.0  ;;  %v2647_v61 = vshrl.u32 %v13236_v53, 16  ;;  %v2650_v30 = vshll.u32 %v13236_v53, 16 }
 0x16c   : > { %v1128_v26 = vadd.f32 %v1103_v32, %v904_v38  ;;  %2066 = vmatmul.bf16.gmra.mxu2 %v13006_v48  ;;  %2119 = vmatmul.bf16.gmra.mxu3 %v1570_v16  ;;  %v2538_v48 = vrot.slane %v2536_v21, 5  ;;  %v12444_v21 = vld [vmem:[#allocation2 + $0xc] sm:$0xff]   ;;  %v13238_v38 = vld [vmem:[#allocation2 + $0x14] sm:$0xff]   ;;  %v13244_v31 = vor.u32 %v2555_v46, %v2552_v15 }
 0x16d   : > { %v905_v34 = vadd.f32 %v880_v42, %v681_v59  ;;  %v2655_v12 = vshrl.u32 %v12444_v21, 16  ;;  %v2658_v1 = vshll.u32 %v12444_v21, 16  ;;  %v2199_v25 = vrot.slane %v13238_v38, 1  ;;  %v12350_v42 = vld [vmem:[#allocation2 + $0x20] sm:$0xff]  }
 0x16e   : > { %v1352_v40 = vadd.f32 %v1327_v6, %v1128_v26  ;;  %v2539_v56 = vor.u32 %v2538_v48, %v2535_v2  ;;  %v2681_v59 = vshrl.u32 %v13238_v38, 16  ;;  %v2684_v2 = vshll.u32 %v13238_v38, 16 }
 0x16f   : > { %v1076_v44 = vpop.f32.mrf.mxu2  ;;  %v1300_v14 = vpop.f32.mrf.mxu3  ;;  %v2196_v48 = vrot.slane %v13236_v53, 1  ;;  %v2197_v45 = vrot.slane %v12444_v21, 1  ;;  %v2657_v47 = vrot.slane %v2655_v12, 3  ;;  %v2562_v63 = vshll.u32 %v12350_v42, 16  ;;  %v4302_v12 = vld [vmem:[#allocation2 + $0x18] sm:$0xf] }
 0x170   : > { %v1377_v18 = vmul.f32 0.25, %v1352_v40  ;;  %v1077_v50 = vadd.f32 %v13013_v10, %v1076_v44  ;;  %v1301_v37 = vadd.f32 %v13013_v10, %v1300_v14  ;;  %v655_v7 = vpop.f32.mrf.mxu0  ;;  %v854_v8 = vpop.f32.mrf.mxu1  ;;  %v2548_v10 = vsel %vm2531_vm3, %v2539_v56, %v2547_v23 }
 0x171   : > { %v2664_v28 = vshrl.u32 %v2539_v56, 16  ;;  %v2667_v9 = vshll.u32 %v2539_v56, 16  ;;  %v2672_v26 = vshrl.u32 %v2548_v10, 16  ;;  %v2675_v40 = vshll.u32 %v2548_v10, 16 }
 0x172   : > { %v12257_v29 = vpack.c.bf16 %v1377_v18, %v1376_v51  ;;  %v1104_v55 = vmax.f32 %v1077_v50, 0.0  ;;  %v1328_v3 = vmax.f32 %v1301_v37, 0.0  ;;  %v1489_v44 = vpack.c.b16 %v13051_v0, %v13051_v0  ;;  %v13257_v0 = vld [vmem:[#allocation2 + $0x1c] sm:$0xff]  }
 0x173   : > { %v1573_v14 = vor.u32 %v1571_v13, %v13198_v54  ;;  %v2660_v51 = vrot.slane %v2658_v1, 4  ;;  %v2649_v18 = vrot.slane %v2647_v61, 3  ;;  %v2557_v54 = vsel %vm2531_vm3, %v2547_v23, %v13244_v31  ;;  %v11869_v1 = vld [vmem:[#allocation2 + $0x1c] sm:$0xff] }
 0x174   : > { %12346 = vst [vmem:[#allocation2 + $0x58] sm:$0xff] %v12257_v29   ;;  %v1129_v62 = vadd.f32 %v1104_v55, %v905_v34  ;;  %v2559_v50 = vshrl.u32 %v12350_v42, 16  ;;  %v2666_v37 = vrot.slane %v2664_v28, 3  ;;  %v2674_v24 = vrot.slane %v2672_v26, 3 }
 0x175   : > { %v13262_v7 = vsel %vm1672_vm2, %v2197_v45, %v2199_v25  ;;  %v2669_v8 = vrot.slane %v2667_v9, 4  ;;  %v2683_v52 = vrot.slane %v2681_v59, 3  ;;  %v2686_v53 = vrot.slane %v2684_v2, 4 }
 0x176   : > { %v1353_v58 = vadd.f32 %v1328_v3, %v1129_v62  ;;  %v2198_v55 = vsel %vm1672_vm2, %v2196_v48, %v2197_v45  ;;  %v2661_v3 = vor.u32 %v2660_v51, %v2657_v47  ;;  %v2690_v21 = vshrl.u32 %v2557_v54, 16 }
 0x177   : > { %v1078_v32 = vpop.f32.mrf.mxu2  ;;  %v1302_v6 = vpop.f32.mrf.mxu3  ;;  %v2693_v56 = vshll.u32 %v2557_v54, 16  ;;  %v2201_v46 = vrot.slane %v13257_v0, 1  ;;  %v2561_v38 = vrot.slane %v2559_v50, 4  ;;  %v2564_v10 = vrot.slane %v2562_v63, 5  ;;  %v4661_v50 = vld [vmem:[#allocation2 + $0x14] sm:$0xc] }
 0x178   : > { %v1378_v17 = vmul.f32 0.25, %v1353_v58  ;;  %v1830_v16 = vpop.f32.mrf.mxu0  ;;  %v1883_v22 = vpop.f32.mrf.mxu1  ;;  %v2251_v61 = vrot.slane %v13262_v7, 2  ;;  %v4301_v6 = vld [vmem:[#allocation2 + $0x14] sm:$0xe]  ;;  %v2250_v9 = vrot.slane %v2198_v55, 2  ;;  %v2692_v26 = vrot.slane %v2690_v21, 3 }
 0x179   : > { %v1884_v33 = vadd.f32 %v1883_v22, %v1830_v16  ;;  %v13269_v16 = vor.u32 %v2686_v53, %v2683_v52  ;;  %v13271_v22 = vld [vmem:[#allocation2 + $0x14] sm:$0xff]   ;;  %v13278_v59 = vsel %vm1672_vm2, %v2199_v25, %v2201_v46  ;;  %v13280_v42 = vor.u32 %v2564_v10, %v2561_v38  ;;  %v13304_v7 = vld [vmem:[#allocation2 + $0x24] sm:$0xff]  }
 0x17a   : > { %v1403_v57 = vpack.c.bf16 %v1378_v17, %v1378_v17  ;;  %v2670_v17 = vor.u32 %v2669_v8, %v2666_v37  ;;  %v2252_v2 = vsel %vm2246_vm0, %v2250_v9, %v2251_v61  ;;  %v13288_v45 = vshll.u32 %v11869_v1, 16  ;;  %16030 = vst [vmem:[#allocation5_spill] sm:$0xff] %v13304_v7 }
 0x17b   : > { %1869 = vmatmul.bf16.gmra.mxu0 %v1703_v60  ;;  %1922 = vmatmul.bf16.gmra.mxu1 %v1705_v35  ;;  %v2652_v60 = vrot.slane %v2650_v30, 4  ;;  %v2677_v35 = vrot.slane %v2675_v40, 4  ;;  %v2699_v40 = vshrl.u32 %v13257_v0, 16  ;;  %v13290_v47 = vshrl.u32 %v11869_v1, 16 }
 0x17c   : > { %1428 = vst [vmem:[#allocation2 + $0x60] sm:$0xf] %v1403_v57  ;;  %2071 = vmatmul.bf16.gmra.mxu2 %v1489_v44  ;;  %2124 = vmatmul.bf16.gmra.mxu3 %v1573_v14  ;;  %v13282_v57 = vld [vmem:[#allocation2 + $0x1c] sm:$0xff]   ;;  %v4355_v44 = vunpack.c.l.b16 %v4301_v6  ;;  %v13284_v14 = vunpack.c.l.b16 %v4302_v12  ;;  %v13294_v51 = vsel %vm2645_vm4, %v2661_v3, %v13269_v16  ;;  %v2702_v25 = vshll.u32 %v13257_v0, 16 }
 0x17d   : > { %v2653_v30 = vor.u32 %v2652_v60, %v2649_v18  ;;  %v2678_v32 = vor.u32 %v2677_v35, %v2674_v24  ;;  %v3605_v18 = vshll.u32 %v13271_v22, 16  ;;  %v2255_v37 = vrot.slane %v13278_v59, 2 }
 0x17e   : > { %v13299_v54 = vpack.c.b16 %v13284_v14, %v4355_v44  ;;  %v2701_v35 = vrot.slane %v2699_v40, 3  ;;  %v4781_v8 = vrot.slane %v13290_v47, 1  ;;  %v3613_v55 = vshll.u32 %v13282_v57, 16 }
 0x17f   : > { %v2032_v29 = vpop.f32.mrf.mxu2  ;;  %v2085_v34 = vpop.f32.mrf.mxu3  ;;  %v2662_v13 = vsel %vm2645_vm4, %v2653_v30, %v2661_v3  ;;  %v2679_v48 = vsel %vm2645_vm4, %v2670_v17, %v2678_v32  ;;  %v2704_v38 = vrot.slane %v2702_v25, 4  ;;  %v13316_v10 = vrot.slane %v3605_v18, 1 }
 0x180   : > { %v2033_v23 = vadd.f32 %v2032_v29, %v1884_v33  ;;  %v1832_v62 = vpop.f32.mrf.mxu0  ;;  %v1885_v15 = vpop.f32.mrf.mxu1  ;;  %v2695_v33 = vrot.slane %v2693_v56, 4  ;;  %16029 = vst [vmem:[#allocation4_spill] sm:$0xff] %v13299_v54  ;;  %v4774_v3 = vshrl.u32 %v13299_v54, 16  ;;  %v4777_v56 = vshll.u32 %v13299_v54, 16 }
 0x181   : > { %v1886_v58 = vadd.f32 %v1885_v15, %v1832_v62  ;;  %v4666_v62 = vunpack.c.l.b16 %v4661_v50  ;;  %v3621_v30 = vshll.u32 %v13304_v7, 16  ;;  %v13326_v9 = vsel %vm2246_vm0, %v2251_v61, %v2255_v37 }
 0x182   : > { %v13267_v28 = vadd.f32 %v2085_v34, %v2033_v23  ;;  %v13302_v24 = vor.u32 %v2695_v33, %v2692_v26  ;;  %v2566_v34 = vsel %vm2531_vm3, %v13244_v31, %v13280_v42  ;;  %v4782_v23 = vrot.slane %v13288_v45, 2  ;;  %v12351_v31 = vld [vmem:[#allocation2 + $0x28] sm:$0xff]  }
 0x183   : > { %v4779_v6 = vrot.slane %v4777_v56, 2  ;;  %v4667_v1 = vpack.c.b16 %v13284_v14, %v4666_v62  ;;  %v2708_v26 = vshrl.u32 %v2566_v34, 16  ;;  %v3609_v33 = vshrl.u32 %v13271_v22, 16 }
 0x184   : > { %v13320_v12 = vor.u32 %v4782_v23, %v4781_v8  ;;  %v13330_v17 = vsel %vm2645_vm4, %v2678_v32, %v13302_v24  ;;  %v3615_v40 = vrot.slane %v3613_v55, 1  ;;  %v2568_v25 = vshrl.u32 %v12351_v31, 16 }
 0x185   : > { %v2571_v18 = vshll.u32 %v12351_v31, 16  ;;  %v3617_v32 = vshrl.u32 %v13282_v57, 16  ;;  %v4669_v23 = vshrl.u32 %v4667_v1, 16  ;;  %v5131_v57 = vld [vmem:[#allocation2 + $0x14] sm:$0x8] }
 0x187   : > { %v2034_v63 = vpop.f32.mrf.mxu2  ;;  %v2087_v60 = vpop.f32.mrf.mxu3  ;;  %v3619_v56 = vor.u32 %v3617_v32, %v3615_v40 }
 0x188   : > { %v2035_v52 = vadd.f32 %v2034_v63, %v1886_v58  ;;  %v1835_v53 = vpop.f32.mrf.mxu0  ;;  %v1888_v29 = vpop.f32.mrf.mxu1  ;;  %v4776_v58 = vrot.slane %v4774_v3, 1  ;;  %v3611_v63 = vor.u32 %v3609_v33, %v13316_v10 }
 0x189   : > { %v1889_v21 = vadd.f32 %v1888_v29, %v1835_v53  ;;  %v2710_v29 = vrot.slane %v2708_v26, 3 }
 0x18a   : > { %v13314_v15 = vadd.f32 %v2087_v60, %v2035_v52  ;;  %v4780_v44 = vor.u32 %v4779_v6, %v4776_v58  ;;  %v13339_v60 = vrot.slane %v3621_v30, 1  ;;  %v13347_v3 = vsel %vm1502_vm1, %v3611_v63, %v3615_v40  ;;  %v13368_v40 = vld [vmem:[#allocation2 + $0x24] sm:$0xff] }
 0x18b   : > { %2403 = vmatmul.bf16.vlgmr.msra.gmra.mxu0 %v12809_v20  ;;  %2456 = vmatmul.bf16.vlgmr.msra.gmra.mxu1 %v2252_v2  ;;  %v13332_v20 = vld [vmem:[#allocation2 + $0x24] sm:$0xff]   ;;  %v4671_v2 = vshll.u32 %v4667_v1, 16  ;;  %v5192_v58 = vrot.slane %v13288_v45, 3  ;;  %v2570_v30 = vrot.slane %v2568_v25, 4  ;;  %v2573_v6 = vrot.slane %v2571_v18, 5 }
 0x18c   : > { %2928 = vmatmul.bf16.vlgmr.msra.gmra.mxu2 %v2662_v13  ;;  %2981 = vmatmul.bf16.vlgmr.msra.gmra.mxu3 %v2679_v48  ;;  %v13335_v13 = vor.u32 %v2704_v38, %v2701_v35  ;;  %v2711_v48 = vshll.u32 %v2566_v34, 16  ;;  %v13343_v8 = vsel %vm4772_vm5, %v4780_v44, %v13320_v12  ;;  %v15984_v35 = vrot.slane %v13332_v20, 1 }
 0x18d   : > { %16031 = vst [vmem:[#allocation6_spill] sm:$0xff] %v13343_v8  ;;  %v4673_v34 = vrot.slane %v4671_v2, 1  ;;  %v13352_v38 = vrot.slane %v13288_v45, 1  ;;  %v13358_v26 = vsel %vm1502_vm1, %v3619_v56, %v13339_v60  ;;  %v2717_v33 = vshrl.u32 %v13332_v20, 16  ;;  %v13385_v56 = vld [vmem:[#allocation2 + $0x2c] sm:$0xff]  }
 0x18e   : > { %v2713_v31 = vrot.slane %v2711_v48, 4  ;;  %16032 = vst [vmem:[#allocation7_spill] sm:$0xff] %v13358_v26  ;;  %v13365_v1 = vsel %vm1672_vm2, %v2201_v46, %v15984_v35  ;;  %v5136_v45 = vunpack.c.l.b16 %v5131_v57  ;;  %v2720_v48 = vshll.u32 %v13332_v20, 16 }
 0x18f   : > { %v2037_v61 = vpop.f32.mrf.mxu2  ;;  %v2090_v50 = vpop.f32.mrf.mxu3  ;;  %v4674_v44 = vor.u32 %v4673_v34, %v4669_v23  ;;  %v15985_v25 = vrot.slane %v13347_v3, 3  ;;  %v5188_v18 = vrot.slane %v4669_v23, 2  ;;  %v15986_v63 = vrot.slane %v13358_v26, 3 }
 0x190   : > { %v2038_v22 = vadd.f32 %v2037_v61, %v1889_v21  ;;  %v1837_v52 = vpop.f32.mrf.mxu0  ;;  %v1890_v53 = vpop.f32.mrf.mxu1  ;;  %v5191_v21 = vrot.slane %v13290_v47, 2  ;;  %v5189_v61 = vrot.slane %v4671_v2, 3  ;;  %v5137_v32 = vpack.c.b16 %v13284_v14, %v5136_v45  ;;  %v12352_v45 = vld [vmem:[#allocation2 + $0x30] sm:$0xff]  }
 0x191   : > { %v1891_v55 = vadd.f32 %v1890_v53, %v1837_v52  ;;  %v13377_v0 = vsel %vm1502_vm1, %v4674_v44, %v13352_v38  ;;  %v15988_v53 = vrot.slane %v13365_v1, 2  ;;  %v13383_v34 = vor.u32 %v2573_v6, %v2570_v30 }
 0x192   : > { %v13349_v62 = vadd.f32 %v2090_v50, %v2038_v22  ;;  %v13372_v50 = vld [vmem:[#allocation2 + $0x2c] sm:$0xff]   ;;  %v13379_v46 = vor.u32 %v5192_v58, %v5191_v21  ;;  %v13392_v21 = vsel %vm4029_vm6, %v15985_v25, %v15986_v63  ;;  %v13395_v14 = vshll.u32 %v13368_v40, 16 }
 0x193   : > { %16033 = vst [vmem:[#allocation8_spill] sm:$0xff] %v13392_v21  ;;  %v5190_v58 = vor.u32 %v5189_v61, %v5188_v18  ;;  %v2719_v6 = vrot.slane %v2717_v33, 3  ;;  %v2722_v44 = vrot.slane %v2720_v48, 4  ;;  %v5141_v36 = vshll.u32 %v5137_v32, 16 }
 0x194   : > { %v2575_v33 = vsel %vm2531_vm3, %v13280_v42, %v13383_v34  ;;  %v3629_v48 = vshll.u32 %v13385_v56, 16  ;;  %v5139_v18 = vshrl.u32 %v5137_v32, 16  ;;  %v13425_v42 = vsel %vm2246_vm0, %v2255_v37, %v15988_v53 }
 0x195   : > { %v13407_v25 = vsel %vm5187_vm7, %v5190_v58, %v13379_v46  ;;  %v5143_v61 = vrot.slane %v5141_v36, 1  ;;  %v4682_v36 = vor.u32 %v13290_v47, %v13352_v38  ;;  %v3625_v32 = vshrl.u32 %v13304_v7, 16 }
 0x196   : > { %16034 = vst [vmem:[#allocation9_spill] sm:$0xff] %v13407_v25  ;;  %v16035_v59 = vrot.slane %v13332_v20, 1  ;;  %v13440_v58 = vrot.slane %v3629_v48, 1  ;;  %v4789_v48 = vshll.u32 %v13377_v0, 16 }
 0x197   : > { %v2039_v22 = vpop.f32.mrf.mxu2  ;;  %v2092_v52 = vpop.f32.mrf.mxu3  ;;  %v3627_v63 = vor.u32 %v3625_v32, %v13339_v60 }
 0x198   : > { %v2040_v2 = vadd.f32 %v2039_v22, %v1891_v55  ;;  %v1840_v23 = vpop.f32.mrf.mxu0  ;;  %v1893_v57 = vpop.f32.mrf.mxu1  ;;  %v13402_v55 = vsel %vm2645_vm4, %v13269_v16, %v13335_v13  ;;  %v15987_v22 = vrot.slane %v13372_v50, 1  ;;  %v13417_v16 = vor.u32 %v2713_v31, %v2710_v29 }
 0x199   : > { %v1894_v30 = vadd.f32 %v1893_v57, %v1840_v23  ;;  %v2729_v29 = vshll.u32 %v2575_v33, 16  ;;  %v2735_v31 = vshrl.u32 %v13372_v50, 16 }
 0x19a   : > { %v13397_v35 = vadd.f32 %v2092_v52, %v2040_v2  ;;  %v2577_v52 = vshrl.u32 %v12352_v45, 16  ;;  %v2580_v2 = vshll.u32 %v12352_v45, 16  ;;  %v13438_v37 = vsel %vm1672_vm2, %v16035_v59, %v15987_v22 }
 0x19b   : > { %2408 = vmatmul.bf16.gmra.mxu0 %v12857_v49  ;;  %2461 = vmatmul.bf16.gmra.mxu1 %v13326_v9  ;;  %v15989_v49 = vrot.slane %v13395_v14, 1  ;;  %v13427_v9 = vor.u32 %v2722_v44, %v2719_v6  ;;  %v4786_v59 = vshrl.u32 %v13377_v0, 16  ;;  %v13465_v0 = vsel %vm1502_vm1, %v3627_v63, %v13440_v58 }
 0x19c   : > { %2933 = vmatmul.bf16.gmra.mxu2 %v13294_v51  ;;  %2986 = vmatmul.bf16.gmra.mxu3 %v13330_v17  ;;  %v5144_v51 = vor.u32 %v5143_v61, %v5139_v18  ;;  %v2726_v17 = vshrl.u32 %v2575_v33, 16  ;;  %v2579_v18 = vrot.slane %v2577_v52, 4  ;;  %v2582_v61 = vrot.slane %v2580_v2, 5  ;;  %16037 = vst [vmem:[#allocation11_spill] sm:$0xff] %v13465_v0 }
 0x19d   : > { %v4687_v47 = vsel %vm1502_vm1, %v4682_v36, %v15989_v49  ;;  %v15992_v36 = vrot.slane %v13438_v37, 2  ;;  %v15990_v49 = vrot.slane %v13304_v7, 3  ;;  %v13461_v60 = vsel %vm2645_vm4, %v13335_v13, %v13427_v9 }
 0x19e   : > { %v5145_v6 = vsel %vm1502_vm1, %v5144_v51, %v13352_v38  ;;  %v4794_v22 = vshrl.u32 %v4687_v47, 16  ;;  %v15991_v38 = vrot.slane %v13385_v56, 3  ;;  %v2728_v52 = vrot.slane %v2726_v17, 3 }
 0x19f   : > { %v2042_v23 = vpop.f32.mrf.mxu2  ;;  %v2095_v57 = vpop.f32.mrf.mxu3  ;;  %v2731_v2 = vrot.slane %v2729_v29, 4  ;;  %v13467_v51 = vrot.slane %v2735_v31, 3  ;;  %v13469_v32 = vor.u32 %v2582_v61, %v2579_v18  ;;  %v4791_v13 = vrot.slane %v4789_v48, 2  ;;  %v13485_v31 = vld [vmem:[#allocation2 + $0x34] sm:$0xff]  }
 0x1a0   : > { %v2043_v44 = vadd.f32 %v2042_v23, %v1894_v30  ;;  %v1842_v45 = vpop.f32.mrf.mxu0  ;;  %v1895_v33 = vpop.f32.mrf.mxu1  ;;  %v2715_v30 = vsel %vm2645_vm4, %v13302_v24, %v13417_v16  ;;  %v13476_v24 = vsel %vm4029_vm6, %v15990_v49, %v15991_v38  ;;  %v4788_v23 = vrot.slane %v4786_v59, 1  ;;  %v11871_v49 = vld [vmem:[#allocation2 + $0x2c] sm:$0xff] }
 0x1a1   : > { %v1896_v20 = vadd.f32 %v1895_v33, %v1842_v45  ;;  %16038 = vst [vmem:[#allocation12_spill] sm:$0xff] %v13476_v24  ;;  %v4797_v17 = vshll.u32 %v4687_v47, 16  ;;  %v16039_v63 = vrot.slane %v13365_v1, 2  ;;  %v5196_v45 = vshrl.u32 %v5145_v6, 16 }
 0x1a2   : > { %v13450_v53 = vadd.f32 %v2095_v57, %v2043_v44  ;;  %v4796_v57 = vrot.slane %v4794_v22, 1  ;;  %v15995_v44 = vrot.slane %v13465_v0, 3  ;;  %v5199_v33 = vshll.u32 %v5145_v6, 16 }
 0x1a3   : > { %v13483_v29 = vsel %vm2246_vm0, %v16039_v63, %v15992_v36  ;;  %v4799_v59 = vrot.slane %v4797_v17, 2  ;;  %v5203_v48 = vrot.slane %v4794_v22, 2  ;;  %v5204_v38 = vrot.slane %v4797_v17, 3 }
 0x1a4   : > { %16036 = vst [vmem:[#allocation10_spill] sm:$0xff] %v13450_v53  ;;  %v4688_v47 = vshrl.u32 %v13368_v40, 16  ;;  %v2738_v63 = vshll.u32 %v13372_v50, 16  ;;  %v2584_v36 = vsel %vm2531_vm3, %v13383_v34, %v13469_v32  ;;  %v16040_v6 = vrot.slane %v13358_v26, 3  ;;  %v12353_v34 = vld [vmem:[#allocation2 + $0x38] sm:$0xff]  }
 0x1a5   : > { %v4792_v17 = vor.u32 %v4791_v13, %v4788_v23  ;;  %v13500_v7 = vor.u32 %v4799_v59, %v4796_v57  ;;  %v5198_v40 = vrot.slane %v5196_v45, 2  ;;  %v5201_v21 = vrot.slane %v5199_v33, 3 }
 0x1a6   : > { %v13498_v24 = vsel %vm4029_vm6, %v16040_v6, %v15995_v44  ;;  %v13505_v54 = vor.u32 %v5204_v38, %v5203_v48  ;;  %v13509_v53 = vshll.u32 %v11871_v49, 16  ;;  %v4802_v23 = vrot.slane %v4688_v47, 1 }
 0x1a7   : > { %v2044_v18 = vpop.f32.mrf.mxu2  ;;  %v2097_v61 = vpop.f32.mrf.mxu3  ;;  %16041 = vst [vmem:[#allocation13_spill] sm:$0xff] %v13498_v24  ;;  %v13517_v13 = vor.u32 %v2731_v2, %v2728_v52  ;;  %v5202_v38 = vor.u32 %v5201_v21, %v5198_v40  ;;  %v5207_v57 = vrot.slane %v4688_v47, 2  ;;  %v2744_v45 = vshrl.u32 %v2584_v36, 16  ;;  %v13528_v52 = vld [vmem:[#allocation2 + $0x34] sm:$0xff]   ;;  %v13707_v24 = vld [vmem:[#allocation2 + $0x2c] sm:$0xff] }
 0x1a8   : > { %v2045_v25 = vadd.f32 %v2044_v18, %v1896_v20  ;;  %v1845_v8 = vpop.f32.mrf.mxu0  ;;  %v1898_v1 = vpop.f32.mrf.mxu1  ;;  %v3637_v18 = vshll.u32 %v13485_v31, 16  ;;  %v2586_v59 = vshrl.u32 %v12353_v34, 16  ;;  %v2589_v48 = vshll.u32 %v12353_v34, 16 }
 0x1a9   : > { %v1899_v22 = vadd.f32 %v1898_v1, %v1845_v8  ;;  %v13513_v8 = vsel %vm4772_vm5, %v4792_v17, %v13500_v7  ;;  %v13524_v1 = vsel %vm5187_vm7, %v5202_v38, %v13505_v54  ;;  %v3633_v21 = vshrl.u32 %v13385_v56, 16 }
 0x1aa   : > { %v13502_v20 = vadd.f32 %v2097_v61, %v2045_v25  ;;  %16043 = vst [vmem:[#allocation15_spill] sm:$0xff] %v13513_v8  ;;  %v4803_v25 = vrot.slane %v13395_v14, 2  ;;  %v13520_v61 = vshrl.u32 %v11871_v49, 16  ;;  %v13531_v2 = vrot.slane %v3637_v18, 1  ;;  %v13608_v8 = vld [vmem:[#allocation2 + $0x3c] sm:$0xff]  }
 0x1ab   : > { %2413 = vmatmul.bf16.gmra.mxu0 %v12889_v43  ;;  %2466 = vmatmul.bf16.gmra.mxu1 %v13425_v42  ;;  %v5208_v43 = vrot.slane %v13395_v14, 3  ;;  %v2740_v42 = vrot.slane %v2738_v63, 4  ;;  %16044 = vst [vmem:[#allocation16_spill] sm:$0xff] %v13524_v1  ;;  %v4816_v38 = vrot.slane %v13509_v53, 2 }
 0x1ac   : > { %16042 = vst [vmem:[#allocation14_spill] sm:$0xff] %v13502_v20  ;;  %2938 = vmatmul.bf16.gmra.mxu2 %v13402_v55  ;;  %2991 = vmatmul.bf16.gmra.mxu3 %v2715_v30  ;;  %v4804_v33 = vor.u32 %v4803_v25, %v4802_v23  ;;  %v4815_v25 = vrot.slane %v13520_v61, 1 }
 0x1ad   : > { %v13526_v6 = vor.u32 %v5208_v43, %v5207_v57  ;;  %v2747_v57 = vshll.u32 %v2584_v36, 16  ;;  %v3635_v43 = vor.u32 %v3633_v21, %v13440_v58  ;;  %v13572_v21 = vor.u32 %v2740_v42, %v13467_v51  ;;  %v13588_v42 = vld [vmem:[#allocation2 + $0x3c] sm:$0xff]  }
 0x1ae   : > { %v13535_v49 = vsel %vm4772_vm5, %v13320_v12, %v4804_v33  ;;  %v16047_v12 = vrot.slane %v13395_v14, 1  ;;  %v13559_v58 = vor.u32 %v4816_v38, %v4815_v25  ;;  %v2733_v14 = vsel %vm2645_vm4, %v13417_v16, %v13517_v13 }
 0x1af   : > { %v2047_v55 = vpop.f32.mrf.mxu2  ;;  %v2100_v30 = vpop.f32.mrf.mxu3  ;;  %16045 = vst [vmem:[#allocation17_spill] sm:$0xff] %v13535_v49  ;;  %v13541_v23 = vsel %vm5187_vm7, %v13379_v46, %v13526_v6  ;;  %v15996_v49 = vrot.slane %v13485_v31, 3  ;;  %v15997_v46 = vrot.slane %v13528_v52, 1 }
 0x1b0   : > { %v2048_v17 = vadd.f32 %v2047_v55, %v1899_v22  ;;  %v1847_v40 = vpop.f32.mrf.mxu0  ;;  %v1900_v34 = vpop.f32.mrf.mxu1  ;;  %16046 = vst [vmem:[#allocation18_spill] sm:$0xff] %v13541_v23  ;;  %v4690_v44 = vor.u32 %v4688_v47, %v16047_v12  ;;  %v2588_v22 = vrot.slane %v2586_v59, 4  ;;  %v2591_v55 = vrot.slane %v2589_v48, 5 }
 0x1b1   : > { %v1901_v18 = vadd.f32 %v1900_v34, %v1847_v40  ;;  %v13554_v23 = vsel %vm1502_vm1, %v3635_v43, %v13531_v2  ;;  %v16049_v40 = vrot.slane %v13509_v53, 1  ;;  %v16050_v47 = vrot.slane %v13385_v56, 3 }
 0x1b2   : > { %v13548_v63 = vadd.f32 %v2100_v30, %v2048_v17  ;;  %v2746_v17 = vrot.slane %v2744_v45, 3  ;;  %v13576_v34 = vsel %vm4772_vm5, %v4804_v33, %v13559_v58  ;;  %v13578_v25 = vor.u32 %v2591_v55, %v2588_v22  ;;  %v11872_v45 = vld [vmem:[#allocation2 + $0x34] sm:$0xff] }
 0x1b3   : > { %v4695_v36 = vsel %vm1502_vm1, %v4690_v44, %v16049_v40  ;;  %v13569_v59 = vsel %vm4029_vm6, %v16050_v47, %v15996_v49  ;;  %v2749_v44 = vrot.slane %v2747_v57, 4  ;;  %16052 = vst [vmem:[#allocation21_spill] sm:$0xff] %v13576_v34  ;;  %v15999_v16 = vrot.slane %v13554_v23, 3 }
 0x1b4   : > { %16048 = vst [vmem:[#allocation19_spill] sm:$0xff] %v13548_v63  ;;  %v4807_v48 = vshrl.u32 %v4695_v36, 16  ;;  %v4810_v30 = vshll.u32 %v4695_v36, 16  ;;  %v16053_v40 = vrot.slane %v13372_v50, 1  ;;  %v5215_v22 = vrot.slane %v13520_v61, 2 }
 0x1b5   : > { %16051 = vst [vmem:[#allocation20_spill] sm:$0xff] %v13569_v59  ;;  %v2753_v49 = vshrl.u32 %v13528_v52, 16  ;;  %v16054_v34 = vrot.slane %v13465_v0, 3  ;;  %v6302_v59 = vld [vmem:[#allocation2 + $0x1c] sm:$0xc] }
 0x1b6   : > { %v4809_v38 = vrot.slane %v4807_v48, 1  ;;  %v4812_v56 = vrot.slane %v4810_v30, 2  ;;  %v13586_v51 = vsel %vm1672_vm2, %v16053_v40, %v15997_v46  ;;  %v5211_v33 = vrot.slane %v4807_v48, 2 }
 0x1b7   : > { %v2049_v43 = vpop.f32.mrf.mxu2  ;;  %v2102_v12 = vpop.f32.mrf.mxu3  ;;  %v5212_v57 = vrot.slane %v4810_v30, 3  ;;  %v13597_v50 = vsel %vm4029_vm6, %v16054_v34, %v15999_v16  ;;  %v2756_v48 = vshll.u32 %v13528_v52, 16  ;;  %v15998_v1 = vrot.slane %v13586_v51, 2 }
 0x1b8   : > { %v2050_v55 = vadd.f32 %v2049_v43, %v1901_v18  ;;  %v1850_v36 = vpop.f32.mrf.mxu0  ;;  %v1903_v47 = vpop.f32.mrf.mxu1  ;;  %16055 = vst [vmem:[#allocation22_spill] sm:$0xff] %v13597_v50  ;;  %v13599_v40 = vor.u32 %v4812_v56, %v4809_v38  ;;  %v5216_v18 = vrot.slane %v13509_v53, 3  ;;  %v13613_v34 = vsel %vm2531_vm3, %v13469_v32, %v13578_v25 }
 0x1b9   : > { %v1904_v46 = vadd.f32 %v1903_v47, %v1850_v36  ;;  %v13602_v30 = vor.u32 %v5212_v57, %v5211_v33  ;;  %v3645_v56 = vshll.u32 %v13588_v42, 16  ;;  %v13640_v57 = vrot.slane %v2756_v48, 4  ;;  %v5527_v48 = vld [vmem:[#allocation2 + $0x1c] sm:$0xff]  }
 0x1ba   : > { %v13605_v43 = vadd.f32 %v2102_v12, %v2050_v55  ;;  %v13618_v38 = vsel %vm4772_vm5, %v13500_v7, %v13599_v40  ;;  %v13623_v12 = vshll.u32 %v11872_v45, 16  ;;  %v5217_v32 = vor.u32 %v5216_v18, %v5215_v22 }
 0x1bb   : > { %16057 = vst [vmem:[#allocation24_spill] sm:$0xff] %v13618_v38  ;;  %2418 = vmatmul.bf16.gmra.mxu0 %v12924_v27  ;;  %2471 = vmatmul.bf16.gmra.mxu1 %v13483_v29  ;;  %v13628_v33 = vsel %vm5187_vm7, %v13505_v54, %v13602_v30  ;;  %v13634_v7 = vsel %vm2645_vm4, %v13427_v9, %v13572_v21  ;;  %v13638_v29 = vrot.slane %v2753_v49, 3  ;;  %v13646_v54 = vshrl.u32 %v11872_v45, 16 }
 0x1bc   : > { %16056 = vst [vmem:[#allocation23_spill] sm:$0xff] %v13605_v43  ;;  %2943 = vmatmul.bf16.gmra.mxu2 %v13461_v60  ;;  %2996 = vmatmul.bf16.gmra.mxu3 %v2733_v14  ;;  %v13636_v27 = vor.u32 %v2749_v44, %v2746_v17  ;;  %v13644_v55 = vsel %vm5187_vm7, %v13526_v6, %v5217_v32  ;;  %v16060_v60 = vrot.slane %v13438_v37, 2  ;;  %v13657_v17 = vld [vmem:[#allocation2 + $0x40] sm:$0xff]   ;;  %v3641_v44 = vshrl.u32 %v13485_v31, 16 }
 0x1bd   : > { %16058 = vst [vmem:[#allocation25_spill] sm:$0xff] %v13628_v33  ;;  %v13660_v36 = vrot.slane %v3645_v56, 1  ;;  %v4828_v47 = vrot.slane %v13646_v54, 1  ;;  %v4829_v37 = vrot.slane %v13623_v12, 2  ;;  %v16061_v49 = vrot.slane %v13509_v53, 1 }
 0x1be   : > { %16059 = vst [vmem:[#allocation26_spill] sm:$0xff] %v13644_v55  ;;  %v13653_v14 = vsel %vm2246_vm0, %v16060_v60, %v15998_v1  ;;  %v5223_v9 = vrot.slane %v13646_v54, 2  ;;  %v5224_v55 = vrot.slane %v13623_v12, 3  ;;  %v2595_v33 = vshrl.u32 %v13657_v17, 16 }
 0x1bf   : > { %v2052_v22 = vpop.f32.mrf.mxu2  ;;  %v2105_v6 = vpop.f32.mrf.mxu3  ;;  %v4698_v16 = vor.u32 %v13520_v61, %v16061_v49  ;;  %v3643_v45 = vor.u32 %v3641_v44, %v13531_v2  ;;  %v16000_v38 = vrot.slane %v13588_v42, 3  ;;  %v13680_v61 = vunpack.c.h.b16 %v5527_v48 }
 0x1c0   : > { %v2053_v18 = vadd.f32 %v2052_v22, %v1904_v46  ;;  %v1852_v60 = vpop.f32.mrf.mxu0  ;;  %v1905_v1 = vpop.f32.mrf.mxu1  ;;  %v16063_v46 = vrot.slane %v13623_v12, 1  ;;  %v13678_v22 = vor.u32 %v4829_v37, %v4828_v47  ;;  %v16065_v2 = vrot.slane %v13485_v31, 3  ;;  %v2147_v37 = vld [vmem:[#allocation2 + $0x48] sm:$0x7] }
 0x1c1   : > { %v1906_v56 = vadd.f32 %v1905_v1, %v1852_v60  ;;  %16064 = vst [vmem:[#allocation28_spill] sm:$0xff] %v13680_v61  ;;  %v13684_v1 = vsel %vm1502_vm1, %v3643_v45, %v13660_v36  ;;  %v13699_v47 = vor.u32 %v5224_v55, %v5223_v9  ;;  %v6321_v45 = vunpack.c.l.b16 %v6302_v59 }
 0x1c2   : > { %v13673_v50 = vadd.f32 %v2105_v6, %v2053_v18  ;;  %v4703_v53 = vsel %vm1502_vm1, %v4698_v16, %v16063_v46  ;;  %v13691_v49 = vsel %vm4029_vm6, %v16065_v2, %v16000_v38  ;;  %v2598_v18 = vshll.u32 %v13657_v17, 16 }
 0x1c3   : > { %16066 = vst [vmem:[#allocation29_spill] sm:$0xff] %v13691_v49  ;;  %v4820_v44 = vshrl.u32 %v4703_v53, 16  ;;  %v4823_v6 = vshll.u32 %v4703_v53, 16  ;;  %v13697_v16 = vsel %vm4772_vm5, %v13559_v58, %v13678_v22  ;;  %v2765_v2 = vshll.u32 %v13613_v34, 16  ;;  %v11932_v49 = vld [vmem:[#allocation2 + $0x24] sm:$0xff] }
 0x1c4   : > { %16062 = vst [vmem:[#allocation27_spill] sm:$0xff] %v13673_v50  ;;  %v13705_v53 = vsel %vm5187_vm7, %v5217_v32, %v13699_v47  ;;  %v6322_v58 = vpack.c.b16 %v13680_v61, %v6321_v45  ;;  %v16069_v9 = vrot.slane %v13608_v8, 1  ;;  %v2771_v38 = vshrl.u32 %v13608_v8, 16  ;;  %v11873_v32 = vld [vmem:[#allocation2 + $0x3c] sm:$0xff] }
 0x1c5   : > { %16067 = vst [vmem:[#allocation30_spill] sm:$0xff] %v13697_v16  ;;  %v4822_v48 = vrot.slane %v4820_v44, 1  ;;  %v4825_v60 = vrot.slane %v4823_v6, 2  ;;  %v5219_v46 = vrot.slane %v4820_v44, 2  ;;  %v5220_v31 = vrot.slane %v4823_v6, 3  ;;  %v13718_v16 = vld [vmem:[#allocation2 + $0x44] sm:$0xff]  }
 0x1c6   : > { %16068 = vst [vmem:[#allocation31_spill] sm:$0xff] %v13705_v53  ;;  %v16070_v44 = vrot.slane %v13528_v52, 1  ;;  %v2186_v63 = vunpack.c.l.b16 %v2147_v37  ;;  %v2597_v0 = vrot.slane %v2595_v33, 4  ;;  %v16071_v20 = vrot.slane %v13684_v1, 3 }
 0x1c7   : > { %v2054_v55 = vpop.f32.mrf.mxu2  ;;  %v2107_v59 = vpop.f32.mrf.mxu3  ;;  %v13720_v53 = vor.u32 %v4825_v60, %v4822_v48  ;;  %v13722_v50 = vor.u32 %v5220_v31, %v5219_v46  ;;  %v16072_v52 = vrot.slane %v13554_v23, 3  ;;  %v2600_v26 = vrot.slane %v2598_v18, 5 }
 0x1c8   : > { %v13715_v6 = vsel %vm1672_vm2, %v16070_v44, %v16069_v9  ;;  %v2055_v43 = vadd.f32 %v2054_v55, %v1906_v56  ;;  %v1855_v45 = vpop.f32.mrf.mxu0  ;;  %v1908_v61 = vpop.f32.mrf.mxu1  ;;  %v6323_v37 = vrot.slane %v6322_v58, 2  ;;  %v6324_v60 = vrot.slane %v11932_v49, 2 }
 0x1c9   : > { %v13729_v9 = vsel %vm4029_vm6, %v16072_v52, %v16071_v20  ;;  %v1909_v44 = vadd.f32 %v1908_v61, %v1855_v45  ;;  %v13734_v48 = vsel %vm4772_vm5, %v13599_v40, %v13720_v53  ;;  %v13739_v56 = vsel %vm5187_vm7, %v13602_v30, %v13722_v50 }
 0x1ca   : > { %16073 = vst [vmem:[#allocation32_spill] sm:$0xff] %v13729_v9  ;;  %v13741_v33 = vadd.f32 %v2107_v59, %v2055_v43  ;;  %v16006_v46 = vrot.slane %v13707_v24, 2  ;;  %v2751_v20 = vsel %vm2645_vm4, %v13517_v13, %v13636_v27  ;;  %v13751_v40 = vor.u32 %v13640_v57, %v13638_v29 }
 0x1cb   : > { %16074 = vst [vmem:[#allocation33_spill] sm:$0xff] %v13734_v48  ;;  %2423 = vmatmul.bf16.gmra.mxu0 %v12968_v11  ;;  %2476 = vmatmul.bf16.gmra.mxu1 %v13653_v14  ;;  %v3653_v30 = vshll.u32 %v13718_v16, 16  ;;  %v13754_v43 = vshll.u32 %v11873_v32, 16  ;;  %v16076_v61 = vshrl.u32 %v13613_v34, 16  ;;  %v16005_v14 = vunpack.c.h.b16 %v13657_v17 }
 0x1cc   : > { %16075 = vst [vmem:[#allocation34_spill] sm:$0xff] %v13739_v56  ;;  %2948 = vmatmul.bf16.gmra.mxu2 %v13634_v7  ;;  %3001 = vmatmul.bf16.gmra.mxu3 %v2751_v20  ;;  %v13761_v49 = vsel %vm2246_vm0, %v6323_v37, %v6324_v60  ;;  %v13766_v13 = vsel %vm2246_vm0, %v6324_v60, %v16006_v46  ;;  %v2767_v57 = vrot.slane %v2765_v2, 4  ;;  %v2773_v18 = vrot.slane %v2771_v38, 3 }
 0x1cd   : > { %v2764_v11 = vrot.slane %v16076_v61, 3  ;;  %16077 = vst [vmem:[#allocation35_spill] sm:$0xff] %v13761_v49  ;;  %v13769_v31 = vshrl.u32 %v11873_v32, 16  ;;  %v13773_v34 = vpack.c.b16 %v2186_v63, %v16005_v14  ;;  %v2774_v7 = vshll.u32 %v13608_v8, 16 }
 0x1ce   : > { %16078 = vst [vmem:[#allocation36_spill] sm:$0xff] %v13766_v13  ;;  %v13776_v58 = vor.u32 %v2600_v26, %v2597_v0  ;;  %v3649_v55 = vshrl.u32 %v13588_v42, 16  ;;  %v13779_v52 = vrot.slane %v3653_v30, 1  ;;  %v4842_v2 = vrot.slane %v13754_v43, 2  ;;  %v2518_v13 = vld [vmem:[#allocation2 + $0x48] sm:$0xf] }
 0x1cf   : > { %v2057_v59 = vpop.f32.mrf.mxu2  ;;  %v2110_v45 = vpop.f32.mrf.mxu3  ;;  %v4841_v38 = vrot.slane %v13769_v31, 1  ;;  %v16079_v20 = vrot.slane %v13623_v12, 1  ;;  %v5231_v0 = vrot.slane %v13769_v31, 2  ;;  %v5232_v61 = vrot.slane %v13754_v43, 3 }
 0x1d0   : > { %v2058_v32 = vadd.f32 %v2057_v59, %v1909_v44  ;;  %v1857_v60 = vpop.f32.mrf.mxu0  ;;  %v1910_v63 = vpop.f32.mrf.mxu1  ;;  %v13789_v30 = vor.u32 %v2767_v57, %v2764_v11  ;;  %v3651_v29 = vor.u32 %v3649_v55, %v13660_v36  ;;  %v16007_v46 = vrot.slane %v13718_v16, 3 }
 0x1d1   : > { %v4706_v26 = vor.u32 %v13646_v54, %v16079_v20  ;;  %v1911_v14 = vadd.f32 %v1910_v63, %v1857_v60  ;;  %v16009_v44 = vrot.slane %v13773_v34, 1  ;;  %v16080_v59 = vrot.slane %v13754_v43, 1  ;;  %v13801_v20 = vld [vmem:[#allocation2 + $0x34] sm:$0xff] }
 0x1d2   : > { %v13793_v37 = vadd.f32 %v2110_v45, %v2058_v32  ;;  %v13799_v54 = vor.u32 %v4842_v2, %v4841_v38  ;;  %v13805_v11 = vsel %vm1502_vm1, %v3651_v29, %v13779_v52  ;;  %v16081_v36 = vrot.slane %v13588_v42, 3 }
 0x1d3   : > { %v4711_v12 = vsel %vm1502_vm1, %v4706_v26, %v16080_v59  ;;  %v2776_v32 = vrot.slane %v2774_v7, 4  ;;  %v2602_v38 = vsel %vm2531_vm3, %v13578_v25, %v13776_v58  ;;  %v13822_v29 = vor.u32 %v5232_v61, %v5231_v0 }
 0x1d4   : > { %v13812_v57 = vsel %vm4029_vm6, %v16081_v36, %v16007_v46  ;;  %v4833_v55 = vshrl.u32 %v4711_v12, 16  ;;  %v4836_v45 = vshll.u32 %v4711_v12, 16  ;;  %v13820_v2 = vsel %vm4772_vm5, %v13678_v22, %v13799_v54 }
 0x1d5   : > { %16082 = vst [vmem:[#allocation37_spill] sm:$0xff] %v13812_v57  ;;  %v2520_v59 = vunpack.c.l.b16 %v2518_v13  ;;  %v13828_v7 = vsel %vm5187_vm7, %v13699_v47, %v13822_v29  ;;  %v16085_v22 = vrot.slane %v13608_v8, 1  ;;  %v2780_v61 = vshrl.u32 %v2602_v38, 16  ;;  %v11874_v13 = vld [vmem:[#allocation2 + $0x44] sm:$0xff] }
 0x1d6   : > { %16083 = vst [vmem:[#allocation38_spill] sm:$0xff] %v13820_v2  ;;  %v4835_v60 = vrot.slane %v4833_v55, 1  ;;  %v4838_v63 = vrot.slane %v4836_v45, 2  ;;  %v5227_v42 = vrot.slane %v4833_v55, 2  ;;  %v5228_v26 = vrot.slane %v4836_v45, 3 }
 0x1d7   : > { %16084 = vst [vmem:[#allocation39_spill] sm:$0xff] %v13828_v7  ;;  %v2059_v12 = vpop.f32.mrf.mxu2  ;;  %v2112_v46 = vpop.f32.mrf.mxu3  ;;  %v13836_v0 = vsel %vm1672_vm2, %v16085_v22, %v16009_v44  ;;  %v2783_v7 = vshll.u32 %v2602_v38, 16  ;;  %v16086_v25 = vrot.slane %v13805_v11, 3  ;;  %v16087_v2 = vrot.slane %v13684_v1, 3 }
 0x1d8   : > { %v13838_v55 = vor.u32 %v4838_v63, %v4835_v60  ;;  %v13840_v45 = vor.u32 %v5228_v26, %v5227_v42  ;;  %v2060_v36 = vadd.f32 %v2059_v12, %v1911_v14  ;;  %v1860_v47 = vpop.f32.mrf.mxu0  ;;  %v1913_v49 = vpop.f32.mrf.mxu1  ;;  %v16089_v8 = vrot.slane %v13801_v20, 2  ;;  %v3548_v14 = vld [vmem:[#allocation2 + $0x50] sm:$0x7] }
 0x1d9   : > { %v13847_v56 = vsel %vm4029_vm6, %v16087_v2, %v16086_v25  ;;  %v16090_v22 = vrot.slane %v13707_v24, 2  ;;  %v1914_v63 = vadd.f32 %v1913_v49, %v1860_v47  ;;  %v13856_v42 = vor.u32 %v2776_v32, %v2773_v18  ;;  %v11836_v47 = vld [vmem:[%s15973_s3 + $0x278] sm:$0xff] }
 0x1da   : > { %16088 = vst [vmem:[#allocation40_spill] sm:$0xff] %v13847_v56  ;;  %v13861_v38 = vsel %vm4772_vm5, %v13720_v53, %v13838_v55  ;;  %v13866_v2 = vsel %vm5187_vm7, %v13722_v50, %v13840_v45  ;;  %v13868_v26 = vadd.f32 %v2112_v46, %v2060_v36  ;;  %v16095_v24 = vrot.slane %v13715_v6, 2  ;;  %v12366_v46 = vld [vmem:[#allocation2 + $0x48] sm:$0xff]   ;;  %3460 = vmatpush.bf16.msrb.mxu1 %v11836_v47 }
 0x1db   : > { %v13854_v60 = vsel %vm2246_vm0, %v16090_v22, %v16089_v8  ;;  %16092 = vst [vmem:[#allocation42_spill] sm:$0xff] %v13861_v38  ;;  %v16096_v25 = vrot.slane %v13586_v51, 2  ;;  %v16008_v18 = vrot.slane %v13836_v0, 2  ;;  %v2530_v32 = vpack.c.b16 %v2520_v59, %v2520_v59  ;;  %2428 = vmatmul.bf16.gmra.mxu0 %v13004_v39  ;;  %v11828_v39 = vld [vmem:[%s15973_s3 + $0x238] sm:$0xff]  ;;  %v11826_v38 = vld [vmem:[%s15973_s3 + $0x228] sm:$0xff] }
 0x1dc   : > { %16091 = vst [vmem:[#allocation41_spill] sm:$0xff] %v13854_v60  ;;  %v2760_v53 = vsel %vm2645_vm4, %v13572_v21, %v13751_v40  ;;  %v2769_v50 = vsel %vm2645_vm4, %v13636_v27, %v13789_v30  ;;  %v13883_v36 = vshll.u32 %v11874_v13, 16  ;;  %v2782_v51 = vrot.slane %v2780_v61, 3  ;;  %v11844_v21 = vld [vmem:[%s15973_s3 + $0x2b8] sm:$0xff]  ;;  %3407 = vmatpush.bf16.msrb.mxu0 %v11828_v39 }
 0x1dd   : > { %16093 = vst [vmem:[#allocation43_spill] sm:$0xff] %v13866_v2  ;;  %v2272_v49 = vsel %vm2246_vm0, %v16096_v25, %v16095_v24  ;;  %2953 = vmatmul.bf16.gmra.mxu2 %v2760_v53  ;;  %3006 = vmatmul.bf16.gmra.mxu3 %v2769_v50  ;;  %v2785_v12 = vrot.slane %v2783_v7, 4  ;;  %v3595_v27 = vunpack.c.l.b16 %v3548_v14  ;;  %v13897_v8 = vsel %vm2645_vm4, %v13751_v40, %v13856_v42  ;;  %v11852_v22 = vld [vmem:[%s15973_s3 + $0x2f8] sm:$0xff]  ;;  %v13917_v50 = vld [vmem:[#allocation2 + $0x50] sm:$0xff]  }
 0x1de   : > { %16094 = vst [vmem:[#allocation44_spill] sm:$0xff] %v13868_v26  ;;  %2481 = vmatmul.bf16.gmra.mxu1 %v2272_v49  ;;  %v16097_v7 = vunpack.c.h.b16 %v13657_v17  ;;  %v13906_v24 = vshrl.u32 %v11874_v13, 16  ;;  %v16098_v25 = vrot.slane %v13715_v6, 2  ;;  %v2604_v49 = vshrl.u32 %v2530_v32, 16  ;;  %3849 = vmatpush.bf16.msrb.mxu2 %v11844_v21  ;;  %v13957_v2 = vld [vmem:[#allocation2 + $0x3c] sm:$0xff] }
 0x1df   : > { %v2607_v40 = vshll.u32 %v2530_v32, 16  ;;  %v13915_v17 = vunpack.c.h.b16 %v12366_v46  ;;  %v2115_v53 = vpop.f32.mrf.mxu3  ;;  %3902 = vmatpush.bf16.msrb.mxu3 %v11852_v22  ;;  %v16100_v13 = vrot.slane %v13754_v43, 1  ;;  %v16010_v6 = vrot.slane %v13883_v36, 1 }
 0x1e0   : > { %v13901_v61 = vpack.c.b16 %v2520_v59, %v16097_v7  ;;  %v13913_v14 = vsel %vm2246_vm0, %v16098_v25, %v16008_v18  ;;  %v2062_v59 = vpop.f32.mrf.mxu2  ;;  %v4854_v25 = vrot.slane %v13906_v24, 1  ;;  %v4855_v32 = vrot.slane %v13883_v36, 2  ;;  %v1862_v47 = vpop.f32.mrf.mxu0 }
 0x1e1   : > { %16099 = vst [vmem:[#allocation45_spill] sm:$0xff] %v13915_v17  ;;  %v4714_v7 = vor.u32 %v13769_v31, %v16100_v13  ;;  %v2063_v39 = vadd.f32 %v2062_v59, %v1914_v63  ;;  %v1915_v46 = vpop.f32.mrf.mxu1  ;;  %v13925_v18 = vor.u32 %v2785_v12, %v2782_v51  ;;  %v13928_v21 = vpack.c.b16 %v3595_v27, %v13915_v17  ;;  %v11827_v51 = vld [vmem:[%s15973_s3 + $0x230] sm:$0xff] }
 0x1e2   : > { %v13931_v22 = vunpack.c.l.b16 %v13917_v50  ;;  %v1916_v43 = vadd.f32 %v1915_v46, %v1862_v47  ;;  %v3657_v31 = vshrl.u32 %v13718_v16, 16  ;;  %v5239_v44 = vrot.slane %v13906_v24, 2  ;;  %v11835_v12 = vld [vmem:[%s15973_s3 + $0x270] sm:$0xff]  ;;  %3408 = vmatpush.bf16.msrb.mxu0 %v11827_v51  ;;  %v11850_v51 = vld [vmem:[%s15973_s3 + $0x2e8] sm:$0xff] }
 0x1e3   : > { %16101 = vst [vmem:[#allocation46_spill] sm:$0xff] %v13928_v21  ;;  %v4719_v13 = vsel %vm1502_vm1, %v4714_v7, %v16010_v6  ;;  %v13938_v63 = vadd.f32 %v2115_v53, %v2063_v39  ;;  %v11843_v27 = vld [vmem:[%s15973_s3 + $0x2b0] sm:$0xff]  ;;  %v5240_v47 = vrot.slane %v13883_v36, 3  ;;  %v2606_v53 = vrot.slane %v2604_v49, 4  ;;  %3461 = vmatpush.bf16.msrb.mxu1 %v11835_v12  ;;  %v11834_v49 = vld [vmem:[%s15973_s3 + $0x268] sm:$0xff] }
 0x1e4   : > { %16102 = vst [vmem:[#allocation47_spill] sm:$0xff] %v13931_v22  ;;  %v3979_v59 = vpack.c.b16 %v13931_v22, %v13915_v17  ;;  %v4846_v7 = vshrl.u32 %v4719_v13, 16  ;;  %v2609_v39 = vrot.slane %v2607_v40, 5  ;;  %v11851_v46 = vld [vmem:[%s15973_s3 + $0x2f0] sm:$0xff]  ;;  %v4849_v6 = vshll.u32 %v4719_v13, 16  ;;  %3850 = vmatpush.bf16.msrb.mxu2 %v11843_v27 }
 0x1e5   : > { %16103 = vst [vmem:[#allocation48_spill] sm:$0xff] %v13938_v63  ;;  %v13955_v60 = vor.u32 %v4855_v32, %v4854_v25  ;;  %v13966_v40 = vor.u32 %v3657_v31, %v13779_v52  ;;  %v16016_v13 = vrot.slane %v13928_v21, 3  ;;  %3903 = vmatpush.bf16.msrb.mxu3 %v11851_v46  ;;  %v11842_v32 = vld [vmem:[%s15973_s3 + $0x2a8] sm:$0xff]  ;;  %v16105_v27 = vrot.slane %v13718_v16, 3 }
 0x1e6   : > { %v3989_v48 = vshll.u32 %v3979_v59, 16  ;;  %v4848_v25 = vrot.slane %v4846_v7, 1  ;;  %v4851_v12 = vrot.slane %v4849_v6, 2  ;;  %v5235_v22 = vrot.slane %v4846_v7, 2  ;;  %3409 = vmatpush.bf16.msrb.mxu0 %v11826_v38 }
 0x1e7   : > { %v5236_v57 = vrot.slane %v4849_v6, 3  ;;  %v13978_v52 = vsel %vm4772_vm5, %v13799_v54, %v13955_v60  ;;  %v13985_v46 = vsel %vm4029_vm6, %v16105_v27, %v16016_v13  ;;  %v3993_v56 = vshrl.u32 %v3979_v59, 16  ;;  %v2117_v63 = vpop.f32.mrf.mxu3  ;;  %3462 = vmatpush.bf16.msrb.mxu1 %v11834_v49  ;;  %v11840_v27 = vld [vmem:[%s15973_s3 + $0x298] sm:$0xff] }
 0x1e8   : > { %16104 = vst [vmem:[#allocation49_spill] sm:$0xff] %v13978_v52  ;;  %v3991_v31 = vrot.slane %v3989_v48, 1  ;;  %v13987_v9 = vor.u32 %v5240_v47, %v5239_v44  ;;  %v2064_v17 = vpop.f32.mrf.mxu2  ;;  %v2610_v7 = vor.u32 %v2609_v39, %v2606_v53  ;;  %v13989_v6 = vor.u32 %v4851_v12, %v4848_v25  ;;  %v1865_v52 = vpop.f32.mrf.mxu0  ;;  %3851 = vmatpush.bf16.msrb.mxu2 %v11842_v32  ;;  %v11875_v53 = vld [vmem:[#allocation2 + $0x4c] sm:$0xff]  ;;  %v12357_v25 = vld [vmem:[#allocation2 + $0x8] sm:$0xe] }
 0x1e9   : > { %16106 = vst [vmem:[#allocation50_spill] sm:$0xff] %v13985_v46  ;;  %v13991_v26 = vor.u32 %v5236_v57, %v5235_v22  ;;  %v16018_v54 = vrot.slane %v13957_v2, 2  ;;  %v2065_v48 = vadd.f32 %v2064_v17, %v1916_v43  ;;  %v1918_v21 = vpop.f32.mrf.mxu1  ;;  %3904 = vmatpush.bf16.msrb.mxu3 %v11850_v51  ;;  %v16111_v43 = vrot.slane %v13805_v11, 3  ;;  %v12356_v39 = vld [vmem:[#allocation2 + $0x8] sm:$0xf0] }
 0x1ea   : > { %v3992_v16 = vsel %vm1502_vm1, %v13966_v40, %v3991_v31  ;;  %v13996_v59 = vor.u32 %v3993_v56, %v3991_v31  ;;  %v1919_v44 = vadd.f32 %v1918_v21, %v1865_v52  ;;  %v14001_v57 = vsel %vm4772_vm5, %v13838_v55, %v13989_v6 }
 0x1eb   : > { %v4058_v47 = vrot.slane %v3992_v16, 3  ;;  %16108 = vst [vmem:[#allocation52_spill] sm:$0xff] %v14001_v57  ;;  %v14006_v38 = vsel %vm5187_vm7, %v13840_v45, %v13991_v26  ;;  %v14008_v17 = vadd.f32 %v2117_v63, %v2065_v48  ;;  %v2787_v56 = vsel %vm2645_vm4, %v13789_v30, %v13925_v18  ;;  %2433 = vmatmul.bf16.gmra.mxu0 %v13042_v19  ;;  %v11825_v45 = vld [vmem:[%s15973_s3 + $0x220] sm:$0xff] }
 0x1ec   : > { %16107 = vst [vmem:[#allocation51_spill] sm:$0xff] %v13996_v59  ;;  %v16015_v21 = vrot.slane %v13996_v59, 3  ;;  %v14017_v22 = vsel %vm5187_vm7, %v13822_v29, %v13987_v9  ;;  %v2611_v55 = vsel %vm2531_vm3, %v13776_v58, %v2610_v7  ;;  %v11833_v30 = vld [vmem:[%s15973_s3 + $0x260] sm:$0xff]  ;;  %v16112_v58 = vrot.slane %v13801_v20, 2  ;;  %3410 = vmatpush.bf16.msrb.mxu0 %v11825_v45  ;;  %v11824_v20 = vld [vmem:[%s15973_s3 + $0x218] sm:$0xff] }
 0x1ed   : > { %16109 = vst [vmem:[#allocation53_spill] sm:$0xff] %v14006_v38  ;;  %v11841_v29 = vld [vmem:[%s15973_s3 + $0x2a0] sm:$0xff]  ;;  %v14035_v19 = vsel %vm4029_vm6, %v16111_v43, %v4058_v47  ;;  %2958 = vmatmul.bf16.gmra.mxu2 %v13897_v8  ;;  %3011 = vmatmul.bf16.gmra.mxu3 %v2787_v56  ;;  %v11832_v8 = vld [vmem:[%s15973_s3 + $0x258] sm:$0xff]  ;;  %v14059_v32 = vshll.u32 %v11875_v53, 16  ;;  %v14061_v51 = vshrl.u32 %v11875_v53, 16  ;;  %v2789_v12 = vshrl.u32 %v13901_v61, 16 }
 0x1ee   : > { %16110 = vst [vmem:[#allocation54_spill] sm:$0xff] %v14017_v22  ;;  %2486 = vmatmul.bf16.gmra.mxu1 %v13913_v14  ;;  %v14042_v14 = vsel %vm2246_vm0, %v16112_v58, %v16018_v54  ;;  %v11849_v63 = vld [vmem:[%s15973_s3 + $0x2e0] sm:$0xff]  ;;  %v14051_v49 = vsel %vm4029_vm6, %v4058_v47, %v16015_v21  ;;  %v2792_v52 = vshll.u32 %v13901_v61, 16  ;;  %v2798_v31 = vshrl.u32 %v2611_v55, 16  ;;  %3852 = vmatpush.bf16.msrb.mxu2 %v11841_v29  ;;  %v11848_v7 = vld [vmem:[%s15973_s3 + $0x2d8] sm:$0xff] }
 0x1ef   : > { %16113 = vst [vmem:[#allocation55_spill] sm:$0xff] %v14042_v14  ;;  %3463 = vmatpush.bf16.msrb.mxu1 %v11833_v30  ;;  %3905 = vmatpush.bf16.msrb.mxu3 %v11849_v63  ;;  %v2120_v16 = vpop.f32.mrf.mxu3  ;;  %v2801_v47 = vshll.u32 %v2611_v55, 16  ;;  %v16115_v30 = vrot.slane %v13773_v34, 1  ;;  %v14075_v29 = vor.u32 %v12357_v25, %v12356_v39  ;;  %v16116_v43 = vrot.slane %v13883_v36, 1  ;;  %v11823_v36 = vld [vmem:[%s15973_s3 + $0x210] sm:$0xff] }
 0x1f0   : > { %16114 = vst [vmem:[#allocation56_spill] sm:$0xff] %v14051_v49  ;;  %v2067_v48 = vpop.f32.mrf.mxu2  ;;  %v1867_v56 = vpop.f32.mrf.mxu0  ;;  %3411 = vmatpush.bf16.msrb.mxu0 %v11824_v20  ;;  %v16017_v21 = vrot.slane %v14059_v32, 1  ;;  %v4867_v55 = vrot.slane %v14061_v51, 1  ;;  %v2791_v34 = vrot.slane %v2789_v12, 3  ;;  %v2800_v13 = vrot.slane %v2798_v31, 3  ;;  %v11839_v20 = vld [vmem:[%s15973_s3 + $0x290] sm:$0xff] }
 0x1f1   : > { %v2068_v53 = vadd.f32 %v2067_v48, %v1919_v44  ;;  %v1920_v45 = vpop.f32.mrf.mxu1  ;;  %v14073_v61 = vrot.slane %v16115_v30, 2  ;;  %v4722_v58 = vor.u32 %v13906_v24, %v16116_v43  ;;  %v4868_v44 = vrot.slane %v14059_v32, 2  ;;  %v11831_v24 = vld [vmem:[%s15973_s3 + $0x250] sm:$0xff]  ;;  %v4660_v31 = vld [vmem:[#allocation2 + $0x58] sm:$0x3] }
 0x1f2   : > { %v1921_v63 = vadd.f32 %v1920_v45, %v1867_v56  ;;  %v2794_v30 = vrot.slane %v2792_v52, 4  ;;  %3853 = vmatpush.bf16.msrb.mxu2 %v11840_v27  ;;  %v2803_v39 = vrot.slane %v2801_v47, 4  ;;  %v5247_v12 = vrot.slane %v14061_v51, 2  ;;  %v11847_v52 = vld [vmem:[%s15973_s3 + $0x2d0] sm:$0xff]  ;;  %v11822_v56 = vld [vmem:[%s15973_s3 + $0x208] sm:$0xff] }
 0x1f3   : > { %3464 = vmatpush.bf16.msrb.mxu1 %v11832_v8  ;;  %v14083_v48 = vadd.f32 %v2120_v16, %v2068_v53  ;;  %3906 = vmatpush.bf16.msrb.mxu3 %v11848_v7  ;;  %v4727_v8 = vsel %vm1502_vm1, %v4722_v58, %v16017_v21  ;;  %v14097_v25 = vor.u32 %v4868_v44, %v4867_v55  ;;  %v14103_v16 = vld [vmem:[#allocation2 + $0x44] sm:$0xff]  ;;  %v16117_v47 = vrot.slane %v13836_v0, 2  ;;  %v5130_v58 = vld [vmem:[#allocation2 + $0x58] sm:$0x7] }
 0x1f4   : > { %v4859_v27 = vshrl.u32 %v4727_v8, 16  ;;  %v4862_v7 = vshll.u32 %v4727_v8, 16  ;;  %3412 = vmatpush.bf16.msrb.mxu0 %v11823_v36  ;;  %v11830_v45 = vld [vmem:[%s15973_s3 + $0x248] sm:$0xff]  ;;  %v3113_v43 = vshll.u32 %v14075_v29, 16  ;;  %v5248_v0 = vrot.slane %v14059_v32, 3 }
 0x1f5   : > { %v2280_v53 = vsel %vm2246_vm0, %v16117_v47, %v14073_v61  ;;  %v14119_v55 = vsel %vm4772_vm5, %v13955_v60, %v14097_v25  ;;  %v14122_v44 = vor.u32 %v2794_v30, %v2791_v34  ;;  %v11838_v36 = vld [vmem:[%s15973_s3 + $0x288] sm:$0xff]  ;;  %v14130_v14 = vor.u32 %v2803_v39, %v2800_v13 }
 0x1f6   : > { %16118 = vst [vmem:[#allocation57_spill] sm:$0xff] %v14119_v55  ;;  %3854 = vmatpush.bf16.msrb.mxu2 %v11839_v20  ;;  %v4861_v8 = vrot.slane %v4859_v27, 1  ;;  %v4864_v47 = vrot.slane %v4862_v7, 2  ;;  %v5243_v21 = vrot.slane %v4859_v27, 2  ;;  %v4663_v55 = vunpack.c.l.b16 %v4660_v31  ;;  %v14137_v27 = vld [vmem:[#allocation2 + $0x10] sm:$0xff]  ;;  %v11845_v31 = vld [vmem:[%s15973_s3 + $0x2c0] sm:$0xff] }
 0x1f7   : > { %3465 = vmatpush.bf16.msrb.mxu1 %v11831_v24  ;;  %3907 = vmatpush.bf16.msrb.mxu3 %v11847_v52  ;;  %v11846_v24 = vld [vmem:[%s15973_s3 + $0x2c8] sm:$0xff]  ;;  %v2122_v60 = vpop.f32.mrf.mxu3  ;;  %v5244_v34 = vrot.slane %v4862_v7, 3  ;;  %v14132_v30 = vor.u32 %v5248_v0, %v5247_v12  ;;  %v5133_v38 = vunpack.c.l.b16 %v5130_v58  ;;  %v16020_v59 = vrot.slane %v14103_v16, 2 }
 0x1f8   : > { %v2069_v54 = vpop.f32.mrf.mxu2  ;;  %v1870_v52 = vpop.f32.mrf.mxu0  ;;  %v14134_v57 = vor.u32 %v4864_v47, %v4861_v8  ;;  %3413 = vmatpush.bf16.msrb.mxu0 %v11822_v56  ;;  %v3115_v39 = vrot.slane %v3113_v43, 1  ;;  %v3530_v7 = vld [vmem:[#allocation2 + $0xc] sm:$0xc]  ;;  %v3111_v43 = vshrl.u32 %v14075_v29, 16  ;;  %v16123_v29 = vrot.slane %v14059_v32, 1 }
 0x1f9   : > { %v2070_v20 = vadd.f32 %v2069_v54, %v1921_v63  ;;  %v1923_v22 = vpop.f32.mrf.mxu1  ;;  %v14139_v46 = vor.u32 %v5244_v34, %v5243_v21  ;;  %v14144_v13 = vsel %vm5187_vm7, %v13987_v9, %v14132_v30  ;;  %v2796_v63 = vsel %vm2645_vm4, %v13856_v42, %v14122_v44  ;;  %v11821_v42 = vld [vmem:[%s15973_s3 + $0x200] sm:$0xff] }
 0x1fa   : > { %v1924_v49 = vadd.f32 %v1923_v22, %v1870_v52  ;;  %16119 = vst [vmem:[#allocation58_spill] sm:$0xff] %v14144_v13  ;;  %3855 = vmatpush.bf16.msrb.mxu2 %v11838_v36  ;;  %v14152_v22 = vunpack.c.h.b16 %v13917_v50  ;;  %v14157_v21 = vsel %vm4772_vm5, %v13989_v6, %v14134_v57  ;;  %v2805_v9 = vsel %vm2645_vm4, %v13925_v18, %v14130_v14  ;;  %v11829_v50 = vld [vmem:[%s15973_s3 + $0x240] sm:$0xff] }
 0x1fb   : > { %3466 = vmatpush.bf16.msrb.mxu1 %v11830_v45  ;;  %v14146_v54 = vadd.f32 %v2122_v60, %v2070_v20  ;;  %3908 = vmatpush.bf16.msrb.mxu3 %v11846_v24  ;;  %v11837_v6 = vld [vmem:[%s15973_s3 + $0x280] sm:$0xff]  ;;  %v16121_v18 = vrot.slane %v13957_v2, 2  ;;  %v3118_v2 = vshll.u32 %v14137_v27, 16  ;;  %v14192_v45 = vld [vmem:[#allocation2 + $0x18] sm:$0xff]  ;;  %v14195_v36 = vor.u32 %v3115_v39, %v3111_v43 }
 0x1fc   : > { %2438 = vmatmul.bf16.gmra.mxu0 %v13162_v5  ;;  %v14175_v5 = vsel %vm5187_vm7, %v13991_v26, %v14139_v46  ;;  %v4664_v56 = vpack.c.b16 %v4663_v55, %v14152_v22  ;;  %v5134_v26 = vpack.c.b16 %v5133_v38, %v14152_v22  ;;  %v3567_v8 = vunpack.c.l.b16 %v3530_v7 }
 0x1fd   : > { %16120 = vst [vmem:[#allocation59_spill] sm:$0xff] %v14175_v5  ;;  %v14182_v12 = vsel %vm2246_vm0, %v16121_v18, %v16020_v59  ;;  %2963 = vmatmul.bf16.gmra.mxu2 %v2796_v63  ;;  %3016 = vmatmul.bf16.gmra.mxu3 %v2805_v9  ;;  %v14198_v52 = vrot.slane %v3118_v2, 1  ;;  %v3126_v63 = vshll.u32 %v14192_v45, 16  ;;  %v4730_v9 = vor.u32 %v14061_v51, %v16123_v29 }
 0x1fe   : > { %2491 = vmatmul.bf16.gmra.mxu1 %v2280_v53  ;;  %16122 = vst [vmem:[#allocation60_spill] sm:$0xff] %v14182_v12  ;;  %v14187_v53 = vld [vmem:[#allocation2 + $0x10] sm:$0xff]   ;;  %3414 = vmatpush.bf16.msrb.mxu0 %v11821_v42  ;;  %v4732_v60 = vshll.u32 %v4664_v56, 16  ;;  %v5147_v34 = vshll.u32 %v5134_v26, 16  ;;  %v4736_v20 = vshrl.u32 %v4664_v56, 16  ;;  %v5151_v42 = vshrl.u32 %v5134_v26, 16 }
 0x1ff   : > { %3467 = vmatpush.bf16.msrb.mxu1 %v11829_v50  ;;  %3856 = vmatpush.bf16.msrb.mxu2 %v11837_v6  ;;  %v2125_v0 = vpop.f32.mrf.mxu3  ;;  %v16021_v24 = vunpack.c.l.b16 %v14187_v53 }
 0x200   : > { %3909 = vmatpush.bf16.msrb.mxu3 %v11845_v31  ;;  %v2072_v58 = vpop.f32.mrf.mxu2  ;;  %v1872_v47 = vpop.f32.mrf.mxu0  ;;  %v4734_v6 = vrot.slane %v4732_v60, 1  ;;  %v5149_v39 = vrot.slane %v5147_v34, 1  ;;  %v4880_v18 = vrot.slane %v4736_v20, 1  ;;  %v4881_v31 = vrot.slane %v4732_v60, 2 }
 0x201   : > { %v2073_v55 = vadd.f32 %v2072_v58, %v1924_v49  ;;  %v1925_v38 = vpop.f32.mrf.mxu1  ;;  %v14208_v49 = vpack.c.b16 %v16021_v24, %v3567_v8  ;;  %v5260_v7 = vrot.slane %v5151_v42, 2  ;;  %v5261_v56 = vrot.slane %v5147_v34, 3 }
 0x202   : > { %v4735_v2 = vsel %vm1502_vm1, %v4730_v9, %v4734_v6  ;;  %v5150_v43 = vsel %vm1502_vm1, %v4730_v9, %v5149_v39  ;;  %v4738_v32 = vor.u32 %v4736_v20, %v4734_v6  ;;  %v5153_v58 = vor.u32 %v5151_v42, %v5149_v39 }
 0x203   : > { %v14204_v50 = vadd.f32 %v2125_v0, %v2073_v55  ;;  %v4872_v51 = vshrl.u32 %v4735_v2, 16  ;;  %v4875_v26 = vshll.u32 %v4735_v2, 16  ;;  %v5252_v0 = vshrl.u32 %v5150_v43, 16 }
 0x204   : > { %v5255_v55 = vshll.u32 %v5150_v43, 16  ;;  %v14212_v47 = vor.u32 %v4881_v31, %v4880_v18  ;;  %v4885_v38 = vshrl.u32 %v4738_v32, 16  ;;  %v4888_v29 = vshll.u32 %v4738_v32, 16 }
 0x205   : > { %v14214_v59 = vor.u32 %v5261_v56, %v5260_v7  ;;  %v4874_v24 = vrot.slane %v4872_v51, 1  ;;  %v4877_v34 = vrot.slane %v4875_v26, 2  ;;  %v5254_v12 = vrot.slane %v5252_v0, 2 }
 0x206   : > { %v5257_v13 = vrot.slane %v5255_v55, 3  ;;  %v14219_v20 = vsel %vm4772_vm5, %v14097_v25, %v14212_v47  ;;  %v4887_v42 = vrot.slane %v4885_v38, 1  ;;  %v4890_v6 = vrot.slane %v4888_v29, 2  ;;  %v11937_v25 = vld [vmem:[#allocation2 + $0x4c] sm:$0xff] }
 0x207   : > { %v2127_v60 = vpop.f32.mrf.mxu3  ;;  %v14224_v39 = vsel %vm5187_vm7, %v14132_v30, %v14214_v59  ;;  %v4878_v31 = vor.u32 %v4877_v34, %v4874_v24  ;;  %v5265_v56 = vshrl.u32 %v5153_v58, 16  ;;  %v3122_v2 = vshrl.u32 %v14137_v27, 16 }
 0x208   : > { %v2074_v8 = vpop.f32.mrf.mxu2  ;;  %v2404_v5 = vpop.f32.mrf.mxu0  ;;  %v5258_v7 = vor.u32 %v5257_v13, %v5254_v12  ;;  %v14227_v43 = vrot.slane %v3126_v63, 1  ;;  %v14229_v32 = vor.u32 %v4890_v6, %v4887_v42  ;;  %v5268_v51 = vshll.u32 %v5153_v58, 16 }
 0x209   : > { %v2457_v9 = vpop.f32.mrf.mxu1  ;;  %v16124_v0 = vrot.slane %v13056_v4, 2  ;;  %v14237_v30 = vsel %vm4772_vm5, %v14134_v57, %v4878_v31  ;;  %v5267_v13 = vrot.slane %v5265_v56, 2  ;;  %v3121_v4 = vsel %vm1502_vm1, %v14195_v36, %v14198_v52  ;;  %v14274_v56 = vld [vmem:[#allocation2 + $0x20] sm:$0xff] }
 0x20a   : > { %v2458_v18 = vadd.f32 %v2457_v9, %v2404_v5  ;;  %v14241_v27 = vsel %vm5187_vm7, %v14139_v46, %v5258_v7  ;;  %v5270_v57 = vrot.slane %v5268_v51, 3  ;;  %v3124_v5 = vor.u32 %v3122_v2, %v14198_v52  ;;  %v11938_v9 = vld [vmem:[#allocation2 + $0x54] sm:$0xff]  ;;  %v5975_v51 = vld [vmem:[#allocation2 + $0x60] sm:$0x3] }
 0x20b   : > { %v6334_v12 = vrot.slane %v11937_v25, 2  ;;  %v3225_v63 = vshll.u32 %v3121_v4, 16  ;;  %v16125_v8 = vrot.slane %v14103_v16, 2  ;;  %v6336_v25 = vrot.slane %v11938_v9, 2 }
 0x20c   : > { %v2501_v26 = vadd.f32 %v2458_v18, %v13267_v28  ;;  %2443 = vmatmul.bf16.gmra.mxu0 %v16124_v0  ;;  %v3600_v28 = vshll.u32 %v14208_v49, 16  ;;  %v14254_v46 = vor.u32 %v5270_v57, %v5267_v13  ;;  %v3598_v18 = vshrl.u32 %v14208_v49, 16  ;;  %v14276_v13 = vld [vmem:[#allocation2 + $0x14] sm:$0xff]  }
 0x20d   : > { %2968 = vmatmul.bf16.gmra.mxu2 %v14122_v44  ;;  %3021 = vmatmul.bf16.gmra.mxu3 %v14130_v14  ;;  %v14258_v14 = vsel %vm1502_vm1, %v3124_v5, %v14227_v43  ;;  %v14267_v60 = vsel %vm2246_vm0, %v16125_v8, %v6334_v12  ;;  %v3227_v2 = vrot.slane %v3225_v63, 1  ;;  %v3223_v16 = vshrl.u32 %v3121_v4, 16 }
 0x20e   : > { %2496 = vmatmul.bf16.gmra.mxu1 %v14073_v61  ;;  %v14251_v61 = vsel %vm4772_vm5, %v4878_v31, %v14229_v32  ;;  %v3602_v38 = vrot.slane %v3600_v28, 1  ;;  %v14262_v29 = vsel %vm5187_vm7, %v5258_v7, %v14254_v46  ;;  %16126 = vst [vmem:[#allocation61_spill] sm:$0xff] %v14267_v60  ;;  %v3230_v6 = vshll.u32 %v14258_v14, 16 }
 0x20f   : > { %v2982_v44 = vpop.f32.mrf.mxu3  ;;  %v3702_v28 = vrot.slane %v14276_v13, 2  ;;  %v14286_v63 = vsel %vm2246_vm0, %v6334_v12, %v6336_v25  ;;  %v5980_v8 = vunpack.c.l.b16 %v5975_v51  ;;  %v3221_v9 = vsel %vm1502_vm1, %v12822_v41, %v14198_v52 }
 0x210   : > { %v2929_v24 = vpop.f32.mrf.mxu2  ;;  %v2406_v58 = vpop.f32.mrf.mxu0  ;;  %v3603_v7 = vor.u32 %v3602_v38, %v3598_v18  ;;  %v3232_v0 = vrot.slane %v3230_v6, 1  ;;  %16128 = vst [vmem:[#allocation63_spill] sm:$0xff] %v14286_v63  ;;  %v3701_v38 = vrot.slane %v14208_v49, 2 }
 0x211   : > { %v2983_v36 = vadd.f32 %v2982_v44, %v2929_v24  ;;  %v2459_v55 = vpop.f32.mrf.mxu1  ;;  %v3705_v24 = vrot.slane %v13347_v3, 2  ;;  %v14283_v44 = vld [vmem:[#allocation2 + $0x5c] sm:$0xf] }
 0x212   : > { %v2460_v34 = vadd.f32 %v2459_v55, %v2406_v58  ;;  %16127 = vst [vmem:[#allocation62_spill] sm:$0xff] %v14283_v44  ;;  %v3228_v55 = vor.u32 %v3227_v2, %v3223_v16  ;;  %v3703_v12 = vsel %vm2246_vm0, %v3701_v38, %v3702_v28  ;;  %v3130_v2 = vshrl.u32 %v14192_v45, 16 }
 0x213   : > { %v14269_v42 = vadd.f32 %v2983_v36, %v2501_v26  ;;  %v3608_v26 = vsel %vm1502_vm1, %v3603_v7, %v13316_v10 }
 0x214   : > { %v2502_v31 = vadd.f32 %v2460_v34, %v13314_v15  ;;  %v3134_v15 = vshll.u32 %v14274_v56, 16  ;;  %v3704_v6 = vrot.slane %v3608_v26, 2  ;;  %v3233_v7 = vsel %vm1502_vm1, %v3228_v55, %v3232_v0 }
 0x215   : > { %v3132_v52 = vor.u32 %v3130_v2, %v14227_v43 }
 0x216   : > { %v3706_v49 = vsel %vm2246_vm0, %v3704_v6, %v3705_v24  ;;  %v3136_v51 = vrot.slane %v3134_v15, 1  ;;  %v14319_v6 = vld [vmem:[#allocation2 + $0x1c] sm:$0xff]  }
 0x217   : > { %v2984_v5 = vpop.f32.mrf.mxu3 }
 0x218   : > { %v2931_v57 = vpop.f32.mrf.mxu2  ;;  %v2409_v36 = vpop.f32.mrf.mxu0  ;;  %v14306_v26 = vsel %vm1502_vm1, %v3132_v52, %v3136_v51 }
 0x219   : > { %v2985_v4 = vadd.f32 %v2984_v5, %v2931_v57  ;;  %v2462_v58 = vpop.f32.mrf.mxu1  ;;  %v16023_v57 = vunpack.c.l.b16 %v14283_v44  ;;  %v3238_v55 = vshll.u32 %v14306_v26, 16 }
 0x21a   : > { %v2463_v34 = vadd.f32 %v2462_v58, %v2409_v36 }
 0x21b   : > { %v14292_v18 = vadd.f32 %v2985_v4, %v2502_v31  ;;  %v14302_v41 = vpack.c.b16 %v5980_v8, %v16023_v57  ;;  %v11816_v8 = vld [vmem:[#allocation2 + $0x28] sm:$0xff] }
 0x21c   : > { %v2503_v5 = vadd.f32 %v2463_v34, %v13349_v62  ;;  %3415 = vmatmul.bf16.vlgmr.msrb.gmra.mxu0 %v3221_v9  ;;  %v3234_v34 = vshrl.u32 %v14258_v14, 16  ;;  %v3240_v9 = vrot.slane %v3238_v55, 1  ;;  %v3142_v52 = vshll.u32 %v11816_v8, 16  ;;  %v16132_v55 = vld [vmem:[#allocation10_spill] sm:$0xff] }
 0x21d   : > { %3857 = vmatmul.bf16.vlgmr.msrb.gmra.mxu2 %v3703_v12  ;;  %3910 = vmatmul.bf16.vlgmr.msrb.gmra.mxu3 %v3706_v49  ;;  %16129 = vst [vmem:[#allocation64_spill] sm:$0xff] %v14302_v41  ;;  %v16022_v58 = vrot.slane %v14302_v41, 2  ;;  %v16131_v49 = vld [vmem:[#allocation7_spill] sm:$0xff] }
 0x21e   : > { %3468 = vmatmul.bf16.vlgmr.msrb.gmra.mxu1 %v3233_v7  ;;  %v3707_v7 = vrot.slane %v14319_v6, 2  ;;  %v3709_v2 = vrot.slane %v16131_v49, 2  ;;  %v3138_v49 = vshrl.u32 %v14274_v56, 16  ;;  %v3242_v56 = vshrl.u32 %v14306_v26, 16 }
 0x21f   : > { %v2987_v16 = vpop.f32.mrf.mxu3  ;;  %v14315_v38 = vsel %vm2246_vm0, %v6336_v25, %v16022_v58  ;;  %v3236_v25 = vor.u32 %v3234_v34, %v3232_v0 }
 0x220   : > { %v2934_v31 = vpop.f32.mrf.mxu2  ;;  %v2411_v4 = vpop.f32.mrf.mxu0  ;;  %16130 = vst [vmem:[#allocation65_spill] sm:$0xff] %v14315_v38  ;;  %v3710_v57 = vsel %vm2246_vm0, %v3705_v24, %v3709_v2  ;;  %v3140_v0 = vor.u32 %v3138_v49, %v3136_v51  ;;  %v11817_v24 = vld [vmem:[#allocation2 + $0x30] sm:$0xff]  ;;  %v12483_v51 = vld [vmem:[#allocation2 + $0x24] sm:$0xff]  }
 0x221   : > { %v2988_v62 = vadd.f32 %v2987_v16, %v2934_v31  ;;  %v2464_v36 = vpop.f32.mrf.mxu1  ;;  %v16134_v49 = vld [vmem:[#allocation11_spill] sm:$0xff] }
 0x222   : > { %v2465_v45 = vadd.f32 %v2464_v36, %v2411_v4  ;;  %v3713_v38 = vrot.slane %v16134_v49, 2 }
 0x223   : > { %v14309_v15 = vadd.f32 %v2988_v62, %v2503_v5 }
 0x224   : > { %v2504_v43 = vadd.f32 %v2465_v45, %v13397_v35  ;;  %v3241_v35 = vsel %vm1502_vm1, %v3236_v25, %v3240_v9  ;;  %v3708_v45 = vsel %vm2246_vm0, %v3702_v28, %v3707_v7 }
 0x227   : > { %v2989_v5 = vpop.f32.mrf.mxu3 }
 0x228   : > { %v2936_v12 = vpop.f32.mrf.mxu2  ;;  %v2414_v16 = vpop.f32.mrf.mxu0 }
 0x229   : > { %v2990_v31 = vadd.f32 %v2989_v5, %v2936_v12  ;;  %v2467_v62 = vpop.f32.mrf.mxu1  ;;  %v3144_v12 = vrot.slane %v3142_v52, 1 }
 0x22a   : > { %v2468_v4 = vadd.f32 %v2467_v62, %v2414_v16 }
 0x22b   : > { %v14323_v36 = vadd.f32 %v2990_v31, %v2504_v43  ;;  %v3145_v5 = vsel %vm1502_vm1, %v3140_v0, %v3144_v12  ;;  %v3150_v0 = vshll.u32 %v11817_v24, 16 }
 0x22c   : > { %v2505_v58 = vadd.f32 %v2468_v4, %v16132_v55  ;;  %3420 = vmatmul.bf16.gmra.mxu0 %v14258_v14  ;;  %v3246_v14 = vshll.u32 %v3145_v5, 16  ;;  %v16133_v4 = vld [vmem:[#allocation14_spill] sm:$0xff]  ;;  %v3711_v55 = vrot.slane %v12483_v51, 2  ;;  %v3714_v51 = vsel %vm2246_vm0, %v3709_v2, %v3713_v38 }
 0x22d   : > { %3862 = vmatmul.bf16.gmra.mxu2 %v3708_v45  ;;  %3915 = vmatmul.bf16.gmra.mxu3 %v3710_v57  ;;  %v3152_v49 = vrot.slane %v3150_v0, 1  ;;  %v12484_v0 = vld [vmem:[#allocation2 + $0x2c] sm:$0xff]  }
 0x22e   : > { %3473 = vmatmul.bf16.gmra.mxu1 %v3241_v35  ;;  %v3248_v52 = vrot.slane %v3246_v14, 1  ;;  %v3712_v14 = vsel %vm2246_vm0, %v3707_v7, %v3711_v55  ;;  %v11818_v7 = vld [vmem:[#allocation2 + $0x38] sm:$0xff] }
 0x22f   : > { %v2992_v43 = vpop.f32.mrf.mxu3 }
 0x230   : > { %v2939_v34 = vpop.f32.mrf.mxu2  ;;  %v2416_v16 = vpop.f32.mrf.mxu0 }
 0x231   : > { %v2993_v31 = vadd.f32 %v2992_v43, %v2939_v34  ;;  %v2469_v28 = vpop.f32.mrf.mxu1 }
 0x232   : > { %v2470_v62 = vadd.f32 %v2469_v28, %v2416_v16  ;;  %v3244_v16 = vor.u32 %v3242_v56, %v3240_v9 }
 0x233   : > { %v14332_v25 = vadd.f32 %v2993_v31, %v2505_v58 }
 0x234   : > { %v2506_v35 = vadd.f32 %v2470_v62, %v16133_v4  ;;  %v3249_v28 = vsel %vm1502_vm1, %v3244_v16, %v3248_v52  ;;  %v3146_v62 = vshrl.u32 %v11816_v8, 16  ;;  %v16135_v4 = vld [vmem:[#allocation19_spill] sm:$0xff] }
 0x235   : > { %v16136_v16 = vld [vmem:[#allocation23_spill] sm:$0xff] }
 0x237   : > { %v2994_v57 = vpop.f32.mrf.mxu3 }
 0x238   : > { %v2941_v45 = vpop.f32.mrf.mxu2  ;;  %v2419_v43 = vpop.f32.mrf.mxu0 }
 0x239   : > { %v2995_v34 = vadd.f32 %v2994_v57, %v2941_v45  ;;  %v2472_v63 = vpop.f32.mrf.mxu1  ;;  %v3148_v45 = vor.u32 %v3146_v62, %v3144_v12  ;;  %v3717_v62 = vrot.slane %v13554_v23, 2 }
 0x23a   : > { %v2473_v58 = vadd.f32 %v2472_v63, %v2419_v43 }
 0x23b   : > { %v14337_v31 = vadd.f32 %v2995_v34, %v2506_v35  ;;  %v3153_v35 = vsel %vm1502_vm1, %v3148_v45, %v3152_v49 }
 0x23c   : > { %v2507_v60 = vadd.f32 %v2473_v58, %v16135_v4  ;;  %3425 = vmatmul.bf16.gmra.mxu0 %v14306_v26  ;;  %v3254_v26 = vshll.u32 %v3153_v35, 16  ;;  %v3715_v4 = vrot.slane %v12484_v0, 2  ;;  %v3154_v0 = vshrl.u32 %v11817_v24, 16  ;;  %v14362_v24 = vld [vmem:[#allocation2 + $0x40] sm:$0xff] }
 0x23d   : > { %3867 = vmatmul.bf16.gmra.mxu2 %v3712_v14  ;;  %3920 = vmatmul.bf16.gmra.mxu3 %v3714_v51  ;;  %v3158_v51 = vshll.u32 %v11818_v7, 16 }
 0x23e   : > { %3478 = vmatmul.bf16.gmra.mxu1 %v3249_v28  ;;  %v3250_v28 = vshrl.u32 %v3145_v5, 16  ;;  %v3256_v2 = vrot.slane %v3254_v26, 1 }
 0x23f   : > { %v2997_v63 = vpop.f32.mrf.mxu3  ;;  %v3160_v23 = vrot.slane %v3158_v51, 1  ;;  %v3258_v51 = vshrl.u32 %v3153_v35, 16 }
 0x240   : > { %v2944_v9 = vpop.f32.mrf.mxu2  ;;  %v2421_v57 = vpop.f32.mrf.mxu0  ;;  %v3252_v44 = vor.u32 %v3250_v28, %v3248_v52 }
 0x241   : > { %v2998_v56 = vadd.f32 %v2997_v63, %v2944_v9  ;;  %v2474_v8 = vpop.f32.mrf.mxu1 }
 0x242   : > { %v2475_v34 = vadd.f32 %v2474_v8, %v2421_v57  ;;  %v3716_v8 = vsel %vm2246_vm0, %v3711_v55, %v3715_v4 }
 0x243   : > { %v14345_v43 = vadd.f32 %v2998_v56, %v2507_v60  ;;  %v3257_v56 = vsel %vm1502_vm1, %v3252_v44, %v3256_v2 }
 0x244   : > { %v2508_v58 = vadd.f32 %v2475_v34, %v16136_v16  ;;  %v16137_v34 = vld [vmem:[#allocation27_spill] sm:$0xff]  ;;  %v3718_v16 = vsel %vm2246_vm0, %v3713_v38, %v3717_v62 }
 0x247   : > { %v2999_v12 = vpop.f32.mrf.mxu3 }
 0x248   : > { %v2946_v14 = vpop.f32.mrf.mxu2  ;;  %v2424_v9 = vpop.f32.mrf.mxu0 }
 0x249   : > { %v3000_v45 = vadd.f32 %v2999_v12, %v2946_v14  ;;  %v2477_v63 = vpop.f32.mrf.mxu1  ;;  %v3156_v14 = vor.u32 %v3154_v0, %v3152_v49 }
 0x24a   : > { %v2478_v57 = vadd.f32 %v2477_v63, %v2424_v9 }
 0x24b   : > { %v14349_v60 = vadd.f32 %v3000_v45, %v2508_v58  ;;  %v14356_v58 = vsel %vm1502_vm1, %v3156_v14, %v3160_v23 }
 0x24c   : > { %v2509_v26 = vadd.f32 %v2478_v57, %v16137_v34  ;;  %3430 = vmatmul.bf16.gmra.mxu0 %v3145_v5  ;;  %v3262_v5 = vshll.u32 %v14356_v58, 16  ;;  %v3721_v34 = vrot.slane %v13684_v1, 2 }
 0x24d   : > { %3872 = vmatmul.bf16.gmra.mxu2 %v3716_v8  ;;  %3925 = vmatmul.bf16.gmra.mxu3 %v3718_v16  ;;  %v3166_v16 = vshll.u32 %v14362_v24, 16 }
 0x24e   : > { %3483 = vmatmul.bf16.gmra.mxu1 %v3257_v56  ;;  %v3264_v63 = vrot.slane %v3262_v5, 1  ;;  %v12485_v56 = vld [vmem:[#allocation2 + $0x34] sm:$0xff]   ;;  %v3722_v1 = vsel %vm2246_vm0, %v3717_v62, %v3721_v34 }
 0x24f   : > { %v3002_v52 = vpop.f32.mrf.mxu3  ;;  %v3719_v8 = vrot.slane %v12485_v56, 2  ;;  %v3168_v5 = vrot.slane %v3166_v16, 1  ;;  %v16138_v62 = vld [vmem:[#allocation44_spill] sm:$0xff] }
 0x250   : > { %v2949_v12 = vpop.f32.mrf.mxu2  ;;  %v2426_v44 = vpop.f32.mrf.mxu0 }
 0x251   : > { %v3003_v28 = vadd.f32 %v3002_v52, %v2949_v12  ;;  %v2479_v45 = vpop.f32.mrf.mxu1  ;;  %v3260_v12 = vor.u32 %v3258_v51, %v3256_v2 }
 0x252   : > { %v2480_v55 = vadd.f32 %v2479_v45, %v2426_v44  ;;  %v3162_v44 = vshrl.u32 %v11818_v7, 16 }
 0x253   : > { %v14358_v9 = vadd.f32 %v3003_v28, %v2509_v26 }
 0x254   : > { %v2510_v38 = vadd.f32 %v2480_v55, %v13741_v33  ;;  %v3265_v33 = vsel %vm1502_vm1, %v3260_v12, %v3264_v63  ;;  %v3720_v55 = vsel %vm2246_vm0, %v3715_v4, %v3719_v8 }
 0x257   : > { %v3004_v57 = vpop.f32.mrf.mxu3 }
 0x258   : > { %v2951_v49 = vpop.f32.mrf.mxu2  ;;  %v2429_v14 = vpop.f32.mrf.mxu0 }
 0x259   : > { %v3005_v0 = vadd.f32 %v3004_v57, %v2951_v49  ;;  %v3164_v49 = vor.u32 %v3162_v44, %v3160_v23  ;;  %v3266_v23 = vshrl.u32 %v14356_v58, 16  ;;  %v14384_v44 = vld [vmem:[#allocation2 + $0x3c] sm:$0xff]  }
 0x25b   : > { %v2482_v26 = vpop.f32.mrf.mxu1  ;;  %v14366_v28 = vadd.f32 %v3005_v0, %v2510_v38  ;;  %v14373_v38 = vsel %vm1502_vm1, %v3164_v49, %v3168_v5  ;;  %v9528_v0 = vld [vmem:[#allocation2 + $0x48] sm:$0xf] }
 0x25c   : > { %v2483_v52 = vadd.f32 %v2482_v26, %v2429_v14  ;;  %3435 = vmatmul.bf16.gmra.mxu0 %v3153_v35  ;;  %v3270_v4 = vshll.u32 %v14373_v38, 16 }
 0x25d   : > { %3877 = vmatmul.bf16.gmra.mxu2 %v3720_v55  ;;  %3930 = vmatmul.bf16.gmra.mxu3 %v3722_v1  ;;  %v16026_v55 = vrot.slane %v14384_v44, 2  ;;  %v16025_v1 = vrot.slane %v13805_v11, 2 }
 0x25e   : > { %v2511_v45 = vadd.f32 %v2483_v52, %v13793_v37  ;;  %3488 = vmatmul.bf16.gmra.mxu1 %v3265_v33  ;;  %v11820_v37 = vld [vmem:[#allocation2 + $0x48] sm:$0x10]  ;;  %v14382_v12 = vrot.slane %v3270_v4, 1 }
 0x25f   : > { %v14379_v26 = vor.u32 %v11820_v37, %v9528_v0  ;;  %v3170_v37 = vshrl.u32 %v14362_v24, 16  ;;  %v11860_v24 = vld [vmem:[%s15973_s3 + $0x338] sm:$0xff] }
 0x260   : > { %v2954_v57 = vpop.f32.mrf.mxu2  ;;  %v3007_v2 = vpop.f32.mrf.mxu3  ;;  %4178 = vmatpush.bf16.msra.mxu0 %v11860_v24  ;;  %v11882_v24 = vld [vmem:[%s15973_s3 + $0x3b0] sm:$0xff] }
 0x261   : > { %v3008_v51 = vadd.f32 %v3007_v2, %v2954_v57  ;;  %v2431_v56 = vpop.f32.mrf.mxu0 }
 0x263   : > { %v2484_v7 = vpop.f32.mrf.mxu1  ;;  %v14375_v14 = vadd.f32 %v3008_v51, %v2511_v45  ;;  %v3174_v45 = vshll.u32 %v14379_v26, 16  ;;  %v3268_v51 = vor.u32 %v3266_v23, %v3264_v63  ;;  %v3726_v63 = vsel %vm2246_vm0, %v3721_v34, %v16025_v1  ;;  %v16140_v23 = vld [vmem:[#allocation46_spill] sm:$0xff]  ;;  %v11891_v34 = vld [vmem:[%s15973_s3 + $0x3f8] sm:$0xff] }
 0x264   : > { %v2485_v35 = vadd.f32 %v2484_v7, %v2431_v56  ;;  %4590 = vmatpush.bf16.msra.mxu3 %v11891_v34  ;;  %v3274_v34 = vshrl.u32 %v14373_v38, 16 }
 0x265   : > { %v3273_v0 = vsel %vm1502_vm1, %v3268_v51, %v14382_v12 }
 0x266   : > { %v2512_v16 = vadd.f32 %v2485_v35, %v16138_v62  ;;  %v16139_v35 = vld [vmem:[#allocation48_spill] sm:$0xff]  ;;  %v3724_v62 = vsel %vm2246_vm0, %v3719_v8, %v16026_v55 }
 0x267   : > { %v11883_v8 = vld [vmem:[%s15973_s3 + $0x3b8] sm:$0xff] }
 0x268   : > { %v2956_v52 = vpop.f32.mrf.mxu2  ;;  %v3009_v33 = vpop.f32.mrf.mxu3  ;;  %4537 = vmatpush.bf16.msra.mxu2 %v11883_v8  ;;  %v11858_v8 = vld [vmem:[%s15973_s3 + $0x328] sm:$0xff] }
 0x269   : > { %v3010_v49 = vadd.f32 %v3009_v33, %v2956_v52  ;;  %v2434_v57 = vpop.f32.mrf.mxu0  ;;  %v3661_v52 = vshll.u32 %v16140_v23, 16  ;;  %v3172_v33 = vor.u32 %v3170_v37, %v3168_v5 }
 0x26b   : > { %v2487_v2 = vpop.f32.mrf.mxu1  ;;  %v14389_v7 = vadd.f32 %v3010_v49, %v2512_v16  ;;  %v14402_v16 = vrot.slane %v3174_v45, 1 }
 0x26c   : > { %v2488_v56 = vadd.f32 %v2487_v2, %v2434_v57  ;;  %3440 = vmatmul.bf16.gmra.mxu0 %v14356_v58  ;;  %v11868_v58 = vld [vmem:[%s15973_s3 + $0x378] sm:$0xff]  ;;  %4538 = vmatpush.bf16.msra.mxu2 %v11882_v24 }
 0x26d   : > { %3882 = vmatmul.bf16.gmra.mxu2 %v3724_v62  ;;  %3935 = vmatmul.bf16.gmra.mxu3 %v3726_v63  ;;  %v14419_v57 = vsel %vm1502_vm1, %v3172_v33, %v14402_v16  ;;  %v11859_v62 = vld [vmem:[%s15973_s3 + $0x330] sm:$0xff]  ;;  %v11866_v33 = vld [vmem:[%s15973_s3 + $0x368] sm:$0xff] }
 0x26e   : > { %v2513_v4 = vadd.f32 %v2488_v56, %v16139_v35  ;;  %3493 = vmatmul.bf16.gmra.mxu1 %v3273_v0  ;;  %v14421_v0 = vrot.slane %v3661_v52, 1  ;;  %v3278_v35 = vshll.u32 %v14419_v57, 16  ;;  %v11867_v63 = vld [vmem:[%s15973_s3 + $0x370] sm:$0xff]  ;;  %4179 = vmatpush.bf16.msra.mxu0 %v11859_v62 }
 0x26f   : > { %4231 = vmatpush.bf16.msra.mxu1 %v11868_v58 }
 0x270   : > { %v2959_v45 = vpop.f32.mrf.mxu2  ;;  %v3012_v49 = vpop.f32.mrf.mxu3  ;;  %v14442_v58 = vsel %vm1502_vm1, %v13966_v40, %v14421_v0  ;;  %v11889_v40 = vld [vmem:[%s15973_s3 + $0x3e8] sm:$0xff] }
 0x271   : > { %v3013_v2 = vadd.f32 %v3012_v49, %v2959_v45  ;;  %v2436_v51 = vpop.f32.mrf.mxu0  ;;  %v14457_v45 = vrot.slane %v3278_v35, 1 }
 0x272   : > { %4180 = vmatpush.bf16.msra.mxu0 %v11858_v8  ;;  %v16142_v8 = vrot.slane %v13805_v11, 2  ;;  %v11888_v11 = vld [vmem:[%s15973_s3 + $0x3e0] sm:$0xff] }
 0x273   : > { %v2489_v56 = vpop.f32.mrf.mxu1  ;;  %v14423_v37 = vadd.f32 %v3013_v2, %v2513_v4  ;;  %v11890_v4 = vld [vmem:[%s15973_s3 + $0x3f0] sm:$0xff]  ;;  %4232 = vmatpush.bf16.msra.mxu1 %v11867_v63 }
 0x274   : > { %v2490_v5 = vadd.f32 %v2489_v56, %v2436_v51  ;;  %4591 = vmatpush.bf16.msra.mxu3 %v11890_v4  ;;  %v14459_v51 = vld [vmem:[#allocation2 + $0x44] sm:$0xff]   ;;  %v3276_v4 = vor.u32 %v3274_v34, %v14382_v12  ;;  %v11887_v34 = vld [vmem:[%s15973_s3 + $0x3d8] sm:$0xff] }
 0x275   : > { %v3727_v56 = vrot.slane %v14459_v51, 2 }
 0x276   : > { %v2514_v52 = vadd.f32 %v2490_v5, %v14008_v17  ;;  %v11881_v17 = vld [vmem:[%s15973_s3 + $0x3a8] sm:$0xff]  ;;  %v3729_v5 = vrot.slane %v14442_v58, 2  ;;  %v3281_v55 = vsel %vm1502_vm1, %v3276_v4, %v14457_v45 }
 0x277   : > { %4233 = vmatpush.bf16.msra.mxu1 %v11866_v33  ;;  %4539 = vmatpush.bf16.msra.mxu2 %v11881_v17  ;;  %v11857_v33 = vld [vmem:[%s15973_s3 + $0x320] sm:$0xff]  ;;  %v11864_v17 = vld [vmem:[%s15973_s3 + $0x358] sm:$0xff] }
 0x278   : > { %v2961_v49 = vpop.f32.mrf.mxu2  ;;  %v3014_v2 = vpop.f32.mrf.mxu3  ;;  %4592 = vmatpush.bf16.msra.mxu3 %v11889_v40  ;;  %4181 = vmatpush.bf16.msra.mxu0 %v11857_v33 }
 0x279   : > { %v3015_v62 = vadd.f32 %v3014_v2, %v2961_v49  ;;  %v2439_v63 = vpop.f32.mrf.mxu0  ;;  %v16141_v49 = vrot.slane %v14384_v44, 2  ;;  %v3178_v44 = vshrl.u32 %v14379_v26, 16  ;;  %v11879_v26 = vld [vmem:[%s15973_s3 + $0x398] sm:$0xff] }
 0x27b   : > { %v2492_v24 = vpop.f32.mrf.mxu1  ;;  %v14464_v35 = vadd.f32 %v3015_v62, %v2514_v52  ;;  %v3728_v12 = vsel %vm2246_vm0, %v16141_v49, %v3727_v56  ;;  %v3730_v52 = vsel %vm2246_vm0, %v16142_v8, %v3729_v5  ;;  %v14500_v40 = vor.u32 %v3178_v44, %v14402_v16 }
 0x27c   : > { %v2493_v1 = vadd.f32 %v2492_v24, %v2439_v63  ;;  %3445 = vmatmul.bf16.gmra.mxu0 %v14373_v38  ;;  %v11880_v38 = vld [vmem:[%s15973_s3 + $0x3a0] sm:$0xff]  ;;  %4593 = vmatpush.bf16.msra.mxu3 %v11888_v11  ;;  %v3665_v16 = vshrl.u32 %v16140_v23, 16  ;;  %v11878_v11 = vld [vmem:[%s15973_s3 + $0x390] sm:$0xff] }
 0x27d   : > { %3887 = vmatmul.bf16.gmra.mxu2 %v3728_v12  ;;  %3940 = vmatmul.bf16.gmra.mxu3 %v3730_v52  ;;  %v3286_v52 = vshll.u32 %v14500_v40, 16 }
 0x27e   : > { %v2515_v41 = vadd.f32 %v2493_v1, %v14083_v48  ;;  %3498 = vmatmul.bf16.gmra.mxu1 %v3281_v55  ;;  %v11865_v48 = vld [vmem:[%s15973_s3 + $0x360] sm:$0xff]  ;;  %v3547_v55 = vld [vmem:[#allocation2 + $0x50] sm:$0x3]  ;;  %v11856_v1 = vld [vmem:[%s15973_s3 + $0x318] sm:$0xff]  ;;  %4540 = vmatpush.bf16.msra.mxu2 %v11880_v38  ;;  %v14517_v44 = vor.u32 %v3665_v16, %v14421_v0 }
 0x27f   : > { %4234 = vmatpush.bf16.msra.mxu1 %v11865_v48  ;;  %v3584_v63 = vunpack.c.l.b16 %v3547_v55  ;;  %4182 = vmatpush.bf16.msra.mxu0 %v11856_v1  ;;  %v16143_v48 = vld [vmem:[#allocation45_spill] sm:$0xff]  ;;  %v11855_v55 = vld [vmem:[%s15973_s3 + $0x310] sm:$0xff]  ;;  %v11854_v0 = vld [vmem:[%s15973_s3 + $0x308] sm:$0xff] }
 0x280   : > { %v2964_v2 = vpop.f32.mrf.mxu2  ;;  %v3017_v62 = vpop.f32.mrf.mxu3  ;;  %4594 = vmatpush.bf16.msra.mxu3 %v11887_v34  ;;  %v11886_v1 = vld [vmem:[%s15973_s3 + $0x3d0] sm:$0xff]  ;;  %v3288_v34 = vrot.slane %v3286_v52, 1 }
 0x281   : > { %v3018_v24 = vadd.f32 %v3017_v62, %v2964_v2  ;;  %v2441_v4 = vpop.f32.mrf.mxu0  ;;  %v14514_v38 = vpack.c.b16 %v3584_v63, %v16143_v48  ;;  %v11877_v2 = vld [vmem:[%s15973_s3 + $0x388] sm:$0xff] }
 0x282   : > { %4541 = vmatpush.bf16.msra.mxu2 %v11879_v26  ;;  %v11885_v62 = vld [vmem:[%s15973_s3 + $0x3c8] sm:$0xff] }
 0x283   : > { %v2494_v49 = vpop.f32.mrf.mxu1  ;;  %4235 = vmatpush.bf16.msra.mxu1 %v11864_v17  ;;  %v14509_v8 = vadd.f32 %v3018_v24, %v2515_v41  ;;  %v11863_v41 = vld [vmem:[%s15973_s3 + $0x350] sm:$0xff]  ;;  %4183 = vmatpush.bf16.msra.mxu0 %v11855_v55  ;;  %v11862_v17 = vld [vmem:[%s15973_s3 + $0x348] sm:$0xff] }
 0x284   : > { %v2495_v12 = vadd.f32 %v2494_v49, %v2441_v4  ;;  %4595 = vmatpush.bf16.msra.mxu3 %v11886_v1  ;;  %v3731_v4 = vrot.slane %v14514_v38, 2  ;;  %v3733_v49 = vrot.slane %v14517_v44, 2 }
 0x286   : > { %v2516_v33 = vadd.f32 %v2495_v12, %v14146_v54  ;;  %v3282_v54 = vshrl.u32 %v14419_v57, 16  ;;  %4542 = vmatpush.bf16.msra.mxu2 %v11878_v11  ;;  %v3732_v38 = vsel %vm2246_vm0, %v3727_v56, %v3731_v4  ;;  %v3734_v44 = vsel %vm2246_vm0, %v3729_v5, %v3733_v49  ;;  %v11861_v11 = vld [vmem:[%s15973_s3 + $0x340] sm:$0xff] }
 0x287   : > { %4236 = vmatpush.bf16.msra.mxu1 %v11863_v41  ;;  %4184 = vmatpush.bf16.msra.mxu0 %v11854_v0  ;;  %v3972_v0 = vld [vmem:[#allocation2 + $0xc] sm:$0x8] }
 0x288   : > { %v3284_v26 = vor.u32 %v3282_v54, %v14457_v45  ;;  %v2966_v63 = vpop.f32.mrf.mxu2  ;;  %v3019_v24 = vpop.f32.mrf.mxu3  ;;  %4596 = vmatpush.bf16.msra.mxu3 %v11885_v62  ;;  %v3290_v62 = vshrl.u32 %v14500_v40, 16 }
 0x289   : > { %v3020_v12 = vadd.f32 %v3019_v24, %v2966_v63  ;;  %v2444_v16 = vpop.f32.mrf.mxu0  ;;  %v16144_v63 = vunpack.c.l.b16 %v14187_v53 }
 0x28a   : > { %v3289_v55 = vsel %vm1502_vm1, %v3284_v26, %v3288_v34  ;;  %4543 = vmatpush.bf16.msra.mxu2 %v11877_v2 }
 0x28b   : > { %v2497_v45 = vpop.f32.mrf.mxu1  ;;  %4237 = vmatpush.bf16.msra.mxu1 %v11862_v17  ;;  %v14547_v48 = vadd.f32 %v3020_v12, %v2516_v33  ;;  %v11853_v33 = vld [vmem:[%s15973_s3 + $0x300] sm:$0xff]  ;;  %v3975_v17 = vunpack.c.l.b16 %v3972_v0 }
 0x28c   : > { %v2498_v52 = vadd.f32 %v2497_v45, %v2444_v16  ;;  %3450 = vmatmul.bf16.gmra.mxu0 %v14419_v57  ;;  %v11884_v57 = vld [vmem:[%s15973_s3 + $0x3c0] sm:$0xff] }
 0x28d   : > { %3892 = vmatmul.bf16.gmra.mxu2 %v3732_v38  ;;  %3945 = vmatmul.bf16.gmra.mxu3 %v3734_v44  ;;  %v3976_v24 = vpack.c.b16 %v16144_v63, %v3975_v17 }
 0x28e   : > { %v2517_v41 = vadd.f32 %v2498_v52, %v14204_v50  ;;  %3503 = vmatmul.bf16.gmra.mxu1 %v3289_v55  ;;  %v11876_v50 = vld [vmem:[%s15973_s3 + $0x380] sm:$0xff]  ;;  %4185 = vmatpush.bf16.msra.mxu0 %v11853_v33  ;;  %v3292_v52 = vor.u32 %v3290_v62, %v3288_v34 }
 0x28f   : > { %4238 = vmatpush.bf16.msra.mxu1 %v11861_v11  ;;  %4544 = vmatpush.bf16.msra.mxu2 %v11876_v50  ;;  %v4030_v62 = vrot.slane %v3976_v24, 3 }
 0x290   : > { %4597 = vmatpush.bf16.msra.mxu3 %v11884_v57  ;;  %v2969_v58 = vpop.f32.mrf.mxu2  ;;  %v3022_v51 = vpop.f32.mrf.mxu3 }
 0x291   : > { %v3023_v56 = vadd.f32 %v3022_v51, %v2969_v58  ;;  %v2446_v5 = vpop.f32.mrf.mxu0  ;;  %v3981_v51 = vshrl.u32 %v3976_v24, 16 }
 0x293   : > { %v2499_v54 = vpop.f32.mrf.mxu1  ;;  %v14570_v1 = vadd.f32 %v3023_v56, %v2517_v41  ;;  %v3983_v41 = vshll.u32 %v3976_v24, 16 }
 0x294   : > { %v12488_v54 = vld [vmem:[#allocation2 + $0x1c] sm:$0xff] }
 0x295   : > { %v3985_v33 = vrot.slane %v3983_v41, 1  ;;  %v4383_v0 = vrot.slane %v12488_v54, 1 }
 0x297   : > { %v3986_v5 = vor.u32 %v3985_v33, %v3981_v51 }
 0x298   : > { %v2971_v26 = vpop.f32.mrf.mxu2  ;;  %v3024_v2 = vpop.f32.mrf.mxu3 }
 0x299   : > { %v3416_v12 = vpop.f32.mrf.mxu0 }
 0x29b   : > { %v3469_v16 = vpop.f32.mrf.mxu1 }
 0x29c   : > { %v3470_v45 = vadd.f32 %v3469_v16, %v3416_v12  ;;  %3455 = vmatmul.bf16.gmra.mxu0 %v14500_v40  ;;  %v4031_v40 = vrot.slane %v14276_v13, 3  ;;  %v16145_v16 = vld [vmem:[#allocation4_spill] sm:$0xff] }
 0x29d   : > { %3897 = vmatmul.bf16.gmra.mxu2 %v3731_v4  ;;  %3950 = vmatmul.bf16.gmra.mxu3 %v3733_v49 }
 0x29e   : > { %v3513_v55 = vadd.f32 %v3470_v45, %v14269_v42  ;;  %3508 = vmatmul.bf16.gmra.mxu1 %v3292_v52  ;;  %v3987_v42 = vsel %vm1502_vm1, %v3986_v5, %v13316_v10  ;;  %v4382_v45 = vrot.slane %v16145_v16, 1  ;;  %v16146_v10 = vrot.slane %v13347_v3, 3 }
 0x29f   : > { %v4033_v63 = vrot.slane %v3987_v42, 3 }
 0x2a0   : > { %v3858_v38 = vpop.f32.mrf.mxu2  ;;  %v3911_v44 = vpop.f32.mrf.mxu3  ;;  %v4384_v41 = vsel %vm1672_vm2, %v4382_v45, %v4383_v0 }
 0x2a1   : > { %v3912_v11 = vadd.f32 %v3911_v44, %v3858_v38  ;;  %v3418_v50 = vpop.f32.mrf.mxu0  ;;  %v4035_v13 = vsel %vm4029_vm6, %v4033_v63, %v16146_v10 }
 0x2a3   : > { %v3471_v57 = vpop.f32.mrf.mxu1  ;;  %v14577_v56 = vadd.f32 %v3912_v11, %v3513_v55 }
 0x2a4   : > { %v3472_v58 = vadd.f32 %v3471_v57, %v3418_v50 }
 0x2a6   : > { %v3514_v34 = vadd.f32 %v3472_v58, %v14292_v18  ;;  %v4032_v18 = vsel %vm4029_vm6, %v4030_v62, %v4031_v40  ;;  %v4036_v58 = vrot.slane %v14319_v6, 3 }
 0x2a8   : > { %v3860_v4 = vpop.f32.mrf.mxu2  ;;  %v3913_v49 = vpop.f32.mrf.mxu3 }
 0x2a9   : > { %v3914_v17 = vadd.f32 %v3913_v49, %v3860_v4  ;;  %v3421_v26 = vpop.f32.mrf.mxu0 }
 0x2ab   : > { %v3474_v2 = vpop.f32.mrf.mxu1  ;;  %v14584_v52 = vadd.f32 %v3914_v17, %v3514_v34  ;;  %v12489_v34 = vld [vmem:[#allocation2 + $0x24] sm:$0xff]  ;;  %v4037_v17 = vsel %vm4029_vm6, %v4031_v40, %v4036_v58 }
 0x2ac   : > { %v3475_v12 = vadd.f32 %v3474_v2, %v3421_v26  ;;  %4186 = vmatmul.bf16.vlgmr.msra.gmra.mxu0 %v4032_v18  ;;  %v4385_v5 = vrot.slane %v12489_v34, 1  ;;  %v16147_v2 = vld [vmem:[#allocation8_spill] sm:$0xff] }
 0x2ad   : > { %4545 = vmatmul.bf16.vlgmr.msra.gmra.mxu2 %v14187_v53  ;;  %4598 = vmatmul.bf16.vlgmr.msra.gmra.mxu3 %v4384_v41 }
 0x2ae   : > { %v3515_v55 = vadd.f32 %v3475_v12, %v14309_v15  ;;  %4239 = vmatmul.bf16.vlgmr.msra.gmra.mxu1 %v4035_v13  ;;  %v4386_v6 = vsel %vm1672_vm2, %v4383_v0, %v4385_v5 }
 0x2b0   : > { %v3863_v24 = vpop.f32.mrf.mxu2  ;;  %v3916_v38 = vpop.f32.mrf.mxu3 }
 0x2b1   : > { %v3917_v44 = vadd.f32 %v3916_v38, %v3863_v24  ;;  %v3423_v33 = vpop.f32.mrf.mxu0 }
 0x2b3   : > { %v3476_v11 = vpop.f32.mrf.mxu1  ;;  %v14593_v57 = vadd.f32 %v3917_v44, %v3515_v55  ;;  %v12490_v55 = vld [vmem:[#allocation2 + $0x2c] sm:$0xff] }
 0x2b4   : > { %v3477_v50 = vadd.f32 %v3476_v11, %v3423_v33  ;;  %v4387_v41 = vrot.slane %v12490_v55, 1  ;;  %v16148_v11 = vld [vmem:[#allocation5_spill] sm:$0xff] }
 0x2b6   : > { %v3516_v3 = vadd.f32 %v3477_v50, %v14323_v36  ;;  %v12360_v36 = vld [vmem:[#allocation2 + $0x18] sm:$0xff]   ;;  %v16149_v50 = vrot.slane %v16148_v11, 3  ;;  %v4388_v34 = vsel %vm1672_vm2, %v4385_v5, %v4387_v41 }
 0x2b8   : > { %v3865_v15 = vpop.f32.mrf.mxu2  ;;  %v3918_v51 = vpop.f32.mrf.mxu3 }
 0x2b9   : > { %v3919_v42 = vadd.f32 %v3918_v51, %v3865_v15  ;;  %v3426_v4 = vpop.f32.mrf.mxu0  ;;  %v16150_v51 = vld [vmem:[#allocation13_spill] sm:$0xff] }
 0x2bb   : > { %v3479_v53 = vpop.f32.mrf.mxu1  ;;  %v14597_v54 = vadd.f32 %v3919_v42, %v3516_v3  ;;  %v4041_v3 = vsel %vm4029_vm6, %v4036_v58, %v16149_v50 }
 0x2bc   : > { %v3480_v49 = vadd.f32 %v3479_v53, %v3426_v4  ;;  %4191 = vmatmul.bf16.gmra.mxu0 %v4037_v17 }
 0x2bd   : > { %4550 = vmatmul.bf16.gmra.mxu2 %v12360_v36  ;;  %4603 = vmatmul.bf16.gmra.mxu3 %v4386_v6  ;;  %v12491_v6 = vld [vmem:[#allocation2 + $0x34] sm:$0xff] }
 0x2be   : > { %v3517_v26 = vadd.f32 %v3480_v49, %v14332_v25  ;;  %4244 = vmatmul.bf16.gmra.mxu1 %v16147_v2 }
 0x2c0   : > { %v3868_v62 = vpop.f32.mrf.mxu2  ;;  %v3921_v63 = vpop.f32.mrf.mxu3 }
 0x2c1   : > { %v3922_v12 = vadd.f32 %v3921_v63, %v3868_v62  ;;  %v3428_v16 = vpop.f32.mrf.mxu0  ;;  %v4389_v62 = vrot.slane %v12491_v6, 1 }
 0x2c3   : > { %v3481_v45 = vpop.f32.mrf.mxu1  ;;  %v14603_v10 = vadd.f32 %v3922_v12, %v3517_v26  ;;  %v4390_v55 = vsel %vm1672_vm2, %v4387_v41, %v4389_v62 }
 0x2c4   : > { %v3482_v18 = vadd.f32 %v3481_v45, %v3428_v16 }
 0x2c6   : > { %v3518_v40 = vadd.f32 %v3482_v18, %v14337_v31  ;;  %v12361_v31 = vld [vmem:[#allocation2 + $0x20] sm:$0xff]  }
 0x2c8   : > { %v3870_v13 = vpop.f32.mrf.mxu2  ;;  %v3923_v25 = vpop.f32.mrf.mxu3 }
 0x2c9   : > { %v3924_v24 = vadd.f32 %v3923_v25, %v3870_v13  ;;  %v3431_v38 = vpop.f32.mrf.mxu0  ;;  %v16152_v13 = vld [vmem:[#allocation22_spill] sm:$0xff] }
 0x2ca   : > { %v12362_v25 = vld [vmem:[#allocation2 + $0x28] sm:$0xff]  }
 0x2cb   : > { %v3484_v44 = vpop.f32.mrf.mxu1  ;;  %v14606_v33 = vadd.f32 %v3924_v24, %v3518_v40  ;;  %v16151_v40 = vld [vmem:[#allocation12_spill] sm:$0xff] }
 0x2cc   : > { %v3485_v0 = vadd.f32 %v3484_v44, %v3431_v38  ;;  %4196 = vmatmul.bf16.gmra.mxu0 %v4041_v3 }
 0x2cd   : > { %4555 = vmatmul.bf16.gmra.mxu2 %v12361_v31  ;;  %4608 = vmatmul.bf16.gmra.mxu3 %v4388_v34 }
 0x2ce   : > { %v3519_v15 = vadd.f32 %v3485_v0, %v14345_v43  ;;  %4249 = vmatmul.bf16.gmra.mxu1 %v16150_v51  ;;  %v12492_v51 = vld [vmem:[#allocation2 + $0x3c] sm:$0xff] }
 0x2cf   : > { %v4391_v31 = vrot.slane %v12492_v51, 1  ;;  %v11923_v51 = vld [vmem:[%s15973_s3 + $0x4f8] sm:$0xff] }
 0x2d0   : > { %v3873_v42 = vpop.f32.mrf.mxu2  ;;  %v3926_v4 = vpop.f32.mrf.mxu3  ;;  %5440 = vmatpush.bf16.msrb.mxu3 %v11923_v51  ;;  %v11911_v51 = vld [vmem:[%s15973_s3 + $0x498] sm:$0xff] }
 0x2d1   : > { %v3927_v53 = vadd.f32 %v3926_v4, %v3873_v42  ;;  %v3433_v49 = vpop.f32.mrf.mxu0 }
 0x2d3   : > { %v3486_v17 = vpop.f32.mrf.mxu1  ;;  %v14614_v2 = vadd.f32 %v3927_v53, %v3519_v15 }
 0x2d4   : > { %v3487_v26 = vadd.f32 %v3486_v17, %v3433_v49  ;;  %v16153_v17 = vld [vmem:[#allocation20_spill] sm:$0xff] }
 0x2d6   : > { %v3520_v58 = vadd.f32 %v3487_v26, %v14349_v60  ;;  %v16154_v26 = vld [vmem:[#allocation32_spill] sm:$0xff] }
 0x2d8   : > { %v3875_v36 = vpop.f32.mrf.mxu2  ;;  %v3928_v43 = vpop.f32.mrf.mxu3 }
 0x2d9   : > { %v3929_v63 = vadd.f32 %v3928_v43, %v3875_v36  ;;  %v3436_v12 = vpop.f32.mrf.mxu0  ;;  %v4392_v36 = vsel %vm1672_vm2, %v4389_v62, %v4391_v31 }
 0x2db   : > { %v3489_v16 = vpop.f32.mrf.mxu1  ;;  %v14617_v45 = vadd.f32 %v3929_v63, %v3520_v58  ;;  %v12363_v58 = vld [vmem:[#allocation2 + $0x30] sm:$0xff]  }
 0x2dc   : > { %v3490_v5 = vadd.f32 %v3489_v16, %v3436_v12  ;;  %4201 = vmatmul.bf16.gmra.mxu0 %v16151_v40 }
 0x2dd   : > { %4560 = vmatmul.bf16.gmra.mxu2 %v12362_v25  ;;  %4613 = vmatmul.bf16.gmra.mxu3 %v4390_v55 }
 0x2de   : > { %v3521_v18 = vadd.f32 %v3490_v5, %v14358_v9  ;;  %4254 = vmatmul.bf16.gmra.mxu1 %v16152_v13  ;;  %v12493_v13 = vld [vmem:[#allocation2 + $0x44] sm:$0xff] }
 0x2df   : > { %v4393_v25 = vrot.slane %v12493_v13, 1 }
 0x2e0   : > { %v3878_v60 = vpop.f32.mrf.mxu2  ;;  %v3931_v24 = vpop.f32.mrf.mxu3 }
 0x2e1   : > { %v3932_v38 = vadd.f32 %v3931_v24, %v3878_v60  ;;  %v3438_v44 = vpop.f32.mrf.mxu0 }
 0x2e3   : > { %v3491_v0 = vpop.f32.mrf.mxu1  ;;  %v14623_v50 = vadd.f32 %v3932_v38, %v3521_v18 }
 0x2e4   : > { %v3492_v11 = vadd.f32 %v3491_v0, %v3438_v44  ;;  %v16155_v0 = vld [vmem:[#allocation29_spill] sm:$0xff] }
 0x2e6   : > { %v3522_v3 = vadd.f32 %v3492_v11, %v14366_v28  ;;  %v16156_v11 = vld [vmem:[#allocation40_spill] sm:$0xff] }
 0x2e8   : > { %v3880_v9 = vpop.f32.mrf.mxu2  ;;  %v3933_v15 = vpop.f32.mrf.mxu3 }
 0x2e9   : > { %v3934_v34 = vadd.f32 %v3933_v15, %v3880_v9  ;;  %v3441_v42 = vpop.f32.mrf.mxu0  ;;  %v4394_v9 = vsel %vm1672_vm2, %v4391_v31, %v4393_v25  ;;  %v11907_v15 = vld [vmem:[%s15973_s3 + $0x478] sm:$0xff] }
 0x2ea   : > { %5060 = vmatpush.bf16.msrb.mxu1 %v11907_v15  ;;  %v4318_v15 = vld [vmem:[#allocation2 + $0x58] sm:$0x1] }
 0x2eb   : > { %v3494_v4 = vpop.f32.mrf.mxu1  ;;  %v14626_v53 = vadd.f32 %v3934_v34, %v3522_v3  ;;  %v12364_v3 = vld [vmem:[#allocation2 + $0x38] sm:$0xff]  }
 0x2ec   : > { %v3495_v41 = vadd.f32 %v3494_v4, %v3441_v42  ;;  %4206 = vmatmul.bf16.gmra.mxu0 %v16153_v17 }
 0x2ed   : > { %4565 = vmatmul.bf16.gmra.mxu2 %v12363_v58  ;;  %4618 = vmatmul.bf16.gmra.mxu3 %v4392_v36  ;;  %v11906_v58 = vld [vmem:[%s15973_s3 + $0x470] sm:$0xff] }
 0x2ee   : > { %v3523_v49 = vadd.f32 %v3495_v41, %v14375_v14  ;;  %4259 = vmatmul.bf16.gmra.mxu1 %v16154_v26  ;;  %v11898_v26 = vld [vmem:[%s15973_s3 + $0x430] sm:$0xff] }
 0x2ef   : > { %v11914_v36 = vld [vmem:[%s15973_s3 + $0x4b0] sm:$0xff]  ;;  %5061 = vmatpush.bf16.msrb.mxu1 %v11906_v58 }
 0x2f0   : > { %v3883_v28 = vpop.f32.mrf.mxu2  ;;  %v3936_v43 = vpop.f32.mrf.mxu3 }
 0x2f1   : > { %v3937_v6 = vadd.f32 %v3936_v43, %v3883_v28  ;;  %v3443_v63 = vpop.f32.mrf.mxu0  ;;  %v11922_v43 = vld [vmem:[%s15973_s3 + $0x4f0] sm:$0xff] }
 0x2f2   : > { %5441 = vmatpush.bf16.msrb.mxu3 %v11922_v43 }
 0x2f3   : > { %v3496_v12 = vpop.f32.mrf.mxu1  ;;  %v14632_v5 = vadd.f32 %v3937_v6, %v3523_v49  ;;  %v11897_v6 = vld [vmem:[%s15973_s3 + $0x428] sm:$0xff] }
 0x2f4   : > { %v3497_v16 = vadd.f32 %v3496_v12, %v3443_v63  ;;  %v11905_v63 = vld [vmem:[%s15973_s3 + $0x468] sm:$0xff] }
 0x2f5   : > { %v11921_v12 = vld [vmem:[%s15973_s3 + $0x4e8] sm:$0xff]  ;;  %5062 = vmatpush.bf16.msrb.mxu1 %v11905_v63  ;;  %v11902_v63 = vld [vmem:[%s15973_s3 + $0x450] sm:$0xff] }
 0x2f6   : > { %v3524_v18 = vadd.f32 %v3497_v16, %v14389_v7  ;;  %v11899_v7 = vld [vmem:[%s15973_s3 + $0x438] sm:$0xff]  ;;  %5442 = vmatpush.bf16.msrb.mxu3 %v11921_v12  ;;  %v11918_v12 = vld [vmem:[%s15973_s3 + $0x4d0] sm:$0xff] }
 0x2f7   : > { %5007 = vmatpush.bf16.msrb.mxu0 %v11899_v7  ;;  %v11904_v7 = vld [vmem:[%s15973_s3 + $0x460] sm:$0xff] }
 0x2f8   : > { %v3885_v14 = vpop.f32.mrf.mxu2  ;;  %v3938_v40 = vpop.f32.mrf.mxu3 }
 0x2f9   : > { %v3939_v55 = vadd.f32 %v3938_v40, %v3885_v14  ;;  %v3446_v60 = vpop.f32.mrf.mxu0  ;;  %v14680_v14 = vld [vmem:[#allocation2 + $0x4c] sm:$0xff]  ;;  %5063 = vmatpush.bf16.msrb.mxu1 %v11904_v7  ;;  %v16158_v7 = vld [vmem:[#allocation50_spill] sm:$0xff] }
 0x2fa   : > { %v4395_v40 = vrot.slane %v14680_v14, 1  ;;  %v11916_v14 = vld [vmem:[%s15973_s3 + $0x4c0] sm:$0xff] }
 0x2fb   : > { %v3499_v24 = vpop.f32.mrf.mxu1  ;;  %v14635_v38 = vadd.f32 %v3939_v55, %v3524_v18  ;;  %5008 = vmatpush.bf16.msrb.mxu0 %v11898_v26 }
 0x2fc   : > { %v3500_v62 = vadd.f32 %v3499_v24, %v3446_v60  ;;  %4211 = vmatmul.bf16.gmra.mxu0 %v16155_v0 }
 0x2fd   : > { %4570 = vmatmul.bf16.gmra.mxu2 %v12364_v3  ;;  %4623 = vmatmul.bf16.gmra.mxu3 %v4394_v9  ;;  %v4396_v3 = vsel %vm1672_vm2, %v4393_v25, %v4395_v40  ;;  %v11896_v9 = vld [vmem:[%s15973_s3 + $0x420] sm:$0xff]  ;;  %v11895_v25 = vld [vmem:[%s15973_s3 + $0x418] sm:$0xff] }
 0x2fe   : > { %v3525_v44 = vadd.f32 %v3500_v62, %v14423_v37  ;;  %4264 = vmatmul.bf16.gmra.mxu1 %v16156_v11  ;;  %v11915_v37 = vld [vmem:[%s15973_s3 + $0x4b8] sm:$0xff] }
 0x2ff   : > { %5387 = vmatpush.bf16.msrb.mxu2 %v11915_v37  ;;  %5009 = vmatpush.bf16.msrb.mxu0 %v11897_v6  ;;  %v16157_v11 = vld [vmem:[#allocation37_spill] sm:$0xff]  ;;  %v11894_v6 = vld [vmem:[%s15973_s3 + $0x410] sm:$0xff] }
 0x300   : > { %v3888_v31 = vpop.f32.mrf.mxu2  ;;  %v3941_v34 = vpop.f32.mrf.mxu3  ;;  %v11903_v37 = vld [vmem:[%s15973_s3 + $0x458] sm:$0xff] }
 0x301   : > { %v3942_v42 = vadd.f32 %v3941_v34, %v3888_v31  ;;  %v3448_v4 = vpop.f32.mrf.mxu0  ;;  %v11919_v31 = vld [vmem:[%s15973_s3 + $0x4d8] sm:$0xff]  ;;  %5064 = vmatpush.bf16.msrb.mxu1 %v11903_v37  ;;  %v12495_v37 = vld [vmem:[#allocation2 + $0x48] sm:$0xff]  }
 0x303   : > { %v3501_v41 = vpop.f32.mrf.mxu1  ;;  %v14653_v17 = vadd.f32 %v3942_v42, %v3525_v44  ;;  %5388 = vmatpush.bf16.msrb.mxu2 %v11914_v36  ;;  %v12365_v44 = vld [vmem:[#allocation2 + $0x40] sm:$0xff]   ;;  %5010 = vmatpush.bf16.msrb.mxu0 %v11896_v9 }
 0x304   : > { %v3502_v49 = vadd.f32 %v3501_v41, %v3448_v4  ;;  %v4372_v4 = vunpack.c.l.b16 %v4318_v15 }
 0x305   : > { %5065 = vmatpush.bf16.msrb.mxu1 %v11902_v63 }
 0x306   : > { %v3526_v28 = vadd.f32 %v3502_v49, %v14464_v35  ;;  %v11913_v35 = vld [vmem:[%s15973_s3 + $0x4a8] sm:$0xff]  ;;  %v4381_v43 = vpack.c.b16 %v4372_v4, %v14152_v22 }
 0x307   : > { %5389 = vmatpush.bf16.msrb.mxu2 %v11913_v35  ;;  %5011 = vmatpush.bf16.msrb.mxu0 %v11895_v25  ;;  %v11910_v35 = vld [vmem:[%s15973_s3 + $0x490] sm:$0xff]  ;;  %v11893_v22 = vld [vmem:[%s15973_s3 + $0x408] sm:$0xff]  ;;  %v11900_v25 = vld [vmem:[%s15973_s3 + $0x440] sm:$0xff] }
 0x308   : > { %v3890_v16 = vpop.f32.mrf.mxu2  ;;  %v3943_v18 = vpop.f32.mrf.mxu3 }
 0x309   : > { %v3944_v13 = vadd.f32 %v3943_v18, %v3890_v16  ;;  %v3451_v55 = vpop.f32.mrf.mxu0  ;;  %v11909_v16 = vld [vmem:[%s15973_s3 + $0x488] sm:$0xff] }
 0x30a   : > { %v11917_v18 = vld [vmem:[%s15973_s3 + $0x4c8] sm:$0xff] }
 0x30b   : > { %v3504_v60 = vpop.f32.mrf.mxu1  ;;  %v14683_v62 = vadd.f32 %v3944_v13, %v3526_v28  ;;  %5012 = vmatpush.bf16.msrb.mxu0 %v11894_v6 }
 0x30c   : > { %v3505_v24 = vadd.f32 %v3504_v60, %v3451_v55  ;;  %4216 = vmatmul.bf16.gmra.mxu0 %v16157_v11  ;;  %v4397_v60 = vrot.slane %v4381_v43, 1  ;;  %v16160_v43 = vld [vmem:[#allocation47_spill] sm:$0xff] }
 0x30d   : > { %4575 = vmatmul.bf16.gmra.mxu2 %v12365_v44  ;;  %4628 = vmatmul.bf16.gmra.mxu3 %v4396_v3  ;;  %v4327_v6 = vpack.c.b16 %v16160_v43, %v16160_v43 }
 0x30e   : > { %v3527_v0 = vadd.f32 %v3505_v24, %v14509_v8  ;;  %4269 = vmatmul.bf16.gmra.mxu1 %v14035_v19  ;;  %v11912_v8 = vld [vmem:[%s15973_s3 + $0x4a0] sm:$0xff]  ;;  %v4398_v15 = vsel %vm1672_vm2, %v4395_v40, %v4397_v60 }
 0x30f   : > { %v11920_v19 = vld [vmem:[%s15973_s3 + $0x4e0] sm:$0xff]  ;;  %5390 = vmatpush.bf16.msrb.mxu2 %v11912_v8  ;;  %5013 = vmatpush.bf16.msrb.mxu0 %v11893_v22  ;;  %v16159_v8 = vld [vmem:[#allocation56_spill] sm:$0xff] }
 0x310   : > { %5443 = vmatpush.bf16.msrb.mxu3 %v11920_v19  ;;  %v3893_v34 = vpop.f32.mrf.mxu2  ;;  %v3946_v42 = vpop.f32.mrf.mxu3  ;;  %v11892_v19 = vld [vmem:[%s15973_s3 + $0x400] sm:$0xff] }
 0x311   : > { %v3947_v41 = vadd.f32 %v3946_v42, %v3893_v34  ;;  %v3453_v49 = vpop.f32.mrf.mxu0 }
 0x313   : > { %v3506_v26 = vpop.f32.mrf.mxu1  ;;  %v14715_v36 = vadd.f32 %v3947_v41, %v3527_v0  ;;  %5391 = vmatpush.bf16.msrb.mxu2 %v11911_v51  ;;  %5014 = vmatpush.bf16.msrb.mxu0 %v11892_v19  ;;  %v16164_v19 = vld [vmem:[#allocation6_spill] sm:$0xff] }
 0x314   : > { %v3507_v58 = vadd.f32 %v3506_v26, %v3453_v49  ;;  %5444 = vmatpush.bf16.msrb.mxu3 %v11919_v31 }
 0x316   : > { %v3528_v28 = vadd.f32 %v3507_v58, %v14547_v48  ;;  %v11901_v48 = vld [vmem:[%s15973_s3 + $0x448] sm:$0xff] }
 0x317   : > { %5392 = vmatpush.bf16.msrb.mxu2 %v11910_v35  ;;  %5066 = vmatpush.bf16.msrb.mxu1 %v11901_v48  ;;  %v16161_v35 = vrot.slane %v16140_v23, 3 }
 0x318   : > { %5445 = vmatpush.bf16.msrb.mxu3 %v11918_v12  ;;  %v3895_v13 = vpop.f32.mrf.mxu2  ;;  %v3948_v55 = vpop.f32.mrf.mxu3  ;;  %v16162_v12 = vld [vmem:[#allocation51_spill] sm:$0xff] }
 0x319   : > { %v3949_v24 = vadd.f32 %v3948_v55, %v3895_v13  ;;  %v3456_v44 = vpop.f32.mrf.mxu0  ;;  %v16163_v22 = vrot.slane %v16162_v12, 3  ;;  %v16169_v12 = vld [vmem:[#allocation24_spill] sm:$0xff] }
 0x31b   : > { %v3509_v0 = vpop.f32.mrf.mxu1  ;;  %v14743_v3 = vadd.f32 %v3949_v24, %v3528_v28  ;;  %5393 = vmatpush.bf16.msrb.mxu2 %v11909_v16  ;;  %5067 = vmatpush.bf16.msrb.mxu1 %v11900_v25  ;;  %v16165_v25 = vld [vmem:[#allocation15_spill] sm:$0xff] }
 0x31c   : > { %v3510_v11 = vadd.f32 %v3509_v0, %v3456_v44  ;;  %5446 = vmatpush.bf16.msrb.mxu3 %v11917_v18  ;;  %4221 = vmatmul.bf16.gmra.mxu0 %v16158_v7 }
 0x31d   : > { %4580 = vmatmul.bf16.gmra.mxu2 %v12495_v37  ;;  %4633 = vmatmul.bf16.gmra.mxu3 %v4398_v15  ;;  %v16167_v37 = vld [vmem:[#allocation16_spill] sm:$0xff] }
 0x31e   : > { %v3529_v9 = vadd.f32 %v3510_v11, %v14570_v1  ;;  %4274 = vmatmul.bf16.gmra.mxu1 %v16159_v8  ;;  %v11908_v1 = vld [vmem:[%s15973_s3 + $0x480] sm:$0xff] }
 0x31f   : > { %5394 = vmatpush.bf16.msrb.mxu2 %v11908_v1  ;;  %v16166_v1 = vld [vmem:[#allocation9_spill] sm:$0xff] }
 0x320   : > { %5447 = vmatpush.bf16.msrb.mxu3 %v11916_v14  ;;  %v3898_v40 = vpop.f32.mrf.mxu2  ;;  %v3951_v51 = vpop.f32.mrf.mxu3 }
 0x321   : > { %v3952_v31 = vadd.f32 %v3951_v51, %v3898_v40  ;;  %v3458_v34 = vpop.f32.mrf.mxu0 }
 0x323   : > { %v3511_v42 = vpop.f32.mrf.mxu1  ;;  %v14763_v4 = vadd.f32 %v3952_v31, %v3529_v9 }
 0x328   : > { %v3900_v41 = vpop.f32.mrf.mxu2  ;;  %v3953_v49 = vpop.f32.mrf.mxu3 }
 0x329   : > { %v4187_v26 = vpop.f32.mrf.mxu0 }
 0x32b   : > { %v4240_v58 = vpop.f32.mrf.mxu1 }
 0x32c   : > { %v4241_v28 = vadd.f32 %v4240_v58, %v4187_v26  ;;  %4226 = vmatmul.bf16.gmra.mxu0 %v16161_v35  ;;  %v16168_v35 = vld [vmem:[#allocation17_spill] sm:$0xff] }
 0x32d   : > { %4585 = vmatmul.bf16.gmra.mxu2 %v4327_v6  ;;  %4638 = vmatmul.bf16.gmra.mxu3 %v4397_v60 }
 0x32e   : > { %v4284_v63 = vadd.f32 %v4241_v28, %v14577_v56  ;;  %4279 = vmatmul.bf16.gmra.mxu1 %v16163_v22  ;;  %v16170_v22 = vld [vmem:[#allocation18_spill] sm:$0xff] }
 0x330   : > { %v4546_v48 = vpop.f32.mrf.mxu2  ;;  %v4599_v16 = vpop.f32.mrf.mxu3 }
 0x331   : > { %v4600_v18 = vadd.f32 %v4599_v16, %v4546_v48  ;;  %v4189_v13 = vpop.f32.mrf.mxu0  ;;  %v16171_v48 = vld [vmem:[#allocation25_spill] sm:$0xff] }
 0x333   : > { %v4242_v55 = vpop.f32.mrf.mxu1  ;;  %v14772_v44 = vadd.f32 %v4600_v18, %v4284_v63 }
 0x334   : > { %v4243_v24 = vadd.f32 %v4242_v55, %v4189_v13 }
 0x336   : > { %v4285_v0 = vadd.f32 %v4243_v24, %v14584_v52 }
 0x338   : > { %v4548_v11 = vpop.f32.mrf.mxu2  ;;  %v4601_v56 = vpop.f32.mrf.mxu3 }
 0x339   : > { %v4602_v9 = vadd.f32 %v4601_v56, %v4548_v11  ;;  %v4192_v23 = vpop.f32.mrf.mxu0 }
 0x33b   : > { %v4245_v7 = vpop.f32.mrf.mxu1  ;;  %v14775_v15 = vadd.f32 %v4602_v9, %v4285_v0 }
 0x33c   : > { %v4246_v8 = vadd.f32 %v4245_v7, %v4192_v23  ;;  %5015 = vmatmul.bf16.vlgmr.msrb.gmra.mxu0 %v16164_v19 }
 0x33d   : > { %5395 = vmatmul.bf16.vlgmr.msrb.gmra.mxu2 %v16166_v1  ;;  %5448 = vmatmul.bf16.vlgmr.msrb.gmra.mxu3 %v16167_v37  ;;  %v16173_v1 = vld [vmem:[#allocation33_spill] sm:$0xff]  ;;  %v16174_v37 = vld [vmem:[#allocation26_spill] sm:$0xff] }
 0x33e   : > { %v4286_v60 = vadd.f32 %v4246_v8, %v14593_v57  ;;  %5068 = vmatmul.bf16.vlgmr.msrb.gmra.mxu1 %v16165_v25  ;;  %v16172_v25 = vld [vmem:[#allocation21_spill] sm:$0xff] }
 0x340   : > { %v4551_v14 = vpop.f32.mrf.mxu2  ;;  %v4604_v52 = vpop.f32.mrf.mxu3 }
 0x341   : > { %v4605_v40 = vadd.f32 %v4604_v52, %v4551_v14  ;;  %v4194_v51 = vpop.f32.mrf.mxu0  ;;  %v16175_v14 = vld [vmem:[#allocation34_spill] sm:$0xff] }
 0x343   : > { %v4247_v31 = vpop.f32.mrf.mxu1  ;;  %v14782_v42 = vadd.f32 %v4605_v40, %v4286_v60 }
 0x344   : > { %v4248_v34 = vadd.f32 %v4247_v31, %v4194_v51 }
 0x346   : > { %v4287_v41 = vadd.f32 %v4248_v34, %v14597_v54 }
 0x348   : > { %v4553_v49 = vpop.f32.mrf.mxu2  ;;  %v4606_v57 = vpop.f32.mrf.mxu3 }
 0x349   : > { %v4607_v26 = vadd.f32 %v4606_v57, %v4553_v49  ;;  %v4197_v58 = vpop.f32.mrf.mxu0 }
 0x34b   : > { %v4250_v28 = vpop.f32.mrf.mxu1  ;;  %v14785_v6 = vadd.f32 %v4607_v26, %v4287_v41 }
 0x34c   : > { %v4251_v43 = vadd.f32 %v4250_v28, %v4197_v58  ;;  %5020 = vmatmul.bf16.gmra.mxu0 %v16168_v35 }
 0x34d   : > { %5400 = vmatmul.bf16.gmra.mxu2 %v16170_v22  ;;  %5453 = vmatmul.bf16.gmra.mxu3 %v16171_v48  ;;  %v16177_v22 = vld [vmem:[#allocation42_spill] sm:$0xff]  ;;  %v16178_v48 = vld [vmem:[#allocation31_spill] sm:$0xff] }
 0x34e   : > { %v4288_v63 = vadd.f32 %v4251_v43, %v14603_v10  ;;  %5073 = vmatmul.bf16.gmra.mxu1 %v16169_v12  ;;  %v16176_v12 = vld [vmem:[#allocation30_spill] sm:$0xff] }
 0x350   : > { %v4556_v16 = vpop.f32.mrf.mxu2  ;;  %v4609_v54 = vpop.f32.mrf.mxu3 }
 0x351   : > { %v4610_v18 = vadd.f32 %v4609_v54, %v4556_v16  ;;  %v4199_v13 = vpop.f32.mrf.mxu0  ;;  %v16179_v16 = vld [vmem:[#allocation43_spill] sm:$0xff] }
 0x353   : > { %v4252_v55 = vpop.f32.mrf.mxu1  ;;  %v14792_v0 = vadd.f32 %v4610_v18, %v4288_v63 }
 0x354   : > { %v4253_v24 = vadd.f32 %v4252_v55, %v4199_v13 }
 0x356   : > { %v4289_v11 = vadd.f32 %v4253_v24, %v14606_v33 }
 0x358   : > { %v4558_v56 = vpop.f32.mrf.mxu2  ;;  %v4611_v10 = vpop.f32.mrf.mxu3 }
 0x359   : > { %v4612_v9 = vadd.f32 %v4611_v10, %v4558_v56  ;;  %v4202_v23 = vpop.f32.mrf.mxu0 }
 0x35b   : > { %v4255_v7 = vpop.f32.mrf.mxu1  ;;  %v14795_v60 = vadd.f32 %v4612_v9, %v4289_v11 }
 0x35c   : > { %v4256_v8 = vadd.f32 %v4255_v7, %v4202_v23  ;;  %5025 = vmatmul.bf16.gmra.mxu0 %v16172_v25 }
 0x35d   : > { %5405 = vmatmul.bf16.gmra.mxu2 %v16174_v37  ;;  %5458 = vmatmul.bf16.gmra.mxu3 %v16175_v14  ;;  %v16181_v37 = vld [vmem:[#allocation52_spill] sm:$0xff]  ;;  %v16182_v14 = vld [vmem:[#allocation39_spill] sm:$0xff] }
 0x35e   : > { %v4290_v19 = vadd.f32 %v4256_v8, %v14614_v2  ;;  %5078 = vmatmul.bf16.gmra.mxu1 %v16173_v1  ;;  %v16180_v1 = vld [vmem:[#allocation38_spill] sm:$0xff] }
 0x360   : > { %v4561_v52 = vpop.f32.mrf.mxu2  ;;  %v4614_v33 = vpop.f32.mrf.mxu3 }
 0x361   : > { %v4615_v40 = vadd.f32 %v4614_v33, %v4561_v52  ;;  %v4204_v51 = vpop.f32.mrf.mxu0  ;;  %v16183_v52 = vld [vmem:[#allocation53_spill] sm:$0xff] }
 0x363   : > { %v4257_v31 = vpop.f32.mrf.mxu1  ;;  %v14802_v41 = vadd.f32 %v4615_v40, %v4290_v19 }
 0x364   : > { %v4258_v34 = vadd.f32 %v4257_v31, %v4204_v51 }
 0x366   : > { %v4291_v49 = vadd.f32 %v4258_v34, %v14617_v45 }
 0x368   : > { %v4563_v57 = vpop.f32.mrf.mxu2  ;;  %v4616_v2 = vpop.f32.mrf.mxu3 }
 0x369   : > { %v4617_v26 = vadd.f32 %v4616_v2, %v4563_v57  ;;  %v4207_v58 = vpop.f32.mrf.mxu0 }
 0x36b   : > { %v4260_v28 = vpop.f32.mrf.mxu1  ;;  %v14805_v63 = vadd.f32 %v4617_v26, %v4291_v49 }
 0x36c   : > { %v4261_v43 = vadd.f32 %v4260_v28, %v4207_v58  ;;  %5030 = vmatmul.bf16.gmra.mxu0 %v16176_v12 }
 0x36d   : > { %5410 = vmatmul.bf16.gmra.mxu2 %v16178_v48  ;;  %5463 = vmatmul.bf16.gmra.mxu3 %v16179_v16  ;;  %v16185_v48 = vld [vmem:[#allocation54_spill] sm:$0xff]  ;;  %v16186_v16 = vld [vmem:[#allocation59_spill] sm:$0xff] }
 0x36e   : > { %v4292_v35 = vadd.f32 %v4261_v43, %v14623_v50  ;;  %5083 = vmatmul.bf16.gmra.mxu1 %v16177_v22  ;;  %v16184_v22 = vld [vmem:[#allocation49_spill] sm:$0xff] }
 0x370   : > { %v4566_v54 = vpop.f32.mrf.mxu2  ;;  %v4619_v45 = vpop.f32.mrf.mxu3 }
 0x371   : > { %v4620_v18 = vadd.f32 %v4619_v45, %v4566_v54  ;;  %v4209_v13 = vpop.f32.mrf.mxu0  ;;  %v11954_v54 = vld [vmem:[%s15973_s3 + $0x578] sm:$0xff] }
 0x372   : > { %5904 = vmatpush.bf16.msra.mxu1 %v11954_v54 }
 0x373   : > { %v4262_v55 = vpop.f32.mrf.mxu1  ;;  %v14812_v11 = vadd.f32 %v4620_v18, %v4292_v35 }
 0x374   : > { %v4263_v24 = vadd.f32 %v4262_v55, %v4209_v13 }
 0x376   : > { %v4293_v56 = vadd.f32 %v4263_v24, %v14626_v53 }
 0x378   : > { %v4568_v10 = vpop.f32.mrf.mxu2  ;;  %v4621_v50 = vpop.f32.mrf.mxu3 }
 0x379   : > { %v4622_v9 = vadd.f32 %v4621_v50, %v4568_v10  ;;  %v4212_v23 = vpop.f32.mrf.mxu0  ;;  %v11945_v50 = vld [vmem:[%s15973_s3 + $0x530] sm:$0xff] }
 0x37b   : > { %v4265_v7 = vpop.f32.mrf.mxu1  ;;  %v14815_v19 = vadd.f32 %v4622_v9, %v4293_v56  ;;  %v11953_v9 = vld [vmem:[%s15973_s3 + $0x570] sm:$0xff] }
 0x37c   : > { %v4266_v8 = vadd.f32 %v4265_v7, %v4212_v23  ;;  %5035 = vmatmul.bf16.gmra.mxu0 %v16180_v1  ;;  %v11961_v23 = vld [vmem:[%s15973_s3 + $0x5b0] sm:$0xff]  ;;  %5905 = vmatpush.bf16.msra.mxu1 %v11953_v9  ;;  %v11952_v1 = vld [vmem:[%s15973_s3 + $0x568] sm:$0xff] }
 0x37d   : > { %5415 = vmatmul.bf16.gmra.mxu2 %v16182_v14  ;;  %5468 = vmatmul.bf16.gmra.mxu3 %v16183_v52 }
 0x37e   : > { %v4294_v25 = vadd.f32 %v4266_v8, %v14632_v5  ;;  %5088 = vmatmul.bf16.gmra.mxu1 %v16181_v37  ;;  %v11969_v8 = vld [vmem:[%s15973_s3 + $0x5f0] sm:$0xff]  ;;  %v11968_v37 = vld [vmem:[%s15973_s3 + $0x5e8] sm:$0xff] }
 0x380   : > { %v4571_v33 = vpop.f32.mrf.mxu2  ;;  %v4624_v53 = vpop.f32.mrf.mxu3  ;;  %5906 = vmatpush.bf16.msra.mxu1 %v11952_v1 }
 0x381   : > { %v4625_v40 = vadd.f32 %v4624_v53, %v4571_v33  ;;  %v4214_v51 = vpop.f32.mrf.mxu0 }
 0x383   : > { %v4267_v31 = vpop.f32.mrf.mxu1  ;;  %v14822_v49 = vadd.f32 %v4625_v40, %v4294_v25  ;;  %v11944_v25 = vld [vmem:[%s15973_s3 + $0x528] sm:$0xff] }
 0x384   : > { %v4268_v34 = vadd.f32 %v4267_v31, %v4214_v51 }
 0x386   : > { %v4295_v57 = vadd.f32 %v4268_v34, %v14635_v38  ;;  %v11946_v38 = vld [vmem:[%s15973_s3 + $0x538] sm:$0xff] }
 0x387   : > { %5851 = vmatpush.bf16.msra.mxu0 %v11946_v38 }
 0x388   : > { %v4573_v2 = vpop.f32.mrf.mxu2  ;;  %v4626_v5 = vpop.f32.mrf.mxu3 }
 0x389   : > { %v4627_v26 = vadd.f32 %v4626_v5, %v4573_v2  ;;  %v4217_v58 = vpop.f32.mrf.mxu0  ;;  %v11943_v2 = vld [vmem:[%s15973_s3 + $0x520] sm:$0xff] }
 0x38a   : > { %v11951_v5 = vld [vmem:[%s15973_s3 + $0x560] sm:$0xff] }
 0x38b   : > { %v4270_v28 = vpop.f32.mrf.mxu1  ;;  %v14825_v35 = vadd.f32 %v4627_v26, %v4295_v57  ;;  %5852 = vmatpush.bf16.msra.mxu0 %v11945_v50  ;;  %v16187_v57 = vld [vmem:[#allocation57_spill] sm:$0xff]  ;;  %5907 = vmatpush.bf16.msra.mxu1 %v11951_v5  ;;  %v11964_v50 = vld [vmem:[%s15973_s3 + $0x5c8] sm:$0xff] }
 0x38c   : > { %v4271_v43 = vadd.f32 %v4270_v28, %v4217_v58  ;;  %5040 = vmatmul.bf16.gmra.mxu0 %v16184_v22  ;;  %v11959_v26 = vld [vmem:[%s15973_s3 + $0x5a0] sm:$0xff]  ;;  %v11950_v28 = vld [vmem:[%s15973_s3 + $0x558] sm:$0xff] }
 0x38d   : > { %5420 = vmatmul.bf16.gmra.mxu2 %v16185_v48  ;;  %5473 = vmatmul.bf16.gmra.mxu3 %v16186_v16  ;;  %v16188_v58 = vld [vmem:[#allocation58_spill] sm:$0xff] }
 0x38e   : > { %v4296_v12 = vadd.f32 %v4271_v43, %v14653_v17  ;;  %5093 = vmatmul.bf16.gmra.mxu1 %v14157_v21  ;;  %v11962_v17 = vld [vmem:[%s15973_s3 + $0x5b8] sm:$0xff] }
 0x38f   : > { %v11970_v21 = vld [vmem:[%s15973_s3 + $0x5f8] sm:$0xff]  ;;  %6179 = vmatpush.bf16.msra.mxu2 %v11962_v17  ;;  %5853 = vmatpush.bf16.msra.mxu0 %v11944_v25 }
 0x390   : > { %v4576_v45 = vpop.f32.mrf.mxu2  ;;  %v4629_v18 = vpop.f32.mrf.mxu3  ;;  %6232 = vmatpush.bf16.msra.mxu3 %v11970_v21  ;;  %v11966_v43 = vld [vmem:[%s15973_s3 + $0x5d8] sm:$0xff]  ;;  %5908 = vmatpush.bf16.msra.mxu1 %v11950_v28 }
 0x391   : > { %v4630_v13 = vadd.f32 %v4629_v18, %v4576_v45  ;;  %v4219_v55 = vpop.f32.mrf.mxu0  ;;  %v11941_v45 = vld [vmem:[%s15973_s3 + $0x510] sm:$0xff] }
 0x392   : > { %v11949_v18 = vld [vmem:[%s15973_s3 + $0x550] sm:$0xff] }
 0x393   : > { %v4272_v24 = vpop.f32.mrf.mxu1  ;;  %v14844_v10 = vadd.f32 %v4630_v13, %v4296_v12  ;;  %6180 = vmatpush.bf16.msra.mxu2 %v11961_v23  ;;  %5854 = vmatpush.bf16.msra.mxu0 %v11943_v2  ;;  %v11957_v13 = vld [vmem:[%s15973_s3 + $0x590] sm:$0xff] }
 0x394   : > { %v4273_v56 = vadd.f32 %v4272_v24, %v4219_v55  ;;  %6233 = vmatpush.bf16.msra.mxu3 %v11969_v8  ;;  %v11965_v55 = vld [vmem:[%s15973_s3 + $0x5d0] sm:$0xff]  ;;  %5909 = vmatpush.bf16.msra.mxu1 %v11949_v18  ;;  %v11948_v24 = vld [vmem:[%s15973_s3 + $0x548] sm:$0xff] }
 0x396   : > { %v4297_v7 = vadd.f32 %v4273_v56, %v14683_v62  ;;  %v11960_v62 = vld [vmem:[%s15973_s3 + $0x5a8] sm:$0xff] }
 0x397   : > { %6181 = vmatpush.bf16.msra.mxu2 %v11960_v62  ;;  %v11956_v56 = vld [vmem:[%s15973_s3 + $0x588] sm:$0xff] }
 0x398   : > { %v4578_v14 = vpop.f32.mrf.mxu2  ;;  %v4631_v52 = vpop.f32.mrf.mxu3  ;;  %6234 = vmatpush.bf16.msra.mxu3 %v11968_v37  ;;  %5910 = vmatpush.bf16.msra.mxu1 %v11948_v24 }
 0x399   : > { %v4632_v33 = vadd.f32 %v4631_v52, %v4578_v14  ;;  %v4222_v53 = vpop.f32.mrf.mxu0  ;;  %v11939_v14 = vld [vmem:[%s15973_s3 + $0x500] sm:$0xff] }
 0x39a   : > { %v11947_v52 = vld [vmem:[%s15973_s3 + $0x540] sm:$0xff] }
 0x39b   : > { %v4275_v40 = vpop.f32.mrf.mxu1  ;;  %v14871_v31 = vadd.f32 %v4632_v33, %v4297_v7  ;;  %6182 = vmatpush.bf16.msra.mxu2 %v11959_v26  ;;  %v11955_v33 = vld [vmem:[%s15973_s3 + $0x580] sm:$0xff] }
 0x39c   : > { %v4276_v51 = vadd.f32 %v4275_v40, %v4222_v53  ;;  %5045 = vmatmul.bf16.gmra.mxu0 %v16187_v57  ;;  %5911 = vmatpush.bf16.msra.mxu1 %v11947_v52  ;;  %v5974_v57 = vld [vmem:[#allocation2 + $0x1c] sm:$0xe] }
 0x39d   : > { %5425 = vmatmul.bf16.gmra.mxu2 %v16188_v58  ;;  %5478 = vmatmul.bf16.gmra.mxu3 %v14241_v27  ;;  %v11958_v27 = vld [vmem:[%s15973_s3 + $0x598] sm:$0xff]  ;;  %v5977_v2 = vunpack.c.l.b16 %v5974_v57 }
 0x39e   : > { %v4298_v34 = vadd.f32 %v4276_v51, %v14715_v36  ;;  %5098 = vmatmul.bf16.gmra.mxu1 %v14237_v30  ;;  %v11967_v30 = vld [vmem:[%s15973_s3 + $0x5e0] sm:$0xff]  ;;  %v11942_v36 = vld [vmem:[%s15973_s3 + $0x518] sm:$0xff] }
 0x39f   : > { %6235 = vmatpush.bf16.msra.mxu3 %v11967_v30  ;;  %5855 = vmatpush.bf16.msra.mxu0 %v11942_v36  ;;  %v16189_v36 = vld [vmem:[#allocation28_spill] sm:$0xff] }
 0x3a0   : > { %v4581_v12 = vpop.f32.mrf.mxu2  ;;  %v4634_v22 = vpop.f32.mrf.mxu3  ;;  %6183 = vmatpush.bf16.msra.mxu2 %v11958_v27  ;;  %v5978_v28 = vpack.c.b16 %v16189_v36, %v5977_v2 }
 0x3a1   : > { %v4635_v48 = vadd.f32 %v4634_v22, %v4581_v12  ;;  %v4224_v16 = vpop.f32.mrf.mxu0 }
 0x3a2   : > { %v6031_v57 = vrot.slane %v5978_v28, 1 }
 0x3a3   : > { %v4277_v38 = vpop.f32.mrf.mxu1  ;;  %v14902_v17 = vadd.f32 %v4635_v48, %v4298_v34  ;;  %6236 = vmatpush.bf16.msra.mxu3 %v11966_v43  ;;  %5856 = vmatpush.bf16.msra.mxu0 %v11941_v45  ;;  %v14951_v43 = vld [vmem:[#allocation2 + $0x24] sm:$0xff] }
 0x3a4   : > { %v4278_v54 = vadd.f32 %v4277_v38, %v4224_v16  ;;  %6184 = vmatpush.bf16.msra.mxu2 %v11957_v13  ;;  %v5650_v12 = vshll.u32 %v14951_v43, 16  ;;  %v14960_v16 = vld [vmem:[#allocation2 + $0x2c] sm:$0xff]  ;;  %v6032_v52 = vrot.slane %v14951_v43, 1 }
 0x3a5   : > { %v5658_v38 = vshll.u32 %v14960_v16, 16 }
 0x3a6   : > { %v4299_v21 = vadd.f32 %v4278_v54, %v14743_v3  ;;  %v11940_v3 = vld [vmem:[%s15973_s3 + $0x508] sm:$0xff]  ;;  %v5985_v54 = vshll.u32 %v5978_v28, 16 }
 0x3a7   : > { %6237 = vmatpush.bf16.msra.mxu3 %v11965_v55  ;;  %5857 = vmatpush.bf16.msra.mxu0 %v11940_v3  ;;  %v5660_v3 = vrot.slane %v5658_v38, 1 }
 0x3a8   : > { %v4583_v9 = vpop.f32.mrf.mxu2  ;;  %v4636_v23 = vpop.f32.mrf.mxu3  ;;  %6185 = vmatpush.bf16.msra.mxu2 %v11956_v56  ;;  %v5987_v24 = vrot.slane %v5985_v54, 1 }
 0x3a9   : > { %v4637_v7 = vadd.f32 %v4636_v23, %v4583_v9  ;;  %v4227_v8 = vpop.f32.mrf.mxu0 }
 0x3ab   : > { %v4280_v25 = vpop.f32.mrf.mxu1  ;;  %v14929_v62 = vadd.f32 %v4637_v7, %v4299_v21  ;;  %6238 = vmatpush.bf16.msra.mxu3 %v11964_v50  ;;  %5858 = vmatpush.bf16.msra.mxu0 %v11939_v14  ;;  %v5652_v21 = vrot.slane %v5650_v12, 1  ;;  %v5983_v50 = vshrl.u32 %v5978_v28, 16 }
 0x3ac   : > { %v4281_v1 = vadd.f32 %v4280_v25, %v4227_v8  ;;  %5050 = vmatmul.bf16.gmra.mxu0 %v14219_v20  ;;  %v11963_v20 = vld [vmem:[%s15973_s3 + $0x5c0] sm:$0xff]  ;;  %6186 = vmatpush.bf16.msra.mxu2 %v11955_v33 }
 0x3ad   : > { %5430 = vmatmul.bf16.gmra.mxu2 %v14224_v39  ;;  %5483 = vmatmul.bf16.gmra.mxu3 %v14262_v29  ;;  %v12496_v29 = vld [vmem:[#allocation2 + $0x1c] sm:$0xff]   ;;  %v5988_v8 = vor.u32 %v5987_v24, %v5983_v50 }
 0x3ae   : > { %v4300_v37 = vadd.f32 %v4281_v1, %v14763_v4  ;;  %5103 = vmatmul.bf16.gmra.mxu1 %v14251_v61  ;;  %v5615_v26 = vunpack.c.l.b16 %v12496_v29  ;;  %v6033_v29 = vsel %vm1672_vm2, %v6031_v57, %v6032_v52 }
 0x3af   : > { %6239 = vmatpush.bf16.msra.mxu3 %v11963_v20  ;;  %v5989_v1 = vsel %vm1502_vm1, %v5988_v8, %v5652_v21 }
 0x3b0   : > { %v4586_v61 = vpop.f32.mrf.mxu2  ;;  %v4639_v4 = vpop.f32.mrf.mxu3  ;;  %v5633_v48 = vpack.c.b16 %v16189_v36, %v5615_v26 }
 0x3b1   : > { %v4640_v53 = vadd.f32 %v4639_v4, %v4586_v61  ;;  %v4229_v40 = vpop.f32.mrf.mxu0 }
 0x3b2   : > { %v5645_v13 = vshll.u32 %v5633_v48, 16  ;;  %v5643_v25 = vshrl.u32 %v5633_v48, 16 }
 0x3b3   : > { %v4282_v51 = vpop.f32.mrf.mxu1  ;;  %v14948_v34 = vadd.f32 %v4640_v53, %v4300_v37 }
 0x3b4   : > { %v5647_v23 = vrot.slane %v5645_v13, 1  ;;  %v11924_v51 = vld [vmem:[#allocation2 + $0x1c] sm:$0xff] }
 0x3b6   : > { %v5648_v53 = vor.u32 %v5647_v23, %v5643_v25  ;;  %v14990_v23 = vld [vmem:[#allocation2 + $0x3c] sm:$0xff] }
 0x3b8   : > { %v4588_v39 = vpop.f32.mrf.mxu2  ;;  %v4641_v5 = vpop.f32.mrf.mxu3 }
 0x3b9   : > { %v5016_v58 = vpop.f32.mrf.mxu0  ;;  %v5653_v39 = vsel %vm1502_vm1, %v5648_v53, %v5652_v21 }
 0x3bb   : > { %v5069_v30 = vpop.f32.mrf.mxu1 }
 0x3bc   : > { %v5070_v27 = vadd.f32 %v5069_v30, %v5016_v58  ;;  %5055 = vmatmul.bf16.gmra.mxu0 %v14212_v47  ;;  %v14976_v58 = vld [vmem:[#allocation2 + $0x34] sm:$0xff] }
 0x3bd   : > { %5435 = vmatmul.bf16.gmra.mxu2 %v14214_v59  ;;  %5488 = vmatmul.bf16.gmra.mxu3 %v14254_v46  ;;  %v5666_v30 = vshll.u32 %v14976_v58, 16 }
 0x3be   : > { %v5113_v22 = vadd.f32 %v5070_v27, %v14772_v44  ;;  %5108 = vmatmul.bf16.gmra.mxu1 %v14229_v32  ;;  %v5654_v32 = vshrl.u32 %v14951_v43, 16 }
 0x3c0   : > { %v5396_v45 = vpop.f32.mrf.mxu2  ;;  %v5449_v18 = vpop.f32.mrf.mxu3  ;;  %v5656_v46 = vor.u32 %v5654_v32, %v5652_v21 }
 0x3c1   : > { %v5450_v44 = vadd.f32 %v5449_v18, %v5396_v45  ;;  %v5018_v55 = vpop.f32.mrf.mxu0 }
 0x3c2   : > { %v5661_v7 = vsel %vm1502_vm1, %v5656_v46, %v5660_v3  ;;  %v11925_v46 = vld [vmem:[#allocation2 + $0x24] sm:$0xff] }
 0x3c3   : > { %v5071_v47 = vpop.f32.mrf.mxu1  ;;  %v14964_v59 = vadd.f32 %v5450_v44, %v5113_v22  ;;  %v6035_v33 = vrot.slane %v5661_v7, 1  ;;  %v5662_v22 = vshrl.u32 %v14960_v16, 16  ;;  %v6037_v44 = vrot.slane %v14960_v16, 1 }
 0x3c4   : > { %v5072_v56 = vadd.f32 %v5071_v47, %v5018_v55  ;;  %v5674_v16 = vshll.u32 %v14990_v23, 16 }
 0x3c5   : > { %v5664_v54 = vor.u32 %v5662_v22, %v5660_v3 }
 0x3c6   : > { %v5114_v9 = vadd.f32 %v5072_v56, %v14775_v15  ;;  %v6034_v15 = vrot.slane %v5989_v1, 1 }
 0x3c8   : > { %v5398_v37 = vpop.f32.mrf.mxu2  ;;  %v5451_v14 = vpop.f32.mrf.mxu3  ;;  %v6036_v26 = vsel %vm1672_vm2, %v6034_v15, %v6035_v33 }
 0x3c9   : > { %v5452_v20 = vadd.f32 %v5451_v14, %v5398_v37  ;;  %v5021_v61 = vpop.f32.mrf.mxu0 }
 0x3cb   : > { %v5074_v4 = vpop.f32.mrf.mxu1  ;;  %v14970_v2 = vadd.f32 %v5452_v20, %v5114_v9  ;;  %v5670_v20 = vshrl.u32 %v14976_v58, 16 }
 0x3cc   : > { %v5075_v40 = vadd.f32 %v5074_v4, %v5021_v61  ;;  %5859 = vmatmul.bf16.vlgmr.msra.gmra.mxu0 %v11924_v51  ;;  %v6041_v51 = vrot.slane %v14976_v58, 1 }
 0x3cd   : > { %6187 = vmatmul.bf16.vlgmr.msra.gmra.mxu2 %v6033_v29  ;;  %6240 = vmatmul.bf16.vlgmr.msra.gmra.mxu3 %v6036_v26  ;;  %v11926_v26 = vld [vmem:[#allocation2 + $0x2c] sm:$0xff] }
 0x3ce   : > { %v5115_v5 = vadd.f32 %v5075_v40, %v14782_v42  ;;  %5912 = vmatmul.bf16.vlgmr.msra.gmra.mxu1 %v5653_v39  ;;  %v5668_v42 = vrot.slane %v5666_v30, 1 }
 0x3d0   : > { %v5401_v36 = vpop.f32.mrf.mxu2  ;;  %v5454_v28 = vpop.f32.mrf.mxu3  ;;  %v5669_v45 = vsel %vm1502_vm1, %v5664_v54, %v5668_v42  ;;  %v5678_v54 = vshrl.u32 %v14990_v23, 16 }
 0x3d1   : > { %v5455_v27 = vadd.f32 %v5454_v28, %v5401_v36  ;;  %v5023_v43 = vpop.f32.mrf.mxu0  ;;  %v6039_v55 = vrot.slane %v5669_v45, 1 }
 0x3d3   : > { %v5076_v12 = vpop.f32.mrf.mxu1  ;;  %v14980_v38 = vadd.f32 %v5455_v27, %v5115_v5  ;;  %v6040_v3 = vsel %vm1672_vm2, %v6035_v33, %v6039_v55  ;;  %v15004_v27 = vld [vmem:[#allocation2 + $0x44] sm:$0xff] }
 0x3d4   : > { %v5077_v48 = vadd.f32 %v5076_v12, %v5023_v43  ;;  %v5682_v58 = vshll.u32 %v15004_v27, 16 }
 0x3d6   : > { %v5116_v21 = vadd.f32 %v5077_v48, %v14785_v6  ;;  %v6038_v6 = vsel %vm1672_vm2, %v6032_v52, %v6037_v44  ;;  %v5672_v52 = vor.u32 %v5670_v20, %v5668_v42 }
 0x3d8   : > { %v5403_v18 = vpop.f32.mrf.mxu2  ;;  %v5456_v13 = vpop.f32.mrf.mxu3 }
 0x3d9   : > { %v5457_v47 = vadd.f32 %v5456_v13, %v5403_v18  ;;  %v5026_v32 = vpop.f32.mrf.mxu0 }
 0x3db   : > { %v5079_v24 = vpop.f32.mrf.mxu1  ;;  %v14985_v50 = vadd.f32 %v5457_v47, %v5116_v21 }
 0x3dc   : > { %v5080_v56 = vadd.f32 %v5079_v24, %v5026_v32  ;;  %5864 = vmatmul.bf16.gmra.mxu0 %v11925_v46  ;;  %v6045_v32 = vrot.slane %v14990_v23, 1 }
 0x3dd   : > { %6192 = vmatmul.bf16.gmra.mxu2 %v6038_v6  ;;  %6245 = vmatmul.bf16.gmra.mxu3 %v6040_v3  ;;  %v11927_v3 = vld [vmem:[#allocation2 + $0x34] sm:$0xff] }
 0x3de   : > { %v5117_v9 = vadd.f32 %v5080_v56, %v14792_v0  ;;  %5917 = vmatmul.bf16.gmra.mxu1 %v5661_v7  ;;  %v5676_v0 = vrot.slane %v5674_v16, 1 }
 0x3e0   : > { %v5406_v8 = vpop.f32.mrf.mxu2  ;;  %v5459_v25 = vpop.f32.mrf.mxu3  ;;  %v5677_v4 = vsel %vm1502_vm1, %v5672_v52, %v5676_v0  ;;  %v5680_v18 = vor.u32 %v5678_v54, %v5676_v0  ;;  %v5686_v52 = vshrl.u32 %v15004_v27, 16 }
 0x3e1   : > { %v5460_v1 = vadd.f32 %v5459_v25, %v5406_v8  ;;  %v5028_v37 = vpop.f32.mrf.mxu0  ;;  %v6043_v57 = vrot.slane %v5677_v4, 1 }
 0x3e3   : > { %v5081_v14 = vpop.f32.mrf.mxu1  ;;  %v14994_v7 = vadd.f32 %v5460_v1, %v5117_v9  ;;  %v6044_v28 = vsel %vm1672_vm2, %v6039_v55, %v6043_v57  ;;  %v15018_v1 = vld [vmem:[#allocation2 + $0x4c] sm:$0xff] }
 0x3e4   : > { %v5082_v61 = vadd.f32 %v5081_v14, %v5028_v37  ;;  %v5690_v23 = vshll.u32 %v15018_v1, 16 }
 0x3e6   : > { %v5118_v33 = vadd.f32 %v5082_v61, %v14795_v60  ;;  %v6042_v60 = vsel %vm1672_vm2, %v6037_v44, %v6041_v51 }
 0x3e8   : > { %v5408_v53 = vpop.f32.mrf.mxu2  ;;  %v5461_v40 = vpop.f32.mrf.mxu3 }
 0x3e9   : > { %v5462_v15 = vadd.f32 %v5461_v40, %v5408_v53  ;;  %v5031_v39 = vpop.f32.mrf.mxu0 }
 0x3eb   : > { %v5084_v5 = vpop.f32.mrf.mxu1  ;;  %v14999_v30 = vadd.f32 %v5462_v15, %v5118_v33 }
 0x3ec   : > { %v5085_v29 = vadd.f32 %v5084_v5, %v5031_v39  ;;  %5869 = vmatmul.bf16.gmra.mxu0 %v11926_v26  ;;  %v6049_v39 = vrot.slane %v15004_v27, 1 }
 0x3ed   : > { %6197 = vmatmul.bf16.gmra.mxu2 %v6042_v60  ;;  %6250 = vmatmul.bf16.gmra.mxu3 %v6044_v28  ;;  %v11928_v28 = vld [vmem:[#allocation2 + $0x3c] sm:$0xff] }
 0x3ee   : > { %v5119_v36 = vadd.f32 %v5085_v29, %v14802_v41  ;;  %5922 = vmatmul.bf16.gmra.mxu1 %v5669_v45  ;;  %v5684_v41 = vrot.slane %v5682_v58, 1 }
 0x3f0   : > { %v5411_v43 = vpop.f32.mrf.mxu2  ;;  %v5464_v12 = vpop.f32.mrf.mxu3  ;;  %v5685_v44 = vsel %vm1502_vm1, %v5680_v18, %v5684_v41  ;;  %v5688_v53 = vor.u32 %v5686_v52, %v5684_v41  ;;  %v5694_v18 = vshrl.u32 %v15018_v1, 16 }
 0x3f1   : > { %v5465_v22 = vadd.f32 %v5464_v12, %v5411_v43  ;;  %v5033_v42 = vpop.f32.mrf.mxu0  ;;  %v6047_v24 = vrot.slane %v5685_v44, 1 }
 0x3f3   : > { %v5086_v48 = vpop.f32.mrf.mxu1  ;;  %v15008_v45 = vadd.f32 %v5465_v22, %v5119_v36  ;;  %v6048_v25 = vsel %vm1672_vm2, %v6043_v57, %v6047_v24  ;;  %v15032_v22 = vld [vmem:[#allocation2 + $0x54] sm:$0xff] }
 0x3f4   : > { %v5087_v21 = vadd.f32 %v5086_v48, %v5033_v42  ;;  %v5698_v27 = vshll.u32 %v15032_v22, 16 }
 0x3f6   : > { %v5120_v13 = vadd.f32 %v5087_v21, %v14805_v63  ;;  %v6046_v63 = vsel %vm1672_vm2, %v6041_v51, %v6045_v32 }
 0x3f8   : > { %v5413_v55 = vpop.f32.mrf.mxu2  ;;  %v5466_v47 = vpop.f32.mrf.mxu3 }
 0x3f9   : > { %v5467_v56 = vadd.f32 %v5466_v47, %v5413_v55  ;;  %v5036_v46 = vpop.f32.mrf.mxu0 }
 0x3fb   : > { %v5089_v9 = vpop.f32.mrf.mxu1  ;;  %v15013_v16 = vadd.f32 %v5467_v56, %v5120_v13 }
 0x3fc   : > { %v5090_v6 = vadd.f32 %v5089_v9, %v5036_v46  ;;  %5874 = vmatmul.bf16.gmra.mxu0 %v11927_v3  ;;  %v6053_v46 = vrot.slane %v15018_v1, 1 }
 0x3fd   : > { %6202 = vmatmul.bf16.gmra.mxu2 %v6046_v63  ;;  %6255 = vmatmul.bf16.gmra.mxu3 %v6048_v25  ;;  %v11929_v25 = vld [vmem:[#allocation2 + $0x44] sm:$0xff] }
 0x3fe   : > { %v5121_v8 = vadd.f32 %v5090_v6, %v14812_v11  ;;  %5927 = vmatmul.bf16.gmra.mxu1 %v5677_v4  ;;  %v5692_v11 = vrot.slane %v5690_v23, 1 }
 0x400   : > { %v5416_v37 = vpop.f32.mrf.mxu2  ;;  %v5469_v14 = vpop.f32.mrf.mxu3  ;;  %v5693_v51 = vsel %vm1502_vm1, %v5688_v53, %v5692_v11  ;;  %v5696_v55 = vor.u32 %v5694_v18, %v5692_v11  ;;  %v5702_v53 = vshrl.u32 %v15032_v22, 16  ;;  %v11974_v18 = vld [vmem:[%s15973_s3 + $0x618] sm:$0xff] }
 0x401   : > { %v5470_v20 = vadd.f32 %v5469_v14, %v5416_v37  ;;  %v5038_v0 = vpop.f32.mrf.mxu0  ;;  %v6051_v5 = vrot.slane %v5693_v51, 1 }
 0x403   : > { %v5091_v61 = vpop.f32.mrf.mxu1  ;;  %v15022_v4 = vadd.f32 %v5470_v20, %v5121_v8  ;;  %v6052_v12 = vsel %vm1672_vm2, %v6047_v24, %v6051_v5  ;;  %v16190_v20 = vld [vmem:[#allocation64_spill] sm:$0xff] }
 0x404   : > { %v5092_v33 = vadd.f32 %v5091_v61, %v5038_v0  ;;  %v5991_v1 = vshll.u32 %v16190_v20, 16  ;;  %v11978_v0 = vld [vmem:[%s15973_s3 + $0x638] sm:$0xff] }
 0x405   : > { %6397 = vmatpush.bf16.msrb.mxu0 %v11978_v0 }
 0x406   : > { %v5122_v40 = vadd.f32 %v5092_v33, %v14815_v19  ;;  %v6050_v19 = vsel %vm1672_vm2, %v6045_v32, %v6049_v39 }
 0x408   : > { %v5418_v57 = vpop.f32.mrf.mxu2  ;;  %v5471_v15 = vpop.f32.mrf.mxu3 }
 0x409   : > { %v5472_v29 = vadd.f32 %v5471_v15, %v5418_v57  ;;  %v5041_v26 = vpop.f32.mrf.mxu0 }
 0x40b   : > { %v5094_v36 = vpop.f32.mrf.mxu1  ;;  %v15027_v58 = vadd.f32 %v5472_v29, %v5122_v40  ;;  %v5993_v40 = vrot.slane %v5991_v1, 1 }
 0x40c   : > { %v5095_v60 = vadd.f32 %v5094_v36, %v5041_v26  ;;  %5879 = vmatmul.bf16.gmra.mxu0 %v11928_v28  ;;  %v11976_v26 = vld [vmem:[%s15973_s3 + $0x628] sm:$0xff]  ;;  %v6057_v28 = vrot.slane %v15032_v22, 1  ;;  %v11975_v22 = vld [vmem:[%s15973_s3 + $0x620] sm:$0xff] }
 0x40d   : > { %6207 = vmatmul.bf16.gmra.mxu2 %v6050_v19  ;;  %6260 = vmatmul.bf16.gmra.mxu3 %v6052_v12  ;;  %v5544_v19 = vld [vmem:[#allocation2 + $0x60] sm:$0x1] }
 0x40e   : > { %v5123_v43 = vadd.f32 %v5095_v60, %v14822_v49  ;;  %5932 = vmatmul.bf16.gmra.mxu1 %v5685_v44  ;;  %v5700_v49 = vrot.slane %v5698_v27, 1 }
 0x410   : > { %v5421_v42 = vpop.f32.mrf.mxu2  ;;  %v5474_v48 = vpop.f32.mrf.mxu3  ;;  %v5701_v32 = vsel %vm1502_vm1, %v5696_v55, %v5700_v49  ;;  %v5704_v15 = vor.u32 %v5702_v53, %v5700_v49  ;;  %v16191_v49 = vld [vmem:[#allocation62_spill] sm:$0xff] }
 0x411   : > { %v5475_v54 = vadd.f32 %v5474_v48, %v5421_v42  ;;  %v5043_v41 = vpop.f32.mrf.mxu0  ;;  %v6055_v9 = vrot.slane %v5701_v32, 1  ;;  %v11930_v42 = vld [vmem:[#allocation2 + $0x4c] sm:$0xff]  ;;  %v5632_v48 = vunpack.c.l.b16 %v5544_v19 }
 0x412   : > { %v5994_v29 = vsel %vm1502_vm1, %v5704_v15, %v5993_v40 }
 0x413   : > { %v5096_v21 = vpop.f32.mrf.mxu1  ;;  %v15036_v44 = vadd.f32 %v5475_v54, %v5123_v43  ;;  %v6056_v14 = vsel %vm1672_vm2, %v6051_v5, %v6055_v9  ;;  %v6059_v43 = vrot.slane %v5994_v29, 1 }
 0x414   : > { %v5097_v13 = vadd.f32 %v5096_v21, %v5043_v41  ;;  %v6058_v41 = vsel %vm1672_vm2, %v6053_v46, %v6057_v28 }
 0x415   : > { %v6060_v21 = vsel %vm1672_vm2, %v6055_v9, %v6059_v43  ;;  %v5995_v9 = vshrl.u32 %v16190_v20, 16 }
 0x416   : > { %v5124_v47 = vadd.f32 %v5097_v13, %v14825_v35  ;;  %v6054_v35 = vsel %vm1672_vm2, %v6049_v39, %v6053_v46  ;;  %v11977_v39 = vld [vmem:[%s15973_s3 + $0x630] sm:$0xff]  ;;  %v16192_v13 = vunpack.c.l.b16 %v16191_v49 }
 0x417   : > { %6398 = vmatpush.bf16.msrb.mxu0 %v11977_v39  ;;  %v11971_v39 = vld [vmem:[%s15973_s3 + $0x600] sm:$0xff] }
 0x418   : > { %v5423_v24 = vpop.f32.mrf.mxu2  ;;  %v5476_v56 = vpop.f32.mrf.mxu3 }
 0x419   : > { %v5477_v6 = vadd.f32 %v5476_v56, %v5423_v24  ;;  %v5046_v3 = vpop.f32.mrf.mxu0 }
 0x41b   : > { %v5099_v8 = vpop.f32.mrf.mxu1  ;;  %v15041_v23 = vadd.f32 %v5477_v6, %v5124_v47  ;;  %6399 = vmatpush.bf16.msrb.mxu0 %v11976_v26 }
 0x41c   : > { %v5100_v63 = vadd.f32 %v5099_v8, %v5046_v3  ;;  %5884 = vmatmul.bf16.gmra.mxu0 %v11929_v25  ;;  %v11973_v25 = vld [vmem:[%s15973_s3 + $0x610] sm:$0xff] }
 0x41d   : > { %6212 = vmatmul.bf16.gmra.mxu2 %v6054_v35  ;;  %6265 = vmatmul.bf16.gmra.mxu3 %v6056_v14 }
 0x41e   : > { %v5125_v37 = vadd.f32 %v5100_v63, %v14844_v10  ;;  %5937 = vmatmul.bf16.gmra.mxu1 %v5693_v51  ;;  %v5997_v63 = vor.u32 %v5995_v9, %v5993_v40 }
 0x41f   : > { %6400 = vmatpush.bf16.msrb.mxu0 %v11975_v22 }
 0x420   : > { %v5426_v61 = vpop.f32.mrf.mxu2  ;;  %v5479_v52 = vpop.f32.mrf.mxu3 }
 0x421   : > { %v5480_v11 = vadd.f32 %v5479_v52, %v5426_v61  ;;  %v5048_v33 = vpop.f32.mrf.mxu0  ;;  %v6063_v61 = vrot.slane %v5997_v63, 1 }
 0x423   : > { %v5101_v10 = vpop.f32.mrf.mxu1  ;;  %v15051_v57 = vadd.f32 %v5480_v11, %v5125_v37  ;;  %6401 = vmatpush.bf16.msrb.mxu0 %v11974_v18  ;;  %v11972_v37 = vld [vmem:[%s15973_s3 + $0x608] sm:$0xff] }
 0x424   : > { %v5102_v51 = vadd.f32 %v5101_v10, %v5048_v33  ;;  %v11931_v33 = vld [vmem:[#allocation2 + $0x54] sm:$0xff] }
 0x426   : > { %v15057_v5 = vadd.f32 %v5102_v51, %v14871_v31  ;;  %v6064_v51 = vsel %vm1672_vm2, %v6059_v43, %v6063_v61 }
 0x427   : > { %6402 = vmatpush.bf16.msrb.mxu0 %v11973_v25  ;;  %v16193_v25 = vld [vmem:[#allocation35_spill] sm:$0xff] }
 0x428   : > { %v15063_v36 = vpop.f32.mrf.mxu2  ;;  %v15065_v60 = vpop.f32.mrf.mxu3 }
 0x429   : > { %v5051_v12 = vpop.f32.mrf.mxu0 }
 0x42b   : > { %v5104_v27 = vpop.f32.mrf.mxu1  ;;  %6403 = vmatpush.bf16.msrb.mxu0 %v11972_v37 }
 0x42c   : > { %v5105_v31 = vadd.f32 %v5104_v27, %v5051_v12  ;;  %5889 = vmatmul.bf16.gmra.mxu0 %v11930_v42 }
 0x42d   : > { %6217 = vmatmul.bf16.gmra.mxu2 %v6058_v41  ;;  %6270 = vmatmul.bf16.gmra.mxu3 %v6060_v21 }
 0x42e   : > { %v5127_v54 = vadd.f32 %v5105_v31, %v14902_v17  ;;  %5942 = vmatmul.bf16.gmra.mxu1 %v5701_v32  ;;  %v5641_v17 = vpack.c.b16 %v5632_v48, %v16192_v13 }
 0x42f   : > { %6404 = vmatpush.bf16.msrb.mxu0 %v11971_v39 }
 0x430   : > { %v5431_v55 = vpop.f32.mrf.mxu2  ;;  %v5484_v47 = vpop.f32.mrf.mxu3  ;;  %v5706_v3 = vshll.u32 %v5641_v17, 16  ;;  %v6061_v0 = vrot.slane %v5641_v17, 1  ;;  %v5710_v48 = vshrl.u32 %v5641_v17, 16 }
 0x431   : > { %v5485_v32 = vadd.f32 %v5484_v47, %v5431_v55  ;;  %v5053_v24 = vpop.f32.mrf.mxu0 }
 0x432   : > { %v5708_v35 = vrot.slane %v5706_v3, 1  ;;  %v6062_v40 = vsel %vm1672_vm2, %v6057_v28, %v6061_v0 }
 0x433   : > { %v5106_v56 = vpop.f32.mrf.mxu1  ;;  %v15080_v6 = vadd.f32 %v5485_v32, %v5127_v54 }
 0x434   : > { %v5107_v46 = vadd.f32 %v5106_v56, %v5053_v24  ;;  %v5709_v10 = vsel %vm1502_vm1, %v5704_v15, %v5708_v35  ;;  %v5712_v22 = vor.u32 %v5710_v48, %v5708_v35 }
 0x436   : > { %v15083_v8 = vadd.f32 %v5107_v46, %v14929_v62 }
 0x438   : > { %v15091_v14 = vpop.f32.mrf.mxu2  ;;  %v15093_v1 = vpop.f32.mrf.mxu3 }
 0x439   : > { %v5056_v52 = vpop.f32.mrf.mxu0 }
 0x43b   : > { %v5109_v62 = vpop.f32.mrf.mxu1 }
 0x43c   : > { %v5110_v11 = vadd.f32 %v5109_v62, %v5056_v52  ;;  %5894 = vmatmul.bf16.gmra.mxu0 %v11931_v33 }
 0x43d   : > { %6222 = vmatmul.bf16.gmra.mxu2 %v6062_v40  ;;  %6275 = vmatmul.bf16.gmra.mxu3 %v6064_v51  ;;  %v16194_v51 = vld [vmem:[#allocation36_spill] sm:$0xff] }
 0x43e   : > { %v5129_v53 = vadd.f32 %v5110_v11, %v14948_v34  ;;  %5947 = vmatmul.bf16.gmra.mxu1 %v5709_v10  ;;  %v5526_v34 = vld [vmem:[#allocation2 + $0x5c] sm:$0xf] }
 0x43f   : > { %v5578_v31 = vunpack.c.l.b16 %v5526_v34 }
 0x440   : > { %v5436_v29 = vpop.f32.mrf.mxu2  ;;  %v5489_v26 = vpop.f32.mrf.mxu3 }
 0x441   : > { %v5490_v19 = vadd.f32 %v5489_v26, %v5436_v29  ;;  %v5058_v12 = vpop.f32.mrf.mxu0  ;;  %v5587_v21 = vpack.c.b16 %v5578_v31, %v5578_v31 }
 0x443   : > { %v5111_v15 = vpop.f32.mrf.mxu1  ;;  %v15102_v27 = vadd.f32 %v5490_v19, %v5129_v53 }
 0x448   : > { %v5438_v42 = vpop.f32.mrf.mxu2  ;;  %v5491_v28 = vpop.f32.mrf.mxu3 }
 0x449   : > { %v5860_v43 = vpop.f32.mrf.mxu0 }
 0x44b   : > { %v5913_v54 = vpop.f32.mrf.mxu1 }
 0x44c   : > { %v5914_v41 = vadd.f32 %v5913_v54, %v5860_v43  ;;  %5899 = vmatmul.bf16.gmra.mxu0 %v5587_v21  ;;  %v16195_v43 = vld [vmem:[#allocation41_spill] sm:$0xff] }
 0x44d   : > { %6227 = vmatmul.bf16.gmra.mxu2 %v6061_v0  ;;  %6280 = vmatmul.bf16.gmra.mxu3 %v6063_v61 }
 0x44e   : > { %v15105_v18 = vadd.f32 %v5914_v41, %v14964_v59  ;;  %5952 = vmatmul.bf16.gmra.mxu1 %v5712_v22 }
 0x450   : > { %v6188_v49 = vpop.f32.mrf.mxu2  ;;  %v6241_v13 = vpop.f32.mrf.mxu3 }
 0x451   : > { %v15107_v55 = vadd.f32 %v6241_v13, %v6188_v49  ;;  %v5862_v47 = vpop.f32.mrf.mxu0 }
 0x453   : > { %v5915_v32 = vpop.f32.mrf.mxu1 }
 0x454   : > { %v5916_v24 = vadd.f32 %v5915_v32, %v5862_v47 }
 0x456   : > { %v15110_v17 = vadd.f32 %v5916_v24, %v14970_v2 }
 0x458   : > { %v15112_v56 = vpop.f32.mrf.mxu2  ;;  %v15114_v46 = vpop.f32.mrf.mxu3 }
 0x459   : > { %v5865_v59 = vpop.f32.mrf.mxu0 }
 0x45b   : > { %v5918_v9 = vpop.f32.mrf.mxu1 }
 0x45c   : > { %v5919_v3 = vadd.f32 %v5918_v9, %v5865_v59  ;;  %6405 = vmatmul.bf16.vlgmr.msrb.gmra.mxu0 %v16193_v25 }
 0x45e   : > { %v15117_v63 = vadd.f32 %v5919_v3, %v14980_v38  ;;  %v16196_v3 = vld [vmem:[#allocation55_spill] sm:$0xff] }
 0x460   : > { %v6193_v37 = vpop.f32.mrf.mxu2  ;;  %v6246_v35 = vpop.f32.mrf.mxu3 }
 0x461   : > { %v15120_v0 = vadd.f32 %v6246_v35, %v6193_v37  ;;  %v5867_v61 = vpop.f32.mrf.mxu0 }
 0x463   : > { %v5920_v52 = vpop.f32.mrf.mxu1 }
 0x464   : > { %v5921_v2 = vadd.f32 %v5920_v52, %v5867_v61 }
 0x466   : > { %v15123_v62 = vadd.f32 %v5921_v2, %v14985_v50 }
 0x468   : > { %v15125_v11 = vpop.f32.mrf.mxu2  ;;  %v15127_v33 = vpop.f32.mrf.mxu3 }
 0x469   : > { %v5870_v10 = vpop.f32.mrf.mxu0 }
 0x46b   : > { %v5923_v53 = vpop.f32.mrf.mxu1 }
 0x46c   : > { %v5924_v38 = vadd.f32 %v5923_v53, %v5870_v10  ;;  %6410 = vmatmul.bf16.gmra.mxu0 %v16194_v51 }
 0x46e   : > { %v15130_v40 = vadd.f32 %v5924_v38, %v14994_v7 }
 0x470   : > { %v6198_v39 = vpop.f32.mrf.mxu2  ;;  %v6251_v29 = vpop.f32.mrf.mxu3 }
 0x471   : > { %v15133_v26 = vadd.f32 %v6251_v29, %v6198_v39  ;;  %v5872_v19 = vpop.f32.mrf.mxu0  ;;  %v16197_v29 = vld [vmem:[#allocation60_spill] sm:$0xff] }
 0x473   : > { %v5925_v12 = vpop.f32.mrf.mxu1 }
 0x474   : > { %v5926_v50 = vadd.f32 %v5925_v12, %v5872_v19 }
 0x476   : > { %v15136_v15 = vadd.f32 %v5926_v50, %v14999_v30 }
 0x478   : > { %v15138_v34 = vpop.f32.mrf.mxu2  ;;  %v15140_v31 = vpop.f32.mrf.mxu3 }
 0x479   : > { %v5875_v42 = vpop.f32.mrf.mxu0 }
 0x47b   : > { %v5928_v28 = vpop.f32.mrf.mxu1 }
 0x47c   : > { %v5929_v7 = vadd.f32 %v5928_v28, %v5875_v42  ;;  %6415 = vmatmul.bf16.gmra.mxu0 %v16195_v43 }
 0x47e   : > { %v15143_v48 = vadd.f32 %v5929_v7, %v15008_v45 }
 0x480   : > { %v6203_v54 = vpop.f32.mrf.mxu2  ;;  %v6256_v41 = vpop.f32.mrf.mxu3 }
 0x481   : > { %v15146_v21 = vadd.f32 %v6256_v41, %v6203_v54  ;;  %v5877_v22 = vpop.f32.mrf.mxu0 }
 0x483   : > { %v5930_v49 = vpop.f32.mrf.mxu1 }
 0x484   : > { %v5931_v30 = vadd.f32 %v5930_v49, %v5877_v22 }
 0x486   : > { %v15149_v13 = vadd.f32 %v5931_v30, %v15013_v16  ;;  %v16198_v30 = vld [vmem:[#allocation61_spill] sm:$0xff] }
 0x488   : > { %v15151_v47 = vpop.f32.mrf.mxu2  ;;  %v15153_v32 = vpop.f32.mrf.mxu3 }
 0x489   : > { %v5880_v24 = vpop.f32.mrf.mxu0 }
 0x48b   : > { %v5933_v59 = vpop.f32.mrf.mxu1 }
 0x48c   : > { %v5934_v45 = vadd.f32 %v5933_v59, %v5880_v24  ;;  %6420 = vmatmul.bf16.gmra.mxu0 %v16196_v3 }
 0x48e   : > { %v15156_v9 = vadd.f32 %v5934_v45, %v15022_v4 }
 0x490   : > { %v6208_v25 = vpop.f32.mrf.mxu2  ;;  %v6261_v37 = vpop.f32.mrf.mxu3 }
 0x491   : > { %v15159_v35 = vadd.f32 %v6261_v37, %v6208_v25  ;;  %v5882_v61 = vpop.f32.mrf.mxu0 }
 0x493   : > { %v5935_v52 = vpop.f32.mrf.mxu1 }
 0x494   : > { %v5936_v16 = vadd.f32 %v5935_v52, %v5882_v61  ;;  %v6285_v61 = vadd.f32 %v15107_v55, %v15105_v18 }
 0x496   : > { %v15162_v2 = vadd.f32 %v5936_v16, %v15027_v58 }
 0x498   : > { %v15164_v10 = vpop.f32.mrf.mxu2  ;;  %v15166_v53 = vpop.f32.mrf.mxu3 }
 0x499   : > { %v5885_v38 = vpop.f32.mrf.mxu0 }
 0x49b   : > { %v5938_v51 = vpop.f32.mrf.mxu1 }
 0x49c   : > { %v5939_v4 = vadd.f32 %v5938_v51, %v5885_v38  ;;  %6425 = vmatmul.bf16.gmra.mxu0 %v16197_v29  ;;  %v5487_v29 = vadd.f32 %v15093_v1, %v15091_v14  ;;  %v16200_v1 = vld [vmem:[#allocation65_spill] sm:$0xff] }
 0x49e   : > { %v15169_v39 = vadd.f32 %v5939_v4, %v15036_v44  ;;  %v16199_v4 = vld [vmem:[#allocation63_spill] sm:$0xff]  ;;  %v5508_v18 = vadd.f32 %v5487_v29, %v15083_v8 }
 0x4a0   : > { %v6213_v19 = vpop.f32.mrf.mxu2  ;;  %v6266_v12 = vpop.f32.mrf.mxu3 }
 0x4a1   : > { %v15172_v50 = vadd.f32 %v6266_v12, %v6213_v19  ;;  %v5887_v42 = vpop.f32.mrf.mxu0 }
 0x4a3   : > { %v5940_v28 = vpop.f32.mrf.mxu1 }
 0x4a4   : > { %v5941_v58 = vadd.f32 %v5940_v28, %v5887_v42 }
 0x4a6   : > { %v15175_v7 = vadd.f32 %v5941_v58, %v15041_v23 }
 0x4a8   : > { %v15177_v43 = vpop.f32.mrf.mxu2  ;;  %v15179_v54 = vpop.f32.mrf.mxu3 }
 0x4a9   : > { %v5890_v41 = vpop.f32.mrf.mxu0 }
 0x4ab   : > { %v5943_v22 = vpop.f32.mrf.mxu1 }
 0x4ac   : > { %v5944_v44 = vadd.f32 %v5943_v22, %v5890_v41  ;;  %6430 = vmatmul.bf16.gmra.mxu0 %v16198_v30  ;;  %v6287_v22 = vadd.f32 %v15120_v0, %v15117_v63 }
 0x4ae   : > { %v15182_v49 = vadd.f32 %v5944_v44, %v15051_v57 }
 0x4b0   : > { %v6218_v24 = vpop.f32.mrf.mxu2  ;;  %v6271_v59 = vpop.f32.mrf.mxu3 }
 0x4b1   : > { %v15185_v45 = vadd.f32 %v6271_v59, %v6218_v24  ;;  %v15187_v3 = vpop.f32.mrf.mxu0 }
 0x4b3   : > { %v15189_v23 = vpop.f32.mrf.mxu1 }
 0x4b8   : > { %v6220_v25 = vpop.f32.mrf.mxu2  ;;  %v6273_v37 = vpop.f32.mrf.mxu3 }
 0x4b9   : > { %v15193_v52 = vadd.f32 %v6273_v37, %v6220_v25  ;;  %v5895_v16 = vpop.f32.mrf.mxu0 }
 0x4bb   : > { %v5948_v57 = vpop.f32.mrf.mxu1 }
 0x4bc   : > { %v5949_v38 = vadd.f32 %v5948_v57, %v5895_v16  ;;  %6435 = vmatmul.bf16.gmra.mxu0 %v16199_v4  ;;  %v6289_v4 = vadd.f32 %v15133_v26, %v15130_v40 }
 0x4be   : > { %v15196_v51 = vadd.f32 %v5949_v38, %v15080_v6 }
 0x4c0   : > { %v6223_v19 = vpop.f32.mrf.mxu2  ;;  %v6276_v12 = vpop.f32.mrf.mxu3 }
 0x4c1   : > { %v6277_v42 = vadd.f32 %v6276_v12, %v6223_v19  ;;  %v5897_v28 = vpop.f32.mrf.mxu0  ;;  %v16201_v12 = vrot.slane %v16190_v20, 2 }
 0x4c3   : > { %v5950_v58 = vpop.f32.mrf.mxu1 }
 0x4c4   : > { %v5951_v55 = vadd.f32 %v5950_v58, %v5897_v28 }
 0x4c6   : > { %v5972_v41 = vadd.f32 %v5951_v55, %v5508_v18  ;;  %v6249_v55 = vadd.f32 %v15127_v33, %v15125_v11 }
 0x4c8   : > { %v6225_v44 = vpop.f32.mrf.mxu2  ;;  %v6278_v6 = vpop.f32.mrf.mxu3  ;;  %v6288_v40 = vadd.f32 %v6249_v55, %v15123_v62  ;;  %v6269_v62 = vadd.f32 %v15179_v54, %v15177_v43 }
 0x4c9   : > { %v6279_v30 = vadd.f32 %v6278_v6, %v6225_v44  ;;  %v5900_v24 = vpop.f32.mrf.mxu0 }
 0x4cb   : > { %v5953_v59 = vpop.f32.mrf.mxu1 }
 0x4cc   : > { %v5954_v25 = vadd.f32 %v5953_v59, %v5900_v24  ;;  %6440 = vmatmul.bf16.gmra.mxu0 %v16200_v1  ;;  %v6254_v24 = vadd.f32 %v15140_v31, %v15138_v34  ;;  %v6295_v59 = vadd.f32 %v15172_v50, %v15169_v39  ;;  %v6297_v39 = vadd.f32 %v15185_v45, %v15182_v49 }
 0x4cd   : > { %v5946_v50 = vadd.f32 %v15189_v23, %v15187_v3 }
 0x4ce   : > { %v5973_v14 = vadd.f32 %v5954_v25, %v15102_v27  ;;  %v6291_v27 = vadd.f32 %v15146_v21, %v15143_v48  ;;  %v6290_v48 = vadd.f32 %v6254_v24, %v15136_v15  ;;  %v5482_v15 = vadd.f32 %v15065_v60, %v15063_v36 }
 0x4cf   : > { %v6264_v36 = vadd.f32 %v15166_v53, %v15164_v10  ;;  %v6244_v10 = vadd.f32 %v15114_v46, %v15112_v56 }
 0x4d0   : > { %v6228_v37 = vpop.f32.mrf.mxu2  ;;  %v6281_v16 = vpop.f32.mrf.mxu3  ;;  %v5506_v54 = vadd.f32 %v5482_v15, %v15057_v5  ;;  %v12479_v5 = vld [vmem:[%s15974_s4] ss:$0 sm:$0xff] }
 0x4d1   : > { %v6282_v57 = vadd.f32 %v6281_v16, %v6228_v37  ;;  %v5902_v38 = vpop.f32.mrf.mxu0  ;;  %v6300_v16 = vadd.f32 %v6279_v30, %v5972_v41  ;;  %v6294_v49 = vadd.f32 %v6264_v36, %v15162_v2 }
 0x4d3   : > { %v5955_v8 = vpop.f32.mrf.mxu1  ;;  %v6301_v38 = vadd.f32 %v6282_v57, %v5973_v14 }
 0x4d8   : > { %v6230_v29 = vpop.f32.mrf.mxu2  ;;  %v6283_v63 = vpop.f32.mrf.mxu3 }
 0x4d9   : > { %v6406_v0 = vpop.f32.mrf.mxu0 }
 0x4da   : > { %v15208_v19 = vadd.f32 %v6406_v0, %v6285_v61  ;;  %v6293_v61 = vadd.f32 %v15159_v35, %v15156_v9  ;;  %v6259_v9 = vadd.f32 %v15153_v32, %v15151_v47  ;;  %v6296_v35 = vadd.f32 %v6269_v62, %v15175_v7 }
 0x4db   : > { %v5970_v47 = vadd.f32 %v5946_v50, %v5506_v54 }
 0x4dc   : > { %6445 = vmatmul.bf16.gmra.mxu0 %v16201_v12  ;;  %v6292_v25 = vadd.f32 %v6259_v9, %v15149_v13  ;;  %v6299_v13 = vadd.f32 %v6277_v42, %v15196_v51 }
 0x4dd   : > { %v6298_v32 = vadd.f32 %v15193_v52, %v5970_v47 }
 0x4e1   : > { %v15212_v28 = vpop.f32.mrf.mxu0 }
 0x4e9   : > { %v6411_v58 = vpop.f32.mrf.mxu0 }
 0x4ea   : > { %v15216_v18 = vadd.f32 %v6411_v58, %v6287_v22 }
 0x4ec   : > { %v6473_v62 = vadd.f32 %v12479_v5, %v15216_v18 }
 0x4f1   : > { %v6413_v26 = vpop.f32.mrf.mxu0 }
 0x4f2   : > { %v6453_v44 = vadd.f32 %v6413_v26, %v6288_v40  ;;  %v6286_v40 = vadd.f32 %v6244_v10, %v15110_v17  ;;  %v6471_v17 = vadd.f32 %v12479_v5, %v15208_v19  ;;  %v12005_v19 = vld [vmem:[%s15976_s6 + $0xb0] sm:$0xff] }
 0x4f3   : > { %v11981_v10 = vld [vmem:[%s15975_s5 + $0x14] sm:$0xf] }
 0x4f9   : > { %v6416_v20 = vpop.f32.mrf.mxu0 }
 0x4fa   : > { %v6454_v6 = vadd.f32 %v6416_v20, %v6289_v4 }
 0x501   : > { %v6418_v21 = vpop.f32.mrf.mxu0 }
 0x502   : > { %v6455_v22 = vadd.f32 %v6418_v21, %v6290_v48  ;;  %v6451_v48 = vadd.f32 %v15212_v28, %v6286_v40  ;;  %v6474_v21 = vadd.f32 %v12479_v5, %v6453_v44  ;;  %v6488_v28 = vmax.f32 %v6471_v17, 0.0  ;;  %v12013_v40 = vld [vmem:[%s15976_s6 + $0xf0] sm:$0xff] }
 0x503   : > { %v12021_v17 = vld [vmem:[%s15976_s6 + $0x130] sm:$0xff] }
 0x504   : > { %v6476_v58 = vadd.f32 %v12479_v5, %v6455_v22 }
 0x506   : > { %v6493_v56 = vmax.f32 %v6476_v58, 0.0  ;;  %v11999_v58 = vld [vmem:[%s15976_s6 + $0x80] sm:$0xff] }
 0x509   : > { %v6421_v11 = vpop.f32.mrf.mxu0 }
 0x50a   : > { %v6456_v33 = vadd.f32 %v6421_v11, %v6291_v27 }
 0x50c   : > { %v6477_v63 = vadd.f32 %v12479_v5, %v6456_v33 }
 0x50e   : > { %v6494_v20 = vmax.f32 %v6477_v63, 0.0  ;;  %v10436_v63 = vld [vmem:[%s15975_s5] sm:$0xf] }
 0x511   : > { %v6423_v34 = vpop.f32.mrf.mxu0 }
 0x512   : > { %v6457_v31 = vadd.f32 %v6423_v34, %v6292_v25  ;;  %v6491_v25 = vmax.f32 %v6474_v21, 0.0  ;;  %v12011_v21 = vld [vmem:[%s15976_s6 + $0xe0] sm:$0xff] }
 0x514   : > { %v6478_v30 = vadd.f32 %v12479_v5, %v6457_v31 }
 0x516   : > { %v6495_v55 = vmax.f32 %v6478_v30, 0.0  ;;  %v11987_v30 = vld [vmem:[%s15976_s6 + $0x20] sm:$0xff] }
 0x518   : > { %v6512_v11 = vpack.c.bf16 %v6495_v55, %v6494_v20  ;;  %v11985_v55 = vld [vmem:[%s15976_s6 + $0x10] sm:$0xff]  ;;  %v12012_v20 = vld [vmem:[%s15976_s6 + $0xe8] sm:$0xff] }
 0x519   : > { %v6426_v43 = vpop.f32.mrf.mxu0 }
 0x51a   : > { %v6458_v1 = vadd.f32 %v6426_v43, %v6293_v61  ;;  %v6475_v61 = vadd.f32 %v12479_v5, %v6454_v6  ;;  %v6490_v6 = vmax.f32 %v6473_v62, 0.0 }
 0x51c   : > { %v6479_v42 = vadd.f32 %v12479_v5, %v6458_v1  ;;  %v6492_v33 = vmax.f32 %v6475_v61, 0.0  ;;  %v11997_v61 = vld [vmem:[%s15976_s6 + $0x70] sm:$0xff] }
 0x51e   : > { %v6496_v0 = vmax.f32 %v6479_v42, 0.0  ;;  %v6511_v34 = vpack.c.bf16 %v6493_v56, %v6492_v33  ;;  %v11988_v42 = vld [vmem:[%s15976_s6 + $0x28] sm:$0xff]  ;;  %v12029_v56 = vld [vmem:[%s15976_s6 + $0x170] sm:$0xff] }
 0x51f   : > { %v12009_v33 = vld [vmem:[%s15976_s6 + $0xd0] sm:$0xff] }
 0x521   : > { %v6428_v7 = vpop.f32.mrf.mxu0 }
 0x522   : > { %v6459_v3 = vadd.f32 %v6428_v7, %v6294_v49  ;;  %v10438_v49 = vld [vmem:[%s15975_s5 + $0x8] sm:$0xf0] }
 0x524   : > { %v6480_v4 = vadd.f32 %v12479_v5, %v6459_v3 }
 0x526   : > { %v6497_v2 = vmax.f32 %v6480_v4, 0.0  ;;  %v11989_v4 = vld [vmem:[%s15976_s6 + $0x30] sm:$0xff] }
 0x528   : > { %v6513_v26 = vpack.c.bf16 %v6497_v2, %v6496_v0  ;;  %v10446_v2 = vld [vmem:[%s15975_s5 + $0x18] sm:$0x10]  ;;  %v11980_v0 = vld [vmem:[%s15975_s5 + $0x4] sm:$0xf0] }
 0x529   : > { %v6431_v37 = vpop.f32.mrf.mxu0 }
 0x52a   : > { %v6460_v23 = vadd.f32 %v6431_v37, %v6295_v59  ;;  %v12006_v37 = vld [vmem:[%s15976_s6 + $0xb8] sm:$0xff] }
 0x52b   : > { %6778 = vmatpush.bf16.msrb.mxu3 %v12006_v37  ;;  %v12016_v37 = vld [vmem:[%s15976_s6 + $0x108] sm:$0xff] }
 0x52c   : > { %v6481_v51 = vadd.f32 %v12479_v5, %v6460_v23 }
 0x52e   : > { %v6498_v53 = vmax.f32 %v6481_v51, 0.0  ;;  %v12002_v51 = vld [vmem:[%s15976_s6 + $0x98] sm:$0xff] }
 0x52f   : > { %6779 = vmatpush.bf16.msrb.mxu3 %v12005_v19  ;;  %v12015_v19 = vld [vmem:[%s15976_s6 + $0x100] sm:$0xff] }
 0x531   : > { %v6433_v60 = vpop.f32.mrf.mxu0 }
 0x532   : > { %v6461_v45 = vadd.f32 %v6433_v60, %v6296_v35  ;;  %v6472_v35 = vadd.f32 %v12479_v5, %v6451_v48  ;;  %v12030_v48 = vld [vmem:[%s15976_s6 + $0x178] sm:$0xff] }
 0x534   : > { %v6482_v52 = vadd.f32 %v12479_v5, %v6461_v45  ;;  %v6489_v31 = vmax.f32 %v6472_v35, 0.0  ;;  %v12004_v45 = vld [vmem:[%s15976_s6 + $0xa8] sm:$0xff]  ;;  %v12022_v35 = vld [vmem:[%s15976_s6 + $0x138] sm:$0xff] }
 0x535   : > { %6780 = vmatpush.bf16.msrb.mxu3 %v12004_v45 }
 0x536   : > { %v6499_v41 = vmax.f32 %v6482_v52, 0.0  ;;  %v6509_v54 = vpack.c.bf16 %v6489_v31, %v6488_v28  ;;  %v11995_v31 = vld [vmem:[%s15976_s6 + $0x60] sm:$0xff]  ;;  %v11994_v28 = vld [vmem:[%s15976_s6 + $0x58] sm:$0xff] }
 0x538   : > { %v6514_v27 = vpack.c.bf16 %v6499_v41, %v6498_v53  ;;  %v12001_v41 = vld [vmem:[%s15976_s6 + $0x90] sm:$0xff]  ;;  %v11986_v53 = vld [vmem:[%s15976_s6 + $0x18] sm:$0xff] }
 0x539   : > { %v6436_v8 = vpop.f32.mrf.mxu0 }
 0x53a   : > { %v6462_v29 = vadd.f32 %v6436_v8, %v6297_v39  ;;  %v6510_v39 = vpack.c.bf16 %v6491_v25, %v6490_v6  ;;  %v12003_v8 = vld [vmem:[%s15976_s6 + $0xa0] sm:$0xff]  ;;  %v12028_v25 = vld [vmem:[%s15976_s6 + $0x168] sm:$0xff] }
 0x53b   : > { %6781 = vmatpush.bf16.msrb.mxu3 %v12003_v8  ;;  %v12027_v6 = vld [vmem:[%s15976_s6 + $0x160] sm:$0xff] }
 0x53c   : > { %v6483_v14 = vadd.f32 %v12479_v5, %v6462_v29  ;;  %v12000_v29 = vld [vmem:[%s15976_s6 + $0x88] sm:$0xff] }
 0x53e   : > { %v6500_v46 = vmax.f32 %v6483_v14, 0.0  ;;  %v11998_v14 = vld [vmem:[%s15976_s6 + $0x78] sm:$0xff] }
 0x53f   : > { %6782 = vmatpush.bf16.msrb.mxu3 %v12002_v51 }
 0x541   : > { %v6438_v12 = vpop.f32.mrf.mxu0 }
 0x542   : > { %v6463_v57 = vadd.f32 %v6438_v12, %v6298_v32  ;;  %v10449_v12 = vor.u32 %v11981_v10, %v10446_v2  ;;  %v12092_v2 = vld [vmem:[%s15976_s6 + $0x368] sm:$0xff] }
 0x543   : > { %6783 = vmatpush.bf16.msrb.mxu3 %v12001_v41 }
 0x544   : > { %v6484_v24 = vadd.f32 %v12479_v5, %v6463_v57  ;;  %v10437_v57 = vor.u32 %v11980_v0, %v10436_v63  ;;  %v12046_v0 = vld [vmem:[%s15976_s6 + $0x1f8] sm:$0xff] }
 0x546   : > { %v6501_v59 = vmax.f32 %v6484_v24, 0.0  ;;  %v11983_v24 = vld [vmem:[%s15976_s6] sm:$0xff] }
 0x547   : > { %6784 = vmatpush.bf16.msrb.mxu3 %v12000_v29 }
 0x548   : > { %v6515_v22 = vpack.c.bf16 %v6501_v59, %v6500_v46  ;;  %v10444_v46 = vld [vmem:[%s15975_s5 + $0x10] sm:$0xf]  ;;  %v11982_v59 = vld [vmem:[%s15975_s5 + $0x14] sm:$0x10] }
 0x549   : > { %v6441_v9 = vpop.f32.mrf.mxu0  ;;  %v10445_v62 = vor.u32 %v11982_v59, %v10444_v46  ;;  %v12089_v59 = vld [vmem:[%s15976_s6 + $0x350] sm:$0xff] }
 0x54a   : > { %v6464_v15 = vadd.f32 %v6441_v9, %v6299_v13  ;;  %v12007_v9 = vld [vmem:[%s15976_s6 + $0xc0] sm:$0xff] }
 0x54b   : > { %6785 = vmatpush.bf16.msrb.mxu3 %v11999_v58 }
 0x54c   : > { %v6485_v50 = vadd.f32 %v12479_v5, %v6464_v15  ;;  %v12020_v15 = vld [vmem:[%s15976_s6 + $0x128] sm:$0xff] }
 0x54e   : > { %v6502_v47 = vmax.f32 %v6485_v50, 0.0  ;;  %v12025_v50 = vld [vmem:[%s15976_s6 + $0x150] sm:$0xff] }
 0x54f   : > { %6913 = vmatpush.bf16.msra.mxu3 %v11998_v14  ;;  %v12036_v14 = vld [vmem:[%s15976_s6 + $0x1a8] sm:$0xff] }
 0x551   : > { %v6443_v44 = vpop.f32.mrf.mxu0 }
 0x552   : > { %v6465_v43 = vadd.f32 %v6443_v44, %v6300_v16  ;;  %v11979_v16 = vld [vmem:[%s15975_s5 + $0x4] sm:$0xf] }
 0x553   : > { %v10441_v52 = vor.u32 %v11979_v16, %v10438_v49  ;;  %6914 = vmatpush.bf16.msra.mxu3 %v11997_v61  ;;  %v12019_v44 = vld [vmem:[%s15976_s6 + $0x120] sm:$0xff] }
 0x554   : > { %v6486_v1 = vadd.f32 %v12479_v5, %v6465_v43  ;;  %v11993_v43 = vld [vmem:[%s15976_s6 + $0x50] sm:$0xff] }
 0x556   : > { %v6503_v18 = vmax.f32 %v6486_v1, 0.0  ;;  %v12024_v1 = vld [vmem:[%s15976_s6 + $0x148] sm:$0xff] }
 0x558   : > { %v6516_v32 = vpack.c.bf16 %v6503_v18, %v6502_v47  ;;  %v11992_v47 = vld [vmem:[%s15976_s6 + $0x48] sm:$0xff]  ;;  %v12017_v18 = vld [vmem:[%s15976_s6 + $0x110] sm:$0xff] }
 0x559   : > { %v6446_v7 = vpop.f32.mrf.mxu0 }
 0x55a   : > { %v6466_v36 = vadd.f32 %v6446_v7, %v6301_v38  ;;  %6547 = vmatpush.bf16.msrb.mxu1 %v6516_v32  ;;  %v12023_v32 = vld [vmem:[%s15976_s6 + $0x140] sm:$0xff] }
 0x55b   : > { %v11991_v7 = vld [vmem:[%s15976_s6 + $0x40] sm:$0xff] }
 0x55c   : > { %v6487_v13 = vadd.f32 %v12479_v5, %v6466_v36  ;;  %v11990_v5 = vld [vmem:[%s15976_s6 + $0x38] sm:$0xff] }
 0x55e   : > { %v6504_v60 = vmax.f32 %v6487_v13, 0.0  ;;  %6548 = vmatpush.bf16.msrb.mxu1 %v6515_v22  ;;  %v12008_v22 = vld [vmem:[%s15976_s6 + $0xc8] sm:$0xff] }
 0x560   : > { %v6517_v3 = vpack.c.bf16 %v6504_v60, %v6504_v60 }
 0x561   : > { %v6448_v23 = vpop.f32.mrf.mxu0 }
 0x562   : > { %6549 = vmatpush.bf16.msrb.mxu1 %v6514_v27  ;;  %v6545_v38 = vsel %vm6543_vm8, %v6517_v3, 0  ;;  %v12014_v27 = vld [vmem:[%s15976_s6 + $0xf8] sm:$0xff] }
 0x563   : > { %6573 = vmatpush.bf16.msrb.mxu2 %v6545_v38  ;;  %v12054_v23 = vld [vmem:[%s15976_s6 + $0x238] sm:$0xff] }
 0x564   : > { %v12038_v38 = vld [vmem:[%s15976_s6 + $0x1b8] sm:$0xff] }
 0x566   : > { %6550 = vmatpush.bf16.msrb.mxu1 %v6513_v26  ;;  %10450 = vmatmul.msk.bf16.vlgmr.msrb.gmra.mxu2 %vm6536_vm9, %v10441_v52  ;;  %v11984_v26 = vld [vmem:[%s15976_s6 + $0x8] sm:$0xff]  ;;  %v12093_v52 = vld [vmem:[%s15976_s6 + $0x370] sm:$0xff] }
 0x567   : > { %6900 = vmatpush.bf16.msra.mxu2 %v11990_v5  ;;  %v12094_v5 = vld [vmem:[%s15976_s6 + $0x378] sm:$0xff] }
 0x568   : > { %7744 = vmatpush.bf16.msra.mxu0 %v12094_v5 }
 0x56a   : > { %6551 = vmatpush.bf16.msrb.mxu1 %v6512_v11  ;;  %v12010_v11 = vld [vmem:[%s15976_s6 + $0xd8] sm:$0xff] }
 0x56b   : > { %6901 = vmatpush.bf16.msra.mxu2 %v11989_v4 }
 0x56c   : > { %7745 = vmatpush.bf16.msra.mxu0 %v12093_v52  ;;  %v12075_v52 = vld [vmem:[%s15976_s6 + $0x2e0] sm:$0xff] }
 0x56e   : > { %6552 = vmatpush.bf16.msrb.mxu1 %v6511_v34  ;;  %v11996_v34 = vld [vmem:[%s15976_s6 + $0x68] sm:$0xff] }
 0x56f   : > { %6902 = vmatpush.bf16.msra.mxu2 %v11988_v42  ;;  %6915 = vmatpush.bf16.msra.mxu3 %v11996_v34  ;;  %v12048_v34 = vld [vmem:[%s15976_s6 + $0x208] sm:$0xff] }
 0x570   : > { %7746 = vmatpush.bf16.msra.mxu0 %v12092_v2 }
 0x572   : > { %6553 = vmatpush.bf16.msrb.mxu1 %v6510_v39  ;;  %v12026_v39 = vld [vmem:[%s15976_s6 + $0x158] sm:$0xff] }
 0x573   : > { %6903 = vmatpush.bf16.msra.mxu2 %v11987_v30  ;;  %6916 = vmatpush.bf16.msra.mxu3 %v11995_v31  ;;  %v12053_v30 = vld [vmem:[%s15976_s6 + $0x230] sm:$0xff]  ;;  %v12032_v31 = vld [vmem:[%s15976_s6 + $0x188] sm:$0xff] }
 0x576   : > { %6554 = vmatpush.bf16.msrb.mxu1 %v6509_v54  ;;  %10451 = vmatmul.msk.bf16.gmra.mxu2 %vm6536_vm9, %v10449_v12  ;;  %v12018_v54 = vld [vmem:[%s15976_s6 + $0x118] sm:$0xff]  ;;  %v12052_v12 = vld [vmem:[%s15976_s6 + $0x228] sm:$0xff] }
 0x577   : > { %6904 = vmatpush.bf16.msra.mxu2 %v11986_v53  ;;  %6917 = vmatpush.bf16.msra.mxu3 %v11994_v28  ;;  %v12037_v53 = vld [vmem:[%s15976_s6 + $0x1b0] sm:$0xff] }
 0x578   : > { %v12041_v28 = vld [vmem:[%s15976_s6 + $0x1d0] sm:$0xff] }
 0x579   : > { %6555 = vmatmul.bf16.vlgmr.msrb.gmra.mxu1 %v10437_v57 }
 0x57a   : > { %6791 = vmatpush.bf16.msra.mxu1 %v12014_v27 }
 0x57b   : > { %6905 = vmatpush.bf16.msra.mxu2 %v11985_v55  ;;  %6918 = vmatpush.bf16.msra.mxu3 %v11993_v43  ;;  %v12091_v55 = vld [vmem:[%s15976_s6 + $0x360] sm:$0xff]  ;;  %v12078_v43 = vld [vmem:[%s15976_s6 + $0x2f8] sm:$0xff] }
 0x57c   : > { %7747 = vmatpush.bf16.msra.mxu0 %v12091_v55  ;;  %v12065_v55 = vld [vmem:[%s15976_s6 + $0x290] sm:$0xff] }
 0x57e   : > { %6792 = vmatpush.bf16.msra.mxu1 %v12013_v40  ;;  %v12045_v40 = vld [vmem:[%s15976_s6 + $0x1f0] sm:$0xff] }
 0x57f   : > { %6906 = vmatpush.bf16.msra.mxu2 %v11984_v26  ;;  %6919 = vmatpush.bf16.msra.mxu3 %v11992_v47  ;;  %v12051_v26 = vld [vmem:[%s15976_s6 + $0x220] sm:$0xff] }
 0x582   : > { %6793 = vmatpush.bf16.msra.mxu1 %v12012_v20  ;;  %v12090_v20 = vld [vmem:[%s15976_s6 + $0x358] sm:$0xff] }
 0x583   : > { %6907 = vmatpush.bf16.msra.mxu2 %v11983_v24  ;;  %6920 = vmatpush.bf16.msra.mxu3 %v11991_v7  ;;  %v12035_v24 = vld [vmem:[%s15976_s6 + $0x1a0] sm:$0xff] }
 0x584   : > { %7748 = vmatpush.bf16.msra.mxu0 %v12090_v20  ;;  %v12086_v20 = vld [vmem:[%s15976_s6 + $0x338] sm:$0xff] }
 0x586   : > { %6794 = vmatpush.bf16.msra.mxu1 %v12011_v21  ;;  %v12044_v21 = vld [vmem:[%s15976_s6 + $0x1e8] sm:$0xff] }
 0x587   : > { %7079 = vmatpush.bf16.msrb.mxu2 %v12030_v48 }
 0x588   : > { %7749 = vmatpush.bf16.msra.mxu0 %v12089_v59  ;;  %v12063_v59 = vld [vmem:[%s15976_s6 + $0x280] sm:$0xff] }
 0x589   : > { %6560 = vmatmul.bf16.gmra.mxu1 %v10445_v62 }
 0x58a   : > { %6795 = vmatpush.bf16.msra.mxu1 %v12010_v11  ;;  %v12034_v11 = vld [vmem:[%s15976_s6 + $0x198] sm:$0xff] }
 0x58b   : > { %7080 = vmatpush.bf16.msrb.mxu2 %v12029_v56  ;;  %v12050_v56 = vld [vmem:[%s15976_s6 + $0x218] sm:$0xff] }
 0x58e   : > { %6796 = vmatpush.bf16.msra.mxu1 %v12009_v33  ;;  %v12043_v33 = vld [vmem:[%s15976_s6 + $0x1e0] sm:$0xff] }
 0x58f   : > { %7081 = vmatpush.bf16.msrb.mxu2 %v12028_v25  ;;  %v12042_v25 = vld [vmem:[%s15976_s6 + $0x1d8] sm:$0xff] }
 0x592   : > { %6797 = vmatpush.bf16.msra.mxu1 %v12008_v22  ;;  %v12049_v22 = vld [vmem:[%s15976_s6 + $0x210] sm:$0xff] }
 0x593   : > { %7082 = vmatpush.bf16.msrb.mxu2 %v12027_v6  ;;  %v12087_v6 = vld [vmem:[%s15976_s6 + $0x340] sm:$0xff] }
 0x596   : > { %6798 = vmatpush.bf16.msra.mxu1 %v12007_v9  ;;  %v12088_v9 = vld [vmem:[%s15976_s6 + $0x348] sm:$0xff] }
 0x597   : > { %7083 = vmatpush.bf16.msrb.mxu2 %v12026_v39  ;;  %7750 = vmatpush.bf16.msra.mxu0 %v12088_v9  ;;  %v12125_v9 = vld [vmem:[%s15976_s6 + $0x470] sm:$0xff] }
 0x59a   : > { %7066 = vmatpush.bf16.msrb.mxu1 %v12022_v35  ;;  %v12033_v35 = vld [vmem:[%s15976_s6 + $0x190] sm:$0xff] }
 0x59b   : > { %7084 = vmatpush.bf16.msrb.mxu2 %v12025_v50  ;;  %7751 = vmatpush.bf16.msra.mxu0 %v12087_v6  ;;  %v12107_v6 = vld [vmem:[%s15976_s6 + $0x3e0] sm:$0xff] }
 0x59e   : > { %7067 = vmatpush.bf16.msrb.mxu1 %v12021_v17 }
 0x59f   : > { %7085 = vmatpush.bf16.msrb.mxu2 %v12024_v1  ;;  %v12031_v1 = vld [vmem:[%s15976_s6 + $0x180] sm:$0xff] }
 0x5a2   : > { %7068 = vmatpush.bf16.msrb.mxu1 %v12020_v15 }
 0x5a3   : > { %7086 = vmatpush.bf16.msrb.mxu2 %v12023_v32  ;;  %v12040_v32 = vld [vmem:[%s15976_s6 + $0x1c8] sm:$0xff] }
 0x5a6   : > { %7069 = vmatpush.bf16.msrb.mxu1 %v12019_v44  ;;  %v12047_v44 = vld [vmem:[%s15976_s6 + $0x200] sm:$0xff] }
 0x5aa   : > { %7070 = vmatpush.bf16.msrb.mxu1 %v12018_v54 }
 0x5ae   : > { %7071 = vmatpush.bf16.msrb.mxu1 %v12017_v18  ;;  %v12062_v18 = vld [vmem:[%s15976_s6 + $0x278] sm:$0xff] }
 0x5b2   : > { %7072 = vmatpush.bf16.msrb.mxu1 %v12016_v37  ;;  %v12077_v37 = vld [vmem:[%s15976_s6 + $0x2f0] sm:$0xff] }
 0x5b6   : > { %7073 = vmatpush.bf16.msrb.mxu1 %v12015_v19 }
 0x5e9   : > { %v6575_v36 = vpop.f32.mrf.mxu2 }
 0x5f1   : > { %v6577_v16 = vpop.f32.mrf.mxu2 }
 0x5f6   : > { %v6556_v13 = vpop.f32.mrf.mxu1 }
 0x5f7   : > { %v6576_v49 = vadd.f32 %v6575_v36, %v6556_v13 }
 0x5fe   : > { %v6558_v60 = vpop.f32.mrf.mxu1 }
 0x5ff   : > { %v6578_v45 = vadd.f32 %v6577_v16, %v6558_v60  ;;  %v12061_v60 = vld [vmem:[%s15976_s6 + $0x270] sm:$0xff] }
 0x601   : > { %v12334_v3 = vpack.c.bf16 %v6578_v45, %v6576_v49  ;;  %v12039_v49 = vld [vmem:[%s15976_s6 + $0x1c0] sm:$0xff]  ;;  %v12070_v45 = vld [vmem:[%s15976_s6 + $0x2b8] sm:$0xff] }
 0x603   : > { %12335 = vst [vmem:[#allocation3] sm:$0xff] %v12334_v3   ;;  %v12076_v3 = vld [vmem:[%s15976_s6 + $0x2e8] sm:$0xff] }
 0x60a   : > { %v6598_v8 = vld [vmem:[#allocation3] sm:$0x1]  ;;  %v6638_v4 = vld [vmem:[#allocation3] sm:$0x2]  ;;  %v15437_v51 = vld [vmem:[#allocation3] sm:$0x4] }
 0x60b   : > { %6908 = vmatmul.bf16.vlgmr.msra.gmra.mxu2 %v6598_v8  ;;  %v6678_v42 = vrot.slane %v6638_v4, 1  ;;  %v6640_v41 = vunpack.c.l.b16 %v6638_v4  ;;  %v6928_v10 = vunpack.c.l.b16 %v15437_v51  ;;  %v6600_v57 = vunpack.c.l.b16 %v6598_v8  ;;  %v7093_v15 = vld [vmem:[#allocation3] sm:$0x8]  ;;  %v15510_v39 = vld [vmem:[#allocation3 + $0x4] sm:$0x4] }
 0x60c   : > { %7397 = vmatpush.bf16.msra.mxu2 %v12054_v23  ;;  %v6966_v17 = vrot.slane %v15437_v51, 2  ;;  %v7593_v50 = vunpack.c.l.b16 %v15510_v39  ;;  %v7095_v54 = vunpack.c.l.b16 %v7093_v15  ;;  %v7260_v19 = vld [vmem:[#allocation3 + $0x4] sm:$0x1]  ;;  %v7133_v16 = vrot.slane %v7093_v15, 3  ;;  %v12059_v4 = vld [vmem:[%s15976_s6 + $0x260] sm:$0xff] }
 0x60d   : > { %6786 = vmatmul.bf16.vlgmr.msrb.gmra.mxu3 %v6678_v42  ;;  %v6641_v29 = vpack.c.b16 %v6640_v41, %v6640_v41  ;;  %v6929_v58 = vpack.c.b16 %v6928_v10, %v6928_v10  ;;  %v6601_v48 = vpack.c.b16 %v6600_v57, %v6600_v57  ;;  %v12060_v23 = vld [vmem:[%s15976_s6 + $0x268] sm:$0xff]  ;;  %v12074_v42 = vld [vmem:[%s15976_s6 + $0x2d8] sm:$0xff]  ;;  %v12073_v10 = vld [vmem:[%s15976_s6 + $0x2d0] sm:$0xff] }
 0x60e   : > { %7233 = vmatpush.bf16.msrb.mxu3 %v12038_v38  ;;  %v7594_v47 = vpack.c.b16 %v7593_v50, %v7593_v50  ;;  %v7096_v36 = vpack.c.b16 %v7095_v54, %v7095_v54  ;;  %v12069_v38 = vld [vmem:[%s15976_s6 + $0x2b0] sm:$0xff]  ;;  %v12068_v51 = vld [vmem:[%s15976_s6 + $0x2a8] sm:$0xff]  ;;  %v12058_v41 = vld [vmem:[%s15976_s6 + $0x258] sm:$0xff] }
 0x60f   : > { %v6643_v63 = vshrl.u32 %v6641_v29, 16  ;;  %v6931_v61 = vshrl.u32 %v6929_v58, 16  ;;  %v6603_v62 = vshrl.u32 %v6601_v48, 16  ;;  %v12067_v29 = vld [vmem:[%s15976_s6 + $0x2a0] sm:$0xff]  ;;  %v7262_v58 = vunpack.c.l.b16 %v7260_v19  ;;  %v12110_v57 = vld [vmem:[%s15976_s6 + $0x3f8] sm:$0xff]  ;;  %v12100_v50 = vld [vmem:[%s15976_s6 + $0x3a8] sm:$0xff] }
 0x610   : > { %7398 = vmatpush.bf16.msra.mxu2 %v12053_v30  ;;  %v7596_v7 = vshrl.u32 %v7594_v47, 16  ;;  %v7098_v5 = vshrl.u32 %v7096_v36, 16  ;;  %v7424_v30 = vld [vmem:[#allocation3 + $0x4] sm:$0x2]  ;;  %v12083_v15 = vld [vmem:[%s15976_s6 + $0x320] sm:$0xff]  ;;  %v12082_v54 = vld [vmem:[%s15976_s6 + $0x318] sm:$0xff] }
 0x611   : > { %v6679_v27 = vrot.slane %v6643_v63, 1  ;;  %v6967_v46 = vrot.slane %v6931_v61, 2  ;;  %v7426_v2 = vunpack.c.l.b16 %v7424_v30  ;;  %v12066_v63 = vld [vmem:[%s15976_s6 + $0x298] sm:$0xff]  ;;  %v7263_v61 = vpack.c.b16 %v7262_v58, %v7262_v58  ;;  %v12123_v47 = vld [vmem:[%s15976_s6 + $0x460] sm:$0xff] }
 0x612   : > { %7234 = vmatpush.bf16.msrb.mxu3 %v12037_v53  ;;  %v7632_v13 = vrot.slane %v7596_v7, 2  ;;  %v7134_v8 = vrot.slane %v7098_v5, 3  ;;  %v12057_v53 = vld [vmem:[%s15976_s6 + $0x250] sm:$0xff]  ;;  %v12122_v36 = vld [vmem:[%s15976_s6 + $0x458] sm:$0xff] }
 0x613   : > { %6799 = vmatmul.bf16.vlgmr.msra.gmra.mxu1 %v6679_v27  ;;  %v12056_v27 = vld [vmem:[%s15976_s6 + $0x248] sm:$0xff] }
 0x614   : > { %7246 = vmatpush.bf16.msra.mxu1 %v12046_v0  ;;  %7399 = vmatpush.bf16.msra.mxu2 %v12052_v12  ;;  %v12072_v0 = vld [vmem:[%s15976_s6 + $0x2c8] sm:$0xff]  ;;  %v7427_v12 = vpack.c.b16 %v7426_v2, %v7426_v2  ;;  %v12095_v2 = vld [vmem:[%s15976_s6 + $0x380] sm:$0xff] }
 0x615   : > { %7752 = vmatmul.bf16.vlgmr.msra.gmra.mxu0 %v7632_v13  ;;  %v12104_v13 = vld [vmem:[%s15976_s6 + $0x3c8] sm:$0xff] }
 0x616   : > { %7235 = vmatpush.bf16.msrb.mxu3 %v12036_v14  ;;  %v12071_v14 = vld [vmem:[%s15976_s6 + $0x2c0] sm:$0xff] }
 0x618   : > { %7247 = vmatpush.bf16.msra.mxu1 %v12045_v40  ;;  %7400 = vmatpush.bf16.msra.mxu2 %v12051_v26  ;;  %v7429_v40 = vshrl.u32 %v7427_v12, 16  ;;  %v12055_v26 = vld [vmem:[%s15976_s6 + $0x240] sm:$0xff]  ;;  %v12158_v12 = vld [vmem:[%s15976_s6 + $0x578] sm:$0xff] }
 0x61a   : > { %7236 = vmatpush.bf16.msrb.mxu3 %v12035_v24  ;;  %v12064_v24 = vld [vmem:[%s15976_s6 + $0x288] sm:$0xff]  ;;  %v7465_v48 = vrot.slane %v7429_v40, 1  ;;  %v12157_v40 = vld [vmem:[%s15976_s6 + $0x570] sm:$0xff] }
 0x61b   : > { %7087 = vmatmul.bf16.vlgmr.msrb.gmra.mxu2 %v6967_v46  ;;  %v12085_v46 = vld [vmem:[%s15976_s6 + $0x330] sm:$0xff] }
 0x61c   : > { %7248 = vmatpush.bf16.msra.mxu1 %v12044_v21  ;;  %7401 = vmatpush.bf16.msra.mxu2 %v12050_v56  ;;  %v12109_v21 = vld [vmem:[%s15976_s6 + $0x3f0] sm:$0xff]  ;;  %v7265_v56 = vshrl.u32 %v7263_v61, 16  ;;  %v12132_v61 = vld [vmem:[%s15976_s6 + $0x4a8] sm:$0xff] }
 0x61d   : > { %6921 = vmatmul.bf16.vlgmr.msra.gmra.mxu3 %v6603_v62  ;;  %v12108_v62 = vld [vmem:[%s15976_s6 + $0x3e8] sm:$0xff] }
 0x61e   : > { %7237 = vmatpush.bf16.msrb.mxu3 %v12034_v11  ;;  %v12102_v11 = vld [vmem:[%s15976_s6 + $0x3b8] sm:$0xff] }
 0x620   : > { %7249 = vmatpush.bf16.msra.mxu1 %v12043_v33  ;;  %7402 = vmatpush.bf16.msra.mxu2 %v12049_v22  ;;  %v12126_v33 = vld [vmem:[%s15976_s6 + $0x478] sm:$0xff]  ;;  %v12084_v22 = vld [vmem:[%s15976_s6 + $0x328] sm:$0xff] }
 0x621   : > { %8075 = vmatpush.bf16.msrb.mxu0 %v12126_v33 }
 0x622   : > { %7238 = vmatpush.bf16.msrb.mxu3 %v12033_v35  ;;  %v6561_v35 = vpop.f32.mrf.mxu1 }
 0x623   : > { %7074 = vmatmul.bf16.vlgmr.msrb.gmra.mxu1 %v6966_v17  ;;  %v12101_v17 = vld [vmem:[%s15976_s6 + $0x3b0] sm:$0xff] }
 0x624   : > { %7250 = vmatpush.bf16.msra.mxu1 %v12042_v25  ;;  %7403 = vmatpush.bf16.msra.mxu2 %v12048_v34  ;;  %v6580_v25 = vpop.f32.mrf.mxu2  ;;  %v7464_v34 = vrot.slane %v7424_v30, 1 }
 0x625   : > { %8076 = vmatpush.bf16.msrb.mxu0 %v12125_v9  ;;  %v6595_v9 = vld [vmem:[#allocation3 + $0xc] sm:$0x1] }
 0x626   : > { %7239 = vmatpush.bf16.msrb.mxu3 %v12032_v31  ;;  %v6581_v31 = vadd.f32 %v6580_v25, %v6561_v35  ;;  %v12113_v35 = vld [vmem:[%s15976_s6 + $0x410] sm:$0xff] }
 0x628   : > { %7251 = vmatpush.bf16.msra.mxu1 %v12041_v28  ;;  %7404 = vmatpush.bf16.msra.mxu2 %v12047_v44  ;;  %v6587_v28 = vpack.c.bf16 %v6581_v31, %v6581_v31  ;;  %v12124_v44 = vld [vmem:[%s15976_s6 + $0x468] sm:$0xff] }
 0x629   : > { %8077 = vmatpush.bf16.msrb.mxu0 %v12124_v44 }
 0x62a   : > { %7240 = vmatpush.bf16.msrb.mxu3 %v12031_v1  ;;  %6591 = vst [vmem:[#allocation3 + $0x8] sm:$0xf] %v6587_v28  ;;  %v15648_v1 = vld [vmem:[#allocation3 + $0x4] sm:$0x8] }
 0x62b   : > { %7405 = vmatmul.bf16.vlgmr.msra.gmra.mxu2 %v7260_v19  ;;  %v7760_v7 = vunpack.c.l.b16 %v15648_v1  ;;  %v12098_v19 = vld [vmem:[%s15976_s6 + $0x398] sm:$0xff]  ;;  %v12112_v28 = vld [vmem:[%s15976_s6 + $0x408] sm:$0xff] }
 0x62c   : > { %7577 = vmatpush.bf16.msrb.mxu2 %v12078_v43  ;;  %7252 = vmatpush.bf16.msra.mxu1 %v12040_v32  ;;  %v12106_v43 = vld [vmem:[%s15976_s6 + $0x3d8] sm:$0xff]  ;;  %v12105_v32 = vld [vmem:[%s15976_s6 + $0x3d0] sm:$0xff] }
 0x62d   : > { %7241 = vmatmul.bf16.vlgmr.msrb.gmra.mxu3 %v7133_v16  ;;  %8078 = vmatpush.bf16.msrb.mxu0 %v12123_v47  ;;  %v12080_v16 = vld [vmem:[%s15976_s6 + $0x308] sm:$0xff]  ;;  %v12111_v47 = vld [vmem:[%s15976_s6 + $0x400] sm:$0xff] }
 0x62e   : > { %7410 = vmatpush.bf16.msra.mxu3 %v12062_v18  ;;  %v12099_v18 = vld [vmem:[%s15976_s6 + $0x3a0] sm:$0xff] }
 0x630   : > { %7578 = vmatpush.bf16.msrb.mxu2 %v12077_v37  ;;  %7253 = vmatpush.bf16.msra.mxu1 %v12039_v49  ;;  %v12081_v37 = vld [vmem:[%s15976_s6 + $0x310] sm:$0xff] }
 0x631   : > { %8079 = vmatpush.bf16.msrb.mxu0 %v12122_v36  ;;  %v12121_v49 = vld [vmem:[%s15976_s6 + $0x450] sm:$0xff]  ;;  %v12152_v36 = vld [vmem:[%s15976_s6 + $0x548] sm:$0xff] }
 0x632   : > { %7411 = vmatpush.bf16.msra.mxu3 %v12061_v60  ;;  %v7761_v60 = vpack.c.b16 %v7760_v7, %v7760_v7  ;;  %v12128_v7 = vld [vmem:[%s15976_s6 + $0x488] sm:$0xff] }
 0x633   : > { %7254 = vmatmul.bf16.vlgmr.msra.gmra.mxu1 %v7134_v8  ;;  %v12096_v8 = vld [vmem:[%s15976_s6 + $0x388] sm:$0xff] }
 0x634   : > { %7564 = vmatpush.bf16.msrb.mxu1 %v12070_v45  ;;  %7579 = vmatpush.bf16.msrb.mxu2 %v12076_v3  ;;  %v12097_v45 = vld [vmem:[%s15976_s6 + $0x390] sm:$0xff]  ;;  %v12103_v3 = vld [vmem:[%s15976_s6 + $0x3c0] sm:$0xff]  ;;  %v7763_v5 = vshrl.u32 %v7761_v60, 16 }
 0x635   : > { %8080 = vmatpush.bf16.msrb.mxu0 %v12121_v49  ;;  %v12127_v60 = vld [vmem:[%s15976_s6 + $0x480] sm:$0xff]  ;;  %v12172_v49 = vld [vmem:[%s15976_s6 + $0x5e8] sm:$0xff] }
 0x636   : > { %7412 = vmatpush.bf16.msra.mxu3 %v12060_v23  ;;  %v12142_v23 = vld [vmem:[%s15976_s6 + $0x4f8] sm:$0xff] }
 0x638   : > { %7565 = vmatpush.bf16.msrb.mxu1 %v12069_v38  ;;  %7580 = vmatpush.bf16.msrb.mxu2 %v12075_v52  ;;  %v12079_v38 = vld [vmem:[%s15976_s6 + $0x300] sm:$0xff]  ;;  %v12118_v52 = vld [vmem:[%s15976_s6 + $0x438] sm:$0xff] }
 0x63a   : > { %7413 = vmatpush.bf16.msra.mxu3 %v12059_v4  ;;  %v12120_v4 = vld [vmem:[%s15976_s6 + $0x448] sm:$0xff] }
 0x63b   : > { %8081 = vmatpush.bf16.msrb.mxu0 %v12120_v4 }
 0x63c   : > { %7566 = vmatpush.bf16.msrb.mxu1 %v12068_v51  ;;  %7581 = vmatpush.bf16.msrb.mxu2 %v12074_v42  ;;  %v15699_v51 = vld [vmem:[#allocation3 + $0x8] sm:$0x1]  ;;  %v7799_v42 = vrot.slane %v7763_v5, 3 }
 0x63d   : > { %v7927_v30 = vunpack.c.l.b16 %v15699_v51  ;;  %v12148_v5 = vld [vmem:[%s15976_s6 + $0x528] sm:$0xff] }
 0x63e   : > { %7414 = vmatpush.bf16.msra.mxu3 %v12058_v41  ;;  %v12141_v41 = vld [vmem:[%s15976_s6 + $0x4f0] sm:$0xff] }
 0x640   : > { %7567 = vmatpush.bf16.msrb.mxu1 %v12067_v29  ;;  %7582 = vmatpush.bf16.msrb.mxu2 %v12073_v10  ;;  %v7631_v29 = vrot.slane %v15510_v39, 2  ;;  %v12117_v10 = vld [vmem:[%s15976_s6 + $0x430] sm:$0xff]  ;;  %v12134_v39 = vld [vmem:[%s15976_s6 + $0x4b8] sm:$0xff] }
 0x642   : > { %7415 = vmatpush.bf16.msra.mxu3 %v12057_v53  ;;  %v7928_v53 = vpack.c.b16 %v7927_v30, %v7927_v30  ;;  %v12170_v30 = vld [vmem:[%s15976_s6 + $0x5d8] sm:$0xff] }
 0x644   : > { %7568 = vmatpush.bf16.msrb.mxu1 %v12066_v63  ;;  %7583 = vmatpush.bf16.msrb.mxu2 %v12072_v0  ;;  %v12119_v63 = vld [vmem:[%s15976_s6 + $0x440] sm:$0xff]  ;;  %v12140_v0 = vld [vmem:[%s15976_s6 + $0x4e8] sm:$0xff]  ;;  %v7930_v58 = vshrl.u32 %v7928_v53, 16 }
 0x645   : > { %8082 = vmatpush.bf16.msrb.mxu0 %v12119_v63  ;;  %v12163_v63 = vld [vmem:[%s15976_s6 + $0x5a0] sm:$0xff] }
 0x646   : > { %7416 = vmatpush.bf16.msra.mxu3 %v12056_v27  ;;  %v12116_v27 = vld [vmem:[%s15976_s6 + $0x428] sm:$0xff] }
 0x648   : > { %7569 = vmatpush.bf16.msrb.mxu1 %v12065_v55  ;;  %7584 = vmatpush.bf16.msrb.mxu2 %v12071_v14  ;;  %v7798_v55 = vrot.slane %v15648_v1, 3  ;;  %v12133_v14 = vld [vmem:[%s15976_s6 + $0x4b0] sm:$0xff] }
 0x649   : > { %8409 = vmatpush.bf16.msra.mxu0 %v12158_v12  ;;  %v12153_v1 = vld [vmem:[%s15976_s6 + $0x550] sm:$0xff] }
 0x64a   : > { %7417 = vmatpush.bf16.msra.mxu3 %v12055_v26  ;;  %v12115_v26 = vld [vmem:[%s15976_s6 + $0x420] sm:$0xff]  ;;  %8083 = vmatmul.bf16.vlgmr.msrb.gmra.mxu0 %v7930_v58  ;;  %v12145_v58 = vld [vmem:[%s15976_s6 + $0x510] sm:$0xff] }
 0x64b   : > { %7585 = vmatmul.bf16.vlgmr.msrb.gmra.mxu2 %v7465_v48  ;;  %v12156_v48 = vld [vmem:[%s15976_s6 + $0x568] sm:$0xff] }
 0x64c   : > { %7911 = vmatpush.bf16.msra.mxu2 %v12110_v57  ;;  %7570 = vmatpush.bf16.msrb.mxu1 %v12064_v24  ;;  %v12139_v57 = vld [vmem:[%s15976_s6 + $0x4e0] sm:$0xff]  ;;  %v15746_v24 = vld [vmem:[#allocation3 + $0x8] sm:$0x2] }
 0x64d   : > { %7418 = vmatmul.bf16.vlgmr.msra.gmra.mxu3 %v7265_v56  ;;  %8410 = vmatpush.bf16.msra.mxu0 %v12157_v40  ;;  %v8091_v56 = vunpack.c.l.b16 %v15746_v24  ;;  %v12168_v40 = vld [vmem:[%s15976_s6 + $0x5c8] sm:$0xff] }
 0x64e   : > { %7731 = vmatpush.bf16.msrb.mxu3 %v12086_v20  ;;  %v12138_v20 = vld [vmem:[%s15976_s6 + $0x4d8] sm:$0xff] }
 0x650   : > { %7912 = vmatpush.bf16.msra.mxu2 %v12109_v21  ;;  %7571 = vmatpush.bf16.msrb.mxu1 %v12063_v59  ;;  %v12114_v21 = vld [vmem:[%s15976_s6 + $0x418] sm:$0xff]  ;;  %v6563_v59 = vpop.f32.mrf.mxu1 }
 0x651   : > { %8411 = vmatpush.bf16.msra.mxu0 %v12156_v48  ;;  %v12167_v48 = vld [vmem:[%s15976_s6 + $0x5c0] sm:$0xff] }
 0x652   : > { %7732 = vmatpush.bf16.msrb.mxu3 %v12085_v46  ;;  %v6582_v46 = vpop.f32.mrf.mxu2 }
 0x653   : > { %7572 = vmatmul.bf16.vlgmr.msrb.gmra.mxu1 %v7464_v34  ;;  %v6583_v33 = vadd.f32 %v6582_v46, %v6563_v59  ;;  %v8092_v34 = vpack.c.b16 %v8091_v56, %v8091_v56  ;;  %v12143_v46 = vld [vmem:[%s15976_s6 + $0x500] sm:$0xff]  ;;  %v12182_v59 = vld [vmem:[%s15976_s6 + $0x638] sm:$0xff] }
 0x654   : > { %7898 = vmatpush.bf16.msra.mxu1 %v12102_v11  ;;  %7913 = vmatpush.bf16.msra.mxu2 %v12108_v62  ;;  %v12131_v11 = vld [vmem:[%s15976_s6 + $0x4a0] sm:$0xff]  ;;  %v12137_v62 = vld [vmem:[%s15976_s6 + $0x4d0] sm:$0xff] }
 0x655   : > { %v6588_v25 = vpack.c.bf16 %v6583_v33, %v6583_v33  ;;  %v8094_v44 = vshrl.u32 %v8092_v34, 16 }
 0x656   : > { %7733 = vmatpush.bf16.msrb.mxu3 %v12084_v22  ;;  %v12155_v22 = vld [vmem:[%s15976_s6 + $0x560] sm:$0xff] }
 0x657   : > { %v6596_v31 = vsel %vm6594_vm12, %v6588_v25, %v6595_v9  ;;  %8412 = vmatpush.bf16.msra.mxu0 %v12155_v22  ;;  %v12181_v9 = vld [vmem:[%s15976_s6 + $0x630] sm:$0xff] }
 0x658   : > { %7899 = vmatpush.bf16.msra.mxu1 %v12101_v17  ;;  %7914 = vmatpush.bf16.msra.mxu2 %v12107_v6  ;;  %v12130_v17 = vld [vmem:[%s15976_s6 + $0x498] sm:$0xff]  ;;  %v12136_v6 = vld [vmem:[%s15976_s6 + $0x4c8] sm:$0xff]  ;;  %6597 = vst [vmem:[#allocation3 + $0xc] sm:$0x1] %v6596_v31 }
 0x659   : > { %v12180_v31 = vld [vmem:[%s15976_s6 + $0x628] sm:$0xff] }
 0x65a   : > { %7734 = vmatpush.bf16.msrb.mxu3 %v12083_v15  ;;  %v12154_v15 = vld [vmem:[%s15976_s6 + $0x558] sm:$0xff] }
 0x65b   : > { %8413 = vmatpush.bf16.msra.mxu0 %v12154_v15 }
 0x65c   : > { %7900 = vmatpush.bf16.msra.mxu1 %v12100_v50  ;;  %7915 = vmatpush.bf16.msra.mxu2 %v12106_v43  ;;  %v12129_v50 = vld [vmem:[%s15976_s6 + $0x490] sm:$0xff]  ;;  %v12135_v43 = vld [vmem:[%s15976_s6 + $0x4c0] sm:$0xff] }
 0x65e   : > { %7735 = vmatpush.bf16.msrb.mxu3 %v12082_v54  ;;  %v12174_v54 = vld [vmem:[%s15976_s6 + $0x5f8] sm:$0xff] }
 0x65f   : > { %8414 = vmatpush.bf16.msra.mxu0 %v12153_v1 }
 0x660   : > { %7901 = vmatpush.bf16.msra.mxu1 %v12099_v18  ;;  %7916 = vmatpush.bf16.msra.mxu2 %v12105_v32  ;;  %v12150_v18 = vld [vmem:[%s15976_s6 + $0x538] sm:$0xff]  ;;  %v8130_v32 = vrot.slane %v8094_v44, 1 }
 0x662   : > { %7736 = vmatpush.bf16.msrb.mxu3 %v12081_v37  ;;  %v12173_v37 = vld [vmem:[%s15976_s6 + $0x5f0] sm:$0xff] }
 0x663   : > { %8415 = vmatpush.bf16.msra.mxu0 %v12152_v36 }
 0x664   : > { %7902 = vmatpush.bf16.msra.mxu1 %v12098_v19  ;;  %7917 = vmatpush.bf16.msra.mxu2 %v12104_v13  ;;  %v15806_v19 = vld [vmem:[#allocation3 + $0x8] sm:$0x4]  ;;  %v12149_v13 = vld [vmem:[%s15976_s6 + $0x530] sm:$0xff] }
 0x665   : > { %v8296_v33 = vrot.slane %v15806_v19, 2 }
 0x666   : > { %7737 = vmatpush.bf16.msrb.mxu3 %v12080_v16  ;;  %v12166_v16 = vld [vmem:[%s15976_s6 + $0x5b8] sm:$0xff] }
 0x668   : > { %7903 = vmatpush.bf16.msra.mxu1 %v12097_v45  ;;  %7918 = vmatpush.bf16.msra.mxu2 %v12103_v3  ;;  %v8258_v45 = vunpack.c.l.b16 %v15806_v19  ;;  %v12151_v3 = vld [vmem:[%s15976_s6 + $0x540] sm:$0xff] }
 0x669   : > { %8416 = vmatpush.bf16.msra.mxu0 %v12151_v3 }
 0x66a   : > { %7738 = vmatpush.bf16.msrb.mxu3 %v12079_v38  ;;  %v8259_v38 = vpack.c.b16 %v8258_v45, %v8258_v45 }
 0x66b   : > { %7919 = vmatmul.bf16.vlgmr.msra.gmra.mxu2 %v7799_v42 }
 0x66c   : > { %8242 = vmatpush.bf16.msrb.mxu2 %v12142_v23  ;;  %7904 = vmatpush.bf16.msra.mxu1 %v12096_v8  ;;  %v8129_v23 = vrot.slane %v15746_v24, 1  ;;  %v12171_v8 = vld [vmem:[%s15976_s6 + $0x5e0] sm:$0xff]  ;;  %v8261_v4 = vshrl.u32 %v8259_v38, 16  ;;  %v12161_v24 = vld [vmem:[%s15976_s6 + $0x590] sm:$0xff] }
 0x66d   : > { %7739 = vmatmul.bf16.vlgmr.msrb.gmra.mxu3 %v7631_v29  ;;  %v8423_v29 = vld [vmem:[#allocation3 + $0x8] sm:$0x8] }
 0x66e   : > { %8062 = vmatpush.bf16.msra.mxu3 %v12118_v52  ;;  %v12165_v52 = vld [vmem:[%s15976_s6 + $0x5b0] sm:$0xff]  ;;  %v8297_v42 = vrot.slane %v8261_v4, 2  ;;  %v8425_v53 = vunpack.c.l.b16 %v8423_v29 }
 0x670   : > { %8243 = vmatpush.bf16.msrb.mxu2 %v12141_v41  ;;  %7905 = vmatpush.bf16.msra.mxu1 %v12095_v2  ;;  %v12164_v41 = vld [vmem:[%s15976_s6 + $0x5a8] sm:$0xff] }
 0x671   : > { %8417 = vmatmul.bf16.vlgmr.msra.gmra.mxu0 %v8297_v42 }
 0x672   : > { %8063 = vmatpush.bf16.msra.mxu3 %v12117_v10  ;;  %v12146_v10 = vld [vmem:[%s15976_s6 + $0x518] sm:$0xff] }
 0x673   : > { %7906 = vmatmul.bf16.vlgmr.msra.gmra.mxu1 %v7798_v55  ;;  %v8426_v55 = vpack.c.b16 %v8425_v53, %v8425_v53 }
 0x674   : > { %8229 = vmatpush.bf16.msrb.mxu1 %v12134_v39  ;;  %8244 = vmatpush.bf16.msrb.mxu2 %v12140_v0  ;;  %v12169_v39 = vld [vmem:[%s15976_s6 + $0x5d0] sm:$0xff] }
 0x676   : > { %8064 = vmatpush.bf16.msra.mxu3 %v12116_v27 }
 0x678   : > { %8230 = vmatpush.bf16.msrb.mxu1 %v12133_v14  ;;  %8245 = vmatpush.bf16.msrb.mxu2 %v12139_v57  ;;  %v12162_v57 = vld [vmem:[%s15976_s6 + $0x598] sm:$0xff] }
 0x67a   : > { %8065 = vmatpush.bf16.msra.mxu3 %v12115_v26  ;;  %v12144_v26 = vld [vmem:[%s15976_s6 + $0x508] sm:$0xff] }
 0x67c   : > { %8231 = vmatpush.bf16.msrb.mxu1 %v12132_v61  ;;  %8246 = vmatpush.bf16.msrb.mxu2 %v12138_v20  ;;  %v8428_v20 = vshrl.u32 %v8426_v55, 16 }
 0x67e   : > { %8066 = vmatpush.bf16.msra.mxu3 %v12114_v21 }
 0x680   : > { %8232 = vmatpush.bf16.msrb.mxu1 %v12131_v11  ;;  %8247 = vmatpush.bf16.msrb.mxu2 %v12137_v62  ;;  %v8464_v11 = vrot.slane %v8428_v20, 3  ;;  %v12160_v62 = vld [vmem:[%s15976_s6 + $0x588] sm:$0xff]  ;;  %v12190_v20 = vld [vmem:[%s15978_s8 + $0x38] sm:$0xff] }
 0x681   : > { %8739 = vmatpush.bf16.msrb.mxu0 %v12190_v20 }
 0x682   : > { %8067 = vmatpush.bf16.msra.mxu3 %v12113_v35  ;;  %v12159_v35 = vld [vmem:[%s15976_s6 + $0x580] sm:$0xff] }
 0x684   : > { %8233 = vmatpush.bf16.msrb.mxu1 %v12130_v17  ;;  %8248 = vmatpush.bf16.msrb.mxu2 %v12136_v6 }
 0x686   : > { %8068 = vmatpush.bf16.msra.mxu3 %v12112_v28  ;;  %v8463_v28 = vrot.slane %v8423_v29, 3 }
 0x688   : > { %8234 = vmatpush.bf16.msrb.mxu1 %v12129_v50  ;;  %8249 = vmatpush.bf16.msrb.mxu2 %v12135_v43  ;;  %v12179_v50 = vld [vmem:[%s15976_s6 + $0x620] sm:$0xff] }
 0x68a   : > { %8069 = vmatpush.bf16.msra.mxu3 %v12111_v47  ;;  %v12178_v47 = vld [vmem:[%s15976_s6 + $0x618] sm:$0xff] }
 0x68b   : > { %8250 = vmatmul.bf16.vlgmr.msrb.gmra.mxu2 %v8130_v32  ;;  %v12177_v32 = vld [vmem:[%s15976_s6 + $0x610] sm:$0xff] }
 0x68c   : > { %8576 = vmatpush.bf16.msra.mxu2 %v12174_v54  ;;  %8235 = vmatpush.bf16.msrb.mxu1 %v12128_v7 }
 0x68d   : > { %8070 = vmatmul.bf16.vlgmr.msra.gmra.mxu3 %v15699_v51  ;;  %v12147_v51 = vld [vmem:[%s15976_s6 + $0x520] sm:$0xff] }
 0x68e   : > { %8396 = vmatpush.bf16.msrb.mxu3 %v12150_v18  ;;  %v6909_v2 = vpop.f32.mrf.mxu2 }
 0x690   : > { %8577 = vmatpush.bf16.msra.mxu2 %v12173_v37  ;;  %8236 = vmatpush.bf16.msrb.mxu1 %v12127_v60  ;;  %v6787_v0 = vpop.f32.mrf.mxu3  ;;  %v6800_v12 = vpop.f32.mrf.mxu1 }
 0x691   : > { %v6801_v27 = vadd.f32 %v6800_v12, %v6787_v0 }
 0x692   : > { %8397 = vmatpush.bf16.msrb.mxu3 %v12149_v13  ;;  %v7753_v1 = vpop.f32.mrf.mxu0  ;;  %v12176_v13 = vld [vmem:[%s15976_s6 + $0x608] sm:$0xff] }
 0x693   : > { %8237 = vmatmul.bf16.vlgmr.msrb.gmra.mxu1 %v8129_v23  ;;  %v6910_v14 = vadd.f32 %v6909_v2, %v6801_v27 }
 0x694   : > { %8563 = vmatpush.bf16.msra.mxu1 %v12166_v16  ;;  %8578 = vmatpush.bf16.msra.mxu2 %v12172_v49  ;;  %v12175_v49 = vld [vmem:[%s15976_s6 + $0x600] sm:$0xff] }
 0x696   : > { %8398 = vmatpush.bf16.msrb.mxu3 %v12148_v5  ;;  %v6911_v61 = vpop.f32.mrf.mxu2  ;;  %v8590_v5 = vld [vmem:[#allocation3 + $0xc] sm:$0x1] }
 0x698   : > { %8564 = vmatpush.bf16.msra.mxu1 %v12165_v52  ;;  %8579 = vmatpush.bf16.msra.mxu2 %v12171_v8  ;;  %v6789_v21 = vpop.f32.mrf.mxu3  ;;  %v6802_v56 = vpop.f32.mrf.mxu1 }
 0x69a   : > { %8399 = vmatpush.bf16.msrb.mxu3 %v12147_v51  ;;  %v7755_v19 = vpop.f32.mrf.mxu0 }
 0x69c   : > { %8565 = vmatpush.bf16.msra.mxu1 %v12164_v41  ;;  %8580 = vmatpush.bf16.msra.mxu2 %v12170_v30 }
 0x69e   : > { %8400 = vmatpush.bf16.msrb.mxu3 %v12146_v10  ;;  %v7088_v22 = vpop.f32.mrf.mxu2 }
 0x6a0   : > { %8566 = vmatpush.bf16.msra.mxu1 %v12163_v63  ;;  %8581 = vmatpush.bf16.msra.mxu2 %v12169_v39  ;;  %v6922_v25 = vpop.f32.mrf.mxu3  ;;  %v7075_v34 = vpop.f32.mrf.mxu1 }
 0x6a1   : > { %v6923_v17 = vadd.f32 %v6922_v25, %v6910_v14  ;;  %v7089_v6 = vadd.f32 %v7088_v22, %v7075_v34 }
 0x6a2   : > { %8401 = vmatpush.bf16.msrb.mxu3 %v12145_v58 }
 0x6a3   : > { %v7092_v15 = vadd.f32 %v7089_v6, %v6923_v17  ;;  %v12184_v6 = vld [vmem:[%s15978_s8 + $0x8] sm:$0xff] }
 0x6a4   : > { %8567 = vmatpush.bf16.msra.mxu1 %v12162_v57  ;;  %8582 = vmatpush.bf16.msra.mxu2 %v12168_v40 }
 0x6a6   : > { %8402 = vmatpush.bf16.msrb.mxu3 %v12144_v26  ;;  %v7090_v44 = vpop.f32.mrf.mxu2 }
 0x6a8   : > { %8568 = vmatpush.bf16.msra.mxu1 %v12161_v24  ;;  %8583 = vmatpush.bf16.msra.mxu2 %v12167_v48  ;;  %v6924_v43 = vpop.f32.mrf.mxu3  ;;  %v7077_v54 = vpop.f32.mrf.mxu1  ;;  %v12189_v48 = vld [vmem:[%s15978_s8 + $0x30] sm:$0xff] }
 0x6a9   : > { %8740 = vmatpush.bf16.msrb.mxu0 %v12189_v48  ;;  %v12197_v43 = vld [vmem:[%s15980_s10 + $0x30] sm:$0xff]  ;;  %v12196_v54 = vld [vmem:[%s15980_s10 + $0x28] sm:$0xff] }
 0x6aa   : > { %8403 = vmatpush.bf16.msrb.mxu3 %v12143_v46 }
 0x6ab   : > { %8584 = vmatmul.bf16.vlgmr.msra.gmra.mxu2 %v8464_v11 }
 0x6ac   : > { %8569 = vmatpush.bf16.msra.mxu1 %v12160_v62 }
 0x6ad   : > { %8404 = vmatmul.bf16.vlgmr.msrb.gmra.mxu3 %v8296_v33  ;;  %v12187_v33 = vld [vmem:[%s15978_s8 + $0x20] sm:$0xff] }
 0x6ae   : > { %8656 = vmatpush.bf16.msra.mxu3 %v12182_v59  ;;  %v7406_v18 = vpop.f32.mrf.mxu2  ;;  %v12188_v59 = vld [vmem:[%s15978_s8 + $0x28] sm:$0xff] }
 0x6af   : > { %8741 = vmatpush.bf16.msrb.mxu0 %v12188_v59 }
 0x6b0   : > { %8570 = vmatpush.bf16.msra.mxu1 %v12159_v35  ;;  %v7242_v7 = vpop.f32.mrf.mxu3  ;;  %v7255_v37 = vpop.f32.mrf.mxu1  ;;  %v12185_v35 = vld [vmem:[%s15978_s8 + $0x10] sm:$0xff] }
 0x6b1   : > { %v7256_v36 = vadd.f32 %v7255_v37, %v7242_v7 }
 0x6b2   : > { %8657 = vmatpush.bf16.msra.mxu3 %v12181_v9  ;;  %v12186_v9 = vld [vmem:[%s15978_s8 + $0x18] sm:$0xff] }
 0x6b3   : > { %8571 = vmatmul.bf16.vlgmr.msra.gmra.mxu1 %v8463_v28  ;;  %v7259_v60 = vadd.f32 %v7256_v36, %v7092_v15  ;;  %8742 = vmatpush.bf16.msrb.mxu0 %v12187_v33  ;;  %v12198_v28 = vld [vmem:[%s15980_s10 + $0x38] sm:$0xff]  ;;  %v12193_v36 = vld [vmem:[%s15980_s10 + $0x10] sm:$0xff] }
 0x6b4   : > { %8819 = vmatpush.bf16.msrb.mxu1 %v12198_v28 }
 0x6b6   : > { %8658 = vmatpush.bf16.msra.mxu3 %v12180_v31  ;;  %v7408_v16 = vpop.f32.mrf.mxu2  ;;  %v12183_v31 = vld [vmem:[%s15978_s8] sm:$0xff] }
 0x6b7   : > { %8743 = vmatpush.bf16.msrb.mxu0 %v12186_v9  ;;  %v8670_v16 = vld [vmem:[%s15977_s7] sm:$0x1] }
 0x6b8   : > { %v7244_v45 = vpop.f32.mrf.mxu3  ;;  %v7257_v3 = vpop.f32.mrf.mxu1  ;;  %8820 = vmatpush.bf16.msrb.mxu1 %v12197_v43 }
 0x6ba   : > { %8659 = vmatpush.bf16.msra.mxu3 %v12179_v50 }
 0x6bb   : > { %8744 = vmatpush.bf16.msrb.mxu0 %v12185_v35 }
 0x6bc   : > { %8821 = vmatpush.bf16.msrb.mxu1 %v12196_v54 }
 0x6be   : > { %8660 = vmatpush.bf16.msra.mxu3 %v12178_v47 }
 0x6bf   : > { %8745 = vmatpush.bf16.msrb.mxu0 %v12184_v6 }
 0x6c2   : > { %8661 = vmatpush.bf16.msra.mxu3 %v12177_v32  ;;  %v12194_v32 = vld [vmem:[%s15980_s10 + $0x18] sm:$0xff] }
 0x6c3   : > { %8746 = vmatpush.bf16.msrb.mxu0 %v12183_v31 }
 0x6c6   : > { %8662 = vmatpush.bf16.msra.mxu3 %v12176_v13 }
 0x6c7   : > { %v8084_v0 = vpop.f32.mrf.mxu0 }
 0x6ca   : > { %8663 = vmatpush.bf16.msra.mxu3 %v12175_v49 }
 0x6cd   : > { %8664 = vmatmul.bf16.vlgmr.msra.gmra.mxu3 %v8590_v5 }
 0x6ce   : > { %v7586_v23 = vpop.f32.mrf.mxu2 }
 0x6cf   : > { %v8086_v57 = vpop.f32.mrf.mxu0 }
 0x6d0   : > { %v7419_v38 = vpop.f32.mrf.mxu3  ;;  %v7573_v52 = vpop.f32.mrf.mxu1 }
 0x6d1   : > { %v7420_v8 = vadd.f32 %v7419_v38, %v7406_v18  ;;  %v7587_v4 = vadd.f32 %v7586_v23, %v7573_v52  ;;  %v12192_v38 = vld [vmem:[%s15980_s10 + $0x8] sm:$0xff]  ;;  %v12191_v52 = vld [vmem:[%s15980_s10] sm:$0xff] }
 0x6d3   : > { %v7423_v51 = vadd.f32 %v7420_v8, %v7259_v60  ;;  %v8690_v8 = vld [vmem:[%s15979_s9] sm:$0x1] }
 0x6d5   : > { %v7590_v42 = vadd.f32 %v7587_v4, %v7423_v51 }
 0x6d6   : > { %v7588_v41 = vpop.f32.mrf.mxu2 }
 0x6d8   : > { %v7421_v30 = vpop.f32.mrf.mxu3  ;;  %v7575_v29 = vpop.f32.mrf.mxu1 }
 0x6d9   : > { %v8770_v29 = vld [vmem:[%s15981_s11] sm:$0x1] }
 0x6ee   : > { %v7920_v10 = vpop.f32.mrf.mxu2  ;;  %v8418_v56 = vpop.f32.mrf.mxu0 }
 0x6f0   : > { %v7740_v2 = vpop.f32.mrf.mxu3  ;;  %v7907_v53 = vpop.f32.mrf.mxu1 }
 0x6f1   : > { %v7754_v63 = vadd.f32 %v7753_v1, %v7740_v2  ;;  %v7921_v39 = vadd.f32 %v7920_v10, %v7907_v53  ;;  %v12195_v1 = vld [vmem:[%s15980_s10 + $0x20] sm:$0xff] }
 0x6f2   : > { %8822 = vmatpush.bf16.msrb.mxu1 %v12195_v1 }
 0x6f3   : > { %v7757_v12 = vadd.f32 %v7754_v63, %v7590_v42 }
 0x6f5   : > { %v7924_v27 = vadd.f32 %v7921_v39, %v7757_v12 }
 0x6f6   : > { %v7922_v58 = vpop.f32.mrf.mxu2  ;;  %v8420_v22 = vpop.f32.mrf.mxu0  ;;  %8823 = vmatpush.bf16.msrb.mxu1 %v12194_v32 }
 0x6f8   : > { %v7742_v55 = vpop.f32.mrf.mxu3  ;;  %v7909_v14 = vpop.f32.mrf.mxu1 }
 0x6fa   : > { %8824 = vmatpush.bf16.msrb.mxu1 %v12193_v36 }
 0x6fe   : > { %8825 = vmatpush.bf16.msrb.mxu1 %v12192_v38 }
 0x702   : > { %8826 = vmatpush.bf16.msrb.mxu1 %v12191_v52 }
 0x70e   : > { %v8251_v40 = vpop.f32.mrf.mxu2 }
 0x710   : > { %v8071_v26 = vpop.f32.mrf.mxu3  ;;  %v8238_v61 = vpop.f32.mrf.mxu1 }
 0x711   : > { %v8085_v24 = vadd.f32 %v8084_v0, %v8071_v26  ;;  %v8252_v47 = vadd.f32 %v8251_v40, %v8238_v61 }
 0x713   : > { %v8088_v21 = vadd.f32 %v8085_v24, %v7924_v27 }
 0x715   : > { %v8255_v7 = vadd.f32 %v8252_v47, %v8088_v21 }
 0x716   : > { %v8253_v46 = vpop.f32.mrf.mxu2 }
 0x718   : > { %v8073_v11 = vpop.f32.mrf.mxu3  ;;  %v8240_v62 = vpop.f32.mrf.mxu1 }
 0x72e   : > { %v8585_v25 = vpop.f32.mrf.mxu2 }
 0x730   : > { %v8405_v34 = vpop.f32.mrf.mxu3  ;;  %v8572_v17 = vpop.f32.mrf.mxu1 }
 0x731   : > { %v8419_v18 = vadd.f32 %v8418_v56, %v8405_v34  ;;  %v8586_v19 = vadd.f32 %v8585_v25, %v8572_v17 }
 0x733   : > { %v8422_v37 = vadd.f32 %v8419_v18, %v8255_v7 }
 0x735   : > { %v8589_v13 = vadd.f32 %v8586_v19, %v8422_v37 }
 0x736   : > { %v8587_v15 = vpop.f32.mrf.mxu2 }
 0x738   : > { %v8407_v44 = vpop.f32.mrf.mxu3  ;;  %v8574_v50 = vpop.f32.mrf.mxu1 }
 0x750   : > { %v8665_v60 = vpop.f32.mrf.mxu3 }
 0x751   : > { %v8669_v49 = vadd.f32 %v8665_v60, %v8589_v13 }
 0x753   : > { %v8671_v45 = vadd.f32 %v8670_v16, %v8669_v49 }
 0x755   : > { %v8672_v3 = vmax.f32 %v8671_v45, 0.0 }
 0x757   : > { %v8673_v5 = vpack.c.bf16 %v8672_v3, %v8672_v3 }
 0x758   : > { %v8667_v23 = vpop.f32.mrf.mxu3 }
 0x759   : > { %8747 = vmatmul.bf16.vlgmr.msrb.gmra.mxu0 %v8673_v5 }
 0x7d6   : > { %v8748_v4 = vpop.f32.mrf.mxu0 }
 0x7d7   : > { %v8749_v51 = vadd.f32 %v8748_v4, %v8690_v8 }
 0x7d9   : > { %v8752_v42 = vmax.f32 %v8749_v51, 0.0 }
 0x7db   : > { %v8753_v41 = vpack.c.bf16 %v8752_v42, %v8752_v42 }
 0x7dd   : > { %8827 = vmatmul.bf16.vlgmr.msrb.gmra.mxu1 %v8753_v41 }
 0x7de   : > { %v8750_v30 = vpop.f32.mrf.mxu0 }
 0x85a   : > { %v8828_v10 = vpop.f32.mrf.mxu1 }
 0x85b   : > { %v8829_v2 = vadd.f32 %v8828_v10, %v8770_v29 }
 0x85d   : > { %v8832_v53 = vperm.slane %v8829_v2, 0 }
 0x85f   : > { %8833 = vst [vmem:[%s413_s13] sm:$0xff] %v8832_v53 }
 0x862   : > { %v8830_v63 = vpop.f32.mrf.mxu1 }
 0x863 PF: > { %s22_s21 = sadd.s32 1, %s12510_s21  }
 0x864   : > { %p19_p5 = scmp.ge.s32.totalorder %s22_s21, 4  }
 0x866   :  { %21 = sbr.rel (!%p19_p5) target bundleno = 1 (0x1), region = 122 }

</bundles_post_ra>
